<compile_context>
chip_gen: v5e
topology: v5e:2x2
jax: 0.10.0
libtpu: 0.0.40
codegen_flags: <defaults>
</compile_context>

<pallas_src>
import functools
import numpy as np

import jax
import jax.numpy as jnp
from jax import lax
from jax.experimental import pallas as pl
from jax.experimental.pallas import tpu as pltpu

DTYPE = jnp.float32


# ------------------- bilinear interpolation matrices (host-side) ------------

def _bilinear_matrix_np(out_size, in_size):
    """Row-stochastic matrix reproducing F.interpolate(bilinear, align_corners=False)."""
    A = np.zeros((out_size, in_size), dtype=np.float32)
    if out_size == in_size:
        np.fill_diagonal(A, 1.0)
        return A
    scale = in_size / out_size
    for i in range(out_size):
        src = max((i + 0.5) * scale - 0.5, 0.0)
        lo = min(int(np.floor(src)), in_size - 1)
        hi = min(lo + 1, in_size - 1)
        frac = src - lo
        A[i, lo] += 1.0 - frac
        A[i, hi] += frac
    return A


# --------------------------- fused base network ------------------------------

def _base_kernel(x_ref, ws_ref, bs_ref, wh_ref, bh_ref,
                 o1_ref, o2_ref, o3_ref, o4_ref, *, ncls, cf, stride):
    x = x_ref[0]                                                     # (Cin, HW)
    feat = jnp.dot(ws_ref[...], x, preferred_element_type=jnp.float32) + bs_ref[...]
    feat = jnp.maximum(feat, 0.0)                                    # (hidden, HW) stays in VMEM
    heads = jnp.dot(wh_ref[...], feat, preferred_element_type=jnp.float32) + bh_ref[...]
    o1_ref[0] = heads[0:ncls].astype(o1_ref.dtype)
    o2_ref[0] = heads[stride:stride + ncls].astype(o2_ref.dtype)
    o3_ref[0] = heads[2 * stride:2 * stride + ncls].astype(o3_ref.dtype)
    o4_ref[0] = heads[3 * stride:3 * stride + cf].astype(o4_ref.dtype)


def base_forward_fused(x, w_stem, b_stem_col, wh, bh_col, *, ncls, cf, stride):
    """x: (B, Cin, H, W) NCHW -> 4 NCHW head outputs, one pallas_call."""
    B, Cin, H, W = x.shape
    HW = H * W
    hidden = w_stem.shape[0]
    tot = 4 * stride
    xr = x.reshape(B, Cin, HW).astype(DTYPE)          # free reshape (contiguous NCHW)

    outs = pl.pallas_call(
        functools.partial(_base_kernel, ncls=ncls, cf=cf, stride=stride),
        out_shape=(
            jax.ShapeDtypeStruct((B, ncls, HW), DTYPE),
            jax.ShapeDtypeStruct((B, ncls, HW), DTYPE),
            jax.ShapeDtypeStruct((B, ncls, HW), DTYPE),
            jax.ShapeDtypeStruct((B, cf, HW), DTYPE),
        ),
        grid=(B,),
        in_specs=[
            pl.BlockSpec((1, Cin, HW), lambda b: (b, 0, 0)),
            pl.BlockSpec((hidden, Cin), lambda b: (0, 0)),
            pl.BlockSpec((hidden, 1), lambda b: (0, 0)),
            pl.BlockSpec((tot, hidden), lambda b: (0, 0)),
            pl.BlockSpec((tot, 1), lambda b: (0, 0)),
        ],
        out_specs=(
            pl.BlockSpec((1, ncls, HW), lambda b: (b, 0, 0)),
            pl.BlockSpec((1, ncls, HW), lambda b: (b, 0, 0)),
            pl.BlockSpec((1, ncls, HW), lambda b: (b, 0, 0)),
            pl.BlockSpec((1, cf, HW), lambda b: (b, 0, 0)),
        ),
        compiler_params=pltpu.CompilerParams(dimension_semantics=("parallel",)),
    )(xr, w_stem, b_stem_col, wh, bh_col)

    l1, l2, l3, f3 = outs
    return (l1.reshape(B, ncls, H, W), l2.reshape(B, ncls, H, W),
            l3.reshape(B, ncls, H, W), f3.reshape(B, cf, H, W))


# --------------------------- feature distance --------------------------------

def _fts_distance_kernel(a_full_ref, a_col_ref, o_ref):
    af = a_full_ref[0]                                   # (C, HW)
    ac = a_col_ref[0]                                    # (C, col)
    # contract on C without an explicit transpose; lane-dense (HW, col) output
    s = lax.dot_general(af, ac, (((0,), (0,)), ((), ())),
                        preferred_element_type=jnp.float32)
    o_ref[0] = jax.nn.sigmoid(s).astype(o_ref.dtype)


def _pick_col_tile(hw):
    # single block while the (hw, col) f32 output tile is small; otherwise use a
    # 128-multiple column tile so the kernel stays valid within VMEM at large HW.
    if hw * hw * 4 <= (4 << 20):
        return hw
    for c in (512, 256, 128):
        if hw % c == 0:
            return c
    return hw


def compute_fts_distance(fts):
    """fts: (B, C, H, W) -> sigmoid(bmm(fts^T, fts)) of shape (B, H*W, H*W)."""
    B, C, H, W = fts.shape
    HW = H * W
    a = fts.reshape(B, C, HW).astype(DTYPE)
    col = _pick_col_tile(HW)
    grid = (B, HW // col)
    return pl.pallas_call(
        _fts_distance_kernel,
        out_shape=jax.ShapeDtypeStruct((B, HW, HW), DTYPE),
        grid=grid,
        in_specs=[
            pl.BlockSpec((1, C, HW), lambda b, j: (b, 0, 0)),
            pl.BlockSpec((1, C, col), lambda b, j: (b, 0, j)),
        ],
        out_specs=pl.BlockSpec((1, HW, col), lambda b, j: (b, 0, j)),
        compiler_params=pltpu.CompilerParams(
            dimension_semantics=("parallel", "parallel"),
            vmem_limit_bytes=64 << 20),
    )(a, a)


# --------------------------- fused bilinear resize ---------------------------

def _resize_kernel(x_ref, ah_ref, awT_ref, o_ref):
    C = x_ref.shape[1]
    ah = ah_ref[...]                                     # (out_h, H)
    awT = awT_ref[...]                                   # (W, out_w)
    for c in range(C):                                   # C is tiny (<= 8), unrolled
        t = jnp.dot(x_ref[0, c], awT, preferred_element_type=jnp.float32)   # (H, out_w)
        o_ref[0, c] = jnp.dot(ah, t, preferred_element_type=jnp.float32).astype(o_ref.dtype)


def pallas_bilinear_resize(x, out_h, out_w):
    """x: (B, C, H, W) -> (B, C, out_h, out_w), single fused kernel (both passes)."""
    B, C, H, W = x.shape
    if (out_h, out_w) == (H, W):
        return x.astype(DTYPE)
    ah = jnp.asarray(_bilinear_matrix_np(out_h, H))        # (out_h, H)
    awT = jnp.asarray(_bilinear_matrix_np(out_w, W).T)     # (W, out_w)
    return pl.pallas_call(
        _resize_kernel,
        out_shape=jax.ShapeDtypeStruct((B, C, out_h, out_w), DTYPE),
        grid=(B,),
        in_specs=[
            pl.BlockSpec((1, C, H, W), lambda b: (b, 0, 0, 0)),
            pl.BlockSpec((out_h, H), lambda b: (0, 0)),
            pl.BlockSpec((W, out_w), lambda b: (0, 0)),
        ],
        out_specs=pl.BlockSpec((1, C, out_h, out_w), lambda b: (b, 0, 0, 0)),
        compiler_params=pltpu.CompilerParams(dimension_semantics=("parallel",)),
    )(x.astype(DTYPE), ah, awT)


# ----------------- fused "interp every level then max/mean" ------------------

def _interp_reduce_kernel(*refs, op, n_levels, scale):
    x0_ref = refs[0]
    o_ref = refs[-1]
    lvl_refs = refs[1:-1]
    C = x0_ref.shape[1]
    for c in range(C):
        acc = x0_ref[0, c].astype(jnp.float32)                     # (H, W)
        for i in range(n_levels):
            x_r = lvl_refs[3 * i]
            ah = lvl_refs[3 * i + 1][...]                          # (H, hi)
            awT = lvl_refs[3 * i + 2][...]                         # (wi, W)
            t = jnp.dot(x_r[0, c], awT, preferred_element_type=jnp.float32)   # (hi, W)
            r = jnp.dot(ah, t, preferred_element_type=jnp.float32)            # (H, W)
            if op == "max":
                acc = jnp.maximum(acc, r)
            else:
                acc = acc + r
        if op == "mean":
            acc = acc * (1.0 / (n_levels + 1))
        if scale != 1.0:
            acc = acc * scale
        o_ref[0, c] = acc.astype(o_ref.dtype)


def pallas_interp_reduce(x0, levels, op, scale=1.0):
    """max/mean over [x0] + [bilinear_resize(level, x0.shape)] in one fused kernel."""
    B, C, H, W = x0.shape
    n = len(levels)
    inputs = [x0.astype(DTYPE)]
    in_specs = [pl.BlockSpec((1, C, H, W), lambda b: (b, 0, 0, 0))]
    for lv in levels:
        _, _, hi, wi = lv.shape
        ah = jnp.asarray(_bilinear_matrix_np(H, hi))       # (H, hi)
        awT = jnp.asarray(_bilinear_matrix_np(W, wi).T)    # (wi, W)
        inputs += [lv.astype(DTYPE), ah, awT]
        in_specs += [
            pl.BlockSpec((1, C, hi, wi), lambda b: (b, 0, 0, 0)),
            pl.BlockSpec((H, hi), lambda b: (0, 0)),
            pl.BlockSpec((wi, W), lambda b: (0, 0)),
        ]
    return pl.pallas_call(
        functools.partial(_interp_reduce_kernel, op=op, n_levels=n, scale=scale),
        out_shape=jax.ShapeDtypeStruct((B, C, H, W), DTYPE),
        grid=(B,),
        in_specs=in_specs,
        out_specs=pl.BlockSpec((1, C, H, W), lambda b: (b, 0, 0, 0)),
        compiler_params=pltpu.CompilerParams(dimension_semantics=("parallel",)),
    )(*inputs)


# --------------------------- synthetic base params ---------------------------

def init_base_params(key, cin=4, hidden=8, ncls=5, cf=8):
    ks = jax.random.split(key, 10)
    return {
        "w_stem": 0.2 * jax.random.normal(ks[0], (hidden, cin), DTYPE),
        "b_stem": 0.05 * jax.random.normal(ks[1], (hidden,), DTYPE),
        "w_l1": 0.2 * jax.random.normal(ks[2], (ncls, hidden), DTYPE),
        "b_l1": 0.05 * jax.random.normal(ks[3], (ncls,), DTYPE),
        "w_l2": 0.2 * jax.random.normal(ks[4], (ncls, hidden), DTYPE),
        "b_l2": 0.05 * jax.random.normal(ks[5], (ncls,), DTYPE),
        "w_l3": 0.2 * jax.random.normal(ks[6], (ncls, hidden), DTYPE),
        "b_l3": 0.05 * jax.random.normal(ks[7], (ncls,), DTYPE),
        "w_f": 0.2 * jax.random.normal(ks[8], (cf, hidden), DTYPE),
        "b_f": 0.05 * jax.random.normal(ks[9], (cf,), DTYPE),
    }


# ------------------------------ MSC forward -----------------------------------

def msc_forward(params, x, x_aug, scales=(0.5, 0.75), training=True):
    x = jnp.concatenate([x, x_aug], axis=0)           # (B, Cin, H, W), B = 2*batch
    B, Cin, H, W = x.shape
    hidden = params["w_stem"].shape[0]
    ncls = params["w_l1"].shape[0]
    cf = params["w_f"].shape[0]

    # pack the 4 head weights into one sublane-aligned matrix (one MXU pass / kernel)
    stride = -(-max(ncls, cf) // 8) * 8
    wh = jnp.zeros((4 * stride, hidden), DTYPE)
    wh = wh.at[0:ncls].set(params["w_l1"])
    wh = wh.at[stride:stride + ncls].set(params["w_l2"])
    wh = wh.at[2 * stride:2 * stride + ncls].set(params["w_l3"])
    wh = wh.at[3 * stride:3 * stride + cf].set(params["w_f"])
    bh = jnp.zeros((4 * stride,), DTYPE)
    bh = bh.at[0:ncls].set(params["b_l1"])
    bh = bh.at[stride:stride + ncls].set(params["b_l2"])
    bh = bh.at[2 * stride:2 * stride + ncls].set(params["b_l3"])
    bh = bh.at[3 * stride:3 * stride + cf].set(params["b_f"])
    bh_col = bh.reshape(4 * stride, 1)
    w_stem = params["w_stem"].astype(DTYPE)
    bs_col = params["b_stem"].reshape(hidden, 1).astype(DTYPE)

    def base(xin):
        return base_forward_fused(xin, w_stem, bs_col, wh, bh_col,
                                  ncls=ncls, cf=cf, stride=stride)

    logits, logits_2nd, logits_3rd, features_3rd = base(x)

    logits_pyramid, logits_pyramid_2nd, logits_pyramid_3rd = [], [], []
    features_pyramid_3rd, features_pyramid_3rd_dis = [], []
    for p in scales:
        hs = int(np.floor(H * p))
        ws = int(np.floor(W * p))
        xs = pallas_bilinear_resize(x, hs, ws)
        lp, lp2, lp3, fp3 = base(xs)
        logits_pyramid.append(lp)
        logits_pyramid_2nd.append(lp2)
        logits_pyramid_3rd.append(lp3)
        features_pyramid_3rd.append(fp3)
        if training:
            features_pyramid_3rd_dis.append(compute_fts_distance(fp3))

    if training:
        features_3rd_dis = compute_fts_distance(features_3rd)
        logits_max = pallas_interp_reduce(logits, logits_pyramid, "max")
        logits_max_2nd = pallas_interp_reduce(logits_2nd, logits_pyramid_2nd, "max")
        logits_max_3rd = pallas_interp_reduce(logits_3rd, logits_pyramid_3rd, "max")
        features_mean_3rd = pallas_interp_reduce(features_3rd, features_pyramid_3rd, "mean")
        features_mean_3rd_dis = compute_fts_distance(features_mean_3rd)
        return ([logits] + logits_pyramid + [logits_max],
                [logits_2nd] + logits_pyramid_2nd + [logits_max_2nd],
                [logits_3rd] + logits_pyramid_3rd + [logits_max_3rd],
                [features_3rd_dis] + features_pyramid_3rd_dis + [features_mean_3rd_dis])
    else:
        # eval: logits_max_3rd / 2.0, with the /2 fused into the reduce kernel
        return pallas_interp_reduce(logits_3rd, logits_pyramid_3rd, "max", scale=0.5)


# ----------------------------- plain-JAX reference ----------------------------

def _ref_conv1x1(x, w, b, act=None):
    y = jnp.einsum("bchw,oc->bohw", x, w) + b[None, :, None, None]
    return jnp.maximum(y, 0.0) if act == "relu" else y


def _ref_base_forward(params, x):
    feat = _ref_conv1x1(x, params["w_stem"], params["b_stem"], act="relu")
    return (_ref_conv1x1(feat, params["w_l1"], params["b_l1"]),
            _ref_conv1x1(feat, params["w_l2"], params["b_l2"]),
            _ref_conv1x1(feat, params["w_l3"], params["b_l3"]),
            _ref_conv1x1(feat, params["w_f"], params["b_f"]))


def _ref_resize(x, oh, ow):
    Ah = jnp.asarray(_bilinear_matrix_np(oh, x.shape[2]))
    Aw = jnp.asarray(_bilinear_matrix_np(ow, x.shape[3]))
    return jnp.einsum("ph,bchw,qw->bcpq", Ah, x, Aw)


def _ref_dist(f):
    B, C, H, W = f.shape
    a = f.reshape(B, C, H * W)
    return jax.nn.sigmoid(jnp.einsum("bci,bcj->bij", a, a))


def _ref_msc_forward(params, x, x_aug, scales=(0.5, 0.75), training=True):
    x = jnp.concatenate([x, x_aug], axis=0)
    l1, l2, l3, f3 = _ref_base_forward(params, x)
    f3d = _ref_dist(f3)
    H, W = l1.shape[2], l1.shape[3]
    lp1, lp2, lp3, fp3, fp3d = [], [], [], [], []
    for p in scales:
        hs = int(np.floor(x.shape[2] * p))
        ws = int(np.floor(x.shape[3] * p))
        xr = _ref_resize(x, hs, ws)
        a, b_, c, d = _ref_base_forward(params, xr)
        lp1.append(a); lp2.append(b_); lp3.append(c); fp3.append(d)
        fp3d.append(_ref_dist(d))
    interp = lambda l: _ref_resize(l, H, W)
    lmax1 = jnp.max(jnp.stack([l1] + [interp(t) for t in lp1]), axis=0)
    lmax2 = jnp.max(jnp.stack([l2] + [interp(t) for t in lp2]), axis=0)
    lmax3 = jnp.max(jnp.stack([l3] + [interp(t) for t in lp3]), axis=0)
    fmean = jnp.mean(jnp.stack([f3] + [interp(t) for t in fp3]), axis=0)
    fmeand = _ref_dist(fmean)
    if training:
        return ([l1] + lp1 + [lmax1], [l2] + lp2 + [lmax2],
                [l3] + lp3 + [lmax3], [f3d] + fp3d + [fmeand])
    return lmax3 / 2.0


# --------------------------------- main ----------------------------------------

if __name__ == "__main__":
    key = jax.random.PRNGKey(0)
    k1, k2, kp = jax.random.split(key, 3)
    B, Cin, H, W = 2, 4, 16, 16
    x = jax.random.normal(k1, (B, Cin, H, W), DTYPE)
    x_aug = jax.random.normal(k2, (B, Cin, H, W), DTYPE)
    params = init_base_params(kp, cin=Cin)

    fwd = jax.jit(msc_forward, static_argnames=("scales", "training"))

    outs = fwd(params, x, x_aug, scales=(0.5, 0.75), training=True)
    jax.block_until_ready(jax.tree_util.tree_leaves(outs))
    assert len(outs) == 4 and all(len(o) == 4 for o in outs)

    # full-forward parity against a plain-JAX reference
    ref_outs = _ref_msc_forward(params, x, x_aug, scales=(0.5, 0.75), training=True)
    for got, want in zip(jax.tree_util.tree_leaves(outs),
                         jax.tree_util.tree_leaves(ref_outs)):
        np.testing.assert_allclose(np.asarray(got), np.asarray(want),
                                   rtol=1e-4, atol=1e-5)

    # eval-mode output (logits_max_3rd / 2.0), /2 fused into the reduce kernel
    eval_out = fwd(params, x, x_aug, scales=(0.5, 0.75), training=False)
    jax.block_until_ready(eval_out)
    eval_ref = _ref_msc_forward(params, x, x_aug, scales=(0.5, 0.75), training=False)
    np.testing.assert_allclose(np.asarray(eval_out), np.asarray(eval_ref),
                               rtol=1e-4, atol=1e-5)

    print("KERNEL_OK")
</pallas_src>

<mosaic_0001>
module attributes {stable_mosaic.version = 11 : i64} {
  func.func @_resize_kernel(%arg0: i32, %arg1: memref<1x4x16x16xf32, #tpu.memory_space<vmem>>, %arg2: memref<12x16xf32, #tpu.memory_space<vmem>>, %arg3: memref<16x12xf32, #tpu.memory_space<vmem>>, %arg4: memref<1x4x12x12xf32, #tpu.memory_space<vmem>>) attributes {dimension_semantics = [#tpu.dimension_semantics<parallel>], iteration_bounds = array<i64: 4>, scalar_prefetch = 0 : i64, scratch_operands = 0 : i64, tpu.core_type = #tpu.core_type<tc>, window_params = [{transform_indices = @transform_0, window_bounds = array<i64: 1, 4, 16, 16>}, {pipeline_mode = #tpu.pipeline_mode<synchronous>, transform_indices = @transform_1, window_bounds = array<i64: 12, 16>}, {pipeline_mode = #tpu.pipeline_mode<synchronous>, transform_indices = @transform_2, window_bounds = array<i64: 16, 12>}, {transform_indices = @transform_3, window_bounds = array<i64: 1, 4, 12, 12>}]} {
    %c0 = arith.constant 0 : index
    %c0_0 = arith.constant 0 : index
    %0 = vector.load %arg2[%c0, %c0_0] : memref<12x16xf32, #tpu.memory_space<vmem>>, vector<12x16xf32>
    %c0_1 = arith.constant 0 : index
    %c0_2 = arith.constant 0 : index
    %1 = vector.load %arg3[%c0_1, %c0_2] : memref<16x12xf32, #tpu.memory_space<vmem>>, vector<16x12xf32>
    %c0_3 = arith.constant 0 : index
    %c0_4 = arith.constant 0 : index
    %c0_5 = arith.constant 0 : index
    %c0_6 = arith.constant 0 : index
    %2 = vector.load %arg1[%c0_3, %c0_4, %c0_5, %c0_6] : memref<1x4x16x16xf32, #tpu.memory_space<vmem>>, vector<1x1x16x16xf32>
    %3 = vector.shape_cast %2 : vector<1x1x16x16xf32> to vector<16x16xf32>
    %cst = arith.constant dense<0.000000e+00> : vector<16x12xf32>
    %4 = tpu.matmul %3, %1, %cst {dimension_numbers = #tpu.dot_dimension_numbers<[1], [0], [0], [1], [0, 0, 1, 1], [], []>} : vector<16x16xf32>, vector<16x12xf32>, vector<16x12xf32> -> vector<16x12xf32>
    %cst_7 = arith.constant dense<0.000000e+00> : vector<12x12xf32>
    %5 = tpu.matmul %0, %4, %cst_7 {dimension_numbers = #tpu.dot_dimension_numbers<[1], [0], [0], [1], [0, 0, 1, 1], [], []>} : vector<12x16xf32>, vector<16x12xf32>, vector<12x12xf32> -> vector<12x12xf32>
    %c0_8 = arith.constant 0 : index
    %c0_9 = arith.constant 0 : index
    %c0_10 = arith.constant 0 : index
    %c0_11 = arith.constant 0 : index
    %6 = vector.load %arg4[%c0_8, %c0_9, %c0_10, %c0_11] : memref<1x4x12x12xf32, #tpu.memory_space<vmem>>, vector<1x1x12x12xf32>
    %7 = vector.shape_cast %6 : vector<1x1x12x12xf32> to vector<12x12xf32>
    %8 = vector.shape_cast %5 : vector<12x12xf32> to vector<1x1x12x12xf32>
    tpu.vector_store %arg4[%c0_8, %c0_9, %c0_10, %c0_11], %8 {strides = array<i32>} : memref<1x4x12x12xf32, #tpu.memory_space<vmem>>, vector<1x1x12x12xf32>,
    %c0_12 = arith.constant 0 : index
    %c1 = arith.constant 1 : index
    %c0_13 = arith.constant 0 : index
    %c0_14 = arith.constant 0 : index
    %9 = vector.load %arg1[%c0_12, %c1, %c0_13, %c0_14] : memref<1x4x16x16xf32, #tpu.memory_space<vmem>>, vector<1x1x16x16xf32>
    %10 = vector.shape_cast %9 : vector<1x1x16x16xf32> to vector<16x16xf32>
    %cst_15 = arith.constant dense<0.000000e+00> : vector<16x12xf32>
    %11 = tpu.matmul %10, %1, %cst_15 {dimension_numbers = #tpu.dot_dimension_numbers<[1], [0], [0], [1], [0, 0, 1, 1], [], []>} : vector<16x16xf32>, vector<16x12xf32>, vector<16x12xf32> -> vector<16x12xf32>
    %cst_16 = arith.constant dense<0.000000e+00> : vector<12x12xf32>
    %12 = tpu.matmul %0, %11, %cst_16 {dimension_numbers = #tpu.dot_dimension_numbers<[1], [0], [0], [1], [0, 0, 1, 1], [], []>} : vector<12x16xf32>, vector<16x12xf32>, vector<12x12xf32> -> vector<12x12xf32>
    %c0_17 = arith.constant 0 : index
    %c1_18 = arith.constant 1 : index
    %c0_19 = arith.constant 0 : index
    %c0_20 = arith.constant 0 : index
    %13 = vector.load %arg4[%c0_17, %c1_18, %c0_19, %c0_20] : memref<1x4x12x12xf32, #tpu.memory_space<vmem>>, vector<1x1x12x12xf32>
    %14 = vector.shape_cast %13 : vector<1x1x12x12xf32> to vector<12x12xf32>
    %15 = vector.shape_cast %12 : vector<12x12xf32> to vector<1x1x12x12xf32>
    tpu.vector_store %arg4[%c0_17, %c1_18, %c0_19, %c0_20], %15 {strides = array<i32>} : memref<1x4x12x12xf32, #tpu.memory_space<vmem>>, vector<1x1x12x12xf32>,
    %c0_21 = arith.constant 0 : index
    %c2 = arith.constant 2 : index
    %c0_22 = arith.constant 0 : index
    %c0_23 = arith.constant 0 : index
    %16 = vector.load %arg1[%c0_21, %c2, %c0_22, %c0_23] : memref<1x4x16x16xf32, #tpu.memory_space<vmem>>, vector<1x1x16x16xf32>
    %17 = vector.shape_cast %16 : vector<1x1x16x16xf32> to vector<16x16xf32>
    %cst_24 = arith.constant dense<0.000000e+00> : vector<16x12xf32>
    %18 = tpu.matmul %17, %1, %cst_24 {dimension_numbers = #tpu.dot_dimension_numbers<[1], [0], [0], [1], [0, 0, 1, 1], [], []>} : vector<16x16xf32>, vector<16x12xf32>, vector<16x12xf32> -> vector<16x12xf32>
    %cst_25 = arith.constant dense<0.000000e+00> : vector<12x12xf32>
    %19 = tpu.matmul %0, %18, %cst_25 {dimension_numbers = #tpu.dot_dimension_numbers<[1], [0], [0], [1], [0, 0, 1, 1], [], []>} : vector<12x16xf32>, vector<16x12xf32>, vector<12x12xf32> -> vector<12x12xf32>
    %c0_26 = arith.constant 0 : index
    %c2_27 = arith.constant 2 : index
    %c0_28 = arith.constant 0 : index
    %c0_29 = arith.constant 0 : index
    %20 = vector.load %arg4[%c0_26, %c2_27, %c0_28, %c0_29] : memref<1x4x12x12xf32, #tpu.memory_space<vmem>>, vector<1x1x12x12xf32>
    %21 = vector.shape_cast %20 : vector<1x1x12x12xf32> to vector<12x12xf32>
    %22 = vector.shape_cast %19 : vector<12x12xf32> to vector<1x1x12x12xf32>
    tpu.vector_store %arg4[%c0_26, %c2_27, %c0_28, %c0_29], %22 {strides = array<i32>} : memref<1x4x12x12xf32, #tpu.memory_space<vmem>>, vector<1x1x12x12xf32>,
    %c0_30 = arith.constant 0 : index
    %c3 = arith.constant 3 : index
    %c0_31 = arith.constant 0 : index
    %c0_32 = arith.constant 0 : index
    %23 = vector.load %arg1[%c0_30, %c3, %c0_31, %c0_32] : memref<1x4x16x16xf32, #tpu.memory_space<vmem>>, vector<1x1x16x16xf32>
    %24 = vector.shape_cast %23 : vector<1x1x16x16xf32> to vector<16x16xf32>
    %cst_33 = arith.constant dense<0.000000e+00> : vector<16x12xf32>
    %25 = tpu.matmul %24, %1, %cst_33 {dimension_numbers = #tpu.dot_dimension_numbers<[1], [0], [0], [1], [0, 0, 1, 1], [], []>} : vector<16x16xf32>, vector<16x12xf32>, vector<16x12xf32> -> vector<16x12xf32>
    %cst_34 = arith.constant dense<0.000000e+00> : vector<12x12xf32>
    %26 = tpu.matmul %0, %25, %cst_34 {dimension_numbers = #tpu.dot_dimension_numbers<[1], [0], [0], [1], [0, 0, 1, 1], [], []>} : vector<12x16xf32>, vector<16x12xf32>, vector<12x12xf32> -> vector<12x12xf32>
    %c0_35 = arith.constant 0 : index
    %c3_36 = arith.constant 3 : index
    %c0_37 = arith.constant 0 : index
    %c0_38 = arith.constant 0 : index
    %27 = vector.load %arg4[%c0_35, %c3_36, %c0_37, %c0_38] : memref<1x4x12x12xf32, #tpu.memory_space<vmem>>, vector<1x1x12x12xf32>
    %28 = vector.shape_cast %27 : vector<1x1x12x12xf32> to vector<12x12xf32>
    %29 = vector.shape_cast %26 : vector<12x12xf32> to vector<1x1x12x12xf32>
    tpu.vector_store %arg4[%c0_35, %c3_36, %c0_37, %c0_38], %29 {strides = array<i32>} : memref<1x4x12x12xf32, #tpu.memory_space<vmem>>, vector<1x1x12x12xf32>,
    return
  }
  func.func @transform_0(%arg0: i32) -> (i32, i32, i32, i32) {
    %c0_i32 = arith.constant 0 : i32
    %c0_i32_0 = arith.constant 0 : i32
    %c0_i32_1 = arith.constant 0 : i32
    %c0_i32_2 = arith.constant 0 : i32
    return %arg0, %c0_i32, %c0_i32_0, %c0_i32_1 : i32, i32, i32, i32
  }
  func.func @transform_1(%arg0: i32) -> (i32, i32) {
    %c0_i32 = arith.constant 0 : i32
    %c0_i32_0 = arith.constant 0 : i32
    %c0_i32_1 = arith.constant 0 : i32
    return %c0_i32, %c0_i32_0 : i32, i32
  }
  func.func @transform_2(%arg0: i32) -> (i32, i32) {
    %c0_i32 = arith.constant 0 : i32
    %c0_i32_0 = arith.constant 0 : i32
    %c0_i32_1 = arith.constant 0 : i32
    return %c0_i32, %c0_i32_0 : i32, i32
  }
  func.func @transform_3(%arg0: i32) -> (i32, i32, i32, i32) {
    %c0_i32 = arith.constant 0 : i32
    %c0_i32_0 = arith.constant 0 : i32
    %c0_i32_1 = arith.constant 0 : i32
    %c0_i32_2 = arith.constant 0 : i32
    return %arg0, %c0_i32, %c0_i32_0, %c0_i32_1 : i32, i32, i32, i32
  }
}

module attributes {stable_mosaic.version = 11 : i64} {
  func.func @_resize_kernel(%arg0: i32, %arg1: memref<1x4x16x16xf32, #tpu.memory_space<vmem>>, %arg2: memref<8x16xf32, #tpu.memory_space<vmem>>, %arg3: memref<16x8xf32, #tpu.memory_space<vmem>>, %arg4: memref<1x4x8x8xf32, #tpu.memory_space<vmem>>) attributes {dimension_semantics = [#tpu.dimension_semantics<parallel>], iteration_bounds = array<i64: 4>, scalar_prefetch = 0 : i64, scratch_operands = 0 : i64, tpu.core_type = #tpu.core_type<tc>, window_params = [{transform_indices = @transform_0, window_bounds = array<i64: 1, 4, 16, 16>}, {pipeline_mode = #tpu.pipeline_mode<synchronous>, transform_indices = @transform_1, window_bounds = array<i64: 8, 16>}, {pipeline_mode = #tpu.pipeline_mode<synchronous>, transform_indices = @transform_2, window_bounds = array<i64: 16, 8>}, {transform_indices = @transform_3, window_bounds = array<i64: 1, 4, 8, 8>}]} {
    %c0 = arith.constant 0 : index
    %c0_0 = arith.constant 0 : index
    %0 = vector.load %arg2[%c0, %c0_0] : memref<8x16xf32, #tpu.memory_space<vmem>>, vector<8x16xf32>
    %c0_1 = arith.constant 0 : index
    %c0_2 = arith.constant 0 : index
    %1 = vector.load %arg3[%c0_1, %c0_2] : memref<16x8xf32, #tpu.memory_space<vmem>>, vector<16x8xf32>
    %c0_3 = arith.constant 0 : index
    %c0_4 = arith.constant 0 : index
    %c0_5 = arith.constant 0 : index
    %c0_6 = arith.constant 0 : index
    %2 = vector.load %arg1[%c0_3, %c0_4, %c0_5, %c0_6] : memref<1x4x16x16xf32, #tpu.memory_space<vmem>>, vector<1x1x16x16xf32>
    %3 = vector.shape_cast %2 : vector<1x1x16x16xf32> to vector<16x16xf32>
    %cst = arith.constant dense<0.000000e+00> : vector<16x8xf32>
    %4 = tpu.matmul %3, %1, %cst {dimension_numbers = #tpu.dot_dimension_numbers<[1], [0], [0], [1], [0, 0, 1, 1], [], []>} : vector<16x16xf32>, vector<16x8xf32>, vector<16x8xf32> -> vector<16x8xf32>
    %cst_7 = arith.constant dense<0.000000e+00> : vector<8x8xf32>
    %5 = tpu.matmul %0, %4, %cst_7 {dimension_numbers = #tpu.dot_dimension_numbers<[1], [0], [0], [1], [0, 0, 1, 1], [], []>} : vector<8x16xf32>, vector<16x8xf32>, vector<8x8xf32> -> vector<8x8xf32>
    %c0_8 = arith.constant 0 : index
    %c0_9 = arith.constant 0 : index
    %c0_10 = arith.constant 0 : index
    %c0_11 = arith.constant 0 : index
    %6 = vector.load %arg4[%c0_8, %c0_9, %c0_10, %c0_11] : memref<1x4x8x8xf32, #tpu.memory_space<vmem>>, vector<1x1x8x8xf32>
    %7 = vector.shape_cast %6 : vector<1x1x8x8xf32> to vector<8x8xf32>
    %8 = vector.shape_cast %5 : vector<8x8xf32> to vector<1x1x8x8xf32>
    tpu.vector_store %arg4[%c0_8, %c0_9, %c0_10, %c0_11], %8 {strides = array<i32>} : memref<1x4x8x8xf32, #tpu.memory_space<vmem>>, vector<1x1x8x8xf32>,
    %c0_12 = arith.constant 0 : index
    %c1 = arith.constant 1 : index
    %c0_13 = arith.constant 0 : index
    %c0_14 = arith.constant 0 : index
    %9 = vector.load %arg1[%c0_12, %c1, %c0_13, %c0_14] : memref<1x4x16x16xf32, #tpu.memory_space<vmem>>, vector<1x1x16x16xf32>
    %10 = vector.shape_cast %9 : vector<1x1x16x16xf32> to vector<16x16xf32>
    %cst_15 = arith.constant dense<0.000000e+00> : vector<16x8xf32>
    %11 = tpu.matmul %10, %1, %cst_15 {dimension_numbers = #tpu.dot_dimension_numbers<[1], [0], [0], [1], [0, 0, 1, 1], [], []>} : vector<16x16xf32>, vector<16x8xf32>, vector<16x8xf32> -> vector<16x8xf32>
    %cst_16 = arith.constant dense<0.000000e+00> : vector<8x8xf32>
    %12 = tpu.matmul %0, %11, %cst_16 {dimension_numbers = #tpu.dot_dimension_numbers<[1], [0], [0], [1], [0, 0, 1, 1], [], []>} : vector<8x16xf32>, vector<16x8xf32>, vector<8x8xf32> -> vector<8x8xf32>
    %c0_17 = arith.constant 0 : index
    %c1_18 = arith.constant 1 : index
    %c0_19 = arith.constant 0 : index
    %c0_20 = arith.constant 0 : index
    %13 = vector.load %arg4[%c0_17, %c1_18, %c0_19, %c0_20] : memref<1x4x8x8xf32, #tpu.memory_space<vmem>>, vector<1x1x8x8xf32>
    %14 = vector.shape_cast %13 : vector<1x1x8x8xf32> to vector<8x8xf32>
    %15 = vector.shape_cast %12 : vector<8x8xf32> to vector<1x1x8x8xf32>
    tpu.vector_store %arg4[%c0_17, %c1_18, %c0_19, %c0_20], %15 {strides = array<i32>} : memref<1x4x8x8xf32, #tpu.memory_space<vmem>>, vector<1x1x8x8xf32>,
    %c0_21 = arith.constant 0 : index
    %c2 = arith.constant 2 : index
    %c0_22 = arith.constant 0 : index
    %c0_23 = arith.constant 0 : index
    %16 = vector.load %arg1[%c0_21, %c2, %c0_22, %c0_23] : memref<1x4x16x16xf32, #tpu.memory_space<vmem>>, vector<1x1x16x16xf32>
    %17 = vector.shape_cast %16 : vector<1x1x16x16xf32> to vector<16x16xf32>
    %cst_24 = arith.constant dense<0.000000e+00> : vector<16x8xf32>
    %18 = tpu.matmul %17, %1, %cst_24 {dimension_numbers = #tpu.dot_dimension_numbers<[1], [0], [0], [1], [0, 0, 1, 1], [], []>} : vector<16x16xf32>, vector<16x8xf32>, vector<16x8xf32> -> vector<16x8xf32>
    %cst_25 = arith.constant dense<0.000000e+00> : vector<8x8xf32>
    %19 = tpu.matmul %0, %18, %cst_25 {dimension_numbers = #tpu.dot_dimension_numbers<[1], [0], [0], [1], [0, 0, 1, 1], [], []>} : vector<8x16xf32>, vector<16x8xf32>, vector<8x8xf32> -> vector<8x8xf32>
    %c0_26 = arith.constant 0 : index
    %c2_27 = arith.constant 2 : index
    %c0_28 = arith.constant 0 : index
    %c0_29 = arith.constant 0 : index
    %20 = vector.load %arg4[%c0_26, %c2_27, %c0_28, %c0_29] : memref<1x4x8x8xf32, #tpu.memory_space<vmem>>, vector<1x1x8x8xf32>
    %21 = vector.shape_cast %20 : vector<1x1x8x8xf32> to vector<8x8xf32>
    %22 = vector.shape_cast %19 : vector<8x8xf32> to vector<1x1x8x8xf32>
    tpu.vector_store %arg4[%c0_26, %c2_27, %c0_28, %c0_29], %22 {strides = array<i32>} : memref<1x4x8x8xf32, #tpu.memory_space<vmem>>, vector<1x1x8x8xf32>,
    %c0_30 = arith.constant 0 : index
    %c3 = arith.constant 3 : index
    %c0_31 = arith.constant 0 : index
    %c0_32 = arith.constant 0 : index
    %23 = vector.load %arg1[%c0_30, %c3, %c0_31, %c0_32] : memref<1x4x16x16xf32, #tpu.memory_space<vmem>>, vector<1x1x16x16xf32>
    %24 = vector.shape_cast %23 : vector<1x1x16x16xf32> to vector<16x16xf32>
    %cst_33 = arith.constant dense<0.000000e+00> : vector<16x8xf32>
    %25 = tpu.matmul %24, %1, %cst_33 {dimension_numbers = #tpu.dot_dimension_numbers<[1], [0], [0], [1], [0, 0, 1, 1], [], []>} : vector<16x16xf32>, vector<16x8xf32>, vector<16x8xf32> -> vector<16x8xf32>
    %cst_34 = arith.constant dense<0.000000e+00> : vector<8x8xf32>
    %26 = tpu.matmul %0, %25, %cst_34 {dimension_numbers = #tpu.dot_dimension_numbers<[1], [0], [0], [1], [0, 0, 1, 1], [], []>} : vector<8x16xf32>, vector<16x8xf32>, vector<8x8xf32> -> vector<8x8xf32>
    %c0_35 = arith.constant 0 : index
    %c3_36 = arith.constant 3 : index
    %c0_37 = arith.constant 0 : index
    %c0_38 = arith.constant 0 : index
    %27 = vector.load %arg4[%c0_35, %c3_36, %c0_37, %c0_38] : memref<1x4x8x8xf32, #tpu.memory_space<vmem>>, vector<1x1x8x8xf32>
    %28 = vector.shape_cast %27 : vector<1x1x8x8xf32> to vector<8x8xf32>
    %29 = vector.shape_cast %26 : vector<8x8xf32> to vector<1x1x8x8xf32>
    tpu.vector_store %arg4[%c0_35, %c3_36, %c0_37, %c0_38], %29 {strides = array<i32>} : memref<1x4x8x8xf32, #tpu.memory_space<vmem>>, vector<1x1x8x8xf32>,
    return
  }
  func.func @transform_0(%arg0: i32) -> (i32, i32, i32, i32) {
    %c0_i32 = arith.constant 0 : i32
    %c0_i32_0 = arith.constant 0 : i32
    %c0_i32_1 = arith.constant 0 : i32
    %c0_i32_2 = arith.constant 0 : i32
    return %arg0, %c0_i32, %c0_i32_0, %c0_i32_1 : i32, i32, i32, i32
  }
  func.func @transform_1(%arg0: i32) -> (i32, i32) {
    %c0_i32 = arith.constant 0 : i32
    %c0_i32_0 = arith.constant 0 : i32
    %c0_i32_1 = arith.constant 0 : i32
    return %c0_i32, %c0_i32_0 : i32, i32
  }
  func.func @transform_2(%arg0: i32) -> (i32, i32) {
    %c0_i32 = arith.constant 0 : i32
    %c0_i32_0 = arith.constant 0 : i32
    %c0_i32_1 = arith.constant 0 : i32
    return %c0_i32, %c0_i32_0 : i32, i32
  }
  func.func @transform_3(%arg0: i32) -> (i32, i32, i32, i32) {
    %c0_i32 = arith.constant 0 : i32
    %c0_i32_0 = arith.constant 0 : i32
    %c0_i32_1 = arith.constant 0 : i32
    %c0_i32_2 = arith.constant 0 : i32
    return %arg0, %c0_i32, %c0_i32_0, %c0_i32_1 : i32, i32, i32, i32
  }
}

module attributes {stable_mosaic.version = 11 : i64} {
  func.func @_base_kernel(%arg0: i32, %arg1: memref<1x4x64xf32, #tpu.memory_space<vmem>>, %arg2: memref<8x4xf32, #tpu.memory_space<vmem>>, %arg3: memref<8x1xf32, #tpu.memory_space<vmem>>, %arg4: memref<32x8xf32, #tpu.memory_space<vmem>>, %arg5: memref<32x1xf32, #tpu.memory_space<vmem>>, %arg6: memref<1x5x64xf32, #tpu.memory_space<vmem>>, %arg7: memref<1x5x64xf32, #tpu.memory_space<vmem>>, %arg8: memref<1x5x64xf32, #tpu.memory_space<vmem>>, %arg9: memref<1x8x64xf32, #tpu.memory_space<vmem>>) attributes {dimension_semantics = [#tpu.dimension_semantics<parallel>], iteration_bounds = array<i64: 4>, scalar_prefetch = 0 : i64, scratch_operands = 0 : i64, tpu.core_type = #tpu.core_type<tc>, window_params = [{transform_indices = @transform_0, window_bounds = array<i64: 1, 4, 64>}, {pipeline_mode = #tpu.pipeline_mode<synchronous>, transform_indices = @transform_1, window_bounds = array<i64: 8, 4>}, {pipeline_mode = #tpu.pipeline_mode<synchronous>, transform_indices = @transform_2, window_bounds = array<i64: 8, 1>}, {pipeline_mode = #tpu.pipeline_mode<synchronous>, transform_indices = @transform_3, window_bounds = array<i64: 32, 8>}, {pipeline_mode = #tpu.pipeline_mode<synchronous>, transform_indices = @transform_4, window_bounds = array<i64: 32, 1>}, {transform_indices = @transform_5, window_bounds = array<i64: 1, 5, 64>}, {transform_indices = @transform_6, window_bounds = array<i64: 1, 5, 64>}, {transform_indices = @transform_7, window_bounds = array<i64: 1, 5, 64>}, {transform_indices = @transform_8, window_bounds = array<i64: 1, 8, 64>}]} {
    %c0 = arith.constant 0 : index
    %c0_0 = arith.constant 0 : index
    %c0_1 = arith.constant 0 : index
    %0 = vector.load %arg1[%c0, %c0_0, %c0_1] : memref<1x4x64xf32, #tpu.memory_space<vmem>>, vector<1x4x64xf32>
    %1 = vector.shape_cast %0 : vector<1x4x64xf32> to vector<4x64xf32>
    %c0_2 = arith.constant 0 : index
    %c0_3 = arith.constant 0 : index
    %2 = vector.load %arg2[%c0_2, %c0_3] : memref<8x4xf32, #tpu.memory_space<vmem>>, vector<8x4xf32>
    %cst = arith.constant dense<0.000000e+00> : vector<8x64xf32>
    %3 = tpu.matmul %2, %1, %cst {dimension_numbers = #tpu.dot_dimension_numbers<[1], [0], [0], [1], [0, 0, 1, 1], [], []>} : vector<8x4xf32>, vector<4x64xf32>, vector<8x64xf32> -> vector<8x64xf32>
    %c0_4 = arith.constant 0 : index
    %c0_5 = arith.constant 0 : index
    %4 = vector.load %arg3[%c0_4, %c0_5] : memref<8x1xf32, #tpu.memory_space<vmem>>, vector<8x1xf32>
    %5 = vector.broadcast %4 : vector<8x1xf32> to vector<8x64xf32>
    %6 = arith.addf %3, %5 : vector<8x64xf32>
    %cst_6 = arith.constant 0.000000e+00 : f32
    %7 = vector.broadcast %cst_6 : f32 to vector<8x64xf32>
    %8 = arith.maximumf %6, %7 : vector<8x64xf32>
    %c0_7 = arith.constant 0 : index
    %c0_8 = arith.constant 0 : index
    %9 = vector.load %arg4[%c0_7, %c0_8] : memref<32x8xf32, #tpu.memory_space<vmem>>, vector<32x8xf32>
    %cst_9 = arith.constant dense<0.000000e+00> : vector<32x64xf32>
    %10 = tpu.matmul %9, %8, %cst_9 {dimension_numbers = #tpu.dot_dimension_numbers<[1], [0], [0], [1], [0, 0, 1, 1], [], []>} : vector<32x8xf32>, vector<8x64xf32>, vector<32x64xf32> -> vector<32x64xf32>
    %c0_10 = arith.constant 0 : index
    %c0_11 = arith.constant 0 : index
    %11 = vector.load %arg5[%c0_10, %c0_11] : memref<32x1xf32, #tpu.memory_space<vmem>>, vector<32x1xf32>
    %12 = vector.broadcast %11 : vector<32x1xf32> to vector<32x64xf32>
    %13 = arith.addf %10, %12 : vector<32x64xf32>
    %14 = vector.extract_strided_slice %13 {offsets = [0, 0], sizes = [5, 64], strides = [1, 1]} : vector<32x64xf32> to vector<5x64xf32>
    %c0_12 = arith.constant 0 : index
    %c0_13 = arith.constant 0 : index
    %c0_14 = arith.constant 0 : index
    %15 = vector.load %arg6[%c0_12, %c0_13, %c0_14] : memref<1x5x64xf32, #tpu.memory_space<vmem>>, vector<1x5x64xf32>
    %16 = vector.shape_cast %15 : vector<1x5x64xf32> to vector<5x64xf32>
    %17 = vector.shape_cast %14 : vector<5x64xf32> to vector<1x5x64xf32>
    tpu.vector_store %arg6[%c0_12, %c0_13, %c0_14], %17 {strides = array<i32>} : memref<1x5x64xf32, #tpu.memory_space<vmem>>, vector<1x5x64xf32>,
    %18 = vector.extract_strided_slice %13 {offsets = [8, 0], sizes = [5, 64], strides = [1, 1]} : vector<32x64xf32> to vector<5x64xf32>
    %c0_15 = arith.constant 0 : index
    %c0_16 = arith.constant 0 : index
    %c0_17 = arith.constant 0 : index
    %19 = vector.load %arg7[%c0_15, %c0_16, %c0_17] : memref<1x5x64xf32, #tpu.memory_space<vmem>>, vector<1x5x64xf32>
    %20 = vector.shape_cast %19 : vector<1x5x64xf32> to vector<5x64xf32>
    %21 = vector.shape_cast %18 : vector<5x64xf32> to vector<1x5x64xf32>
    tpu.vector_store %arg7[%c0_15, %c0_16, %c0_17], %21 {strides = array<i32>} : memref<1x5x64xf32, #tpu.memory_space<vmem>>, vector<1x5x64xf32>,
    %22 = vector.extract_strided_slice %13 {offsets = [16, 0], sizes = [5, 64], strides = [1, 1]} : vector<32x64xf32> to vector<5x64xf32>
    %c0_18 = arith.constant 0 : index
    %c0_19 = arith.constant 0 : index
    %c0_20 = arith.constant 0 : index
    %23 = vector.load %arg8[%c0_18, %c0_19, %c0_20] : memref<1x5x64xf32, #tpu.memory_space<vmem>>, vector<1x5x64xf32>
    %24 = vector.shape_cast %23 : vector<1x5x64xf32> to vector<5x64xf32>
    %25 = vector.shape_cast %22 : vector<5x64xf32> to vector<1x5x64xf32>
    tpu.vector_store %arg8[%c0_18, %c0_19, %c0_20], %25 {strides = array<i32>} : memref<1x5x64xf32, #tpu.memory_space<vmem>>, vector<1x5x64xf32>,
    %26 = vector.extract_strided_slice %13 {offsets = [24, 0], sizes = [8, 64], strides = [1, 1]} : vector<32x64xf32> to vector<8x64xf32>
    %c0_21 = arith.constant 0 : index
    %c0_22 = arith.constant 0 : index
    %c0_23 = arith.constant 0 : index
    %27 = vector.load %arg9[%c0_21, %c0_22, %c0_23] : memref<1x8x64xf32, #tpu.memory_space<vmem>>, vector<1x8x64xf32>
    %28 = vector.shape_cast %27 : vector<1x8x64xf32> to vector<8x64xf32>
    %29 = vector.shape_cast %26 : vector<8x64xf32> to vector<1x8x64xf32>
    tpu.vector_store %arg9[%c0_21, %c0_22, %c0_23], %29 {strides = array<i32>} : memref<1x8x64xf32, #tpu.memory_space<vmem>>, vector<1x8x64xf32>,
    return
  }
  func.func @transform_0(%arg0: i32) -> (i32, i32, i32) {
    %c0_i32 = arith.constant 0 : i32
    %c0_i32_0 = arith.constant 0 : i32
    %c0_i32_1 = arith.constant 0 : i32
    return %arg0, %c0_i32, %c0_i32_0 : i32, i32, i32
  }
  func.func @transform_1(%arg0: i32) -> (i32, i32) {
    %c0_i32 = arith.constant 0 : i32
    %c0_i32_0 = arith.constant 0 : i32
    %c0_i32_1 = arith.constant 0 : i32
    return %c0_i32, %c0_i32_0 : i32, i32
  }
  func.func @transform_2(%arg0: i32) -> (i32, i32) {
    %c0_i32 = arith.constant 0 : i32
    %c0_i32_0 = arith.constant 0 : i32
    %c0_i32_1 = arith.constant 0 : i32
    return %c0_i32, %c0_i32_0 : i32, i32
  }
  func.func @transform_3(%arg0: i32) -> (i32, i32) {
    %c0_i32 = arith.constant 0 : i32
    %c0_i32_0 = arith.constant 0 : i32
    %c0_i32_1 = arith.constant 0 : i32
    return %c0_i32, %c0_i32_0 : i32, i32
  }
  func.func @transform_4(%arg0: i32) -> (i32, i32) {
    %c0_i32 = arith.constant 0 : i32
    %c0_i32_0 = arith.constant 0 : i32
    %c0_i32_1 = arith.constant 0 : i32
    return %c0_i32, %c0_i32_0 : i32, i32
  }
  func.func @transform_5(%arg0: i32) -> (i32, i32, i32) {
    %c0_i32 = arith.constant 0 : i32
    %c0_i32_0 = arith.constant 0 : i32
    %c0_i32_1 = arith.constant 0 : i32
    return %arg0, %c0_i32, %c0_i32_0 : i32, i32, i32
  }
  func.func @transform_6(%arg0: i32) -> (i32, i32, i32) {
    %c0_i32 = arith.constant 0 : i32
    %c0_i32_0 = arith.constant 0 : i32
    %c0_i32_1 = arith.constant 0 : i32
    return %arg0, %c0_i32, %c0_i32_0 : i32, i32, i32
  }
  func.func @transform_7(%arg0: i32) -> (i32, i32, i32) {
    %c0_i32 = arith.constant 0 : i32
    %c0_i32_0 = arith.constant 0 : i32
    %c0_i32_1 = arith.constant 0 : i32
    return %arg0, %c0_i32, %c0_i32_0 : i32, i32, i32
  }
  func.func @transform_8(%arg0: i32) -> (i32, i32, i32) {
    %c0_i32 = arith.constant 0 : i32
    %c0_i32_0 = arith.constant 0 : i32
    %c0_i32_1 = arith.constant 0 : i32
    return %arg0, %c0_i32, %c0_i32_0 : i32, i32, i32
  }
}

module attributes {stable_mosaic.version = 11 : i64} {
  func.func @_base_kernel(%arg0: i32, %arg1: memref<1x4x144xf32, #tpu.memory_space<vmem>>, %arg2: memref<8x4xf32, #tpu.memory_space<vmem>>, %arg3: memref<8x1xf32, #tpu.memory_space<vmem>>, %arg4: memref<32x8xf32, #tpu.memory_space<vmem>>, %arg5: memref<32x1xf32, #tpu.memory_space<vmem>>, %arg6: memref<1x5x144xf32, #tpu.memory_space<vmem>>, %arg7: memref<1x5x144xf32, #tpu.memory_space<vmem>>, %arg8: memref<1x5x144xf32, #tpu.memory_space<vmem>>, %arg9: memref<1x8x144xf32, #tpu.memory_space<vmem>>) attributes {dimension_semantics = [#tpu.dimension_semantics<parallel>], iteration_bounds = array<i64: 4>, scalar_prefetch = 0 : i64, scratch_operands = 0 : i64, tpu.core_type = #tpu.core_type<tc>, window_params = [{transform_indices = @transform_0, window_bounds = array<i64: 1, 4, 144>}, {pipeline_mode = #tpu.pipeline_mode<synchronous>, transform_indices = @transform_1, window_bounds = array<i64: 8, 4>}, {pipeline_mode = #tpu.pipeline_mode<synchronous>, transform_indices = @transform_2, window_bounds = array<i64: 8, 1>}, {pipeline_mode = #tpu.pipeline_mode<synchronous>, transform_indices = @transform_3, window_bounds = array<i64: 32, 8>}, {pipeline_mode = #tpu.pipeline_mode<synchronous>, transform_indices = @transform_4, window_bounds = array<i64: 32, 1>}, {transform_indices = @transform_5, window_bounds = array<i64: 1, 5, 144>}, {transform_indices = @transform_6, window_bounds = array<i64: 1, 5, 144>}, {transform_indices = @transform_7, window_bounds = array<i64: 1, 5, 144>}, {transform_indices = @transform_8, window_bounds = array<i64: 1, 8, 144>}]} {
    %c0 = arith.constant 0 : index
    %c0_0 = arith.constant 0 : index
    %c0_1 = arith.constant 0 : index
    %0 = vector.load %arg1[%c0, %c0_0, %c0_1] : memref<1x4x144xf32, #tpu.memory_space<vmem>>, vector<1x4x144xf32>
    %1 = vector.shape_cast %0 : vector<1x4x144xf32> to vector<4x144xf32>
    %c0_2 = arith.constant 0 : index
    %c0_3 = arith.constant 0 : index
    %2 = vector.load %arg2[%c0_2, %c0_3] : memref<8x4xf32, #tpu.memory_space<vmem>>, vector<8x4xf32>
    %cst = arith.constant dense<0.000000e+00> : vector<8x144xf32>
    %3 = tpu.matmul %2, %1, %cst {dimension_numbers = #tpu.dot_dimension_numbers<[1], [0], [0], [1], [0, 0, 1, 1], [], []>} : vector<8x4xf32>, vector<4x144xf32>, vector<8x144xf32> -> vector<8x144xf32>
    %c0_4 = arith.constant 0 : index
    %c0_5 = arith.constant 0 : index
    %4 = vector.load %arg3[%c0_4, %c0_5] : memref<8x1xf32, #tpu.memory_space<vmem>>, vector<8x1xf32>
    %5 = vector.broadcast %4 : vector<8x1xf32> to vector<8x144xf32>
    %6 = arith.addf %3, %5 : vector<8x144xf32>
    %cst_6 = arith.constant 0.000000e+00 : f32
    %7 = vector.broadcast %cst_6 : f32 to vector<8x144xf32>
    %8 = arith.maximumf %6, %7 : vector<8x144xf32>
    %c0_7 = arith.constant 0 : index
    %c0_8 = arith.constant 0 : index
    %9 = vector.load %arg4[%c0_7, %c0_8] : memref<32x8xf32, #tpu.memory_space<vmem>>, vector<32x8xf32>
    %cst_9 = arith.constant dense<0.000000e+00> : vector<32x144xf32>
    %10 = tpu.matmul %9, %8, %cst_9 {dimension_numbers = #tpu.dot_dimension_numbers<[1], [0], [0], [1], [0, 0, 1, 1], [], []>} : vector<32x8xf32>, vector<8x144xf32>, vector<32x144xf32> -> vector<32x144xf32>
    %c0_10 = arith.constant 0 : index
    %c0_11 = arith.constant 0 : index
    %11 = vector.load %arg5[%c0_10, %c0_11] : memref<32x1xf32, #tpu.memory_space<vmem>>, vector<32x1xf32>
    %12 = vector.broadcast %11 : vector<32x1xf32> to vector<32x144xf32>
    %13 = arith.addf %10, %12 : vector<32x144xf32>
    %14 = vector.extract_strided_slice %13 {offsets = [0, 0], sizes = [5, 144], strides = [1, 1]} : vector<32x144xf32> to vector<5x144xf32>
    %c0_12 = arith.constant 0 : index
    %c0_13 = arith.constant 0 : index
    %c0_14 = arith.constant 0 : index
    %15 = vector.load %arg6[%c0_12, %c0_13, %c0_14] : memref<1x5x144xf32, #tpu.memory_space<vmem>>, vector<1x5x144xf32>
    %16 = vector.shape_cast %15 : vector<1x5x144xf32> to vector<5x144xf32>
    %17 = vector.shape_cast %14 : vector<5x144xf32> to vector<1x5x144xf32>
    tpu.vector_store %arg6[%c0_12, %c0_13, %c0_14], %17 {strides = array<i32>} : memref<1x5x144xf32, #tpu.memory_space<vmem>>, vector<1x5x144xf32>,
    %18 = vector.extract_strided_slice %13 {offsets = [8, 0], sizes = [5, 144], strides = [1, 1]} : vector<32x144xf32> to vector<5x144xf32>
    %c0_15 = arith.constant 0 : index
    %c0_16 = arith.constant 0 : index
    %c0_17 = arith.constant 0 : index
    %19 = vector.load %arg7[%c0_15, %c0_16, %c0_17] : memref<1x5x144xf32, #tpu.memory_space<vmem>>, vector<1x5x144xf32>
    %20 = vector.shape_cast %19 : vector<1x5x144xf32> to vector<5x144xf32>
    %21 = vector.shape_cast %18 : vector<5x144xf32> to vector<1x5x144xf32>
    tpu.vector_store %arg7[%c0_15, %c0_16, %c0_17], %21 {strides = array<i32>} : memref<1x5x144xf32, #tpu.memory_space<vmem>>, vector<1x5x144xf32>,
    %22 = vector.extract_strided_slice %13 {offsets = [16, 0], sizes = [5, 144], strides = [1, 1]} : vector<32x144xf32> to vector<5x144xf32>
    %c0_18 = arith.constant 0 : index
    %c0_19 = arith.constant 0 : index
    %c0_20 = arith.constant 0 : index
    %23 = vector.load %arg8[%c0_18, %c0_19, %c0_20] : memref<1x5x144xf32, #tpu.memory_space<vmem>>, vector<1x5x144xf32>
    %24 = vector.shape_cast %23 : vector<1x5x144xf32> to vector<5x144xf32>
    %25 = vector.shape_cast %22 : vector<5x144xf32> to vector<1x5x144xf32>
    tpu.vector_store %arg8[%c0_18, %c0_19, %c0_20], %25 {strides = array<i32>} : memref<1x5x144xf32, #tpu.memory_space<vmem>>, vector<1x5x144xf32>,
    %26 = vector.extract_strided_slice %13 {offsets = [24, 0], sizes = [8, 144], strides = [1, 1]} : vector<32x144xf32> to vector<8x144xf32>
    %c0_21 = arith.constant 0 : index
    %c0_22 = arith.constant 0 : index
    %c0_23 = arith.constant 0 : index
    %27 = vector.load %arg9[%c0_21, %c0_22, %c0_23] : memref<1x8x144xf32, #tpu.memory_space<vmem>>, vector<1x8x144xf32>
    %28 = vector.shape_cast %27 : vector<1x8x144xf32> to vector<8x144xf32>
    %29 = vector.shape_cast %26 : vector<8x144xf32> to vector<1x8x144xf32>
    tpu.vector_store %arg9[%c0_21, %c0_22, %c0_23], %29 {strides = array<i32>} : memref<1x8x144xf32, #tpu.memory_space<vmem>>, vector<1x8x144xf32>,
    return
  }
  func.func @transform_0(%arg0: i32) -> (i32, i32, i32) {
    %c0_i32 = arith.constant 0 : i32
    %c0_i32_0 = arith.constant 0 : i32
    %c0_i32_1 = arith.constant 0 : i32
    return %arg0, %c0_i32, %c0_i32_0 : i32, i32, i32
  }
  func.func @transform_1(%arg0: i32) -> (i32, i32) {
    %c0_i32 = arith.constant 0 : i32
    %c0_i32_0 = arith.constant 0 : i32
    %c0_i32_1 = arith.constant 0 : i32
    return %c0_i32, %c0_i32_0 : i32, i32
  }
  func.func @transform_2(%arg0: i32) -> (i32, i32) {
    %c0_i32 = arith.constant 0 : i32
    %c0_i32_0 = arith.constant 0 : i32
    %c0_i32_1 = arith.constant 0 : i32
    return %c0_i32, %c0_i32_0 : i32, i32
  }
  func.func @transform_3(%arg0: i32) -> (i32, i32) {
    %c0_i32 = arith.constant 0 : i32
    %c0_i32_0 = arith.constant 0 : i32
    %c0_i32_1 = arith.constant 0 : i32
    return %c0_i32, %c0_i32_0 : i32, i32
  }
  func.func @transform_4(%arg0: i32) -> (i32, i32) {
    %c0_i32 = arith.constant 0 : i32
    %c0_i32_0 = arith.constant 0 : i32
    %c0_i32_1 = arith.constant 0 : i32
    return %c0_i32, %c0_i32_0 : i32, i32
  }
  func.func @transform_5(%arg0: i32) -> (i32, i32, i32) {
    %c0_i32 = arith.constant 0 : i32
    %c0_i32_0 = arith.constant 0 : i32
    %c0_i32_1 = arith.constant 0 : i32
    return %arg0, %c0_i32, %c0_i32_0 : i32, i32, i32
  }
  func.func @transform_6(%arg0: i32) -> (i32, i32, i32) {
    %c0_i32 = arith.constant 0 : i32
    %c0_i32_0 = arith.constant 0 : i32
    %c0_i32_1 = arith.constant 0 : i32
    return %arg0, %c0_i32, %c0_i32_0 : i32, i32, i32
  }
  func.func @transform_7(%arg0: i32) -> (i32, i32, i32) {
    %c0_i32 = arith.constant 0 : i32
    %c0_i32_0 = arith.constant 0 : i32
    %c0_i32_1 = arith.constant 0 : i32
    return %arg0, %c0_i32, %c0_i32_0 : i32, i32, i32
  }
  func.func @transform_8(%arg0: i32) -> (i32, i32, i32) {
    %c0_i32 = arith.constant 0 : i32
    %c0_i32_0 = arith.constant 0 : i32
    %c0_i32_1 = arith.constant 0 : i32
    return %arg0, %c0_i32, %c0_i32_0 : i32, i32, i32
  }
}

module attributes {stable_mosaic.version = 11 : i64} {
  func.func @_base_kernel(%arg0: i32, %arg1: memref<1x4x256xf32, #tpu.memory_space<vmem>>, %arg2: memref<8x4xf32, #tpu.memory_space<vmem>>, %arg3: memref<8x1xf32, #tpu.memory_space<vmem>>, %arg4: memref<32x8xf32, #tpu.memory_space<vmem>>, %arg5: memref<32x1xf32, #tpu.memory_space<vmem>>, %arg6: memref<1x5x256xf32, #tpu.memory_space<vmem>>, %arg7: memref<1x5x256xf32, #tpu.memory_space<vmem>>, %arg8: memref<1x5x256xf32, #tpu.memory_space<vmem>>, %arg9: memref<1x8x256xf32, #tpu.memory_space<vmem>>) attributes {dimension_semantics = [#tpu.dimension_semantics<parallel>], iteration_bounds = array<i64: 4>, scalar_prefetch = 0 : i64, scratch_operands = 0 : i64, tpu.core_type = #tpu.core_type<tc>, window_params = [{transform_indices = @transform_0, window_bounds = array<i64: 1, 4, 256>}, {pipeline_mode = #tpu.pipeline_mode<synchronous>, transform_indices = @transform_1, window_bounds = array<i64: 8, 4>}, {pipeline_mode = #tpu.pipeline_mode<synchronous>, transform_indices = @transform_2, window_bounds = array<i64: 8, 1>}, {pipeline_mode = #tpu.pipeline_mode<synchronous>, transform_indices = @transform_3, window_bounds = array<i64: 32, 8>}, {pipeline_mode = #tpu.pipeline_mode<synchronous>, transform_indices = @transform_4, window_bounds = array<i64: 32, 1>}, {transform_indices = @transform_5, window_bounds = array<i64: 1, 5, 256>}, {transform_indices = @transform_6, window_bounds = array<i64: 1, 5, 256>}, {transform_indices = @transform_7, window_bounds = array<i64: 1, 5, 256>}, {transform_indices = @transform_8, window_bounds = array<i64: 1, 8, 256>}]} {
    %c0 = arith.constant 0 : index
    %c0_0 = arith.constant 0 : index
    %c0_1 = arith.constant 0 : index
    %0 = vector.load %arg1[%c0, %c0_0, %c0_1] : memref<1x4x256xf32, #tpu.memory_space<vmem>>, vector<1x4x256xf32>
    %1 = vector.shape_cast %0 : vector<1x4x256xf32> to vector<4x256xf32>
    %c0_2 = arith.constant 0 : index
    %c0_3 = arith.constant 0 : index
    %2 = vector.load %arg2[%c0_2, %c0_3] : memref<8x4xf32, #tpu.memory_space<vmem>>, vector<8x4xf32>
    %cst = arith.constant dense<0.000000e+00> : vector<8x256xf32>
    %3 = tpu.matmul %2, %1, %cst {dimension_numbers = #tpu.dot_dimension_numbers<[1], [0], [0], [1], [0, 0, 1, 1], [], []>} : vector<8x4xf32>, vector<4x256xf32>, vector<8x256xf32> -> vector<8x256xf32>
    %c0_4 = arith.constant 0 : index
    %c0_5 = arith.constant 0 : index
    %4 = vector.load %arg3[%c0_4, %c0_5] : memref<8x1xf32, #tpu.memory_space<vmem>>, vector<8x1xf32>
    %5 = vector.broadcast %4 : vector<8x1xf32> to vector<8x256xf32>
    %6 = arith.addf %3, %5 : vector<8x256xf32>
    %cst_6 = arith.constant 0.000000e+00 : f32
    %7 = vector.broadcast %cst_6 : f32 to vector<8x256xf32>
    %8 = arith.maximumf %6, %7 : vector<8x256xf32>
    %c0_7 = arith.constant 0 : index
    %c0_8 = arith.constant 0 : index
    %9 = vector.load %arg4[%c0_7, %c0_8] : memref<32x8xf32, #tpu.memory_space<vmem>>, vector<32x8xf32>
    %cst_9 = arith.constant dense<0.000000e+00> : vector<32x256xf32>
    %10 = tpu.matmul %9, %8, %cst_9 {dimension_numbers = #tpu.dot_dimension_numbers<[1], [0], [0], [1], [0, 0, 1, 1], [], []>} : vector<32x8xf32>, vector<8x256xf32>, vector<32x256xf32> -> vector<32x256xf32>
    %c0_10 = arith.constant 0 : index
    %c0_11 = arith.constant 0 : index
    %11 = vector.load %arg5[%c0_10, %c0_11] : memref<32x1xf32, #tpu.memory_space<vmem>>, vector<32x1xf32>
    %12 = vector.broadcast %11 : vector<32x1xf32> to vector<32x256xf32>
    %13 = arith.addf %10, %12 : vector<32x256xf32>
    %14 = vector.extract_strided_slice %13 {offsets = [0, 0], sizes = [5, 256], strides = [1, 1]} : vector<32x256xf32> to vector<5x256xf32>
    %c0_12 = arith.constant 0 : index
    %c0_13 = arith.constant 0 : index
    %c0_14 = arith.constant 0 : index
    %15 = vector.load %arg6[%c0_12, %c0_13, %c0_14] : memref<1x5x256xf32, #tpu.memory_space<vmem>>, vector<1x5x256xf32>
    %16 = vector.shape_cast %15 : vector<1x5x256xf32> to vector<5x256xf32>
    %17 = vector.shape_cast %14 : vector<5x256xf32> to vector<1x5x256xf32>
    tpu.vector_store %arg6[%c0_12, %c0_13, %c0_14], %17 {strides = array<i32>} : memref<1x5x256xf32, #tpu.memory_space<vmem>>, vector<1x5x256xf32>,
    %18 = vector.extract_strided_slice %13 {offsets = [8, 0], sizes = [5, 256], strides = [1, 1]} : vector<32x256xf32> to vector<5x256xf32>
    %c0_15 = arith.constant 0 : index
    %c0_16 = arith.constant 0 : index
    %c0_17 = arith.constant 0 : index
    %19 = vector.load %arg7[%c0_15, %c0_16, %c0_17] : memref<1x5x256xf32, #tpu.memory_space<vmem>>, vector<1x5x256xf32>
    %20 = vector.shape_cast %19 : vector<1x5x256xf32> to vector<5x256xf32>
    %21 = vector.shape_cast %18 : vector<5x256xf32> to vector<1x5x256xf32>
    tpu.vector_store %arg7[%c0_15, %c0_16, %c0_17], %21 {strides = array<i32>} : memref<1x5x256xf32, #tpu.memory_space<vmem>>, vector<1x5x256xf32>,
    %22 = vector.extract_strided_slice %13 {offsets = [16, 0], sizes = [5, 256], strides = [1, 1]} : vector<32x256xf32> to vector<5x256xf32>
    %c0_18 = arith.constant 0 : index
    %c0_19 = arith.constant 0 : index
    %c0_20 = arith.constant 0 : index
    %23 = vector.load %arg8[%c0_18, %c0_19, %c0_20] : memref<1x5x256xf32, #tpu.memory_space<vmem>>, vector<1x5x256xf32>
    %24 = vector.shape_cast %23 : vector<1x5x256xf32> to vector<5x256xf32>
    %25 = vector.shape_cast %22 : vector<5x256xf32> to vector<1x5x256xf32>
    tpu.vector_store %arg8[%c0_18, %c0_19, %c0_20], %25 {strides = array<i32>} : memref<1x5x256xf32, #tpu.memory_space<vmem>>, vector<1x5x256xf32>,
    %26 = vector.extract_strided_slice %13 {offsets = [24, 0], sizes = [8, 256], strides = [1, 1]} : vector<32x256xf32> to vector<8x256xf32>
    %c0_21 = arith.constant 0 : index
    %c0_22 = arith.constant 0 : index
    %c0_23 = arith.constant 0 : index
    %27 = vector.load %arg9[%c0_21, %c0_22, %c0_23] : memref<1x8x256xf32, #tpu.memory_space<vmem>>, vector<1x8x256xf32>
    %28 = vector.shape_cast %27 : vector<1x8x256xf32> to vector<8x256xf32>
    %29 = vector.shape_cast %26 : vector<8x256xf32> to vector<1x8x256xf32>
    tpu.vector_store %arg9[%c0_21, %c0_22, %c0_23], %29 {strides = array<i32>} : memref<1x8x256xf32, #tpu.memory_space<vmem>>, vector<1x8x256xf32>,
    return
  }
  func.func @transform_0(%arg0: i32) -> (i32, i32, i32) {
    %c0_i32 = arith.constant 0 : i32
    %c0_i32_0 = arith.constant 0 : i32
    %c0_i32_1 = arith.constant 0 : i32
    return %arg0, %c0_i32, %c0_i32_0 : i32, i32, i32
  }
  func.func @transform_1(%arg0: i32) -> (i32, i32) {
    %c0_i32 = arith.constant 0 : i32
    %c0_i32_0 = arith.constant 0 : i32
    %c0_i32_1 = arith.constant 0 : i32
    return %c0_i32, %c0_i32_0 : i32, i32
  }
  func.func @transform_2(%arg0: i32) -> (i32, i32) {
    %c0_i32 = arith.constant 0 : i32
    %c0_i32_0 = arith.constant 0 : i32
    %c0_i32_1 = arith.constant 0 : i32
    return %c0_i32, %c0_i32_0 : i32, i32
  }
  func.func @transform_3(%arg0: i32) -> (i32, i32) {
    %c0_i32 = arith.constant 0 : i32
    %c0_i32_0 = arith.constant 0 : i32
    %c0_i32_1 = arith.constant 0 : i32
    return %c0_i32, %c0_i32_0 : i32, i32
  }
  func.func @transform_4(%arg0: i32) -> (i32, i32) {
    %c0_i32 = arith.constant 0 : i32
    %c0_i32_0 = arith.constant 0 : i32
    %c0_i32_1 = arith.constant 0 : i32
    return %c0_i32, %c0_i32_0 : i32, i32
  }
  func.func @transform_5(%arg0: i32) -> (i32, i32, i32) {
    %c0_i32 = arith.constant 0 : i32
    %c0_i32_0 = arith.constant 0 : i32
    %c0_i32_1 = arith.constant 0 : i32
    return %arg0, %c0_i32, %c0_i32_0 : i32, i32, i32
  }
  func.func @transform_6(%arg0: i32) -> (i32, i32, i32) {
    %c0_i32 = arith.constant 0 : i32
    %c0_i32_0 = arith.constant 0 : i32
    %c0_i32_1 = arith.constant 0 : i32
    return %arg0, %c0_i32, %c0_i32_0 : i32, i32, i32
  }
  func.func @transform_7(%arg0: i32) -> (i32, i32, i32) {
    %c0_i32 = arith.constant 0 : i32
    %c0_i32_0 = arith.constant 0 : i32
    %c0_i32_1 = arith.constant 0 : i32
    return %arg0, %c0_i32, %c0_i32_0 : i32, i32, i32
  }
  func.func @transform_8(%arg0: i32) -> (i32, i32, i32) {
    %c0_i32 = arith.constant 0 : i32
    %c0_i32_0 = arith.constant 0 : i32
    %c0_i32_1 = arith.constant 0 : i32
    return %arg0, %c0_i32, %c0_i32_0 : i32, i32, i32
  }
}

module attributes {stable_mosaic.version = 11 : i64} {
  func.func @_fts_distance_kernel(%arg0: i32, %arg1: i32, %arg2: memref<1x8x64xf32, #tpu.memory_space<vmem>>, %arg3: memref<1x8x64xf32, #tpu.memory_space<vmem>>, %arg4: memref<1x64x64xf32, #tpu.memory_space<vmem>>) attributes {dimension_semantics = [#tpu.dimension_semantics<parallel>, #tpu.dimension_semantics<parallel>], iteration_bounds = array<i64: 4, 1>, scalar_prefetch = 0 : i64, scratch_operands = 0 : i64, tpu.core_type = #tpu.core_type<tc>, window_params = [{transform_indices = @transform_0, window_bounds = array<i64: 1, 8, 64>}, {transform_indices = @transform_1, window_bounds = array<i64: 1, 8, 64>}, {transform_indices = @transform_2, window_bounds = array<i64: 1, 64, 64>}]} {
    %c0 = arith.constant 0 : index
    %c0_0 = arith.constant 0 : index
    %c0_1 = arith.constant 0 : index
    %0 = vector.load %arg2[%c0, %c0_0, %c0_1] : memref<1x8x64xf32, #tpu.memory_space<vmem>>, vector<1x8x64xf32>
    %1 = vector.shape_cast %0 : vector<1x8x64xf32> to vector<8x64xf32>
    %c0_2 = arith.constant 0 : index
    %c0_3 = arith.constant 0 : index
    %c0_4 = arith.constant 0 : index
    %2 = vector.load %arg3[%c0_2, %c0_3, %c0_4] : memref<1x8x64xf32, #tpu.memory_space<vmem>>, vector<1x8x64xf32>
    %3 = vector.shape_cast %2 : vector<1x8x64xf32> to vector<8x64xf32>
    %cst = arith.constant dense<0.000000e+00> : vector<64x64xf32>
    %4 = tpu.matmul %1, %3, %cst {dimension_numbers = #tpu.dot_dimension_numbers<[0], [0], [1], [1], [0, 1, 1, 1], [], []>} : vector<8x64xf32>, vector<8x64xf32>, vector<64x64xf32> -> vector<64x64xf32>
    %5 = arith.negf %4 : vector<64x64xf32>
    %6 = math.exp %5 : vector<64x64xf32>
    %cst_5 = arith.constant 1.000000e+00 : f32
    %7 = vector.broadcast %cst_5 : f32 to vector<64x64xf32>
    %8 = arith.addf %7, %6 : vector<64x64xf32>
    %9 = arith.divf %7, %8 : vector<64x64xf32>
    %c0_6 = arith.constant 0 : index
    %c0_7 = arith.constant 0 : index
    %c0_8 = arith.constant 0 : index
    %10 = vector.load %arg4[%c0_6, %c0_7, %c0_8] : memref<1x64x64xf32, #tpu.memory_space<vmem>>, vector<1x64x64xf32>
    %11 = vector.shape_cast %10 : vector<1x64x64xf32> to vector<64x64xf32>
    %12 = vector.shape_cast %9 : vector<64x64xf32> to vector<1x64x64xf32>
    tpu.vector_store %arg4[%c0_6, %c0_7, %c0_8], %12 {strides = array<i32>} : memref<1x64x64xf32, #tpu.memory_space<vmem>>, vector<1x64x64xf32>,
    return
  }
  func.func @transform_0(%arg0: i32, %arg1: i32) -> (i32, i32, i32) {
    %c0_i32 = arith.constant 0 : i32
    %c0_i32_0 = arith.constant 0 : i32
    %c0_i32_1 = arith.constant 0 : i32
    return %arg0, %c0_i32, %c0_i32_0 : i32, i32, i32
  }
  func.func @transform_1(%arg0: i32, %arg1: i32) -> (i32, i32, i32) {
    %c0_i32 = arith.constant 0 : i32
    %c0_i32_0 = arith.constant 0 : i32
    return %arg0, %c0_i32, %arg1 : i32, i32, i32
  }
  func.func @transform_2(%arg0: i32, %arg1: i32) -> (i32, i32, i32) {
    %c0_i32 = arith.constant 0 : i32
    %c0_i32_0 = arith.constant 0 : i32
    return %arg0, %c0_i32, %arg1 : i32, i32, i32
  }
}

module attributes {stable_mosaic.version = 11 : i64} {
  func.func @_interp_reduce_kernel(%arg0: i32, %arg1: memref<1x5x16x16xf32, #tpu.memory_space<vmem>>, %arg2: memref<1x5x8x8xf32, #tpu.memory_space<vmem>>, %arg3: memref<16x8xf32, #tpu.memory_space<vmem>>, %arg4: memref<8x16xf32, #tpu.memory_space<vmem>>, %arg5: memref<1x5x12x12xf32, #tpu.memory_space<vmem>>, %arg6: memref<16x12xf32, #tpu.memory_space<vmem>>, %arg7: memref<12x16xf32, #tpu.memory_space<vmem>>, %arg8: memref<1x5x16x16xf32, #tpu.memory_space<vmem>>) attributes {dimension_semantics = [#tpu.dimension_semantics<parallel>], iteration_bounds = array<i64: 4>, scalar_prefetch = 0 : i64, scratch_operands = 0 : i64, tpu.core_type = #tpu.core_type<tc>, window_params = [{transform_indices = @transform_0, window_bounds = array<i64: 1, 5, 16, 16>}, {transform_indices = @transform_1, window_bounds = array<i64: 1, 5, 8, 8>}, {pipeline_mode = #tpu.pipeline_mode<synchronous>, transform_indices = @transform_2, window_bounds = array<i64: 16, 8>}, {pipeline_mode = #tpu.pipeline_mode<synchronous>, transform_indices = @transform_3, window_bounds = array<i64: 8, 16>}, {transform_indices = @transform_4, window_bounds = array<i64: 1, 5, 12, 12>}, {pipeline_mode = #tpu.pipeline_mode<synchronous>, transform_indices = @transform_5, window_bounds = array<i64: 16, 12>}, {pipeline_mode = #tpu.pipeline_mode<synchronous>, transform_indices = @transform_6, window_bounds = array<i64: 12, 16>}, {transform_indices = @transform_7, window_bounds = array<i64: 1, 5, 16, 16>}]} {
    %c0 = arith.constant 0 : index
    %c0_0 = arith.constant 0 : index
    %c0_1 = arith.constant 0 : index
    %c0_2 = arith.constant 0 : index
    %0 = vector.load %arg1[%c0, %c0_0, %c0_1, %c0_2] : memref<1x5x16x16xf32, #tpu.memory_space<vmem>>, vector<1x1x16x16xf32>
    %1 = vector.shape_cast %0 : vector<1x1x16x16xf32> to vector<16x16xf32>
    %c0_3 = arith.constant 0 : index
    %c0_4 = arith.constant 0 : index
    %2 = vector.load %arg3[%c0_3, %c0_4] : memref<16x8xf32, #tpu.memory_space<vmem>>, vector<16x8xf32>
    %c0_5 = arith.constant 0 : index
    %c0_6 = arith.constant 0 : index
    %3 = vector.load %arg4[%c0_5, %c0_6] : memref<8x16xf32, #tpu.memory_space<vmem>>, vector<8x16xf32>
    %c0_7 = arith.constant 0 : index
    %c0_8 = arith.constant 0 : index
    %c0_9 = arith.constant 0 : index
    %c0_10 = arith.constant 0 : index
    %4 = vector.load %arg2[%c0_7, %c0_8, %c0_9, %c0_10] : memref<1x5x8x8xf32, #tpu.memory_space<vmem>>, vector<1x1x8x8xf32>
    %5 = vector.shape_cast %4 : vector<1x1x8x8xf32> to vector<8x8xf32>
    %cst = arith.constant dense<0.000000e+00> : vector<8x16xf32>
    %6 = tpu.matmul %5, %3, %cst {dimension_numbers = #tpu.dot_dimension_numbers<[1], [0], [0], [1], [0, 0, 1, 1], [], []>} : vector<8x8xf32>, vector<8x16xf32>, vector<8x16xf32> -> vector<8x16xf32>
    %cst_11 = arith.constant dense<0.000000e+00> : vector<16x16xf32>
    %7 = tpu.matmul %2, %6, %cst_11 {dimension_numbers = #tpu.dot_dimension_numbers<[1], [0], [0], [1], [0, 0, 1, 1], [], []>} : vector<16x8xf32>, vector<8x16xf32>, vector<16x16xf32> -> vector<16x16xf32>
    %8 = arith.maximumf %1, %7 : vector<16x16xf32>
    %c0_12 = arith.constant 0 : index
    %c0_13 = arith.constant 0 : index
    %9 = vector.load %arg6[%c0_12, %c0_13] : memref<16x12xf32, #tpu.memory_space<vmem>>, vector<16x12xf32>
    %c0_14 = arith.constant 0 : index
    %c0_15 = arith.constant 0 : index
    %10 = vector.load %arg7[%c0_14, %c0_15] : memref<12x16xf32, #tpu.memory_space<vmem>>, vector<12x16xf32>
    %c0_16 = arith.constant 0 : index
    %c0_17 = arith.constant 0 : index
    %c0_18 = arith.constant 0 : index
    %c0_19 = arith.constant 0 : index
    %11 = vector.load %arg5[%c0_16, %c0_17, %c0_18, %c0_19] : memref<1x5x12x12xf32, #tpu.memory_space<vmem>>, vector<1x1x12x12xf32>
    %12 = vector.shape_cast %11 : vector<1x1x12x12xf32> to vector<12x12xf32>
    %cst_20 = arith.constant dense<0.000000e+00> : vector<12x16xf32>
    %13 = tpu.matmul %12, %10, %cst_20 {dimension_numbers = #tpu.dot_dimension_numbers<[1], [0], [0], [1], [0, 0, 1, 1], [], []>} : vector<12x12xf32>, vector<12x16xf32>, vector<12x16xf32> -> vector<12x16xf32>
    %cst_21 = arith.constant dense<0.000000e+00> : vector<16x16xf32>
    %14 = tpu.matmul %9, %13, %cst_21 {dimension_numbers = #tpu.dot_dimension_numbers<[1], [0], [0], [1], [0, 0, 1, 1], [], []>} : vector<16x12xf32>, vector<12x16xf32>, vector<16x16xf32> -> vector<16x16xf32>
    %15 = arith.maximumf %8, %14 : vector<16x16xf32>
    %c0_22 = arith.constant 0 : index
    %c0_23 = arith.constant 0 : index
    %c0_24 = arith.constant 0 : index
    %c0_25 = arith.constant 0 : index
    %16 = vector.load %arg8[%c0_22, %c0_23, %c0_24, %c0_25] : memref<1x5x16x16xf32, #tpu.memory_space<vmem>>, vector<1x1x16x16xf32>
    %17 = vector.shape_cast %16 : vector<1x1x16x16xf32> to vector<16x16xf32>
    %18 = vector.shape_cast %15 : vector<16x16xf32> to vector<1x1x16x16xf32>
    tpu.vector_store %arg8[%c0_22, %c0_23, %c0_24, %c0_25], %18 {strides = array<i32>} : memref<1x5x16x16xf32, #tpu.memory_space<vmem>>, vector<1x1x16x16xf32>,
    %c0_26 = arith.constant 0 : index
    %c1 = arith.constant 1 : index
    %c0_27 = arith.constant 0 : index
    %c0_28 = arith.constant 0 : index
    %19 = vector.load %arg1[%c0_26, %c1, %c0_27, %c0_28] : memref<1x5x16x16xf32, #tpu.memory_space<vmem>>, vector<1x1x16x16xf32>
    %20 = vector.shape_cast %19 : vector<1x1x16x16xf32> to vector<16x16xf32>
    %c0_29 = arith.constant 0 : index
    %c0_30 = arith.constant 0 : index
    %21 = vector.load %arg3[%c0_29, %c0_30] : memref<16x8xf32, #tpu.memory_space<vmem>>, vector<16x8xf32>
    %c0_31 = arith.constant 0 : index
    %c0_32 = arith.constant 0 : index
    %22 = vector.load %arg4[%c0_31, %c0_32] : memref<8x16xf32, #tpu.memory_space<vmem>>, vector<8x16xf32>
    %c0_33 = arith.constant 0 : index
    %c1_34 = arith.constant 1 : index
    %c0_35 = arith.constant 0 : index
    %c0_36 = arith.constant 0 : index
    %23 = vector.load %arg2[%c0_33, %c1_34, %c0_35, %c0_36] : memref<1x5x8x8xf32, #tpu.memory_space<vmem>>, vector<1x1x8x8xf32>
    %24 = vector.shape_cast %23 : vector<1x1x8x8xf32> to vector<8x8xf32>
    %cst_37 = arith.constant dense<0.000000e+00> : vector<8x16xf32>
    %25 = tpu.matmul %24, %22, %cst_37 {dimension_numbers = #tpu.dot_dimension_numbers<[1], [0], [0], [1], [0, 0, 1, 1], [], []>} : vector<8x8xf32>, vector<8x16xf32>, vector<8x16xf32> -> vector<8x16xf32>
    %cst_38 = arith.constant dense<0.000000e+00> : vector<16x16xf32>
    %26 = tpu.matmul %21, %25, %cst_38 {dimension_numbers = #tpu.dot_dimension_numbers<[1], [0], [0], [1], [0, 0, 1, 1], [], []>} : vector<16x8xf32>, vector<8x16xf32>, vector<16x16xf32> -> vector<16x16xf32>
    %27 = arith.maximumf %20, %26 : vector<16x16xf32>
    %c0_39 = arith.constant 0 : index
    %c0_40 = arith.constant 0 : index
    %28 = vector.load %arg6[%c0_39, %c0_40] : memref<16x12xf32, #tpu.memory_space<vmem>>, vector<16x12xf32>
    %c0_41 = arith.constant 0 : index
    %c0_42 = arith.constant 0 : index
    %29 = vector.load %arg7[%c0_41, %c0_42] : memref<12x16xf32, #tpu.memory_space<vmem>>, vector<12x16xf32>
    %c0_43 = arith.constant 0 : index
    %c1_44 = arith.constant 1 : index
    %c0_45 = arith.constant 0 : index
    %c0_46 = arith.constant 0 : index
    %30 = vector.load %arg5[%c0_43, %c1_44, %c0_45, %c0_46] : memref<1x5x12x12xf32, #tpu.memory_space<vmem>>, vector<1x1x12x12xf32>
    %31 = vector.shape_cast %30 : vector<1x1x12x12xf32> to vector<12x12xf32>
    %cst_47 = arith.constant dense<0.000000e+00> : vector<12x16xf32>
    %32 = tpu.matmul %31, %29, %cst_47 {dimension_numbers = #tpu.dot_dimension_numbers<[1], [0], [0], [1], [0, 0, 1, 1], [], []>} : vector<12x12xf32>, vector<12x16xf32>, vector<12x16xf32> -> vector<12x16xf32>
    %cst_48 = arith.constant dense<0.000000e+00> : vector<16x16xf32>
    %33 = tpu.matmul %28, %32, %cst_48 {dimension_numbers = #tpu.dot_dimension_numbers<[1], [0], [0], [1], [0, 0, 1, 1], [], []>} : vector<16x12xf32>, vector<12x16xf32>, vector<16x16xf32> -> vector<16x16xf32>
    %34 = arith.maximumf %27, %33 : vector<16x16xf32>
    %c0_49 = arith.constant 0 : index
    %c1_50 = arith.constant 1 : index
    %c0_51 = arith.constant 0 : index
    %c0_52 = arith.constant 0 : index
    %35 = vector.load %arg8[%c0_49, %c1_50, %c0_51, %c0_52] : memref<1x5x16x16xf32, #tpu.memory_space<vmem>>, vector<1x1x16x16xf32>
    %36 = vector.shape_cast %35 : vector<1x1x16x16xf32> to vector<16x16xf32>
    %37 = vector.shape_cast %34 : vector<16x16xf32> to vector<1x1x16x16xf32>
    tpu.vector_store %arg8[%c0_49, %c1_50, %c0_51, %c0_52], %37 {strides = array<i32>} : memref<1x5x16x16xf32, #tpu.memory_space<vmem>>, vector<1x1x16x16xf32>,
    %c0_53 = arith.constant 0 : index
    %c2 = arith.constant 2 : index
    %c0_54 = arith.constant 0 : index
    %c0_55 = arith.constant 0 : index
    %38 = vector.load %arg1[%c0_53, %c2, %c0_54, %c0_55] : memref<1x5x16x16xf32, #tpu.memory_space<vmem>>, vector<1x1x16x16xf32>
    %39 = vector.shape_cast %38 : vector<1x1x16x16xf32> to vector<16x16xf32>
    %c0_56 = arith.constant 0 : index
    %c0_57 = arith.constant 0 : index
    %40 = vector.load %arg3[%c0_56, %c0_57] : memref<16x8xf32, #tpu.memory_space<vmem>>, vector<16x8xf32>
    %c0_58 = arith.constant 0 : index
    %c0_59 = arith.constant 0 : index
    %41 = vector.load %arg4[%c0_58, %c0_59] : memref<8x16xf32, #tpu.memory_space<vmem>>, vector<8x16xf32>
    %c0_60 = arith.constant 0 : index
    %c2_61 = arith.constant 2 : index
    %c0_62 = arith.constant 0 : index
    %c0_63 = arith.constant 0 : index
    %42 = vector.load %arg2[%c0_60, %c2_61, %c0_62, %c0_63] : memref<1x5x8x8xf32, #tpu.memory_space<vmem>>, vector<1x1x8x8xf32>
    %43 = vector.shape_cast %42 : vector<1x1x8x8xf32> to vector<8x8xf32>
    %cst_64 = arith.constant dense<0.000000e+00> : vector<8x16xf32>
    %44 = tpu.matmul %43, %41, %cst_64 {dimension_numbers = #tpu.dot_dimension_numbers<[1], [0], [0], [1], [0, 0, 1, 1], [], []>} : vector<8x8xf32>, vector<8x16xf32>, vector<8x16xf32> -> vector<8x16xf32>
    %cst_65 = arith.constant dense<0.000000e+00> : vector<16x16xf32>
    %45 = tpu.matmul %40, %44, %cst_65 {dimension_numbers = #tpu.dot_dimension_numbers<[1], [0], [0], [1], [0, 0, 1, 1], [], []>} : vector<16x8xf32>, vector<8x16xf32>, vector<16x16xf32> -> vector<16x16xf32>
    %46 = arith.maximumf %39, %45 : vector<16x16xf32>
    %c0_66 = arith.constant 0 : index
    %c0_67 = arith.constant 0 : index
    %47 = vector.load %arg6[%c0_66, %c0_67] : memref<16x12xf32, #tpu.memory_space<vmem>>, vector<16x12xf32>
    %c0_68 = arith.constant 0 : index
    %c0_69 = arith.constant 0 : index
    %48 = vector.load %arg7[%c0_68, %c0_69] : memref<12x16xf32, #tpu.memory_space<vmem>>, vector<12x16xf32>
    %c0_70 = arith.constant 0 : index
    %c2_71 = arith.constant 2 : index
    %c0_72 = arith.constant 0 : index
    %c0_73 = arith.constant 0 : index
    %49 = vector.load %arg5[%c0_70, %c2_71, %c0_72, %c0_73] : memref<1x5x12x12xf32, #tpu.memory_space<vmem>>, vector<1x1x12x12xf32>
    %50 = vector.shape_cast %49 : vector<1x1x12x12xf32> to vector<12x12xf32>
    %cst_74 = arith.constant dense<0.000000e+00> : vector<12x16xf32>
    %51 = tpu.matmul %50, %48, %cst_74 {dimension_numbers = #tpu.dot_dimension_numbers<[1], [0], [0], [1], [0, 0, 1, 1], [], []>} : vector<12x12xf32>, vector<12x16xf32>, vector<12x16xf32> -> vector<12x16xf32>
    %cst_75 = arith.constant dense<0.000000e+00> : vector<16x16xf32>
    %52 = tpu.matmul %47, %51, %cst_75 {dimension_numbers = #tpu.dot_dimension_numbers<[1], [0], [0], [1], [0, 0, 1, 1], [], []>} : vector<16x12xf32>, vector<12x16xf32>, vector<16x16xf32> -> vector<16x16xf32>
    %53 = arith.maximumf %46, %52 : vector<16x16xf32>
    %c0_76 = arith.constant 0 : index
    %c2_77 = arith.constant 2 : index
    %c0_78 = arith.constant 0 : index
    %c0_79 = arith.constant 0 : index
    %54 = vector.load %arg8[%c0_76, %c2_77, %c0_78, %c0_79] : memref<1x5x16x16xf32, #tpu.memory_space<vmem>>, vector<1x1x16x16xf32>
    %55 = vector.shape_cast %54 : vector<1x1x16x16xf32> to vector<16x16xf32>
    %56 = vector.shape_cast %53 : vector<16x16xf32> to vector<1x1x16x16xf32>
    tpu.vector_store %arg8[%c0_76, %c2_77, %c0_78, %c0_79], %56 {strides = array<i32>} : memref<1x5x16x16xf32, #tpu.memory_space<vmem>>, vector<1x1x16x16xf32>,
    %c0_80 = arith.constant 0 : index
    %c3 = arith.constant 3 : index
    %c0_81 = arith.constant 0 : index
    %c0_82 = arith.constant 0 : index
    %57 = vector.load %arg1[%c0_80, %c3, %c0_81, %c0_82] : memref<1x5x16x16xf32, #tpu.memory_space<vmem>>, vector<1x1x16x16xf32>
    %58 = vector.shape_cast %57 : vector<1x1x16x16xf32> to vector<16x16xf32>
    %c0_83 = arith.constant 0 : index
    %c0_84 = arith.constant 0 : index
    %59 = vector.load %arg3[%c0_83, %c0_84] : memref<16x8xf32, #tpu.memory_space<vmem>>, vector<16x8xf32>
    %c0_85 = arith.constant 0 : index
    %c0_86 = arith.constant 0 : index
    %60 = vector.load %arg4[%c0_85, %c0_86] : memref<8x16xf32, #tpu.memory_space<vmem>>, vector<8x16xf32>
    %c0_87 = arith.constant 0 : index
    %c3_88 = arith.constant 3 : index
    %c0_89 = arith.constant 0 : index
    %c0_90 = arith.constant 0 : index
    %61 = vector.load %arg2[%c0_87, %c3_88, %c0_89, %c0_90] : memref<1x5x8x8xf32, #tpu.memory_space<vmem>>, vector<1x1x8x8xf32>
    %62 = vector.shape_cast %61 : vector<1x1x8x8xf32> to vector<8x8xf32>
    %cst_91 = arith.constant dense<0.000000e+00> : vector<8x16xf32>
    %63 = tpu.matmul %62, %60, %cst_91 {dimension_numbers = #tpu.dot_dimension_numbers<[1], [0], [0], [1], [0, 0, 1, 1], [], []>} : vector<8x8xf32>, vector<8x16xf32>, vector<8x16xf32> -> vector<8x16xf32>
    %cst_92 = arith.constant dense<0.000000e+00> : vector<16x16xf32>
    %64 = tpu.matmul %59, %63, %cst_92 {dimension_numbers = #tpu.dot_dimension_numbers<[1], [0], [0], [1], [0, 0, 1, 1], [], []>} : vector<16x8xf32>, vector<8x16xf32>, vector<16x16xf32> -> vector<16x16xf32>
    %65 = arith.maximumf %58, %64 : vector<16x16xf32>
    %c0_93 = arith.constant 0 : index
    %c0_94 = arith.constant 0 : index
    %66 = vector.load %arg6[%c0_93, %c0_94] : memref<16x12xf32, #tpu.memory_space<vmem>>, vector<16x12xf32>
    %c0_95 = arith.constant 0 : index
    %c0_96 = arith.constant 0 : index
    %67 = vector.load %arg7[%c0_95, %c0_96] : memref<12x16xf32, #tpu.memory_space<vmem>>, vector<12x16xf32>
    %c0_97 = arith.constant 0 : index
    %c3_98 = arith.constant 3 : index
    %c0_99 = arith.constant 0 : index
    %c0_100 = arith.constant 0 : index
    %68 = vector.load %arg5[%c0_97, %c3_98, %c0_99, %c0_100] : memref<1x5x12x12xf32, #tpu.memory_space<vmem>>, vector<1x1x12x12xf32>
    %69 = vector.shape_cast %68 : vector<1x1x12x12xf32> to vector<12x12xf32>
    %cst_101 = arith.constant dense<0.000000e+00> : vector<12x16xf32>
    %70 = tpu.matmul %69, %67, %cst_101 {dimension_numbers = #tpu.dot_dimension_numbers<[1], [0], [0], [1], [0, 0, 1, 1], [], []>} : vector<12x12xf32>, vector<12x16xf32>, vector<12x16xf32> -> vector<12x16xf32>
    %cst_102 = arith.constant dense<0.000000e+00> : vector<16x16xf32>
    %71 = tpu.matmul %66, %70, %cst_102 {dimension_numbers = #tpu.dot_dimension_numbers<[1], [0], [0], [1], [0, 0, 1, 1], [], []>} : vector<16x12xf32>, vector<12x16xf32>, vector<16x16xf32> -> vector<16x16xf32>
    %72 = arith.maximumf %65, %71 : vector<16x16xf32>
    %c0_103 = arith.constant 0 : index
    %c3_104 = arith.constant 3 : index
    %c0_105 = arith.constant 0 : index
    %c0_106 = arith.constant 0 : index
    %73 = vector.load %arg8[%c0_103, %c3_104, %c0_105, %c0_106] : memref<1x5x16x16xf32, #tpu.memory_space<vmem>>, vector<1x1x16x16xf32>
    %74 = vector.shape_cast %73 : vector<1x1x16x16xf32> to vector<16x16xf32>
    %75 = vector.shape_cast %72 : vector<16x16xf32> to vector<1x1x16x16xf32>
    tpu.vector_store %arg8[%c0_103, %c3_104, %c0_105, %c0_106], %75 {strides = array<i32>} : memref<1x5x16x16xf32, #tpu.memory_space<vmem>>, vector<1x1x16x16xf32>,
    %c0_107 = arith.constant 0 : index
    %c4 = arith.constant 4 : index
    %c0_108 = arith.constant 0 : index
    %c0_109 = arith.constant 0 : index
    %76 = vector.load %arg1[%c0_107, %c4, %c0_108, %c0_109] : memref<1x5x16x16xf32, #tpu.memory_space<vmem>>, vector<1x1x16x16xf32>
    %77 = vector.shape_cast %76 : vector<1x1x16x16xf32> to vector<16x16xf32>
    %c0_110 = arith.constant 0 : index
    %c0_111 = arith.constant 0 : index
    %78 = vector.load %arg3[%c0_110, %c0_111] : memref<16x8xf32, #tpu.memory_space<vmem>>, vector<16x8xf32>
    %c0_112 = arith.constant 0 : index
    %c0_113 = arith.constant 0 : index
    %79 = vector.load %arg4[%c0_112, %c0_113] : memref<8x16xf32, #tpu.memory_space<vmem>>, vector<8x16xf32>
    %c0_114 = arith.constant 0 : index
    %c4_115 = arith.constant 4 : index
    %c0_116 = arith.constant 0 : index
    %c0_117 = arith.constant 0 : index
    %80 = vector.load %arg2[%c0_114, %c4_115, %c0_116, %c0_117] : memref<1x5x8x8xf32, #tpu.memory_space<vmem>>, vector<1x1x8x8xf32>
    %81 = vector.shape_cast %80 : vector<1x1x8x8xf32> to vector<8x8xf32>
    %cst_118 = arith.constant dense<0.000000e+00> : vector<8x16xf32>
    %82 = tpu.matmul %81, %79, %cst_118 {dimension_numbers = #tpu.dot_dimension_numbers<[1], [0], [0], [1], [0, 0, 1, 1], [], []>} : vector<8x8xf32>, vector<8x16xf32>, vector<8x16xf32> -> vector<8x16xf32>
    %cst_119 = arith.constant dense<0.000000e+00> : vector<16x16xf32>
    %83 = tpu.matmul %78, %82, %cst_119 {dimension_numbers = #tpu.dot_dimension_numbers<[1], [0], [0], [1], [0, 0, 1, 1], [], []>} : vector<16x8xf32>, vector<8x16xf32>, vector<16x16xf32> -> vector<16x16xf32>
    %84 = arith.maximumf %77, %83 : vector<16x16xf32>
    %c0_120 = arith.constant 0 : index
    %c0_121 = arith.constant 0 : index
    %85 = vector.load %arg6[%c0_120, %c0_121] : memref<16x12xf32, #tpu.memory_space<vmem>>, vector<16x12xf32>
    %c0_122 = arith.constant 0 : index
    %c0_123 = arith.constant 0 : index
    %86 = vector.load %arg7[%c0_122, %c0_123] : memref<12x16xf32, #tpu.memory_space<vmem>>, vector<12x16xf32>
    %c0_124 = arith.constant 0 : index
    %c4_125 = arith.constant 4 : index
    %c0_126 = arith.constant 0 : index
    %c0_127 = arith.constant 0 : index
    %87 = vector.load %arg5[%c0_124, %c4_125, %c0_126, %c0_127] : memref<1x5x12x12xf32, #tpu.memory_space<vmem>>, vector<1x1x12x12xf32>
    %88 = vector.shape_cast %87 : vector<1x1x12x12xf32> to vector<12x12xf32>
    %cst_128 = arith.constant dense<0.000000e+00> : vector<12x16xf32>
    %89 = tpu.matmul %88, %86, %cst_128 {dimension_numbers = #tpu.dot_dimension_numbers<[1], [0], [0], [1], [0, 0, 1, 1], [], []>} : vector<12x12xf32>, vector<12x16xf32>, vector<12x16xf32> -> vector<12x16xf32>
    %cst_129 = arith.constant dense<0.000000e+00> : vector<16x16xf32>
    %90 = tpu.matmul %85, %89, %cst_129 {dimension_numbers = #tpu.dot_dimension_numbers<[1], [0], [0], [1], [0, 0, 1, 1], [], []>} : vector<16x12xf32>, vector<12x16xf32>, vector<16x16xf32> -> vector<16x16xf32>
    %91 = arith.maximumf %84, %90 : vector<16x16xf32>
    %c0_130 = arith.constant 0 : index
    %c4_131 = arith.constant 4 : index
    %c0_132 = arith.constant 0 : index
    %c0_133 = arith.constant 0 : index
    %92 = vector.load %arg8[%c0_130, %c4_131, %c0_132, %c0_133] : memref<1x5x16x16xf32, #tpu.memory_space<vmem>>, vector<1x1x16x16xf32>
    %93 = vector.shape_cast %92 : vector<1x1x16x16xf32> to vector<16x16xf32>
    %94 = vector.shape_cast %91 : vector<16x16xf32> to vector<1x1x16x16xf32>
    tpu.vector_store %arg8[%c0_130, %c4_131, %c0_132, %c0_133], %94 {strides = array<i32>} : memref<1x5x16x16xf32, #tpu.memory_space<vmem>>, vector<1x1x16x16xf32>,
    return
  }
  func.func @transform_0(%arg0: i32) -> (i32, i32, i32, i32) {
    %c0_i32 = arith.constant 0 : i32
    %c0_i32_0 = arith.constant 0 : i32
    %c0_i32_1 = arith.constant 0 : i32
    %c0_i32_2 = arith.constant 0 : i32
    return %arg0, %c0_i32, %c0_i32_0, %c0_i32_1 : i32, i32, i32, i32
  }
  func.func @transform_1(%arg0: i32) -> (i32, i32, i32, i32) {
    %c0_i32 = arith.constant 0 : i32
    %c0_i32_0 = arith.constant 0 : i32
    %c0_i32_1 = arith.constant 0 : i32
    %c0_i32_2 = arith.constant 0 : i32
    return %arg0, %c0_i32, %c0_i32_0, %c0_i32_1 : i32, i32, i32, i32
  }
  func.func @transform_2(%arg0: i32) -> (i32, i32) {
    %c0_i32 = arith.constant 0 : i32
    %c0_i32_0 = arith.constant 0 : i32
    %c0_i32_1 = arith.constant 0 : i32
    return %c0_i32, %c0_i32_0 : i32, i32
  }
  func.func @transform_3(%arg0: i32) -> (i32, i32) {
    %c0_i32 = arith.constant 0 : i32
    %c0_i32_0 = arith.constant 0 : i32
    %c0_i32_1 = arith.constant 0 : i32
    return %c0_i32, %c0_i32_0 : i32, i32
  }
  func.func @transform_4(%arg0: i32) -> (i32, i32, i32, i32) {
    %c0_i32 = arith.constant 0 : i32
    %c0_i32_0 = arith.constant 0 : i32
    %c0_i32_1 = arith.constant 0 : i32
    %c0_i32_2 = arith.constant 0 : i32
    return %arg0, %c0_i32, %c0_i32_0, %c0_i32_1 : i32, i32, i32, i32
  }
  func.func @transform_5(%arg0: i32) -> (i32, i32) {
    %c0_i32 = arith.constant 0 : i32
    %c0_i32_0 = arith.constant 0 : i32
    %c0_i32_1 = arith.constant 0 : i32
    return %c0_i32, %c0_i32_0 : i32, i32
  }
  func.func @transform_6(%arg0: i32) -> (i32, i32) {
    %c0_i32 = arith.constant 0 : i32
    %c0_i32_0 = arith.constant 0 : i32
    %c0_i32_1 = arith.constant 0 : i32
    return %c0_i32, %c0_i32_0 : i32, i32
  }
  func.func @transform_7(%arg0: i32) -> (i32, i32, i32, i32) {
    %c0_i32 = arith.constant 0 : i32
    %c0_i32_0 = arith.constant 0 : i32
    %c0_i32_1 = arith.constant 0 : i32
    %c0_i32_2 = arith.constant 0 : i32
    return %arg0, %c0_i32, %c0_i32_0, %c0_i32_1 : i32, i32, i32, i32
  }
}

module attributes {stable_mosaic.version = 11 : i64} {
  func.func @_interp_reduce_kernel(%arg0: i32, %arg1: memref<1x8x16x16xf32, #tpu.memory_space<vmem>>, %arg2: memref<1x8x8x8xf32, #tpu.memory_space<vmem>>, %arg3: memref<16x8xf32, #tpu.memory_space<vmem>>, %arg4: memref<8x16xf32, #tpu.memory_space<vmem>>, %arg5: memref<1x8x12x12xf32, #tpu.memory_space<vmem>>, %arg6: memref<16x12xf32, #tpu.memory_space<vmem>>, %arg7: memref<12x16xf32, #tpu.memory_space<vmem>>, %arg8: memref<1x8x16x16xf32, #tpu.memory_space<vmem>>) attributes {dimension_semantics = [#tpu.dimension_semantics<parallel>], iteration_bounds = array<i64: 4>, scalar_prefetch = 0 : i64, scratch_operands = 0 : i64, tpu.core_type = #tpu.core_type<tc>, window_params = [{transform_indices = @transform_0, window_bounds = array<i64: 1, 8, 16, 16>}, {transform_indices = @transform_1, window_bounds = array<i64: 1, 8, 8, 8>}, {pipeline_mode = #tpu.pipeline_mode<synchronous>, transform_indices = @transform_2, window_bounds = array<i64: 16, 8>}, {pipeline_mode = #tpu.pipeline_mode<synchronous>, transform_indices = @transform_3, window_bounds = array<i64: 8, 16>}, {transform_indices = @transform_4, window_bounds = array<i64: 1, 8, 12, 12>}, {pipeline_mode = #tpu.pipeline_mode<synchronous>, transform_indices = @transform_5, window_bounds = array<i64: 16, 12>}, {pipeline_mode = #tpu.pipeline_mode<synchronous>, transform_indices = @transform_6, window_bounds = array<i64: 12, 16>}, {transform_indices = @transform_7, window_bounds = array<i64: 1, 8, 16, 16>}]} {
    %c0 = arith.constant 0 : index
    %c0_0 = arith.constant 0 : index
    %c0_1 = arith.constant 0 : index
    %c0_2 = arith.constant 0 : index
    %0 = vector.load %arg1[%c0, %c0_0, %c0_1, %c0_2] : memref<1x8x16x16xf32, #tpu.memory_space<vmem>>, vector<1x1x16x16xf32>
    %1 = vector.shape_cast %0 : vector<1x1x16x16xf32> to vector<16x16xf32>
    %c0_3 = arith.constant 0 : index
    %c0_4 = arith.constant 0 : index
    %2 = vector.load %arg3[%c0_3, %c0_4] : memref<16x8xf32, #tpu.memory_space<vmem>>, vector<16x8xf32>
    %c0_5 = arith.constant 0 : index
    %c0_6 = arith.constant 0 : index
    %3 = vector.load %arg4[%c0_5, %c0_6] : memref<8x16xf32, #tpu.memory_space<vmem>>, vector<8x16xf32>
    %c0_7 = arith.constant 0 : index
    %c0_8 = arith.constant 0 : index
    %c0_9 = arith.constant 0 : index
    %c0_10 = arith.constant 0 : index
    %4 = vector.load %arg2[%c0_7, %c0_8, %c0_9, %c0_10] : memref<1x8x8x8xf32, #tpu.memory_space<vmem>>, vector<1x1x8x8xf32>
    %5 = vector.shape_cast %4 : vector<1x1x8x8xf32> to vector<8x8xf32>
    %cst = arith.constant dense<0.000000e+00> : vector<8x16xf32>
    %6 = tpu.matmul %5, %3, %cst {dimension_numbers = #tpu.dot_dimension_numbers<[1], [0], [0], [1], [0, 0, 1, 1], [], []>} : vector<8x8xf32>, vector<8x16xf32>, vector<8x16xf32> -> vector<8x16xf32>
    %cst_11 = arith.constant dense<0.000000e+00> : vector<16x16xf32>
    %7 = tpu.matmul %2, %6, %cst_11 {dimension_numbers = #tpu.dot_dimension_numbers<[1], [0], [0], [1], [0, 0, 1, 1], [], []>} : vector<16x8xf32>, vector<8x16xf32>, vector<16x16xf32> -> vector<16x16xf32>
    %8 = arith.addf %1, %7 : vector<16x16xf32>
    %c0_12 = arith.constant 0 : index
    %c0_13 = arith.constant 0 : index
    %9 = vector.load %arg6[%c0_12, %c0_13] : memref<16x12xf32, #tpu.memory_space<vmem>>, vector<16x12xf32>
    %c0_14 = arith.constant 0 : index
    %c0_15 = arith.constant 0 : index
    %10 = vector.load %arg7[%c0_14, %c0_15] : memref<12x16xf32, #tpu.memory_space<vmem>>, vector<12x16xf32>
    %c0_16 = arith.constant 0 : index
    %c0_17 = arith.constant 0 : index
    %c0_18 = arith.constant 0 : index
    %c0_19 = arith.constant 0 : index
    %11 = vector.load %arg5[%c0_16, %c0_17, %c0_18, %c0_19] : memref<1x8x12x12xf32, #tpu.memory_space<vmem>>, vector<1x1x12x12xf32>
    %12 = vector.shape_cast %11 : vector<1x1x12x12xf32> to vector<12x12xf32>
    %cst_20 = arith.constant dense<0.000000e+00> : vector<12x16xf32>
    %13 = tpu.matmul %12, %10, %cst_20 {dimension_numbers = #tpu.dot_dimension_numbers<[1], [0], [0], [1], [0, 0, 1, 1], [], []>} : vector<12x12xf32>, vector<12x16xf32>, vector<12x16xf32> -> vector<12x16xf32>
    %cst_21 = arith.constant dense<0.000000e+00> : vector<16x16xf32>
    %14 = tpu.matmul %9, %13, %cst_21 {dimension_numbers = #tpu.dot_dimension_numbers<[1], [0], [0], [1], [0, 0, 1, 1], [], []>} : vector<16x12xf32>, vector<12x16xf32>, vector<16x16xf32> -> vector<16x16xf32>
    %15 = arith.addf %8, %14 : vector<16x16xf32>
    %cst_22 = arith.constant 0.333333343 : f32
    %16 = vector.broadcast %cst_22 : f32 to vector<16x16xf32>
    %17 = arith.mulf %15, %16 : vector<16x16xf32>
    %c0_23 = arith.constant 0 : index
    %c0_24 = arith.constant 0 : index
    %c0_25 = arith.constant 0 : index
    %c0_26 = arith.constant 0 : index
    %18 = vector.load %arg8[%c0_23, %c0_24, %c0_25, %c0_26] : memref<1x8x16x16xf32, #tpu.memory_space<vmem>>, vector<1x1x16x16xf32>
    %19 = vector.shape_cast %18 : vector<1x1x16x16xf32> to vector<16x16xf32>
    %20 = vector.shape_cast %17 : vector<16x16xf32> to vector<1x1x16x16xf32>
    tpu.vector_store %arg8[%c0_23, %c0_24, %c0_25, %c0_26], %20 {strides = array<i32>} : memref<1x8x16x16xf32, #tpu.memory_space<vmem>>, vector<1x1x16x16xf32>,
    %c0_27 = arith.constant 0 : index
    %c1 = arith.constant 1 : index
    %c0_28 = arith.constant 0 : index
    %c0_29 = arith.constant 0 : index
    %21 = vector.load %arg1[%c0_27, %c1, %c0_28, %c0_29] : memref<1x8x16x16xf32, #tpu.memory_space<vmem>>, vector<1x1x16x16xf32>
    %22 = vector.shape_cast %21 : vector<1x1x16x16xf32> to vector<16x16xf32>
    %c0_30 = arith.constant 0 : index
    %c0_31 = arith.constant 0 : index
    %23 = vector.load %arg3[%c0_30, %c0_31] : memref<16x8xf32, #tpu.memory_space<vmem>>, vector<16x8xf32>
    %c0_32 = arith.constant 0 : index
    %c0_33 = arith.constant 0 : index
    %24 = vector.load %arg4[%c0_32, %c0_33] : memref<8x16xf32, #tpu.memory_space<vmem>>, vector<8x16xf32>
    %c0_34 = arith.constant 0 : index
    %c1_35 = arith.constant 1 : index
    %c0_36 = arith.constant 0 : index
    %c0_37 = arith.constant 0 : index
    %25 = vector.load %arg2[%c0_34, %c1_35, %c0_36, %c0_37] : memref<1x8x8x8xf32, #tpu.memory_space<vmem>>, vector<1x1x8x8xf32>
    %26 = vector.shape_cast %25 : vector<1x1x8x8xf32> to vector<8x8xf32>
    %cst_38 = arith.constant dense<0.000000e+00> : vector<8x16xf32>
    %27 = tpu.matmul %26, %24, %cst_38 {dimension_numbers = #tpu.dot_dimension_numbers<[1], [0], [0], [1], [0, 0, 1, 1], [], []>} : vector<8x8xf32>, vector<8x16xf32>, vector<8x16xf32> -> vector<8x16xf32>
    %cst_39 = arith.constant dense<0.000000e+00> : vector<16x16xf32>
    %28 = tpu.matmul %23, %27, %cst_39 {dimension_numbers = #tpu.dot_dimension_numbers<[1], [0], [0], [1], [0, 0, 1, 1], [], []>} : vector<16x8xf32>, vector<8x16xf32>, vector<16x16xf32> -> vector<16x16xf32>
    %29 = arith.addf %22, %28 : vector<16x16xf32>
    %c0_40 = arith.constant 0 : index
    %c0_41 = arith.constant 0 : index
    %30 = vector.load %arg6[%c0_40, %c0_41] : memref<16x12xf32, #tpu.memory_space<vmem>>, vector<16x12xf32>
    %c0_42 = arith.constant 0 : index
    %c0_43 = arith.constant 0 : index
    %31 = vector.load %arg7[%c0_42, %c0_43] : memref<12x16xf32, #tpu.memory_space<vmem>>, vector<12x16xf32>
    %c0_44 = arith.constant 0 : index
    %c1_45 = arith.constant 1 : index
    %c0_46 = arith.constant 0 : index
    %c0_47 = arith.constant 0 : index
    %32 = vector.load %arg5[%c0_44, %c1_45, %c0_46, %c0_47] : memref<1x8x12x12xf32, #tpu.memory_space<vmem>>, vector<1x1x12x12xf32>
    %33 = vector.shape_cast %32 : vector<1x1x12x12xf32> to vector<12x12xf32>
    %cst_48 = arith.constant dense<0.000000e+00> : vector<12x16xf32>
    %34 = tpu.matmul %33, %31, %cst_48 {dimension_numbers = #tpu.dot_dimension_numbers<[1], [0], [0], [1], [0, 0, 1, 1], [], []>} : vector<12x12xf32>, vector<12x16xf32>, vector<12x16xf32> -> vector<12x16xf32>
    %cst_49 = arith.constant dense<0.000000e+00> : vector<16x16xf32>
    %35 = tpu.matmul %30, %34, %cst_49 {dimension_numbers = #tpu.dot_dimension_numbers<[1], [0], [0], [1], [0, 0, 1, 1], [], []>} : vector<16x12xf32>, vector<12x16xf32>, vector<16x16xf32> -> vector<16x16xf32>
    %36 = arith.addf %29, %35 : vector<16x16xf32>
    %cst_50 = arith.constant 0.333333343 : f32
    %37 = vector.broadcast %cst_50 : f32 to vector<16x16xf32>
    %38 = arith.mulf %36, %37 : vector<16x16xf32>
    %c0_51 = arith.constant 0 : index
    %c1_52 = arith.constant 1 : index
    %c0_53 = arith.constant 0 : index
    %c0_54 = arith.constant 0 : index
    %39 = vector.load %arg8[%c0_51, %c1_52, %c0_53, %c0_54] : memref<1x8x16x16xf32, #tpu.memory_space<vmem>>, vector<1x1x16x16xf32>
    %40 = vector.shape_cast %39 : vector<1x1x16x16xf32> to vector<16x16xf32>
    %41 = vector.shape_cast %38 : vector<16x16xf32> to vector<1x1x16x16xf32>
    tpu.vector_store %arg8[%c0_51, %c1_52, %c0_53, %c0_54], %41 {strides = array<i32>} : memref<1x8x16x16xf32, #tpu.memory_space<vmem>>, vector<1x1x16x16xf32>,
    %c0_55 = arith.constant 0 : index
    %c2 = arith.constant 2 : index
    %c0_56 = arith.constant 0 : index
    %c0_57 = arith.constant 0 : index
    %42 = vector.load %arg1[%c0_55, %c2, %c0_56, %c0_57] : memref<1x8x16x16xf32, #tpu.memory_space<vmem>>, vector<1x1x16x16xf32>
    %43 = vector.shape_cast %42 : vector<1x1x16x16xf32> to vector<16x16xf32>
    %c0_58 = arith.constant 0 : index
    %c0_59 = arith.constant 0 : index
    %44 = vector.load %arg3[%c0_58, %c0_59] : memref<16x8xf32, #tpu.memory_space<vmem>>, vector<16x8xf32>
    %c0_60 = arith.constant 0 : index
    %c0_61 = arith.constant 0 : index
    %45 = vector.load %arg4[%c0_60, %c0_61] : memref<8x16xf32, #tpu.memory_space<vmem>>, vector<8x16xf32>
    %c0_62 = arith.constant 0 : index
    %c2_63 = arith.constant 2 : index
    %c0_64 = arith.constant 0 : index
    %c0_65 = arith.constant 0 : index
    %46 = vector.load %arg2[%c0_62, %c2_63, %c0_64, %c0_65] : memref<1x8x8x8xf32, #tpu.memory_space<vmem>>, vector<1x1x8x8xf32>
    %47 = vector.shape_cast %46 : vector<1x1x8x8xf32> to vector<8x8xf32>
    %cst_66 = arith.constant dense<0.000000e+00> : vector<8x16xf32>
    %48 = tpu.matmul %47, %45, %cst_66 {dimension_numbers = #tpu.dot_dimension_numbers<[1], [0], [0], [1], [0, 0, 1, 1], [], []>} : vector<8x8xf32>, vector<8x16xf32>, vector<8x16xf32> -> vector<8x16xf32>
    %cst_67 = arith.constant dense<0.000000e+00> : vector<16x16xf32>
    %49 = tpu.matmul %44, %48, %cst_67 {dimension_numbers = #tpu.dot_dimension_numbers<[1], [0], [0], [1], [0, 0, 1, 1], [], []>} : vector<16x8xf32>, vector<8x16xf32>, vector<16x16xf32> -> vector<16x16xf32>
    %50 = arith.addf %43, %49 : vector<16x16xf32>
    %c0_68 = arith.constant 0 : index
    %c0_69 = arith.constant 0 : index
    %51 = vector.load %arg6[%c0_68, %c0_69] : memref<16x12xf32, #tpu.memory_space<vmem>>, vector<16x12xf32>
    %c0_70 = arith.constant 0 : index
    %c0_71 = arith.constant 0 : index
    %52 = vector.load %arg7[%c0_70, %c0_71] : memref<12x16xf32, #tpu.memory_space<vmem>>, vector<12x16xf32>
    %c0_72 = arith.constant 0 : index
    %c2_73 = arith.constant 2 : index
    %c0_74 = arith.constant 0 : index
    %c0_75 = arith.constant 0 : index
    %53 = vector.load %arg5[%c0_72, %c2_73, %c0_74, %c0_75] : memref<1x8x12x12xf32, #tpu.memory_space<vmem>>, vector<1x1x12x12xf32>
    %54 = vector.shape_cast %53 : vector<1x1x12x12xf32> to vector<12x12xf32>
    %cst_76 = arith.constant dense<0.000000e+00> : vector<12x16xf32>
    %55 = tpu.matmul %54, %52, %cst_76 {dimension_numbers = #tpu.dot_dimension_numbers<[1], [0], [0], [1], [0, 0, 1, 1], [], []>} : vector<12x12xf32>, vector<12x16xf32>, vector<12x16xf32> -> vector<12x16xf32>
    %cst_77 = arith.constant dense<0.000000e+00> : vector<16x16xf32>
    %56 = tpu.matmul %51, %55, %cst_77 {dimension_numbers = #tpu.dot_dimension_numbers<[1], [0], [0], [1], [0, 0, 1, 1], [], []>} : vector<16x12xf32>, vector<12x16xf32>, vector<16x16xf32> -> vector<16x16xf32>
    %57 = arith.addf %50, %56 : vector<16x16xf32>
    %cst_78 = arith.constant 0.333333343 : f32
    %58 = vector.broadcast %cst_78 : f32 to vector<16x16xf32>
    %59 = arith.mulf %57, %58 : vector<16x16xf32>
    %c0_79 = arith.constant 0 : index
    %c2_80 = arith.constant 2 : index
    %c0_81 = arith.constant 0 : index
    %c0_82 = arith.constant 0 : index
    %60 = vector.load %arg8[%c0_79, %c2_80, %c0_81, %c0_82] : memref<1x8x16x16xf32, #tpu.memory_space<vmem>>, vector<1x1x16x16xf32>
    %61 = vector.shape_cast %60 : vector<1x1x16x16xf32> to vector<16x16xf32>
    %62 = vector.shape_cast %59 : vector<16x16xf32> to vector<1x1x16x16xf32>
    tpu.vector_store %arg8[%c0_79, %c2_80, %c0_81, %c0_82], %62 {strides = array<i32>} : memref<1x8x16x16xf32, #tpu.memory_space<vmem>>, vector<1x1x16x16xf32>,
    %c0_83 = arith.constant 0 : index
    %c3 = arith.constant 3 : index
    %c0_84 = arith.constant 0 : index
    %c0_85 = arith.constant 0 : index
    %63 = vector.load %arg1[%c0_83, %c3, %c0_84, %c0_85] : memref<1x8x16x16xf32, #tpu.memory_space<vmem>>, vector<1x1x16x16xf32>
    %64 = vector.shape_cast %63 : vector<1x1x16x16xf32> to vector<16x16xf32>
    %c0_86 = arith.constant 0 : index
    %c0_87 = arith.constant 0 : index
    %65 = vector.load %arg3[%c0_86, %c0_87] : memref<16x8xf32, #tpu.memory_space<vmem>>, vector<16x8xf32>
    %c0_88 = arith.constant 0 : index
    %c0_89 = arith.constant 0 : index
    %66 = vector.load %arg4[%c0_88, %c0_89] : memref<8x16xf32, #tpu.memory_space<vmem>>, vector<8x16xf32>
    %c0_90 = arith.constant 0 : index
    %c3_91 = arith.constant 3 : index
    %c0_92 = arith.constant 0 : index
    %c0_93 = arith.constant 0 : index
    %67 = vector.load %arg2[%c0_90, %c3_91, %c0_92, %c0_93] : memref<1x8x8x8xf32, #tpu.memory_space<vmem>>, vector<1x1x8x8xf32>
    %68 = vector.shape_cast %67 : vector<1x1x8x8xf32> to vector<8x8xf32>
    %cst_94 = arith.constant dense<0.000000e+00> : vector<8x16xf32>
    %69 = tpu.matmul %68, %66, %cst_94 {dimension_numbers = #tpu.dot_dimension_numbers<[1], [0], [0], [1], [0, 0, 1, 1], [], []>} : vector<8x8xf32>, vector<8x16xf32>, vector<8x16xf32> -> vector<8x16xf32>
    %cst_95 = arith.constant dense<0.000000e+00> : vector<16x16xf32>
    %70 = tpu.matmul %65, %69, %cst_95 {dimension_numbers = #tpu.dot_dimension_numbers<[1], [0], [0], [1], [0, 0, 1, 1], [], []>} : vector<16x8xf32>, vector<8x16xf32>, vector<16x16xf32> -> vector<16x16xf32>
    %71 = arith.addf %64, %70 : vector<16x16xf32>
    %c0_96 = arith.constant 0 : index
    %c0_97 = arith.constant 0 : index
    %72 = vector.load %arg6[%c0_96, %c0_97] : memref<16x12xf32, #tpu.memory_space<vmem>>, vector<16x12xf32>
    %c0_98 = arith.constant 0 : index
    %c0_99 = arith.constant 0 : index
    %73 = vector.load %arg7[%c0_98, %c0_99] : memref<12x16xf32, #tpu.memory_space<vmem>>, vector<12x16xf32>
    %c0_100 = arith.constant 0 : index
    %c3_101 = arith.constant 3 : index
    %c0_102 = arith.constant 0 : index
    %c0_103 = arith.constant 0 : index
    %74 = vector.load %arg5[%c0_100, %c3_101, %c0_102, %c0_103] : memref<1x8x12x12xf32, #tpu.memory_space<vmem>>, vector<1x1x12x12xf32>
    %75 = vector.shape_cast %74 : vector<1x1x12x12xf32> to vector<12x12xf32>
    %cst_104 = arith.constant dense<0.000000e+00> : vector<12x16xf32>
    %76 = tpu.matmul %75, %73, %cst_104 {dimension_numbers = #tpu.dot_dimension_numbers<[1], [0], [0], [1], [0, 0, 1, 1], [], []>} : vector<12x12xf32>, vector<12x16xf32>, vector<12x16xf32> -> vector<12x16xf32>
    %cst_105 = arith.constant dense<0.000000e+00> : vector<16x16xf32>
    %77 = tpu.matmul %72, %76, %cst_105 {dimension_numbers = #tpu.dot_dimension_numbers<[1], [0], [0], [1], [0, 0, 1, 1], [], []>} : vector<16x12xf32>, vector<12x16xf32>, vector<16x16xf32> -> vector<16x16xf32>
    %78 = arith.addf %71, %77 : vector<16x16xf32>
    %cst_106 = arith.constant 0.333333343 : f32
    %79 = vector.broadcast %cst_106 : f32 to vector<16x16xf32>
    %80 = arith.mulf %78, %79 : vector<16x16xf32>
    %c0_107 = arith.constant 0 : index
    %c3_108 = arith.constant 3 : index
    %c0_109 = arith.constant 0 : index
    %c0_110 = arith.constant 0 : index
    %81 = vector.load %arg8[%c0_107, %c3_108, %c0_109, %c0_110] : memref<1x8x16x16xf32, #tpu.memory_space<vmem>>, vector<1x1x16x16xf32>
    %82 = vector.shape_cast %81 : vector<1x1x16x16xf32> to vector<16x16xf32>
    %83 = vector.shape_cast %80 : vector<16x16xf32> to vector<1x1x16x16xf32>
    tpu.vector_store %arg8[%c0_107, %c3_108, %c0_109, %c0_110], %83 {strides = array<i32>} : memref<1x8x16x16xf32, #tpu.memory_space<vmem>>, vector<1x1x16x16xf32>,
    %c0_111 = arith.constant 0 : index
    %c4 = arith.constant 4 : index
    %c0_112 = arith.constant 0 : index
    %c0_113 = arith.constant 0 : index
    %84 = vector.load %arg1[%c0_111, %c4, %c0_112, %c0_113] : memref<1x8x16x16xf32, #tpu.memory_space<vmem>>, vector<1x1x16x16xf32>
    %85 = vector.shape_cast %84 : vector<1x1x16x16xf32> to vector<16x16xf32>
    %c0_114 = arith.constant 0 : index
    %c0_115 = arith.constant 0 : index
    %86 = vector.load %arg3[%c0_114, %c0_115] : memref<16x8xf32, #tpu.memory_space<vmem>>, vector<16x8xf32>
    %c0_116 = arith.constant 0 : index
    %c0_117 = arith.constant 0 : index
    %87 = vector.load %arg4[%c0_116, %c0_117] : memref<8x16xf32, #tpu.memory_space<vmem>>, vector<8x16xf32>
    %c0_118 = arith.constant 0 : index
    %c4_119 = arith.constant 4 : index
    %c0_120 = arith.constant 0 : index
    %c0_121 = arith.constant 0 : index
    %88 = vector.load %arg2[%c0_118, %c4_119, %c0_120, %c0_121] : memref<1x8x8x8xf32, #tpu.memory_space<vmem>>, vector<1x1x8x8xf32>
    %89 = vector.shape_cast %88 : vector<1x1x8x8xf32> to vector<8x8xf32>
    %cst_122 = arith.constant dense<0.000000e+00> : vector<8x16xf32>
    %90 = tpu.matmul %89, %87, %cst_122 {dimension_numbers = #tpu.dot_dimension_numbers<[1], [0], [0], [1], [0, 0, 1, 1], [], []>} : vector<8x8xf32>, vector<8x16xf32>, vector<8x16xf32> -> vector<8x16xf32>
    %cst_123 = arith.constant dense<0.000000e+00> : vector<16x16xf32>
    %91 = tpu.matmul %86, %90, %cst_123 {dimension_numbers = #tpu.dot_dimension_numbers<[1], [0], [0], [1], [0, 0, 1, 1], [], []>} : vector<16x8xf32>, vector<8x16xf32>, vector<16x16xf32> -> vector<16x16xf32>
    %92 = arith.addf %85, %91 : vector<16x16xf32>
    %c0_124 = arith.constant 0 : index
    %c0_125 = arith.constant 0 : index
    %93 = vector.load %arg6[%c0_124, %c0_125] : memref<16x12xf32, #tpu.memory_space<vmem>>, vector<16x12xf32>
    %c0_126 = arith.constant 0 : index
    %c0_127 = arith.constant 0 : index
    %94 = vector.load %arg7[%c0_126, %c0_127] : memref<12x16xf32, #tpu.memory_space<vmem>>, vector<12x16xf32>
    %c0_128 = arith.constant 0 : index
    %c4_129 = arith.constant 4 : index
    %c0_130 = arith.constant 0 : index
    %c0_131 = arith.constant 0 : index
    %95 = vector.load %arg5[%c0_128, %c4_129, %c0_130, %c0_131] : memref<1x8x12x12xf32, #tpu.memory_space<vmem>>, vector<1x1x12x12xf32>
    %96 = vector.shape_cast %95 : vector<1x1x12x12xf32> to vector<12x12xf32>
    %cst_132 = arith.constant dense<0.000000e+00> : vector<12x16xf32>
    %97 = tpu.matmul %96, %94, %cst_132 {dimension_numbers = #tpu.dot_dimension_numbers<[1], [0], [0], [1], [0, 0, 1, 1], [], []>} : vector<12x12xf32>, vector<12x16xf32>, vector<12x16xf32> -> vector<12x16xf32>
    %cst_133 = arith.constant dense<0.000000e+00> : vector<16x16xf32>
    %98 = tpu.matmul %93, %97, %cst_133 {dimension_numbers = #tpu.dot_dimension_numbers<[1], [0], [0], [1], [0, 0, 1, 1], [], []>} : vector<16x12xf32>, vector<12x16xf32>, vector<16x16xf32> -> vector<16x16xf32>
    %99 = arith.addf %92, %98 : vector<16x16xf32>
    %cst_134 = arith.constant 0.333333343 : f32
    %100 = vector.broadcast %cst_134 : f32 to vector<16x16xf32>
    %101 = arith.mulf %99, %100 : vector<16x16xf32>
    %c0_135 = arith.constant 0 : index
    %c4_136 = arith.constant 4 : index
    %c0_137 = arith.constant 0 : index
    %c0_138 = arith.constant 0 : index
    %102 = vector.load %arg8[%c0_135, %c4_136, %c0_137, %c0_138] : memref<1x8x16x16xf32, #tpu.memory_space<vmem>>, vector<1x1x16x16xf32>
    %103 = vector.shape_cast %102 : vector<1x1x16x16xf32> to vector<16x16xf32>
    %104 = vector.shape_cast %101 : vector<16x16xf32> to vector<1x1x16x16xf32>
    tpu.vector_store %arg8[%c0_135, %c4_136, %c0_137, %c0_138], %104 {strides = array<i32>} : memref<1x8x16x16xf32, #tpu.memory_space<vmem>>, vector<1x1x16x16xf32>,
    %c0_139 = arith.constant 0 : index
    %c5 = arith.constant 5 : index
    %c0_140 = arith.constant 0 : index
    %c0_141 = arith.constant 0 : index
    %105 = vector.load %arg1[%c0_139, %c5, %c0_140, %c0_141] : memref<1x8x16x16xf32, #tpu.memory_space<vmem>>, vector<1x1x16x16xf32>
    %106 = vector.shape_cast %105 : vector<1x1x16x16xf32> to vector<16x16xf32>
    %c0_142 = arith.constant 0 : index
    %c0_143 = arith.constant 0 : index
    %107 = vector.load %arg3[%c0_142, %c0_143] : memref<16x8xf32, #tpu.memory_space<vmem>>, vector<16x8xf32>
    %c0_144 = arith.constant 0 : index
    %c0_145 = arith.constant 0 : index
    %108 = vector.load %arg4[%c0_144, %c0_145] : memref<8x16xf32, #tpu.memory_space<vmem>>, vector<8x16xf32>
    %c0_146 = arith.constant 0 : index
    %c5_147 = arith.constant 5 : index
    %c0_148 = arith.constant 0 : index
    %c0_149 = arith.constant 0 : index
    %109 = vector.load %arg2[%c0_146, %c5_147, %c0_148, %c0_149] : memref<1x8x8x8xf32, #tpu.memory_space<vmem>>, vector<1x1x8x8xf32>
    %110 = vector.shape_cast %109 : vector<1x1x8x8xf32> to vector<8x8xf32>
    %cst_150 = arith.constant dense<0.000000e+00> : vector<8x16xf32>
    %111 = tpu.matmul %110, %108, %cst_150 {dimension_numbers = #tpu.dot_dimension_numbers<[1], [0], [0], [1], [0, 0, 1, 1], [], []>} : vector<8x8xf32>, vector<8x16xf32>, vector<8x16xf32> -> vector<8x16xf32>
    %cst_151 = arith.constant dense<0.000000e+00> : vector<16x16xf32>
    %112 = tpu.matmul %107, %111, %cst_151 {dimension_numbers = #tpu.dot_dimension_numbers<[1], [0], [0], [1], [0, 0, 1, 1], [], []>} : vector<16x8xf32>, vector<8x16xf32>, vector<16x16xf32> -> vector<16x16xf32>
    %113 = arith.addf %106, %112 : vector<16x16xf32>
    %c0_152 = arith.constant 0 : index
    %c0_153 = arith.constant 0 : index
    %114 = vector.load %arg6[%c0_152, %c0_153] : memref<16x12xf32, #tpu.memory_space<vmem>>, vector<16x12xf32>
    %c0_154 = arith.constant 0 : index
    %c0_155 = arith.constant 0 : index
    %115 = vector.load %arg7[%c0_154, %c0_155] : memref<12x16xf32, #tpu.memory_space<vmem>>, vector<12x16xf32>
    %c0_156 = arith.constant 0 : index
    %c5_157 = arith.constant 5 : index
    %c0_158 = arith.constant 0 : index
    %c0_159 = arith.constant 0 : index
    %116 = vector.load %arg5[%c0_156, %c5_157, %c0_158, %c0_159] : memref<1x8x12x12xf32, #tpu.memory_space<vmem>>, vector<1x1x12x12xf32>
    %117 = vector.shape_cast %116 : vector<1x1x12x12xf32> to vector<12x12xf32>
    %cst_160 = arith.constant dense<0.000000e+00> : vector<12x16xf32>
    %118 = tpu.matmul %117, %115, %cst_160 {dimension_numbers = #tpu.dot_dimension_numbers<[1], [0], [0], [1], [0, 0, 1, 1], [], []>} : vector<12x12xf32>, vector<12x16xf32>, vector<12x16xf32> -> vector<12x16xf32>
    %cst_161 = arith.constant dense<0.000000e+00> : vector<16x16xf32>
    %119 = tpu.matmul %114, %118, %cst_161 {dimension_numbers = #tpu.dot_dimension_numbers<[1], [0], [0], [1], [0, 0, 1, 1], [], []>} : vector<16x12xf32>, vector<12x16xf32>, vector<16x16xf32> -> vector<16x16xf32>
    %120 = arith.addf %113, %119 : vector<16x16xf32>
    %cst_162 = arith.constant 0.333333343 : f32
    %121 = vector.broadcast %cst_162 : f32 to vector<16x16xf32>
    %122 = arith.mulf %120, %121 : vector<16x16xf32>
    %c0_163 = arith.constant 0 : index
    %c5_164 = arith.constant 5 : index
    %c0_165 = arith.constant 0 : index
    %c0_166 = arith.constant 0 : index
    %123 = vector.load %arg8[%c0_163, %c5_164, %c0_165, %c0_166] : memref<1x8x16x16xf32, #tpu.memory_space<vmem>>, vector<1x1x16x16xf32>
    %124 = vector.shape_cast %123 : vector<1x1x16x16xf32> to vector<16x16xf32>
    %125 = vector.shape_cast %122 : vector<16x16xf32> to vector<1x1x16x16xf32>
    tpu.vector_store %arg8[%c0_163, %c5_164, %c0_165, %c0_166], %125 {strides = array<i32>} : memref<1x8x16x16xf32, #tpu.memory_space<vmem>>, vector<1x1x16x16xf32>,
    %c0_167 = arith.constant 0 : index
    %c6 = arith.constant 6 : index
    %c0_168 = arith.constant 0 : index
    %c0_169 = arith.constant 0 : index
    %126 = vector.load %arg1[%c0_167, %c6, %c0_168, %c0_169] : memref<1x8x16x16xf32, #tpu.memory_space<vmem>>, vector<1x1x16x16xf32>
    %127 = vector.shape_cast %126 : vector<1x1x16x16xf32> to vector<16x16xf32>
    %c0_170 = arith.constant 0 : index
    %c0_171 = arith.constant 0 : index
    %128 = vector.load %arg3[%c0_170, %c0_171] : memref<16x8xf32, #tpu.memory_space<vmem>>, vector<16x8xf32>
    %c0_172 = arith.constant 0 : index
    %c0_173 = arith.constant 0 : index
    %129 = vector.load %arg4[%c0_172, %c0_173] : memref<8x16xf32, #tpu.memory_space<vmem>>, vector<8x16xf32>
    %c0_174 = arith.constant 0 : index
    %c6_175 = arith.constant 6 : index
    %c0_176 = arith.constant 0 : index
    %c0_177 = arith.constant 0 : index
    %130 = vector.load %arg2[%c0_174, %c6_175, %c0_176, %c0_177] : memref<1x8x8x8xf32, #tpu.memory_space<vmem>>, vector<1x1x8x8xf32>
    %131 = vector.shape_cast %130 : vector<1x1x8x8xf32> to vector<8x8xf32>
    %cst_178 = arith.constant dense<0.000000e+00> : vector<8x16xf32>
    %132 = tpu.matmul %131, %129, %cst_178 {dimension_numbers = #tpu.dot_dimension_numbers<[1], [0], [0], [1], [0, 0, 1, 1], [], []>} : vector<8x8xf32>, vector<8x16xf32>, vector<8x16xf32> -> vector<8x16xf32>
    %cst_179 = arith.constant dense<0.000000e+00> : vector<16x16xf32>
    %133 = tpu.matmul %128, %132, %cst_179 {dimension_numbers = #tpu.dot_dimension_numbers<[1], [0], [0], [1], [0, 0, 1, 1], [], []>} : vector<16x8xf32>, vector<8x16xf32>, vector<16x16xf32> -> vector<16x16xf32>
    %134 = arith.addf %127, %133 : vector<16x16xf32>
    %c0_180 = arith.constant 0 : index
    %c0_181 = arith.constant 0 : index
    %135 = vector.load %arg6[%c0_180, %c0_181] : memref<16x12xf32, #tpu.memory_space<vmem>>, vector<16x12xf32>
    %c0_182 = arith.constant 0 : index
    %c0_183 = arith.constant 0 : index
    %136 = vector.load %arg7[%c0_182, %c0_183] : memref<12x16xf32, #tpu.memory_space<vmem>>, vector<12x16xf32>
    %c0_184 = arith.constant 0 : index
    %c6_185 = arith.constant 6 : index
    %c0_186 = arith.constant 0 : index
    %c0_187 = arith.constant 0 : index
    %137 = vector.load %arg5[%c0_184, %c6_185, %c0_186, %c0_187] : memref<1x8x12x12xf32, #tpu.memory_space<vmem>>, vector<1x1x12x12xf32>
    %138 = vector.shape_cast %137 : vector<1x1x12x12xf32> to vector<12x12xf32>
    %cst_188 = arith.constant dense<0.000000e+00> : vector<12x16xf32>
    %139 = tpu.matmul %138, %136, %cst_188 {dimension_numbers = #tpu.dot_dimension_numbers<[1], [0], [0], [1], [0, 0, 1, 1], [], []>} : vector<12x12xf32>, vector<12x16xf32>, vector<12x16xf32> -> vector<12x16xf32>
    %cst_189 = arith.constant dense<0.000000e+00> : vector<16x16xf32>
    %140 = tpu.matmul %135, %139, %cst_189 {dimension_numbers = #tpu.dot_dimension_numbers<[1], [0], [0], [1], [0, 0, 1, 1], [], []>} : vector<16x12xf32>, vector<12x16xf32>, vector<16x16xf32> -> vector<16x16xf32>
    %141 = arith.addf %134, %140 : vector<16x16xf32>
    %cst_190 = arith.constant 0.333333343 : f32
    %142 = vector.broadcast %cst_190 : f32 to vector<16x16xf32>
    %143 = arith.mulf %141, %142 : vector<16x16xf32>
    %c0_191 = arith.constant 0 : index
    %c6_192 = arith.constant 6 : index
    %c0_193 = arith.constant 0 : index
    %c0_194 = arith.constant 0 : index
    %144 = vector.load %arg8[%c0_191, %c6_192, %c0_193, %c0_194] : memref<1x8x16x16xf32, #tpu.memory_space<vmem>>, vector<1x1x16x16xf32>
    %145 = vector.shape_cast %144 : vector<1x1x16x16xf32> to vector<16x16xf32>
    %146 = vector.shape_cast %143 : vector<16x16xf32> to vector<1x1x16x16xf32>
    tpu.vector_store %arg8[%c0_191, %c6_192, %c0_193, %c0_194], %146 {strides = array<i32>} : memref<1x8x16x16xf32, #tpu.memory_space<vmem>>, vector<1x1x16x16xf32>,
    %c0_195 = arith.constant 0 : index
    %c7 = arith.constant 7 : index
    %c0_196 = arith.constant 0 : index
    %c0_197 = arith.constant 0 : index
    %147 = vector.load %arg1[%c0_195, %c7, %c0_196, %c0_197] : memref<1x8x16x16xf32, #tpu.memory_space<vmem>>, vector<1x1x16x16xf32>
    %148 = vector.shape_cast %147 : vector<1x1x16x16xf32> to vector<16x16xf32>
    %c0_198 = arith.constant 0 : index
    %c0_199 = arith.constant 0 : index
    %149 = vector.load %arg3[%c0_198, %c0_199] : memref<16x8xf32, #tpu.memory_space<vmem>>, vector<16x8xf32>
    %c0_200 = arith.constant 0 : index
    %c0_201 = arith.constant 0 : index
    %150 = vector.load %arg4[%c0_200, %c0_201] : memref<8x16xf32, #tpu.memory_space<vmem>>, vector<8x16xf32>
    %c0_202 = arith.constant 0 : index
    %c7_203 = arith.constant 7 : index
    %c0_204 = arith.constant 0 : index
    %c0_205 = arith.constant 0 : index
    %151 = vector.load %arg2[%c0_202, %c7_203, %c0_204, %c0_205] : memref<1x8x8x8xf32, #tpu.memory_space<vmem>>, vector<1x1x8x8xf32>
    %152 = vector.shape_cast %151 : vector<1x1x8x8xf32> to vector<8x8xf32>
    %cst_206 = arith.constant dense<0.000000e+00> : vector<8x16xf32>
    %153 = tpu.matmul %152, %150, %cst_206 {dimension_numbers = #tpu.dot_dimension_numbers<[1], [0], [0], [1], [0, 0, 1, 1], [], []>} : vector<8x8xf32>, vector<8x16xf32>, vector<8x16xf32> -> vector<8x16xf32>
    %cst_207 = arith.constant dense<0.000000e+00> : vector<16x16xf32>
    %154 = tpu.matmul %149, %153, %cst_207 {dimension_numbers = #tpu.dot_dimension_numbers<[1], [0], [0], [1], [0, 0, 1, 1], [], []>} : vector<16x8xf32>, vector<8x16xf32>, vector<16x16xf32> -> vector<16x16xf32>
    %155 = arith.addf %148, %154 : vector<16x16xf32>
    %c0_208 = arith.constant 0 : index
    %c0_209 = arith.constant 0 : index
    %156 = vector.load %arg6[%c0_208, %c0_209] : memref<16x12xf32, #tpu.memory_space<vmem>>, vector<16x12xf32>
    %c0_210 = arith.constant 0 : index
    %c0_211 = arith.constant 0 : index
    %157 = vector.load %arg7[%c0_210, %c0_211] : memref<12x16xf32, #tpu.memory_space<vmem>>, vector<12x16xf32>
    %c0_212 = arith.constant 0 : index
    %c7_213 = arith.constant 7 : index
    %c0_214 = arith.constant 0 : index
    %c0_215 = arith.constant 0 : index
    %158 = vector.load %arg5[%c0_212, %c7_213, %c0_214, %c0_215] : memref<1x8x12x12xf32, #tpu.memory_space<vmem>>, vector<1x1x12x12xf32>
    %159 = vector.shape_cast %158 : vector<1x1x12x12xf32> to vector<12x12xf32>
    %cst_216 = arith.constant dense<0.000000e+00> : vector<12x16xf32>
    %160 = tpu.matmul %159, %157, %cst_216 {dimension_numbers = #tpu.dot_dimension_numbers<[1], [0], [0], [1], [0, 0, 1, 1], [], []>} : vector<12x12xf32>, vector<12x16xf32>, vector<12x16xf32> -> vector<12x16xf32>
    %cst_217 = arith.constant dense<0.000000e+00> : vector<16x16xf32>
    %161 = tpu.matmul %156, %160, %cst_217 {dimension_numbers = #tpu.dot_dimension_numbers<[1], [0], [0], [1], [0, 0, 1, 1], [], []>} : vector<16x12xf32>, vector<12x16xf32>, vector<16x16xf32> -> vector<16x16xf32>
    %162 = arith.addf %155, %161 : vector<16x16xf32>
    %cst_218 = arith.constant 0.333333343 : f32
    %163 = vector.broadcast %cst_218 : f32 to vector<16x16xf32>
    %164 = arith.mulf %162, %163 : vector<16x16xf32>
    %c0_219 = arith.constant 0 : index
    %c7_220 = arith.constant 7 : index
    %c0_221 = arith.constant 0 : index
    %c0_222 = arith.constant 0 : index
    %165 = vector.load %arg8[%c0_219, %c7_220, %c0_221, %c0_222] : memref<1x8x16x16xf32, #tpu.memory_space<vmem>>, vector<1x1x16x16xf32>
    %166 = vector.shape_cast %165 : vector<1x1x16x16xf32> to vector<16x16xf32>
    %167 = vector.shape_cast %164 : vector<16x16xf32> to vector<1x1x16x16xf32>
    tpu.vector_store %arg8[%c0_219, %c7_220, %c0_221, %c0_222], %167 {strides = array<i32>} : memref<1x8x16x16xf32, #tpu.memory_space<vmem>>, vector<1x1x16x16xf32>,
    return
  }
  func.func @transform_0(%arg0: i32) -> (i32, i32, i32, i32) {
    %c0_i32 = arith.constant 0 : i32
    %c0_i32_0 = arith.constant 0 : i32
    %c0_i32_1 = arith.constant 0 : i32
    %c0_i32_2 = arith.constant 0 : i32
    return %arg0, %c0_i32, %c0_i32_0, %c0_i32_1 : i32, i32, i32, i32
  }
  func.func @transform_1(%arg0: i32) -> (i32, i32, i32, i32) {
    %c0_i32 = arith.constant 0 : i32
    %c0_i32_0 = arith.constant 0 : i32
    %c0_i32_1 = arith.constant 0 : i32
    %c0_i32_2 = arith.constant 0 : i32
    return %arg0, %c0_i32, %c0_i32_0, %c0_i32_1 : i32, i32, i32, i32
  }
  func.func @transform_2(%arg0: i32) -> (i32, i32) {
    %c0_i32 = arith.constant 0 : i32
    %c0_i32_0 = arith.constant 0 : i32
    %c0_i32_1 = arith.constant 0 : i32
    return %c0_i32, %c0_i32_0 : i32, i32
  }
  func.func @transform_3(%arg0: i32) -> (i32, i32) {
    %c0_i32 = arith.constant 0 : i32
    %c0_i32_0 = arith.constant 0 : i32
    %c0_i32_1 = arith.constant 0 : i32
    return %c0_i32, %c0_i32_0 : i32, i32
  }
  func.func @transform_4(%arg0: i32) -> (i32, i32, i32, i32) {
    %c0_i32 = arith.constant 0 : i32
    %c0_i32_0 = arith.constant 0 : i32
    %c0_i32_1 = arith.constant 0 : i32
    %c0_i32_2 = arith.constant 0 : i32
    return %arg0, %c0_i32, %c0_i32_0, %c0_i32_1 : i32, i32, i32, i32
  }
  func.func @transform_5(%arg0: i32) -> (i32, i32) {
    %c0_i32 = arith.constant 0 : i32
    %c0_i32_0 = arith.constant 0 : i32
    %c0_i32_1 = arith.constant 0 : i32
    return %c0_i32, %c0_i32_0 : i32, i32
  }
  func.func @transform_6(%arg0: i32) -> (i32, i32) {
    %c0_i32 = arith.constant 0 : i32
    %c0_i32_0 = arith.constant 0 : i32
    %c0_i32_1 = arith.constant 0 : i32
    return %c0_i32, %c0_i32_0 : i32, i32
  }
  func.func @transform_7(%arg0: i32) -> (i32, i32, i32, i32) {
    %c0_i32 = arith.constant 0 : i32
    %c0_i32_0 = arith.constant 0 : i32
    %c0_i32_1 = arith.constant 0 : i32
    %c0_i32_2 = arith.constant 0 : i32
    return %arg0, %c0_i32, %c0_i32_0, %c0_i32_1 : i32, i32, i32, i32
  }
}

module attributes {stable_mosaic.version = 11 : i64} {
  func.func @_fts_distance_kernel(%arg0: i32, %arg1: i32, %arg2: memref<1x8x144xf32, #tpu.memory_space<vmem>>, %arg3: memref<1x8x144xf32, #tpu.memory_space<vmem>>, %arg4: memref<1x144x144xf32, #tpu.memory_space<vmem>>) attributes {dimension_semantics = [#tpu.dimension_semantics<parallel>, #tpu.dimension_semantics<parallel>], iteration_bounds = array<i64: 4, 1>, scalar_prefetch = 0 : i64, scratch_operands = 0 : i64, tpu.core_type = #tpu.core_type<tc>, window_params = [{transform_indices = @transform_0, window_bounds = array<i64: 1, 8, 144>}, {transform_indices = @transform_1, window_bounds = array<i64: 1, 8, 144>}, {transform_indices = @transform_2, window_bounds = array<i64: 1, 144, 144>}]} {
    %c0 = arith.constant 0 : index
    %c0_0 = arith.constant 0 : index
    %c0_1 = arith.constant 0 : index
    %0 = vector.load %arg2[%c0, %c0_0, %c0_1] : memref<1x8x144xf32, #tpu.memory_space<vmem>>, vector<1x8x144xf32>
    %1 = vector.shape_cast %0 : vector<1x8x144xf32> to vector<8x144xf32>
    %c0_2 = arith.constant 0 : index
    %c0_3 = arith.constant 0 : index
    %c0_4 = arith.constant 0 : index
    %2 = vector.load %arg3[%c0_2, %c0_3, %c0_4] : memref<1x8x144xf32, #tpu.memory_space<vmem>>, vector<1x8x144xf32>
    %3 = vector.shape_cast %2 : vector<1x8x144xf32> to vector<8x144xf32>
    %cst = arith.constant dense<0.000000e+00> : vector<144x144xf32>
    %4 = tpu.matmul %1, %3, %cst {dimension_numbers = #tpu.dot_dimension_numbers<[0], [0], [1], [1], [0, 1, 1, 1], [], []>} : vector<8x144xf32>, vector<8x144xf32>, vector<144x144xf32> -> vector<144x144xf32>
    %5 = arith.negf %4 : vector<144x144xf32>
    %6 = math.exp %5 : vector<144x144xf32>
    %cst_5 = arith.constant 1.000000e+00 : f32
    %7 = vector.broadcast %cst_5 : f32 to vector<144x144xf32>
    %8 = arith.addf %7, %6 : vector<144x144xf32>
    %9 = arith.divf %7, %8 : vector<144x144xf32>
    %c0_6 = arith.constant 0 : index
    %c0_7 = arith.constant 0 : index
    %c0_8 = arith.constant 0 : index
    %10 = vector.load %arg4[%c0_6, %c0_7, %c0_8] : memref<1x144x144xf32, #tpu.memory_space<vmem>>, vector<1x144x144xf32>
    %11 = vector.shape_cast %10 : vector<1x144x144xf32> to vector<144x144xf32>
    %12 = vector.shape_cast %9 : vector<144x144xf32> to vector<1x144x144xf32>
    tpu.vector_store %arg4[%c0_6, %c0_7, %c0_8], %12 {strides = array<i32>} : memref<1x144x144xf32, #tpu.memory_space<vmem>>, vector<1x144x144xf32>,
    return
  }
  func.func @transform_0(%arg0: i32, %arg1: i32) -> (i32, i32, i32) {
    %c0_i32 = arith.constant 0 : i32
    %c0_i32_0 = arith.constant 0 : i32
    %c0_i32_1 = arith.constant 0 : i32
    return %arg0, %c0_i32, %c0_i32_0 : i32, i32, i32
  }
  func.func @transform_1(%arg0: i32, %arg1: i32) -> (i32, i32, i32) {
    %c0_i32 = arith.constant 0 : i32
    %c0_i32_0 = arith.constant 0 : i32
    return %arg0, %c0_i32, %arg1 : i32, i32, i32
  }
  func.func @transform_2(%arg0: i32, %arg1: i32) -> (i32, i32, i32) {
    %c0_i32 = arith.constant 0 : i32
    %c0_i32_0 = arith.constant 0 : i32
    return %arg0, %c0_i32, %arg1 : i32, i32, i32
  }
}

module attributes {stable_mosaic.version = 11 : i64} {
  func.func @_fts_distance_kernel(%arg0: i32, %arg1: i32, %arg2: memref<1x8x256xf32, #tpu.memory_space<vmem>>, %arg3: memref<1x8x256xf32, #tpu.memory_space<vmem>>, %arg4: memref<1x256x256xf32, #tpu.memory_space<vmem>>) attributes {dimension_semantics = [#tpu.dimension_semantics<parallel>, #tpu.dimension_semantics<parallel>], iteration_bounds = array<i64: 4, 1>, scalar_prefetch = 0 : i64, scratch_operands = 0 : i64, tpu.core_type = #tpu.core_type<tc>, window_params = [{transform_indices = @transform_0, window_bounds = array<i64: 1, 8, 256>}, {transform_indices = @transform_1, window_bounds = array<i64: 1, 8, 256>}, {transform_indices = @transform_2, window_bounds = array<i64: 1, 256, 256>}]} {
    %c0 = arith.constant 0 : index
    %c0_0 = arith.constant 0 : index
    %c0_1 = arith.constant 0 : index
    %0 = vector.load %arg2[%c0, %c0_0, %c0_1] : memref<1x8x256xf32, #tpu.memory_space<vmem>>, vector<1x8x256xf32>
    %1 = vector.shape_cast %0 : vector<1x8x256xf32> to vector<8x256xf32>
    %c0_2 = arith.constant 0 : index
    %c0_3 = arith.constant 0 : index
    %c0_4 = arith.constant 0 : index
    %2 = vector.load %arg3[%c0_2, %c0_3, %c0_4] : memref<1x8x256xf32, #tpu.memory_space<vmem>>, vector<1x8x256xf32>
    %3 = vector.shape_cast %2 : vector<1x8x256xf32> to vector<8x256xf32>
    %cst = arith.constant dense<0.000000e+00> : vector<256x256xf32>
    %4 = tpu.matmul %1, %3, %cst {dimension_numbers = #tpu.dot_dimension_numbers<[0], [0], [1], [1], [0, 1, 1, 1], [], []>} : vector<8x256xf32>, vector<8x256xf32>, vector<256x256xf32> -> vector<256x256xf32>
    %5 = arith.negf %4 : vector<256x256xf32>
    %6 = math.exp %5 : vector<256x256xf32>
    %cst_5 = arith.constant 1.000000e+00 : f32
    %7 = vector.broadcast %cst_5 : f32 to vector<256x256xf32>
    %8 = arith.addf %7, %6 : vector<256x256xf32>
    %9 = arith.divf %7, %8 : vector<256x256xf32>
    %c0_6 = arith.constant 0 : index
    %c0_7 = arith.constant 0 : index
    %c0_8 = arith.constant 0 : index
    %10 = vector.load %arg4[%c0_6, %c0_7, %c0_8] : memref<1x256x256xf32, #tpu.memory_space<vmem>>, vector<1x256x256xf32>
    %11 = vector.shape_cast %10 : vector<1x256x256xf32> to vector<256x256xf32>
    %12 = vector.shape_cast %9 : vector<256x256xf32> to vector<1x256x256xf32>
    tpu.vector_store %arg4[%c0_6, %c0_7, %c0_8], %12 {strides = array<i32>} : memref<1x256x256xf32, #tpu.memory_space<vmem>>, vector<1x256x256xf32>,
    return
  }
  func.func @transform_0(%arg0: i32, %arg1: i32) -> (i32, i32, i32) {
    %c0_i32 = arith.constant 0 : i32
    %c0_i32_0 = arith.constant 0 : i32
    %c0_i32_1 = arith.constant 0 : i32
    return %arg0, %c0_i32, %c0_i32_0 : i32, i32, i32
  }
  func.func @transform_1(%arg0: i32, %arg1: i32) -> (i32, i32, i32) {
    %c0_i32 = arith.constant 0 : i32
    %c0_i32_0 = arith.constant 0 : i32
    return %arg0, %c0_i32, %arg1 : i32, i32, i32
  }
  func.func @transform_2(%arg0: i32, %arg1: i32) -> (i32, i32, i32) {
    %c0_i32 = arith.constant 0 : i32
    %c0_i32_0 = arith.constant 0 : i32
    return %arg0, %c0_i32, %arg1 : i32, i32, i32
  }
}

</mosaic_0001>

<bundles_post_ra>
// kernel: msc_forward.18
= control target key start
LH: loop header
LB: loop body
LE: loop exit
PB: predicated region body
PF: predicated region fallthrough
CT: control target
= control target key end

     0   :  { %s771_s27 = smov 0   ;;  %s834_s0 = inlined_call_operand.vmem [shape: f32[4,4,144], index: 0, kind: input, shape index: {}]   ;;  %s835_s1 = inlined_call_operand.vmem [shape: f32[8,4], index: 1, kind: input, shape index: {}]   ;;  %s836_s2 = inlined_call_operand.vmem [shape: f32[8,1], index: 2, kind: input, shape index: {}]   ;;  %s837_s3 = inlined_call_operand.vmem [shape: f32[32,8], index: 3, kind: input, shape index: {}]   ;;  %s838_s4 = inlined_call_operand.vmem [shape: f32[32,1], index: 4, kind: input, shape index: {}]   ;;  %s839_s5 = inlined_call_operand.vmem [shape: f32[4,5,144], index: 5, kind: output, shape index: {0}]   ;;  %s840_s6 = inlined_call_operand.vmem [shape: f32[4,5,144], index: 6, kind: output, shape index: {1}]   ;;  %s841_s7 = inlined_call_operand.vmem [shape: f32[4,5,144], index: 7, kind: output, shape index: {2}]   ;;  %s842_s8 = inlined_call_operand.vmem [shape: f32[4,8,144], index: 8, kind: output, shape index: {3}]  }
   0x1 LB: > { %s669_s28 = sadd.s32 4294967295, %s723_s27   ;;  %p673_p0 = scmp.ge.s32.totalorder %s723_s27, 1  ;;  %s723_s27 = sphi %s771_s27, %s19_s27  }
   0x2   : > { %p269_p1 = scmp.lt.s32.totalorder %s723_s27, 5 }
   0x4   : > { %p270_p2 = pnand %p673_p0, %p269_p1 }
   0x5   : > { %p318_p3 = scmp.lt.s32.totalorder (!%p270_p2), %s669_s28, 3 }
   0x6   : > { %273 = sbr.rel (%p270_p2) target bundleno = 308 (0x134), region = 40 }
   0xb   : > { %v345_v0 = vld [vmem:[%s836_s2] sm:$0xff]  ;;  %v725_v1 = vmov 0   ;;  %s844_s28 = smov (!%p318_p3, %s669_s28), 3  ;;  %vm359_vm0 = vcmask 1043456   ;;  %vm355_vm1 = vcmask 31744   ;;  %v411_v7 = vld [vmem:[%s838_s4 + $0x8] sm:$0xff] }
   0xc   : > { %714 = vset.pattern.permute.xlu0 %v725_v1  ;;  %715 = vset.pattern.permute.xlu1 %v725_v1  ;;  %s698_s9 = sshll.u32 %s844_s28, 3  ;;  %v410_v3 = vld [vmem:[%s838_s4] sm:$0xff]  ;;  %v413_v8 = vld [vmem:[%s838_s4 + $0x18] sm:$0xff]  ;;  %v412_v9 = vld [vmem:[%s838_s4 + $0x10] sm:$0xff]  ;;  %vm434_vm2 = vcmask 64512   ;;  %s699_s11 = sshll.u32 %s844_s28, 4 }
   0xd   : > { %348 = vperm.xlu0 %714, %v345_v0   ;;  %716 = vset.pattern.permute.xlu2 %v725_v1  ;;  %s322_s12 = scalar_lea.vmem %s834_s0, %s698_s9  ;;  %v344_v4 = vld [vmem:[%s835_s1] sm:$0xff]  ;;  %v407_v18 = vld [vmem:[%s837_s3 + $0x8] sm:$0xff]  ;;  %v408_v19 = vld [vmem:[%s837_s3 + $0x10] sm:$0xff]  ;;  %s327_s14 = scalar_lea.vmem %s839_s5, %s699_s11  ;;  %vm506_vm3 = vcmask 126976   ;;  %vm513_vm4 = vcmask 130048  }
   0xe   : > { %v343_v2 = vld [vmem:[%s322_s12] sm:$0xff]  ;;  %421 = vperm.xlu1 %715, %v411_v7   ;;  %431 = vperm.xlu2 %716, %v413_v8   ;;  %v409_v20 = vld [vmem:[%s837_s3 + $0x18] sm:$0xff]  ;;  %s332_s17 = scalar_lea.vmem %s840_s6, %s699_s11  ;;  %s337_s19 = scalar_lea.vmem %s841_s7, %s699_s11 }
   0xf   : > { %352 = vst [vmem:[#allocation1] ss:$2 sm:$0xff] %v343_v2  ;;  %v406_v17 = vld [vmem:[%s837_s3] sm:$0xff]  ;;  %s342_s22 = scalar_lea.vmem %s842_s8, %s699_s11 }
  0x15   : > { %416 = vperm.xlu0 %714, %v410_v3  }
  0x16   : > { %v353_v5 = vld.sshfl [vmem:[#allocation1] sm:$0xff pattern:$0x75316420]  ;;  %v354_v6 = vld.sshfl [vmem:[#allocation1 + $0x8] sm:$0xff pattern:$0x75316420]  ;;  %426 = vperm.xlu1 %715, %v412_v9  }
  0x17   : > { %684 = vmatpush.msk.msra.mxu0 %vm359_vm0, %v353_v5  ;;  %686 = vmatpush.msk.msra.mxu1 %vm359_vm0, %v354_v6 }
  0x18   : > { %685 = vmatmul.msk.f32.vlgmr.msra.gmra.mxu0 %vm355_vm1, %v344_v4  ;;  %687 = vmatmul.msk.f32.vlgmr.msra.gmra.mxu1 %vm355_vm1, %v344_v4 }
  0x68   : > { %v432_v36 = vpop.permute.xlu2 %431 }
  0x7f   : > { %v349_v10 = vpop.permute.xlu0 %348 }
  0x80   : > { %v422_v26 = vpop.permute.xlu1 %421 }
  0x87   : > { %v417_v21 = vpop.permute.xlu0 %416 }
  0x88   : > { %v427_v31 = vpop.permute.xlu1 %426 }
  0x95   : > { %v381_v11 = vpop.f32.mrf.mxu0  ;;  %v401_v12 = vpop.f32.mrf.mxu1 }
  0x96   : > { %v382_v13 = vadd.f32 %v381_v11, %v349_v10  ;;  %v402_v14 = vadd.f32 %v401_v12, %v349_v10 }
  0x98   : > { %v404_v15 = vmax.f32 %v382_v13, 0.0  ;;  %v405_v16 = vmax.f32 %v402_v14, 0.0 }
  0x9a   : > { %462 = vmatpush.msrb.mxu0 %v404_v15  ;;  %703 = vmatpush.msra.mxu2 %v404_v15 }
  0x9b   : > { %491 = vmatpush.msrb.mxu1 %v405_v16  ;;  %704 = vmatpush.msra.mxu3 %v405_v16 }
  0x9c   : > { %688 = vmatmul.msk.f32.vlgmr.msrb.gmra.mxu0 %vm434_vm2, %v406_v17  ;;  %689 = vmatmul.msk.f32.vlgmr.msra.gmra.mxu2 %vm434_vm2, %v407_v18 }
  0x9d   : > { %692 = vmatmul.msk.f32.vlgmr.msrb.gmra.mxu1 %vm434_vm2, %v406_v17  ;;  %693 = vmatmul.msk.f32.vlgmr.msra.gmra.mxu3 %vm434_vm2, %v407_v18 }
  0xa4   : > { %690 = vmatmul.msk.f32.gmra.mxu2 %vm434_vm2, %v408_v19 }
  0xa5   : > { %694 = vmatmul.msk.f32.gmra.mxu3 %vm434_vm2, %v408_v19 }
  0xac   : > { %691 = vmatmul.msk.f32.gmra.mxu2 %vm434_vm2, %v409_v20 }
  0xad   : > { %695 = vmatmul.msk.f32.gmra.mxu3 %vm434_vm2, %v409_v20 }
 0x119   : > { %v464_v22 = vpop.f32.mrf.mxu0 }
 0x11a   : > { %v465_v23 = vadd.f32 %v464_v22, %v417_v21  ;;  %v493_v24 = vpop.f32.mrf.mxu1 }
 0x11b   : > { %v494_v25 = vadd.f32 %v493_v24, %v417_v21 }
 0x11c   : > { %505 = vst [vmem:[%s327_s14] sm:$0x1f] %v465_v23 }
 0x11d   : > { %507 = vst.msk [vmem:[%s327_s14 + $0x8] sm:$0x1f] %vm506_vm3, %v494_v25 }
 0x11f   : > { %v467_v27 = vpop.f32.mrf.mxu2 }
 0x120   : > { %v468_v28 = vadd.f32 %v467_v27, %v422_v26  ;;  %v496_v29 = vpop.f32.mrf.mxu3 }
 0x121   : > { %v497_v30 = vadd.f32 %v496_v29, %v422_v26 }
 0x122   : > { %508 = vst [vmem:[%s332_s17] sm:$0x1f] %v468_v28 }
 0x123   : > { %509 = vst.msk [vmem:[%s332_s17 + $0x8] sm:$0x1f] %vm506_vm3, %v497_v30 }
 0x127   : > { %v470_v32 = vpop.f32.mrf.mxu2 }
 0x128   : > { %v471_v33 = vadd.f32 %v470_v32, %v427_v31  ;;  %v499_v34 = vpop.f32.mrf.mxu3 }
 0x129   : > { %v500_v35 = vadd.f32 %v499_v34, %v427_v31 }
 0x12a   : > { %510 = vst [vmem:[%s337_s19] sm:$0x1f] %v471_v33 }
 0x12b   : > { %511 = vst.msk [vmem:[%s337_s19 + $0x8] sm:$0x1f] %vm506_vm3, %v500_v35 }
 0x12f   : > { %v473_v37 = vpop.f32.mrf.mxu2 }
 0x130   : > { %v474_v38 = vadd.f32 %v473_v37, %v432_v36  ;;  %v502_v39 = vpop.f32.mrf.mxu3 }
 0x131   : > { %v503_v40 = vadd.f32 %v502_v39, %v432_v36 }
 0x132   : > { %512 = vst [vmem:[%s342_s22] sm:$0xff] %v474_v38 }
 0x133   : > { %514 = vst.msk [vmem:[%s342_s22 + $0x8] sm:$0xff] %vm513_vm4, %v503_v40 }
 0x134 PF: > { %s19_s27 = sadd.s32 1, %s723_s27  }
 0x135   : > { %p16_p4 = scmp.ge.s32.totalorder %s19_s27, 6  }
 0x137   :  { %18 = sbr.rel (!%p16_p4) target bundleno = 1 (0x1), region = 106 }

// kernel: msc_forward.14
= control target key start
LH: loop header
LB: loop body
LE: loop exit
PB: predicated region body
PF: predicated region fallthrough
CT: control target
= control target key end

     0   :  { %s520_s12 = smov 0   ;;  %s562_s0 = inlined_call_operand.vmem [shape: f32[4,4,16,16], index: 0, kind: input, shape index: {}]   ;;  %s563_s1 = inlined_call_operand.vmem [shape: f32[8,16], index: 1, kind: input, shape index: {}]   ;;  %s564_s2 = inlined_call_operand.vmem [shape: f32[16,8], index: 2, kind: input, shape index: {}]   ;;  %s565_s3 = inlined_call_operand.vmem [shape: f32[4,4,8,8], index: 3, kind: output, shape index: {}]  }
   0x1 LB: > { %s448_s13 = sadd.s32 4294967295, %s498_s12   ;;  %p452_p0 = scmp.ge.s32.totalorder %s498_s12, 1  ;;  %s498_s12 = sphi %s520_s12, %s13_s12  }
   0x2   : > { %p137_p1 = scmp.lt.s32.totalorder %s498_s12, 5 }
   0x4   : > { %p138_p2 = pnand %p452_p0, %p137_p1 }
   0x5   : > { %p161_p3 = scmp.lt.s32.totalorder (!%p138_p2), %s448_s13, 3 }
   0x6   : > { %141 = sbr.rel (%p138_p2) target bundleno = 428 (0x1ac), region = 32 }
   0xb   : > { %v173_v0 = vld [vmem:[%s564_s2 + $0x8] sm:$0xff]  ;;  %v172_v1 = vld [vmem:[%s564_s2] sm:$0xff]  ;;  %s567_s13 = smov (!%p161_p3, %s448_s13), 3  ;;  %vm176_vm0 = vcmask 130048   ;;  %vm229_vm1 = vcmask 64512  }
   0xc   : > { %482 = vmatpush.msra.mxu3 %v173_v0  ;;  %197 = vmatpush.msra.mxu0 %v173_v0  ;;  %s480_s18 = sshll.u32 %s567_s13, 6  ;;  %v171_v10 = vld [vmem:[%s563_s1] sm:$0xff]  ;;  %s481_s24 = sshll.u32 %s567_s13, 5 }
   0xd   : > { %254 = vmatpush.msra.mxu2 %v173_v0  ;;  %s165_s21 = scalar_lea.vmem %s562_s0, %s480_s18  ;;  %s170_s27 = scalar_lea.vmem %s565_s3, %s481_s24 }
   0xe   : > { %483 = vmatpush.msra.mxu3 %v172_v1  ;;  %198 = vmatpush.msra.mxu0 %v172_v1  ;;  %v175_v2 = vld [vmem:[%s165_s21 + $0x8] sm:$0xff]  ;;  %v174_v3 = vld [vmem:[%s165_s21] sm:$0xff]  ;;  %v460_v4 = vld [vmem:[%s165_s21 + $0x10] sm:$0xff] }
   0xf   : > { %255 = vmatpush.msra.mxu2 %v172_v1  ;;  %458 = vmatmul.msk.f32.vlgmr.msra.gmra.mxu3 %vm176_vm0, %v175_v2  ;;  %v472_v5 = vld [vmem:[%s165_s21 + $0x30] sm:$0xff]  ;;  %v461_v6 = vld [vmem:[%s165_s21 + $0x18] sm:$0xff]  ;;  %v466_v12 = vld [vmem:[%s165_s21 + $0x20] sm:$0xff] }
  0x10   : > { %362 = vmatpush.msrb.mxu0 %v173_v0  ;;  %462 = vmatmul.msk.f32.vlgmr.msra.gmra.mxu2 %vm176_vm0, %v460_v4  ;;  %v473_v7 = vld [vmem:[%s165_s21 + $0x38] sm:$0xff]  ;;  %v467_v14 = vld [vmem:[%s165_s21 + $0x28] sm:$0xff] }
  0x11   : > { %457 = vmatmul.msk.f32.vlgmr.msra.gmra.mxu0 %vm176_vm0, %v174_v3 }
  0x12   : > { %363 = vmatpush.msrb.mxu0 %v172_v1 }
  0x18   : > { %463 = vmatmul.msk.f32.gmra.mxu2 %vm176_vm0, %v461_v6 }
  0x19   : > { %474 = vmatmul.msk.f32.vlgmr.msrb.gmra.mxu0 %vm176_vm0, %v472_v5 }
  0x21   : > { %475 = vmatmul.msk.f32.gmra.mxu0 %vm176_vm0, %v473_v7 }
  0x8e   : > { %v200_v9 = vpop.f32.mrf.mxu0 }
  0x92   : > { %v203_v8 = vpop.f32.mrf.mxu3 }
  0x93   : > { %223 = vmatpush.msra.mxu1 %v203_v8  ;;  %v257_v11 = vpop.f32.mrf.mxu2 }
  0x95   : > { %224 = vmatpush.msra.mxu1 %v200_v9 }
  0x96   : > { %459 = vmatmul.msk.f32.vlgmr.msra.gmra.mxu1 %vm176_vm0, %v171_v10  ;;  %v365_v15 = vpop.f32.mrf.mxu0 }
  0x97   : > { %308 = vmatpush.msrb.mxu1 %v173_v0 }
  0x99   : > { %309 = vmatpush.msrb.mxu1 %v172_v1 }
  0x9b   : > { %v260_v13 = vpop.f32.mrf.mxu2 }
  0x9c   : > { %277 = vmatpush.msrb.mxu3 %v260_v13 }
  0x9e   : > { %468 = vmatmul.msk.f32.vlgmr.msrb.gmra.mxu1 %vm176_vm0, %v466_v12  ;;  %278 = vmatpush.msrb.mxu3 %v257_v11  ;;  %v368_v16 = vpop.f32.mrf.mxu0 }
  0x9f   : > { %464 = vmatmul.msk.f32.vlgmr.msrb.gmra.mxu3 %vm176_vm0, %v171_v10  ;;  %385 = vmatpush.msrb.mxu2 %v368_v16 }
  0xa1   : > { %386 = vmatpush.msrb.mxu2 %v365_v15 }
  0xa2   : > { %476 = vmatmul.msk.f32.vlgmr.msrb.gmra.mxu2 %vm176_vm0, %v171_v10 }
  0xa6   : > { %469 = vmatmul.msk.f32.gmra.mxu1 %vm176_vm0, %v467_v14 }
 0x113   : > { %v226_v17 = vpop.f32.mrf.mxu1 }
 0x114   : > { %230 = vst.msk [vmem:[%s170_s27] sm:$0xff] %vm229_vm1, %v226_v17 }
 0x11b   : > { %v311_v18 = vpop.f32.mrf.mxu1 }
 0x122   : > { %v280_v19 = vpop.f32.mrf.mxu3 }
 0x123   : > { %v314_v20 = vpop.f32.mrf.mxu1  ;;  %465 = vst.msk [vmem:[%s170_s27 + $0x8] sm:$0xff] %vm229_vm1, %v280_v19 }
 0x124   : > { %331 = vmatpush.msra.mxu3 %v314_v20 }
 0x125   : > { %v388_v21 = vpop.f32.mrf.mxu2 }
 0x126   : > { %332 = vmatpush.msra.mxu3 %v311_v18  ;;  %477 = vst.msk [vmem:[%s170_s27 + $0x18] sm:$0xff] %vm229_vm1, %v388_v21 }
 0x127   : > { %470 = vmatmul.msk.f32.vlgmr.msra.gmra.mxu3 %vm176_vm0, %v171_v10 }
 0x1aa   : > { %v334_v22 = vpop.f32.mrf.mxu3 }
 0x1ab   : > { %471 = vst.msk [vmem:[%s170_s27 + $0x10] sm:$0xff] %vm229_vm1, %v334_v22 }
 0x1ac PF: > { %s13_s12 = sadd.s32 1, %s498_s12  }
 0x1ad   : > { %p10_p4 = scmp.ge.s32.totalorder %s13_s12, 6  }
 0x1af   :  { %12 = sbr.rel (!%p10_p4) target bundleno = 1 (0x1), region = 68 }

// kernel: msc_forward.17
= control target key start
LH: loop header
LB: loop body
LE: loop exit
PB: predicated region body
PF: predicated region fallthrough
CT: control target
= control target key end

     0   :  { %s546_s12 = smov 0   ;;  %s598_s0 = inlined_call_operand.vmem [shape: f32[4,4,16,16], index: 0, kind: input, shape index: {}]   ;;  %s599_s1 = inlined_call_operand.vmem [shape: f32[12,16], index: 1, kind: input, shape index: {}]   ;;  %s600_s2 = inlined_call_operand.vmem [shape: f32[16,12], index: 2, kind: input, shape index: {}]   ;;  %s601_s3 = inlined_call_operand.vmem [shape: f32[4,4,12,12], index: 3, kind: output, shape index: {}]  }
   0x1 LB: > { %s469_s13 = sadd.s32 4294967295, %s524_s12   ;;  %p473_p0 = scmp.ge.s32.totalorder %s524_s12, 1  ;;  %s524_s12 = sphi %s546_s12, %s13_s12  }
   0x2   : > { %p137_p1 = scmp.lt.s32.totalorder %s524_s12, 5 }
   0x4   : > { %p138_p2 = pnand %p473_p0, %p137_p1 }
   0x5   : > { %p161_p3 = scmp.lt.s32.totalorder (!%p138_p2), %s469_s13, 3 }
   0x6   : > { %141 = sbr.rel (%p138_p2) target bundleno = 315 (0x13b), region = 32 }
   0xb   : > { %v174_v0 = vld [vmem:[%s600_s2 + $0x8] sm:$0xff]  ;;  %v173_v1 = vld [vmem:[%s600_s2] sm:$0xff]  ;;  %s603_s13 = smov (!%p161_p3, %s469_s13), 3  ;;  %vm177_vm0 = vcmask 130048   ;;  %vm236_vm1 = vcmask 97280   ;;  %vm238_vm2 = vcmask 93184  }
   0xc   : > { %263 = vmatpush.msra.mxu2 %v174_v0  ;;  %198 = vmatpush.msra.mxu0 %v174_v0  ;;  %s508_s18 = sshll.u32 %s603_s13, 6  ;;  %v171_v13 = vld [vmem:[%s599_s1] sm:$0xff]  ;;  %v172_v16 = vld [vmem:[%s599_s1 + $0x8] sm:$0xf] }
   0xd   : > { %s165_s21 = scalar_lea.vmem %s598_s0, %s508_s18  ;;  %s170_s28 = scalar_lea.vmem %s601_s3, %s508_s18 }
   0xe   : > { %264 = vmatpush.msra.mxu2 %v173_v1  ;;  %199 = vmatpush.msra.mxu0 %v173_v1  ;;  %v482_v2 = vld [vmem:[%s165_s21 + $0x10] sm:$0xff]  ;;  %v175_v3 = vld [vmem:[%s165_s21] sm:$0xff]  ;;  %v483_v4 = vld [vmem:[%s165_s21 + $0x18] sm:$0xff] }
   0xf   : > { %484 = vmatmul.msk.f32.vlgmr.msra.gmra.mxu2 %vm177_vm0, %v482_v2  ;;  %478 = vmatmul.msk.f32.vlgmr.msra.gmra.mxu0 %vm177_vm0, %v175_v3  ;;  %v176_v5 = vld [vmem:[%s165_s21 + $0x8] sm:$0xff]  ;;  %v498_v6 = vld [vmem:[%s165_s21 + $0x30] sm:$0xff]  ;;  %v490_v7 = vld [vmem:[%s165_s21 + $0x20] sm:$0xff] }
  0x10   : > { %379 = vmatpush.msrb.mxu2 %v174_v0  ;;  %321 = vmatpush.msrb.mxu0 %v174_v0  ;;  %v499_v8 = vld [vmem:[%s165_s21 + $0x38] sm:$0xff]  ;;  %v491_v9 = vld [vmem:[%s165_s21 + $0x28] sm:$0xff] }
  0x12   : > { %380 = vmatpush.msrb.mxu2 %v173_v1  ;;  %322 = vmatpush.msrb.mxu0 %v173_v1 }
  0x17   : > { %485 = vmatmul.msk.f32.gmra.mxu2 %vm177_vm0, %v483_v4  ;;  %479 = vmatmul.msk.f32.gmra.mxu0 %vm177_vm0, %v176_v5 }
  0x1f   : > { %500 = vmatmul.msk.f32.vlgmr.msrb.gmra.mxu2 %vm177_vm0, %v498_v6  ;;  %492 = vmatmul.msk.f32.vlgmr.msrb.gmra.mxu0 %vm177_vm0, %v490_v7 }
  0x27   : > { %501 = vmatmul.msk.f32.gmra.mxu2 %vm177_vm0, %v499_v8  ;;  %493 = vmatmul.msk.f32.gmra.mxu0 %vm177_vm0, %v491_v9 }
  0x8c   : > { %v201_v10 = vpop.f32.mrf.mxu0 }
  0x92   : > { %v266_v11 = vpop.f32.mrf.mxu2 }
  0x94   : > { %v204_v12 = vpop.f32.mrf.mxu0 }
  0x95   : > { %227 = vmatpush.msra.mxu1 %v204_v12 }
  0x97   : > { %228 = vmatpush.msra.mxu1 %v201_v10 }
  0x98   : > { %480 = vmatmul.msk.f32.vlgmr.msra.gmra.mxu1 %vm177_vm0, %v171_v13 }
  0x9a   : > { %v269_v14 = vpop.f32.mrf.mxu2 }
  0x9b   : > { %286 = vmatpush.msra.mxu3 %v269_v14 }
  0x9c   : > { %v324_v15 = vpop.f32.mrf.mxu0 }
  0x9d   : > { %287 = vmatpush.msra.mxu3 %v266_v11 }
  0x9e   : > { %486 = vmatmul.msk.f32.vlgmr.msra.gmra.mxu3 %vm177_vm0, %v171_v13 }
  0xa0   : > { %481 = vmatmul.msk.f32.gmra.mxu1 %vm177_vm0, %v172_v16 }
  0xa2   : > { %v382_v17 = vpop.f32.mrf.mxu2 }
  0xa4   : > { %v327_v18 = vpop.f32.mrf.mxu0 }
  0xa5   : > { %344 = vmatpush.msrb.mxu1 %v327_v18 }
  0xa6   : > { %487 = vmatmul.msk.f32.gmra.mxu3 %vm177_vm0, %v172_v16 }
  0xa7   : > { %345 = vmatpush.msrb.mxu1 %v324_v15 }
  0xa8   : > { %494 = vmatmul.msk.f32.vlgmr.msrb.gmra.mxu1 %vm177_vm0, %v171_v13 }
  0xaa   : > { %v385_v19 = vpop.f32.mrf.mxu2 }
  0xab   : > { %402 = vmatpush.msrb.mxu3 %v385_v19 }
  0xad   : > { %403 = vmatpush.msrb.mxu3 %v382_v17 }
  0xae   : > { %502 = vmatmul.msk.f32.vlgmr.msrb.gmra.mxu3 %vm177_vm0, %v171_v13 }
  0xb0   : > { %495 = vmatmul.msk.f32.gmra.mxu1 %vm177_vm0, %v172_v16 }
  0xb6   : > { %503 = vmatmul.msk.f32.gmra.mxu3 %vm177_vm0, %v172_v16 }
 0x115   : > { %v230_v20 = vpop.f32.mrf.mxu1 }
 0x116   : > { %237 = vst.msk [vmem:[%s170_s28] sm:$0xff] %vm236_vm1, %v230_v20 }
 0x11d   : > { %v233_v21 = vpop.f32.mrf.mxu1 }
 0x11e   : > { %239 = vst.msk [vmem:[%s170_s28 + $0x8] sm:$0xf] %vm238_vm2, %v233_v21 }
 0x121   : > { %v289_v22 = vpop.f32.mrf.mxu3 }
 0x122   : > { %488 = vst.msk [vmem:[%s170_s28 + $0x10] sm:$0xff] %vm236_vm1, %v289_v22 }
 0x125   : > { %v347_v23 = vpop.f32.mrf.mxu1 }
 0x126   : > { %496 = vst.msk [vmem:[%s170_s28 + $0x20] sm:$0xff] %vm236_vm1, %v347_v23 }
 0x129   : > { %v292_v24 = vpop.f32.mrf.mxu3 }
 0x12a   : > { %489 = vst.msk [vmem:[%s170_s28 + $0x18] sm:$0xf] %vm238_vm2, %v292_v24 }
 0x12d   : > { %v350_v25 = vpop.f32.mrf.mxu1 }
 0x12e   : > { %497 = vst.msk [vmem:[%s170_s28 + $0x28] sm:$0xf] %vm238_vm2, %v350_v25 }
 0x131   : > { %v405_v26 = vpop.f32.mrf.mxu3 }
 0x132   : > { %504 = vst.msk [vmem:[%s170_s28 + $0x30] sm:$0xff] %vm236_vm1, %v405_v26 }
 0x139   : > { %v408_v27 = vpop.f32.mrf.mxu3 }
 0x13a   : > { %505 = vst.msk [vmem:[%s170_s28 + $0x38] sm:$0xf] %vm238_vm2, %v408_v27 }
 0x13b PF: > { %s13_s12 = sadd.s32 1, %s524_s12  }
 0x13c   : > { %p10_p4 = scmp.ge.s32.totalorder %s13_s12, 6  }
 0x13e   :  { %12 = sbr.rel (!%p10_p4) target bundleno = 1 (0x1), region = 68 }

// kernel: msc_forward.15
= control target key start
LH: loop header
LB: loop body
LE: loop exit
PB: predicated region body
PF: predicated region fallthrough
CT: control target
= control target key end

     0   :  { %s677_s27 = smov 0   ;;  %s740_s0 = inlined_call_operand.vmem [shape: f32[4,4,64], index: 0, kind: input, shape index: {}]   ;;  %s741_s1 = inlined_call_operand.vmem [shape: f32[8,4], index: 1, kind: input, shape index: {}]   ;;  %s742_s2 = inlined_call_operand.vmem [shape: f32[8,1], index: 2, kind: input, shape index: {}]   ;;  %s743_s3 = inlined_call_operand.vmem [shape: f32[32,8], index: 3, kind: input, shape index: {}]   ;;  %s744_s4 = inlined_call_operand.vmem [shape: f32[32,1], index: 4, kind: input, shape index: {}]   ;;  %s745_s5 = inlined_call_operand.vmem [shape: f32[4,5,64], index: 5, kind: output, shape index: {0}]   ;;  %s746_s6 = inlined_call_operand.vmem [shape: f32[4,5,64], index: 6, kind: output, shape index: {1}]   ;;  %s747_s7 = inlined_call_operand.vmem [shape: f32[4,5,64], index: 7, kind: output, shape index: {2}]   ;;  %s748_s8 = inlined_call_operand.vmem [shape: f32[4,8,64], index: 8, kind: output, shape index: {3}]  }
   0x1 LB: > { %s591_s28 = sadd.s32 4294967295, %s629_s27   ;;  %p595_p0 = scmp.ge.s32.totalorder %s629_s27, 1  ;;  %s629_s27 = sphi %s677_s27, %s19_s27  }
   0x2   : > { %p268_p1 = scmp.lt.s32.totalorder %s629_s27, 5 }
   0x4   : > { %p269_p2 = pnand %p595_p0, %p268_p1 }
   0x5   : > { %p312_p3 = scmp.lt.s32.totalorder (!%p269_p2), %s591_s28, 3 }
   0x6   : > { %272 = sbr.rel (%p269_p2) target bundleno = 291 (0x123), region = 40 }
   0xb   : > { %v334_v0 = vld [vmem:[%s742_s2] sm:$0xff]  ;;  %v631_v1 = vmov 0   ;;  %s750_s28 = smov (!%p312_p3, %s591_s28), 3  ;;  %vm344_vm0 = vcmask 1043456   ;;  %vm340_vm1 = vcmask 31744   ;;  %v374_v5 = vld [vmem:[%s744_s4 + $0x8] sm:$0xff] }
   0xc   : > { %620 = vset.pattern.permute.xlu0 %v631_v1  ;;  %621 = vset.pattern.permute.xlu1 %v631_v1  ;;  %s596_s9 = sshll.u32 %s750_s28, 2  ;;  %v333_v2 = vld [vmem:[%s741_s1] sm:$0xff]  ;;  %v376_v6 = vld [vmem:[%s744_s4 + $0x18] sm:$0xff]  ;;  %v375_v7 = vld [vmem:[%s744_s4 + $0x10] sm:$0xff]  ;;  %vm397_vm2 = vcmask 64512   ;;  %s597_s11 = sshll.u32 %s750_s28, 3 }
   0xd   : > { %337 = vperm.xlu0 %620, %v334_v0   ;;  %622 = vset.pattern.permute.xlu2 %v631_v1  ;;  %s315_s12 = scalar_lea.vmem %s740_s0, %s596_s9  ;;  %v373_v4 = vld [vmem:[%s744_s4] sm:$0xff]  ;;  %v370_v13 = vld [vmem:[%s743_s3 + $0x8] sm:$0xff]  ;;  %v372_v14 = vld [vmem:[%s743_s3 + $0x18] sm:$0xff]  ;;  %s319_s14 = scalar_lea.vmem %s745_s5, %s597_s11  ;;  %vm439_vm3 = vcmask 520192   ;;  %vm443_vm4 = vcmask 523264  }
   0xe   : > { %v332_v3 = vld [vmem:[%s315_s12] sm:$0xf]  ;;  %384 = vperm.xlu1 %621, %v374_v5   ;;  %394 = vperm.xlu2 %622, %v376_v6   ;;  %v371_v15 = vld [vmem:[%s743_s3 + $0x10] sm:$0xff]  ;;  %s323_s17 = scalar_lea.vmem %s746_s6, %s597_s11  ;;  %s331_s19 = scalar_lea.vmem %s748_s8, %s597_s11 }
   0xf   : > { %601 = vmatpush.msk.msra.mxu0 %vm344_vm0, %v332_v3  ;;  %v369_v12 = vld [vmem:[%s743_s3] sm:$0xff]  ;;  %s327_s22 = scalar_lea.vmem %s747_s7, %s597_s11 }
  0x10   : > { %602 = vmatmul.msk.f32.vlgmr.msra.gmra.mxu0 %vm340_vm1, %v333_v2 }
  0x15   : > { %379 = vperm.xlu0 %620, %v373_v4  }
  0x16   : > { %389 = vperm.xlu1 %621, %v375_v7  }
  0x68   : > { %v395_v20 = vpop.permute.xlu2 %394 }
  0x7f   : > { %v338_v8 = vpop.permute.xlu0 %337 }
  0x80   : > { %v385_v19 = vpop.permute.xlu1 %384 }
  0x87   : > { %v380_v16 = vpop.permute.xlu0 %379 }
  0x88   : > { %v390_v25 = vpop.permute.xlu1 %389 }
  0x8d   : > { %v365_v9 = vpop.f32.mrf.mxu0 }
  0x8e   : > { %v366_v10 = vadd.f32 %v365_v9, %v338_v8 }
  0x90   : > { %v368_v11 = vmax.f32 %v366_v10, 0.0 }
  0x92   : > { %425 = vmatpush.msra.mxu1 %v368_v11  ;;  %609 = vmatpush.msra.mxu2 %v368_v11 }
  0x93   : > { %610 = vmatpush.msra.mxu3 %v368_v11  ;;  %603 = vmatmul.msk.f32.vlgmr.msra.gmra.mxu1 %vm397_vm2, %v369_v12 }
  0x94   : > { %604 = vmatmul.msk.f32.vlgmr.msra.gmra.mxu2 %vm397_vm2, %v370_v13  ;;  %606 = vmatmul.msk.f32.vlgmr.msra.gmra.mxu3 %vm397_vm2, %v372_v14 }
  0x9c   : > { %605 = vmatmul.msk.f32.gmra.mxu2 %vm397_vm2, %v371_v15 }
 0x110   : > { %v427_v17 = vpop.f32.mrf.mxu1 }
 0x111   : > { %v428_v18 = vadd.f32 %v427_v17, %v380_v16 }
 0x113   : > { %440 = vst.msk [vmem:[%s319_s14] sm:$0x1f] %vm439_vm3, %v428_v18 }
 0x117   : > { %v430_v21 = vpop.f32.mrf.mxu2  ;;  %v436_v22 = vpop.f32.mrf.mxu3 }
 0x118   : > { %v431_v23 = vadd.f32 %v430_v21, %v385_v19  ;;  %v437_v24 = vadd.f32 %v436_v22, %v395_v20 }
 0x11a   : > { %441 = vst.msk [vmem:[%s323_s17] sm:$0x1f] %vm439_vm3, %v431_v23 }
 0x11b   : > { %444 = vst.msk [vmem:[%s331_s19] sm:$0xff] %vm443_vm4, %v437_v24 }
 0x11f   : > { %v433_v26 = vpop.f32.mrf.mxu2 }
 0x120   : > { %v434_v27 = vadd.f32 %v433_v26, %v390_v25 }
 0x122   : > { %442 = vst.msk [vmem:[%s327_s22] sm:$0x1f] %vm439_vm3, %v434_v27 }
 0x123 PF: > { %s19_s27 = sadd.s32 1, %s629_s27  }
 0x124   : > { %p16_p4 = scmp.ge.s32.totalorder %s19_s27, 6  }
 0x126   :  { %18 = sbr.rel (!%p16_p4) target bundleno = 1 (0x1), region = 106 }

// kernel: msc_forward.16
= control target key start
LH: loop header
LB: loop body
LE: loop exit
PB: predicated region body
PF: predicated region fallthrough
CT: control target
= control target key end

     0   :  { %7 = vsyncpa [#allocation3], 0  ;;  %s897_s0 = inlined_call_operand.vmem [shape: f32[4,8,64], index: 0, kind: input, shape index: {}, may-alias: {0,1}]   ;;  %s898_s1 = inlined_call_operand.vmem [shape: f32[4,8,64], index: 1, kind: input, shape index: {}, may-alias: {0,1}]   ;;  %s899_s2 = inlined_call_operand.hbm [shape: f32[4,64,64], index: 2, kind: output, shape index: {}]  }
   0x1   :  { %9 = vsyncpa [#allocation3 + $0x1], 0  ;;  %s766_s9 = smov 0   ;;  %s768_s10 = smov 0  }
   0x2   :  { %s770_s11 = smov 0   ;;  %s772_s12 = smov 0  }
   0x3   :  { %s774_s13 = smov 0   ;;  %s776_s14 = smov 0  }
   0x4 LB: > { %s546_s15 = sadd.s32 4294967295, %s747_s14   ;;  %s547_s16 = sadd.s32 4294967294, %s747_s14   ;;  %s747_s14 = sphi %s776_s14, %s15_s14   ;;  %s743_s13 = sphi %s774_s13, %s906_s13   ;;  %s739_s12 = sphi %s772_s12, %s905_s12   ;;  %s735_s11 = sphi %s770_s11, %s904_s11   ;;  %s731_s10 = sphi %s768_s10, %s903_s10   ;;  %s727_s9 = sphi %s766_s9, %s902_s9  }
   0x5   : > { %s27_s17 = sadd.s32 1, %s743_s13  ;;  %s90_s18 = sadd.s32 1, %s735_s11 }
   0x6   : > { %p29_p0 = scmp.ge.s32.totalorder %s27_s17, 4  ;;  %p100_p1 = scmp.ne.s32.totalorder %s735_s11, %s731_s10 }
   0x7   : > { %p101_p2 = scmp.eq.s32.totalorder %s546_s15, 3  ;;  %p106_p3 = scmp.ne.s32.totalorder %s731_s10, %s727_s9 }
   0x8   : > { %s908_s17 = smov (%p29_p0, %s27_s17), 0  ;;  %p107_p5 = scmp.eq.s32.totalorder %s547_s16, 3 }
   0x9   : > { %p806_p4 = por %p101_p2, %p100_p1  ;;  %s85_s20 = ssub.s32 %s743_s13, %s908_s17 }
   0xa   : > { %p550_p6 = scmp.ge.s32.totalorder %s747_s14, 1  ;;  %p88_p7 = scmp.eq.s32.totalorder %s85_s20, 0 }
   0xb   : > { %p813_p8 = por %p107_p5, %p106_p3  ;;  %p142_p9 = scmp.lt.s32.totalorder %s747_s14, 5 }
   0xc   : > { %s819_s22 = scalar_select %p88_p7, %s735_s11, %s90_s18  }
   0xd   : > { %p143_p10 = pnand %p550_p6, %p142_p9 }
   0xe   : > { %p170_p11 = scmp.lt.s32.totalorder (!%p143_p10), %s739_s12, 3  ;;  %s167_s3 = sand.u32 (!%p143_p10), 1, %s731_s10  }
   0xf   : > { %146 = sbr.rel (%p143_p10) target bundleno = 410 (0x19a), region = 28  ;;  %s551_s4 = sshll.u32 (!%p143_p10), %s167_s3, 6 }
  0x10   : > { %s840_s5 = scalar_lea.vmem (!%p143_p10), [#allocation2], %s551_s4  ;;  %s575_s6 = sshll.u32 (!%p143_p10), %s739_s12, 6 }
  0x11   : > { %s455_s15 = scalar_lea.hbm (!%p143_p10), %s899_s2, %s575_s6  ;;  %s443_s18 = scalar_lea.sflag (!%p143_p10), [#allocation3], %s167_s3 }
  0x12   : > { %s458_s16 = sshll.u32 (!%p143_p10), %s455_s15, 4  ;;  %s689_s26 = scalar_lea.hbm (!%p143_p10), %s899_s2, 256  ;;  %s459_s16 = int_to_ptr.hbm [resolvable:$true] %s458_s16 }
  0x13   : > { %s683_s20 = sshra.s32 (!%p143_p10), %s459_s16, 4  ;;  %s684_s20 = int_to_ptr.hbm [resolvable:$true] %s683_s20 }
  0x14   : > { %s171_s23 = scalar_select %p170_p11, %s739_s12, 3  ;;  %vm215_vm0 = vcmask 64512   ;;  %vm433_vm4 = vcmask 523264  }
  0x15   : > { %s456_s12 = sshll.u32 %s840_s5, 4  ;;  %p690_p1 = scmp.lt.s32.totalorder %s684_s20, %s899_s2  ;;  %s457_s12 = int_to_ptr.vmem [resolvable:$true] %s456_s12 }
  0x16   : > { %s552_s24 = sshll.u32 %s171_s23, 3  ;;  %s685_s23 = scalar_lea.hbm %s684_s20, 64 }
  0x17   : > { %s173_s27 = scalar_lea.vmem %s897_s0, %s552_s24  ;;  %s180_s30 = scalar_lea.vmem %s898_s1, %s552_s24 }
  0x18   : > { %v181_v0 = vld [vmem:[%s173_s27] sm:$0xff]  ;;  %p686_p12 = scmp.ne.s32.totalorder %s684_s20, %s685_s23  ;;  %p691_p2 = scmp.lt.s32.totalorder %s689_s26, %s685_s23 }
  0x19   : > { %v182_v1 = vld [vmem:[%s180_s30] sm:$0xff]  ;;  %183 = vxpose.xlu0.b32.start.end [1/1] (short) (narrow) %v181_v0, 64 }
  0x1a   : > { %255 = vmatpush.msra.mxu0 %v182_v1  ;;  %576 = vmatpush.msra.mxu1 %v182_v1  ;;  %p687_p13 = pnand %p686_p12, %p806_p4  ;;  %p692_p3 = por %p691_p2, %p690_p1 }
  0x1b   : > { %577 = vmatpush.msra.mxu2 %v182_v1  ;;  %578 = vmatpush.msra.mxu3 %v182_v1 }
  0x1c   : > { %p688_p0 = pneg %p687_p13 }
  0x1e   : > { %p693_p5 = pnand %p692_p3, %p688_p0 }
  0xbd   : > { %v199_v2 = vpop.trf.xlu0 }
  0xbe   : > { %554 = vmatmul.msk.f32.vlgmr.msra.gmra.mxu0 %vm215_vm0, %v199_v2 }
  0xc5   : > { %v200_v3 = vpop.trf.xlu0 }
  0xc6   : > { %555 = vmatmul.msk.f32.gmra.mxu0 %vm215_vm0, %v200_v3 }
  0xcd   : > { %v201_v4 = vpop.trf.xlu0 }
  0xce   : > { %556 = vmatmul.msk.f32.vlgmr.msra.gmra.mxu1 %vm215_vm0, %v201_v4 }
  0xd5   : > { %v202_v5 = vpop.trf.xlu0 }
  0xd6   : > { %557 = vmatmul.msk.f32.gmra.mxu1 %vm215_vm0, %v202_v5 }
  0xdd   : > { %v203_v6 = vpop.trf.xlu0 }
  0xde   : > { %558 = vmatmul.msk.f32.vlgmr.msra.gmra.mxu2 %vm215_vm0, %v203_v6 }
  0xe5   : > { %v204_v7 = vpop.trf.xlu0 }
  0xe6   : > { %559 = vmatmul.msk.f32.gmra.mxu2 %vm215_vm0, %v204_v7 }
  0xed   : > { %v205_v8 = vpop.trf.xlu0 }
  0xee   : > { %560 = vmatmul.msk.f32.vlgmr.msra.gmra.mxu3 %vm215_vm0, %v205_v8 }
  0xf5   : > { %v206_v9 = vpop.trf.xlu0 }
  0xf6   : > { %561 = vmatmul.msk.f32.gmra.mxu3 %vm215_vm0, %v206_v9 }
 0x13b   : > { %v257_v10 = vpop.f32.mrf.mxu0 }
 0x13c   : > { %v562_v11 = vmul.f32 -1.442695, %v257_v10 }
 0x13e   : > { %637 = vpow2.f32 %v562_v11 }
 0x143   : > { %v260_v12 = vpop.f32.mrf.mxu0 }
 0x144   : > { %v638_v13 = vpop.eup %637  ;;  %v563_v14 = vmul.f32 -1.442695, %v260_v12 }
 0x145   : > { %v305_v15 = vadd.f32 1.0, %v638_v13 }
 0x146   : > { %639 = vpow2.f32 %v563_v14 }
 0x147   : > { %641 = vrcp.f32 %v305_v15  ;;  %v324_v23 = vand.u32 2147483648, %v305_v15  ;;  %v322_v25 = vand.u32 2147483647, %v305_v15  ;;  %vm318_vm2 = vweird.f32 %v305_v15 }
 0x149   : > { %v325_v31 = vor.u32 1.1754944e-38, %v324_v23  ;;  %vm323_vm5 = vcmp.eq.f32.partialorder %v322_v25, 8.507059e+37 }
 0x14b   : > { %v263_v16 = vpop.f32.mrf.mxu1 }
 0x14c   : > { %v640_v17 = vpop.eup %639  ;;  %v564_v18 = vmul.f32 -1.442695, %v263_v16 }
 0x14d   : > { %v642_v19 = vpop.eup %641  ;;  %v306_v20 = vadd.f32 1.0, %v640_v17 }
 0x14e   : > { %v314_v21 = vmul.f32 %v642_v19, %v305_v15  ;;  %643 = vpow2.f32 %v564_v18  ;;  %vm319_vm1 = vweird.f32 %v642_v19 }
 0x14f   : > { %645 = vrcp.f32 %v306_v20  ;;  %vm320_vm3 = vmor %vm318_vm2, %vm319_vm1  ;;  %v339_v37 = vand.u32 2147483648, %v306_v20  ;;  %v337_v39 = vand.u32 2147483647, %v306_v20  ;;  %vm333_vm7 = vweird.f32 %v306_v20 }
 0x150   : > { %v315_v22 = vsub.f32 1.0, %v314_v21 }
 0x151   : > { %v340_v43 = vor.u32 1.1754944e-38, %v339_v37  ;;  %vm338_vm9 = vcmp.eq.f32.partialorder %v337_v39, 8.507059e+37 }
 0x152   : > { %v316_v24 = vmul.f32 %v642_v19, %v315_v22 }
 0x153   : > { %v266_v26 = vpop.f32.mrf.mxu1 }
 0x154   : > { %v644_v27 = vpop.eup %643  ;;  %v317_v28 = vadd.f32 %v642_v19, %v316_v24  ;;  %v565_v29 = vmul.f32 -1.442695, %v266_v26 }
 0x155   : > { %v646_v30 = vpop.eup %645  ;;  %v307_v32 = vadd.f32 1.0, %v644_v27 }
 0x156   : > { %v321_v33 = vsel %vm320_vm3, %v642_v19, %v317_v28  ;;  %v329_v34 = vmul.f32 %v646_v30, %v306_v20  ;;  %647 = vpow2.f32 %v565_v29  ;;  %vm334_vm6 = vweird.f32 %v646_v30 }
 0x157   : > { %v326_v35 = vsel %vm323_vm5, %v325_v31, %v321_v33  ;;  %649 = vrcp.f32 %v307_v32  ;;  %vm335_vm8 = vmor %vm333_vm7, %vm334_vm6  ;;  %v354_v49 = vand.u32 2147483648, %v307_v32  ;;  %v352_v52 = vand.u32 2147483647, %v307_v32 }
 0x158   : > { %434 = vst.msk [vmem:[%s840_s5] sm:$0xff] %vm433_vm4, %v326_v35  ;;  %v330_v36 = vsub.f32 1.0, %v329_v34  ;;  %vm348_vm11 = vweird.f32 %v307_v32 }
 0x159   : > { %v355_v56 = vor.u32 1.1754944e-38, %v354_v49  ;;  %vm353_vm13 = vcmp.eq.f32.partialorder %v352_v52, 8.507059e+37 }
 0x15a   : > { %v331_v38 = vmul.f32 %v646_v30, %v330_v36 }
 0x15c   : > { %v648_v40 = vpop.eup %647  ;;  %v332_v41 = vadd.f32 %v646_v30, %v331_v38 }
 0x15d   : > { %v650_v42 = vpop.eup %649  ;;  %v308_v44 = vadd.f32 1.0, %v648_v40 }
 0x15e   : > { %v336_v45 = vsel %vm335_vm8, %v646_v30, %v332_v41  ;;  %v344_v46 = vmul.f32 %v650_v42, %v307_v32  ;;  %vm349_vm10 = vweird.f32 %v650_v42 }
 0x15f   : > { %v341_v47 = vsel %vm338_vm9, %v340_v43, %v336_v45  ;;  %651 = vrcp.f32 %v308_v44  ;;  %vm350_vm12 = vmor %vm348_vm11, %vm349_vm10  ;;  %v369_v61 = vand.u32 2147483648, %v308_v44  ;;  %v367_v1 = vand.u32 2147483647, %v308_v44 }
 0x160   : > { %435 = vst.msk [vmem:[%s840_s5 + $0x8] sm:$0xff] %vm433_vm4, %v341_v47  ;;  %v345_v48 = vsub.f32 1.0, %v344_v46  ;;  %vm363_vm15 = vweird.f32 %v308_v44 }
 0x161   : > { %v269_v50 = vpop.f32.mrf.mxu2  ;;  %v370_v5 = vor.u32 1.1754944e-38, %v369_v61  ;;  %vm368_vm1 = vcmp.eq.f32.partialorder %v367_v1, 8.507059e+37 }
 0x162   : > { %v346_v51 = vmul.f32 %v650_v42, %v345_v48  ;;  %v566_v53 = vmul.f32 -1.442695, %v269_v50 }
 0x164   : > { %v347_v54 = vadd.f32 %v650_v42, %v346_v51  ;;  %653 = vpow2.f32 %v566_v53 }
 0x165   : > { %v652_v55 = vpop.eup %651 }
 0x166   : > { %v351_v57 = vsel %vm350_vm12, %v650_v42, %v347_v54  ;;  %v359_v58 = vmul.f32 %v652_v55, %v308_v44  ;;  %vm364_vm14 = vweird.f32 %v652_v55 }
 0x167   : > { %v356_v59 = vsel %vm353_vm13, %v355_v56, %v351_v57  ;;  %vm365_vm0 = vmor %vm363_vm15, %vm364_vm14 }
 0x168   : > { %436 = vst.msk [vmem:[%s840_s5 + $0x10] sm:$0xff] %vm433_vm4, %v356_v59  ;;  %v360_v60 = vsub.f32 1.0, %v359_v58 }
 0x169   : > { %v272_v62 = vpop.f32.mrf.mxu2 }
 0x16a   : > { %v654_v63 = vpop.eup %653  ;;  %v361_v0 = vmul.f32 %v652_v55, %v360_v60  ;;  %v567_v2 = vmul.f32 -1.442695, %v272_v62 }
 0x16b   : > { %v309_v3 = vadd.f32 1.0, %v654_v63 }
 0x16c   : > { %v362_v4 = vadd.f32 %v652_v55, %v361_v0  ;;  %655 = vpow2.f32 %v567_v2 }
 0x16d   : > { %657 = vrcp.f32 %v309_v3  ;;  %v384_v15 = vand.u32 2147483648, %v309_v3  ;;  %v382_v17 = vand.u32 2147483647, %v309_v3  ;;  %vm378_vm3 = vweird.f32 %v309_v3 }
 0x16e   : > { %v366_v6 = vsel %vm365_vm0, %v652_v55, %v362_v4 }
 0x16f   : > { %v371_v7 = vsel %vm368_vm1, %v370_v5, %v366_v6  ;;  %v385_v23 = vor.u32 1.1754944e-38, %v384_v15  ;;  %vm383_vm6 = vcmp.eq.f32.partialorder %v382_v17, 8.507059e+37 }
 0x170   : > { %437 = vst.msk [vmem:[%s840_s5 + $0x18] sm:$0xff] %vm433_vm4, %v371_v7 }
 0x171   : > { %v275_v8 = vpop.f32.mrf.mxu3 }
 0x172   : > { %v656_v9 = vpop.eup %655  ;;  %v568_v10 = vmul.f32 -1.442695, %v275_v8 }
 0x173   : > { %v658_v11 = vpop.eup %657  ;;  %v310_v12 = vadd.f32 1.0, %v656_v9 }
 0x174   : > { %v374_v13 = vmul.f32 %v658_v11, %v309_v3  ;;  %659 = vpow2.f32 %v568_v10  ;;  %vm379_vm2 = vweird.f32 %v658_v11 }
 0x175   : > { %661 = vrcp.f32 %v310_v12  ;;  %vm380_vm5 = vmor %vm378_vm3, %vm379_vm2  ;;  %v399_v29 = vand.u32 2147483648, %v310_v12  ;;  %v397_v31 = vand.u32 2147483647, %v310_v12  ;;  %vm393_vm8 = vweird.f32 %v310_v12 }
 0x176   : > { %v375_v14 = vsub.f32 1.0, %v374_v13 }
 0x177   : > { %v400_v35 = vor.u32 1.1754944e-38, %v399_v29  ;;  %vm398_vm10 = vcmp.eq.f32.partialorder %v397_v31, 8.507059e+37 }
 0x178   : > { %v376_v16 = vmul.f32 %v658_v11, %v375_v14 }
 0x179   : > { %v278_v18 = vpop.f32.mrf.mxu3 }
 0x17a   : > { %v660_v19 = vpop.eup %659  ;;  %v377_v20 = vadd.f32 %v658_v11, %v376_v16  ;;  %v569_v21 = vmul.f32 -1.442695, %v278_v18 }
 0x17b   : > { %v662_v22 = vpop.eup %661  ;;  %v311_v24 = vadd.f32 1.0, %v660_v19 }
 0x17c   : > { %v381_v25 = vsel %vm380_vm5, %v658_v11, %v377_v20  ;;  %v389_v26 = vmul.f32 %v662_v22, %v310_v12  ;;  %663 = vpow2.f32 %v569_v21  ;;  %vm394_vm7 = vweird.f32 %v662_v22 }
 0x17d   : > { %v386_v27 = vsel %vm383_vm6, %v385_v23, %v381_v25  ;;  %665 = vrcp.f32 %v311_v24  ;;  %vm395_vm9 = vmor %vm393_vm8, %vm394_vm7  ;;  %v414_v41 = vand.u32 2147483648, %v311_v24  ;;  %v412_v43 = vand.u32 2147483647, %v311_v24 }
 0x17e   : > { %438 = vst.msk [vmem:[%s840_s5 + $0x20] sm:$0xff] %vm433_vm4, %v386_v27  ;;  %v390_v28 = vsub.f32 1.0, %v389_v26  ;;  %vm408_vm12 = vweird.f32 %v311_v24 }
 0x17f   : > { %v415_v46 = vor.u32 1.1754944e-38, %v414_v41  ;;  %vm413_vm14 = vcmp.eq.f32.partialorder %v412_v43, 8.507059e+37 }
 0x180   : > { %v391_v30 = vmul.f32 %v662_v22, %v390_v28 }
 0x182   : > { %v664_v32 = vpop.eup %663  ;;  %v392_v33 = vadd.f32 %v662_v22, %v391_v30 }
 0x183   : > { %v666_v34 = vpop.eup %665  ;;  %v312_v36 = vadd.f32 1.0, %v664_v32 }
 0x184   : > { %v396_v37 = vsel %vm395_vm9, %v662_v22, %v392_v33  ;;  %v404_v38 = vmul.f32 %v666_v34, %v311_v24  ;;  %vm409_vm11 = vweird.f32 %v666_v34 }
 0x185   : > { %v401_v39 = vsel %vm398_vm10, %v400_v35, %v396_v37  ;;  %667 = vrcp.f32 %v312_v36  ;;  %vm410_vm13 = vmor %vm408_vm12, %vm409_vm11  ;;  %v429_v51 = vand.u32 2147483648, %v312_v36  ;;  %v427_v53 = vand.u32 2147483647, %v312_v36 }
 0x186   : > { %439 = vst.msk [vmem:[%s840_s5 + $0x28] sm:$0xff] %vm433_vm4, %v401_v39  ;;  %v405_v40 = vsub.f32 1.0, %v404_v38  ;;  %vm423_vm0 = vweird.f32 %v312_v36 }
 0x187   : > { %v430_v55 = vor.u32 1.1754944e-38, %v429_v51  ;;  %vm428_vm2 = vcmp.eq.f32.partialorder %v427_v53, 8.507059e+37 }
 0x188   : > { %v406_v42 = vmul.f32 %v666_v34, %v405_v40 }
 0x18a   : > { %v407_v44 = vadd.f32 %v666_v34, %v406_v42 }
 0x18b   : > { %v668_v45 = vpop.eup %667 }
 0x18c   : > { %v411_v47 = vsel %vm410_vm13, %v666_v34, %v407_v44  ;;  %v419_v48 = vmul.f32 %v668_v45, %v312_v36  ;;  %vm424_vm15 = vweird.f32 %v668_v45 }
 0x18d   : > { %v416_v49 = vsel %vm413_vm14, %v415_v46, %v411_v47  ;;  %vm425_vm1 = vmor %vm423_vm0, %vm424_vm15 }
 0x18e   : > { %440 = vst.msk [vmem:[%s840_s5 + $0x30] sm:$0xff] %vm433_vm4, %v416_v49  ;;  %v420_v50 = vsub.f32 1.0, %v419_v48 }
 0x190   : > { %v421_v52 = vmul.f32 %v668_v45, %v420_v50 }
 0x192   : > { %v422_v54 = vadd.f32 %v668_v45, %v421_v52 }
 0x194   : > { %v426_v56 = vsel %vm425_vm1, %v668_v45, %v422_v54 }
 0x195   : > { %v431_v57 = vsel %vm428_vm2, %v430_v55, %v426_v56 }
 0x196   : > { %441 = vst.msk [vmem:[%s840_s5 + $0x38] sm:$0xff] %vm433_vm4, %v431_v57 }
 0x197   : > { %696 = shalt.err (!%p693_p5)
}
 0x198   : > { %s749_s29 = smov 128   ;;  %s750_s30 = smov 8  }
 0x199   : > { %579 = dma.vmem_to_hbm [thread:$0]  (%p806_p4), %s457_s12, 1024, %s459_s16, %s443_s18, %s749_s29, %s749_s29, %s750_s30  }
 0x19a PF: > { %p585_p6 = scmp.ge.s32.totalorder %s747_s14, 2  ;;  %s473_s3 = sand.u32 1, %s727_s9  }
 0x19b   : > { %s474_s4 = scalar_lea.sflag [#allocation3], %s473_s3 }
 0x19c   : > { %p582_p7 = pnand %p585_p6, %p813_p8 }
 0x19e   : > { %p583_p9 = pneg %p582_p7 }
 0x1a0   : > { %722 = dma.done.wait (%p583_p9), %s474_s4, 1024  }
 0x1a1   : > { %724 = vsyncadd (%p583_p9), %s474_s4, 4294966272  ;;  %s15_s14 = sadd.s32 1, %s747_s14   ;;  %s902_s9 = smov %s731_s10 }
 0x1a2   : > { %p12_p10 = scmp.ge.s32.totalorder %s15_s14, 6   ;;  %s903_s10 = smov %s735_s11 }
 0x1a3   : > { %s904_s11 = smov %s819_s22  ;;  %s905_s12 = smov %s743_s13 }
 0x1a4   : > { %s906_s13 = smov %s908_s17  ;;  %14 = sbr.rel (!%p12_p10) target bundleno = 4 (0x4), region = 66 }
 0x1a9   :  { %480 = vsyncpa [#allocation3], 1 }
 0x1aa   :  { %482 = vsyncpa [#allocation3 + $0x1], 1 }

// kernel: msc_forward.13
= control target key start
LH: loop header
LB: loop body
LE: loop exit
PB: predicated region body
PF: predicated region fallthrough
CT: control target
= control target key end

     0   :  { %s769_s27 = smov 0   ;;  %s829_s0 = inlined_call_operand.vmem [shape: f32[4,4,256], index: 0, kind: input, shape index: {}]   ;;  %s830_s1 = inlined_call_operand.vmem [shape: f32[8,4], index: 1, kind: input, shape index: {}]   ;;  %s831_s2 = inlined_call_operand.vmem [shape: f32[8,1], index: 2, kind: input, shape index: {}]   ;;  %s832_s3 = inlined_call_operand.vmem [shape: f32[32,8], index: 3, kind: input, shape index: {}]   ;;  %s833_s4 = inlined_call_operand.vmem [shape: f32[32,1], index: 4, kind: input, shape index: {}]   ;;  %s834_s5 = inlined_call_operand.vmem [shape: f32[4,5,256], index: 5, kind: output, shape index: {0}]   ;;  %s835_s6 = inlined_call_operand.vmem [shape: f32[4,5,256], index: 6, kind: output, shape index: {1}]   ;;  %s836_s7 = inlined_call_operand.vmem [shape: f32[4,5,256], index: 7, kind: output, shape index: {2}]   ;;  %s837_s8 = inlined_call_operand.vmem [shape: f32[4,8,256], index: 8, kind: output, shape index: {3}]  }
   0x1 LB: > { %s667_s28 = sadd.s32 4294967295, %s721_s27   ;;  %p671_p0 = scmp.ge.s32.totalorder %s721_s27, 1  ;;  %s721_s27 = sphi %s769_s27, %s19_s27  }
   0x2   : > { %p269_p1 = scmp.lt.s32.totalorder %s721_s27, 5 }
   0x4   : > { %p270_p2 = pnand %p671_p0, %p269_p1 }
   0x5   : > { %p318_p3 = scmp.lt.s32.totalorder (!%p270_p2), %s667_s28, 3 }
   0x6   : > { %273 = sbr.rel (%p270_p2) target bundleno = 308 (0x134), region = 40 }
   0xb   : > { %v345_v0 = vld [vmem:[%s831_s2] sm:$0xff]  ;;  %v723_v1 = vmov 0   ;;  %s839_s28 = smov (!%p318_p3, %s667_s28), 3  ;;  %vm359_vm0 = vcmask 1043456   ;;  %vm355_vm1 = vcmask 31744   ;;  %v411_v7 = vld [vmem:[%s833_s4 + $0x8] sm:$0xff] }
   0xc   : > { %712 = vset.pattern.permute.xlu0 %v723_v1  ;;  %713 = vset.pattern.permute.xlu1 %v723_v1  ;;  %s696_s9 = sshll.u32 %s839_s28, 3  ;;  %v410_v3 = vld [vmem:[%s833_s4] sm:$0xff]  ;;  %v413_v8 = vld [vmem:[%s833_s4 + $0x18] sm:$0xff]  ;;  %v412_v9 = vld [vmem:[%s833_s4 + $0x10] sm:$0xff]  ;;  %vm434_vm2 = vcmask 64512   ;;  %s697_s11 = sshll.u32 %s839_s28, 4 }
   0xd   : > { %348 = vperm.xlu0 %712, %v345_v0   ;;  %714 = vset.pattern.permute.xlu2 %v723_v1  ;;  %s322_s12 = scalar_lea.vmem %s829_s0, %s696_s9  ;;  %v344_v4 = vld [vmem:[%s830_s1] sm:$0xff]  ;;  %v407_v18 = vld [vmem:[%s832_s3 + $0x8] sm:$0xff]  ;;  %v408_v19 = vld [vmem:[%s832_s3 + $0x10] sm:$0xff]  ;;  %s327_s14 = scalar_lea.vmem %s834_s5, %s697_s11 }
   0xe   : > { %v343_v2 = vld [vmem:[%s322_s12] sm:$0xff]  ;;  %421 = vperm.xlu1 %713, %v411_v7   ;;  %431 = vperm.xlu2 %714, %v413_v8   ;;  %v409_v20 = vld [vmem:[%s832_s3 + $0x18] sm:$0xff]  ;;  %s332_s17 = scalar_lea.vmem %s835_s6, %s697_s11  ;;  %s337_s19 = scalar_lea.vmem %s836_s7, %s697_s11 }
   0xf   : > { %352 = vst [vmem:[#allocation1] ss:$2 sm:$0xff] %v343_v2  ;;  %v406_v17 = vld [vmem:[%s832_s3] sm:$0xff]  ;;  %s342_s22 = scalar_lea.vmem %s837_s8, %s697_s11 }
  0x15   : > { %416 = vperm.xlu0 %712, %v410_v3  }
  0x16   : > { %v353_v5 = vld.sshfl [vmem:[#allocation1] sm:$0xff pattern:$0x75316420]  ;;  %v354_v6 = vld.sshfl [vmem:[#allocation1 + $0x8] sm:$0xff pattern:$0x75316420]  ;;  %426 = vperm.xlu1 %713, %v412_v9  }
  0x17   : > { %682 = vmatpush.msk.msra.mxu0 %vm359_vm0, %v353_v5  ;;  %684 = vmatpush.msk.msra.mxu1 %vm359_vm0, %v354_v6 }
  0x18   : > { %683 = vmatmul.msk.f32.vlgmr.msra.gmra.mxu0 %vm355_vm1, %v344_v4  ;;  %685 = vmatmul.msk.f32.vlgmr.msra.gmra.mxu1 %vm355_vm1, %v344_v4 }
  0x68   : > { %v432_v36 = vpop.permute.xlu2 %431 }
  0x7f   : > { %v349_v10 = vpop.permute.xlu0 %348 }
  0x80   : > { %v422_v26 = vpop.permute.xlu1 %421 }
  0x87   : > { %v417_v21 = vpop.permute.xlu0 %416 }
  0x88   : > { %v427_v31 = vpop.permute.xlu1 %426 }
  0x95   : > { %v381_v11 = vpop.f32.mrf.mxu0  ;;  %v401_v12 = vpop.f32.mrf.mxu1 }
  0x96   : > { %v382_v13 = vadd.f32 %v381_v11, %v349_v10  ;;  %v402_v14 = vadd.f32 %v401_v12, %v349_v10 }
  0x98   : > { %v404_v15 = vmax.f32 %v382_v13, 0.0  ;;  %v405_v16 = vmax.f32 %v402_v14, 0.0 }
  0x9a   : > { %462 = vmatpush.msrb.mxu0 %v404_v15  ;;  %701 = vmatpush.msra.mxu2 %v404_v15 }
  0x9b   : > { %491 = vmatpush.msrb.mxu1 %v405_v16  ;;  %702 = vmatpush.msra.mxu3 %v405_v16 }
  0x9c   : > { %686 = vmatmul.msk.f32.vlgmr.msrb.gmra.mxu0 %vm434_vm2, %v406_v17  ;;  %687 = vmatmul.msk.f32.vlgmr.msra.gmra.mxu2 %vm434_vm2, %v407_v18 }
  0x9d   : > { %690 = vmatmul.msk.f32.vlgmr.msrb.gmra.mxu1 %vm434_vm2, %v406_v17  ;;  %691 = vmatmul.msk.f32.vlgmr.msra.gmra.mxu3 %vm434_vm2, %v407_v18 }
  0xa4   : > { %688 = vmatmul.msk.f32.gmra.mxu2 %vm434_vm2, %v408_v19 }
  0xa5   : > { %692 = vmatmul.msk.f32.gmra.mxu3 %vm434_vm2, %v408_v19 }
  0xac   : > { %689 = vmatmul.msk.f32.gmra.mxu2 %vm434_vm2, %v409_v20 }
  0xad   : > { %693 = vmatmul.msk.f32.gmra.mxu3 %vm434_vm2, %v409_v20 }
 0x119   : > { %v464_v22 = vpop.f32.mrf.mxu0 }
 0x11a   : > { %v465_v23 = vadd.f32 %v464_v22, %v417_v21  ;;  %v493_v24 = vpop.f32.mrf.mxu1 }
 0x11b   : > { %v494_v25 = vadd.f32 %v493_v24, %v417_v21 }
 0x11c   : > { %505 = vst [vmem:[%s327_s14] sm:$0x1f] %v465_v23 }
 0x11d   : > { %506 = vst [vmem:[%s327_s14 + $0x8] sm:$0x1f] %v494_v25 }
 0x11f   : > { %v467_v27 = vpop.f32.mrf.mxu2 }
 0x120   : > { %v468_v28 = vadd.f32 %v467_v27, %v422_v26  ;;  %v496_v29 = vpop.f32.mrf.mxu3 }
 0x121   : > { %v497_v30 = vadd.f32 %v496_v29, %v422_v26 }
 0x122   : > { %507 = vst [vmem:[%s332_s17] sm:$0x1f] %v468_v28 }
 0x123   : > { %508 = vst [vmem:[%s332_s17 + $0x8] sm:$0x1f] %v497_v30 }
 0x127   : > { %v470_v32 = vpop.f32.mrf.mxu2 }
 0x128   : > { %v471_v33 = vadd.f32 %v470_v32, %v427_v31  ;;  %v499_v34 = vpop.f32.mrf.mxu3 }
 0x129   : > { %v500_v35 = vadd.f32 %v499_v34, %v427_v31 }
 0x12a   : > { %509 = vst [vmem:[%s337_s19] sm:$0x1f] %v471_v33 }
 0x12b   : > { %510 = vst [vmem:[%s337_s19 + $0x8] sm:$0x1f] %v500_v35 }
 0x12f   : > { %v473_v37 = vpop.f32.mrf.mxu2 }
 0x130   : > { %v474_v38 = vadd.f32 %v473_v37, %v432_v36  ;;  %v502_v39 = vpop.f32.mrf.mxu3 }
 0x131   : > { %v503_v40 = vadd.f32 %v502_v39, %v432_v36 }
 0x132   : > { %511 = vst [vmem:[%s342_s22] sm:$0xff] %v474_v38 }
 0x133   : > { %512 = vst [vmem:[%s342_s22 + $0x8] sm:$0xff] %v503_v40 }
 0x134 PF: > { %s19_s27 = sadd.s32 1, %s721_s27  }
 0x135   : > { %p16_p4 = scmp.ge.s32.totalorder %s19_s27, 6  }
 0x137   :  { %18 = sbr.rel (!%p16_p4) target bundleno = 1 (0x1), region = 106 }

// kernel: msc_forward.21
= control target key start
LH: loop header
LB: loop body
LE: loop exit
PB: predicated region body
PF: predicated region fallthrough
CT: control target
= control target key end

     0   :  { %12 = vsyncpa [#allocation3], 0  ;;  %s1624_s0 = inlined_call_operand.vmem [shape: f32[4,5,16,16], index: 0, kind: input, shape index: {}]   ;;  %s1625_s1 = inlined_call_operand.vmem [shape: f32[4,5,8,8], index: 1, kind: input, shape index: {}]   ;;  %s1626_s2 = inlined_call_operand.vmem [shape: f32[16,8], index: 2, kind: input, shape index: {}]   ;;  %s1627_s3 = inlined_call_operand.vmem [shape: f32[8,16], index: 3, kind: input, shape index: {}]   ;;  %s1628_s4 = inlined_call_operand.vmem [shape: f32[4,5,12,12], index: 4, kind: input, shape index: {}]   ;;  %s1629_s5 = inlined_call_operand.vmem [shape: f32[16,12], index: 5, kind: input, shape index: {}]   ;;  %s1630_s6 = inlined_call_operand.vmem [shape: f32[12,16], index: 6, kind: input, shape index: {}]   ;;  %s1631_s7 = inlined_call_operand.hbm [shape: f32[4,5,16,16], index: 7, kind: output, shape index: {}]  }
   0x1   :  { %14 = vsyncpa [#allocation3 + $0x1], 0  ;;  %s1345_s24 = smov 0   ;;  %s1347_s25 = smov 0  }
   0x2   :  { %s1349_s26 = smov 0   ;;  %s1351_s27 = smov 0  }
   0x3 LB: > { %s1366_s28 = sadd.s32 4294967295, %s1301_s27   ;;  %s1109_s29 = sadd.s32 4294967294, %s1301_s27   ;;  %s1301_s27 = sphi %s1351_s27, %s1637_s27   ;;  %s1297_s26 = sphi %s1349_s26, %s1636_s26   ;;  %s1293_s25 = sphi %s1347_s25, %s1635_s25   ;;  %s1289_s24 = sphi %s1345_s24, %s1634_s24  }
   0x4   : > { %s1370_s30 = sadd.s32 1, %s1301_s27   ;;  %s189_s8 = sadd.s32 1, %s1297_s26 }
   0x5   : > { %s186_s9 = ssub.s32 %s1301_s27, %s1370_s30  ;;  %p199_p0 = scmp.ne.s32.totalorder %s1297_s26, %s1293_s25 }
   0x6   : > { %p187_p1 = scmp.eq.s32.totalorder %s186_s9, 0  ;;  %p200_p2 = scmp.eq.s32.totalorder %s1366_s28, 3 }
   0x7   : > { %p205_p3 = scmp.ne.s32.totalorder %s1293_s25, %s1289_s24  ;;  %p206_p4 = scmp.eq.s32.totalorder %s1109_s29, 3 }
   0x8   : > { %s1381_s10 = scalar_select %p187_p1, %s1297_s26, %s189_s8  }
   0x9   : > { %p1383_p5 = por %p200_p2, %p199_p0  ;;  %p1387_p6 = por %p206_p4, %p205_p3 }
   0xa   : > { %p1112_p7 = scmp.ge.s32.totalorder %s1301_s27, 1  ;;  %p260_p8 = scmp.lt.s32.totalorder %s1301_s27, 5 }
   0xc   : > { %p261_p9 = pnand %p1112_p7, %p260_p8 }
   0xd   : > { %p302_p10 = scmp.lt.s32.totalorder (!%p261_p9), %s1366_s28, 3  ;;  %s299_s17 = sand.u32 (!%p261_p9), 1, %s1293_s25  }
   0xe   : > { %264 = sbr.rel (%p261_p9) target bundleno = 760 (0x2f8), region = 48  ;;  %s1259_s8 = scalar_lea.hbm (!%p261_p9), %s1631_s7, 320 }
   0xf   : > { %s1194_s18 = smul.u32 (!%p261_p9), 80, %s299_s17 }
  0x13   : > { %v381_v0 = vld [vmem:[%s1630_s6 + $0x8] sm:$0xf]  ;;  %vm391_vm0 = vcmask 1043456   ;;  %v1399_v1 = vld [vmem:[%s1627_s3] sm:$0xff]  ;;  %s1410_s19 = scalar_select %p302_p10, %s1366_s28, 3  ;;  %vm384_vm1 = vcmask 97280  }
  0x14   : > { %v1404_v2 = vld [vmem:[%s1630_s6] sm:$0xff]  ;;  %1192 = vmatpush.msk.msra.mxu2 %vm391_vm0, %v381_v0  ;;  %342 = vmatpush.msra.mxu0 %v1399_v1  ;;  %vm323_vm2 = vcmask 64512   ;;  %v520_v9 = vld [vmem:[%s1630_s6 + $0x8] sm:$0xf]  ;;  %vm452_vm3 = vcmask 130048  }
  0x15   : > { %s1195_s20 = smul.u32 80, %s1410_s19  ;;  %v1441_v7 = vld [vmem:[%s1626_s2] sm:$0xff]  ;;  %v1454_v11 = vld [vmem:[%s1626_s2 + $0x8] sm:$0xff] }
  0x16   : > { %1119 = vmatpush.msk.msrb.mxu0 %vm391_vm0, %v381_v0  ;;  %1193 = vmatpush.msra.mxu2 %v1404_v2  ;;  %s1196_s21 = smul.u32 40, %s1410_s19  ;;  %v1459_v12 = vld [vmem:[%s1629_s5] sm:$0xff]  ;;  %v1469_v14 = vld [vmem:[%s1629_s5 + $0x8] sm:$0xff]  ;;  %s1500_s19 = scalar_lea.vmem [#allocation2], %s1194_s18 }
  0x17   : > { %s1422_s29 = scalar_lea.vmem %s1628_s4, %s1195_s20  ;;  %s1488_s16 = scalar_lea.vmem %s1624_s0, %s1195_s20  ;;  %v658_v22 = vld [vmem:[%s1630_s6 + $0x8] sm:$0xf] }
  0x18   : > { %410 = vmatpush.msrb.mxu0 %v1404_v2  ;;  %s1427_s13 = scalar_lea.vmem %s1625_s1, %s1196_s21  ;;  %v383_v3 = vld [vmem:[%s1422_s29 + $0x8] sm:$0xf]  ;;  %v382_v5 = vld [vmem:[%s1422_s29] sm:$0xff]  ;;  %v1131_v15 = vld [vmem:[%s1422_s29 + $0x10] sm:$0xff]  ;;  %s1020_s18 = sshll.u32 %s1500_s19, 4  ;;  %s1021_s18 = int_to_ptr.vmem [resolvable:$true] %s1020_s18 }
  0x19   : > { %v322_v4 = vld [vmem:[%s1427_s13] sm:$0xff]  ;;  %1121 = vmatmul.msk.f32.vlgmr.msra.gmra.mxu2 %vm384_vm1, %v383_v3  ;;  %v1127_v6 = vld [vmem:[%s1427_s13 + $0x8] sm:$0xff]  ;;  %v1132_v16 = vld [vmem:[%s1422_s29 + $0x18] sm:$0xf] }
  0x1a   : > { %1116 = vmatmul.msk.f32.vlgmr.msra.gmra.mxu0 %vm323_vm2, %v322_v4  ;;  %v1143_v17 = vld [vmem:[%s1427_s13 + $0x10] sm:$0xff]  ;;  %v317_v21 = vld [vmem:[%s1488_s16] sm:$0xff]  ;;  %v318_v28 = vld [vmem:[%s1488_s16 + $0x8] sm:$0xff] }
  0x1b   : > { %481 = vmatpush.msra.mxu0 %v1399_v1  ;;  %v1147_v27 = vld [vmem:[%s1422_s29 + $0x20] sm:$0xff]  ;;  %v1148_v33 = vld [vmem:[%s1422_s29 + $0x28] sm:$0xf]  ;;  %v1159_v36 = vld [vmem:[%s1427_s13 + $0x18] sm:$0xff] }
  0x1c   : > { %v796_v35 = vld [vmem:[%s1630_s6 + $0x8] sm:$0xf]  ;;  %v1163_v37 = vld [vmem:[%s1422_s29 + $0x30] sm:$0xff]  ;;  %v1164_v38 = vld [vmem:[%s1422_s29 + $0x38] sm:$0xf] }
  0x1d   : > { %v1125_v43 = vld [vmem:[%s1488_s16 + $0x10] sm:$0xff]  ;;  %v1126_v47 = vld [vmem:[%s1488_s16 + $0x18] sm:$0xff]  ;;  %v1175_v52 = vld [vmem:[%s1427_s13 + $0x20] sm:$0xff] }
  0x1e   : > { %v934_v55 = vld [vmem:[%s1630_s6 + $0x8] sm:$0xf]  ;;  %v1179_v58 = vld [vmem:[%s1422_s29 + $0x40] sm:$0xff] }
  0x1f   : > { %v1180_v59 = vld [vmem:[%s1422_s29 + $0x48] sm:$0xf]  ;;  %v1141_v60 = vld [vmem:[%s1488_s16 + $0x20] sm:$0xff]  ;;  %s1197_s29 = smul.u32 80, %s1366_s28  ;;  %s1008_s28 = scalar_lea.sflag [#allocation3], %s299_s17 }
  0x20   : > { %v1142_v0 = vld [vmem:[%s1488_s16 + $0x28] sm:$0xff] }
  0x21   : > { %s1019_s15 = scalar_lea.hbm %s1631_s7, %s1197_s29 }
  0x22   : > { %1120 = vmatmul.msk.f32.vlgmr.msrb.gmra.mxu0 %vm384_vm1, %v382_v5  ;;  %s1022_s21 = sshll.u32 %s1019_s15, 4  ;;  %s1023_s21 = int_to_ptr.hbm [resolvable:$true] %s1022_s21 }
  0x2a   : > { %1128 = vmatmul.msk.f32.vlgmr.msra.gmra.mxu0 %vm323_vm2, %v1127_v6  ;;  %v1157_v6 = vld [vmem:[%s1488_s16 + $0x30] sm:$0xff] }
  0x97   : > { %v344_v8 = vpop.f32.mrf.mxu0 }
  0x98   : > { %368 = vmatpush.msra.mxu1 %v344_v8 }
  0x99   : > { %1117 = vmatmul.msk.f32.vlgmr.msra.gmra.mxu1 %vm323_vm2, %v1441_v7 }
  0x9a   : > { %1133 = vmatpush.msk.msrb.mxu1 %vm391_vm0, %v520_v9 }
  0x9c   : > { %v415_v10 = vpop.f32.mrf.mxu2  ;;  %548 = vmatpush.msrb.mxu1 %v1404_v2 }
  0x9d   : > { %1122 = vmatpush.msk.msra.mxu3 %vm391_vm0, %v415_v10 }
  0x9f   : > { %v412_v13 = vpop.f32.mrf.mxu0 }
  0xa0   : > { %442 = vmatpush.msra.mxu3 %v412_v13 }
  0xa1   : > { %1118 = vmatmul.msk.f32.gmra.mxu1 %vm323_vm2, %v1454_v11  ;;  %1123 = vmatmul.msk.f32.vlgmr.msra.gmra.mxu3 %vm384_vm1, %v1459_v12 }
  0xa2   : > { %619 = vmatpush.msrb.mxu3 %v1399_v1 }
  0xa7   : > { %v483_v18 = vpop.f32.mrf.mxu0 }
  0xa8   : > { %507 = vmatpush.msrb.mxu0 %v483_v18 }
  0xa9   : > { %1124 = vmatmul.msk.f32.gmra.mxu3 %vm384_vm1, %v1469_v14  ;;  %1134 = vmatmul.msk.f32.vlgmr.msrb.gmra.mxu1 %vm384_vm1, %v1131_v15  ;;  %v1158_v15 = vld [vmem:[%s1488_s16 + $0x38] sm:$0xff] }
  0xaa   : > { %1129 = vmatmul.msk.f32.vlgmr.msrb.gmra.mxu0 %vm323_vm2, %v1441_v7 }
  0xab   : > { %1149 = vmatpush.msk.msra.mxu0 %vm391_vm0, %v658_v22 }
  0xad   : > { %686 = vmatpush.msra.mxu0 %v1404_v2 }
  0xb1   : > { %1135 = vmatmul.msk.f32.gmra.mxu1 %vm384_vm1, %v1132_v16  ;;  %1144 = vmatmul.msk.f32.vlgmr.msrb.gmra.mxu3 %vm323_vm2, %v1143_v17 }
  0xb2   : > { %1130 = vmatmul.msk.f32.gmra.mxu0 %vm323_vm2, %v1454_v11 }
  0xba   : > { %1150 = vmatmul.msk.f32.vlgmr.msra.gmra.mxu0 %vm384_vm1, %v1147_v27 }
  0xc2   : > { %1151 = vmatmul.msk.f32.gmra.mxu0 %vm384_vm1, %v1148_v33 }
 0x116   : > { %v370_v19 = vpop.f32.mrf.mxu1 }
 0x117   : > { %v376_v23 = vmax.f32 %v317_v21, %v370_v19 }
 0x11e   : > { %v373_v20 = vpop.f32.mrf.mxu1 }
 0x11f   : > { %v377_v29 = vmax.f32 %v318_v28, %v373_v20  ;;  %v1173_v20 = vld [vmem:[%s1488_s16 + $0x40] sm:$0xff] }
 0x124   : > { %v444_v24 = vpop.f32.mrf.mxu3 }
 0x125   : > { %v450_v25 = vmax.f32 %v376_v23, %v444_v24  ;;  %v1174_v24 = vld [vmem:[%s1488_s16 + $0x48] sm:$0xff]  ;;  %s1253_s16 = sshra.s32 %s1023_s21, 4  ;;  %s1254_s16 = int_to_ptr.hbm [resolvable:$true] %s1253_s16 }
 0x126   : > { %v550_v26 = vpop.f32.mrf.mxu1  ;;  %s1255_s22 = scalar_lea.hbm %s1254_s16, 80  ;;  %p1260_p0 = scmp.lt.s32.totalorder %s1254_s16, %s1631_s7 }
 0x127   : > { %453 = vst.msk [vmem:[%s1500_s19] sm:$0xff] %vm452_vm3, %v450_v25  ;;  %v509_v39 = vpop.f32.mrf.mxu0  ;;  %p1256_p11 = scmp.ne.s32.totalorder %s1254_s16, %s1255_s22  ;;  %p1261_p1 = scmp.lt.s32.totalorder %s1259_s8, %s1255_s22 }
 0x128   : > { %v515_v44 = vmax.f32 %v1125_v43, %v509_v39 }
 0x129   : > { %p1257_p12 = pnand %p1256_p11, %p1383_p5  ;;  %p1262_p2 = por %p1261_p1, %p1260_p0 }
 0x12b   : > { %p1258_p13 = pneg %p1257_p12 }
 0x12c   : > { %v447_v30 = vpop.f32.mrf.mxu3 }
 0x12d   : > { %v451_v31 = vmax.f32 %v377_v29, %v447_v30  ;;  %p1263_p3 = pnand %p1262_p2, %p1258_p13 }
 0x12e   : > { %v553_v32 = vpop.f32.mrf.mxu1 }
 0x12f   : > { %454 = vst.msk [vmem:[%s1500_s19 + $0x8] sm:$0xff] %vm452_vm3, %v451_v31  ;;  %1136 = vmatpush.msk.msrb.mxu2 %vm391_vm0, %v553_v32  ;;  %v512_v40 = vpop.f32.mrf.mxu0 }
 0x130   : > { %v516_v49 = vmax.f32 %v1126_v47, %v512_v40 }
 0x131   : > { %580 = vmatpush.msrb.mxu2 %v550_v26 }
 0x132   : > { %1137 = vmatmul.msk.f32.vlgmr.msrb.gmra.mxu2 %vm384_vm1, %v1459_v12 }
 0x133   : > { %757 = vmatpush.msra.mxu2 %v1399_v1 }
 0x134   : > { %v621_v34 = vpop.f32.mrf.mxu3 }
 0x135   : > { %645 = vmatpush.msra.mxu3 %v621_v34 }
 0x136   : > { %1145 = vmatmul.msk.f32.vlgmr.msra.gmra.mxu3 %vm323_vm2, %v1441_v7 }
 0x137   : > { %1165 = vmatpush.msk.msrb.mxu3 %vm391_vm0, %v796_v35  ;;  %v688_v41 = vpop.f32.mrf.mxu0 }
 0x139   : > { %824 = vmatpush.msrb.mxu3 %v1404_v2 }
 0x13a   : > { %1138 = vmatmul.msk.f32.gmra.mxu2 %vm384_vm1, %v1469_v14 }
 0x13e   : > { %1146 = vmatmul.msk.f32.gmra.mxu3 %vm323_vm2, %v1454_v11 }
 0x13f   : > { %v691_v42 = vpop.f32.mrf.mxu0 }
 0x140   : > { %1152 = vmatpush.msk.msra.mxu1 %vm391_vm0, %v691_v42 }
 0x142   : > { %1160 = vmatmul.msk.f32.vlgmr.msra.gmra.mxu2 %vm323_vm2, %v1159_v36  ;;  %718 = vmatpush.msra.mxu1 %v688_v41 }
 0x143   : > { %1153 = vmatmul.msk.f32.vlgmr.msra.gmra.mxu1 %vm384_vm1, %v1459_v12 }
 0x144   : > { %895 = vmatpush.msrb.mxu1 %v1399_v1 }
 0x146   : > { %1166 = vmatmul.msk.f32.vlgmr.msrb.gmra.mxu3 %vm384_vm1, %v1163_v37 }
 0x14b   : > { %1154 = vmatmul.msk.f32.gmra.mxu1 %vm384_vm1, %v1469_v14 }
 0x14e   : > { %1167 = vmatmul.msk.f32.gmra.mxu3 %vm384_vm1, %v1164_v38 }
 0x153   : > { %1176 = vmatmul.msk.f32.vlgmr.msrb.gmra.mxu1 %vm323_vm2, %v1175_v52 }
 0x1b5   : > { %v582_v45 = vpop.f32.mrf.mxu2 }
 0x1b6   : > { %v588_v46 = vmax.f32 %v515_v44, %v582_v45 }
 0x1b8   : > { %1139 = vst.msk [vmem:[%s1500_s19 + $0x10] sm:$0xff] %vm452_vm3, %v588_v46 }
 0x1b9   : > { %v647_v48 = vpop.f32.mrf.mxu3 }
 0x1ba   : > { %v653_v61 = vmax.f32 %v1141_v60, %v647_v48 }
 0x1bd   : > { %v585_v50 = vpop.f32.mrf.mxu2 }
 0x1be   : > { %v589_v51 = vmax.f32 %v516_v49, %v585_v50 }
 0x1c0   : > { %1140 = vst.msk [vmem:[%s1500_s19 + $0x18] sm:$0xff] %vm452_vm3, %v589_v51  ;;  %v720_v62 = vpop.f32.mrf.mxu1 }
 0x1c1   : > { %v650_v53 = vpop.f32.mrf.mxu3  ;;  %v726_v63 = vmax.f32 %v653_v61, %v720_v62 }
 0x1c2   : > { %v654_v1 = vmax.f32 %v1142_v0, %v650_v53 }
 0x1c3   : > { %1155 = vst.msk [vmem:[%s1500_s19 + $0x20] sm:$0xff] %vm452_vm3, %v726_v63 }
 0x1c5   : > { %v759_v54 = vpop.f32.mrf.mxu2 }
 0x1c6   : > { %783 = vmatpush.msrb.mxu2 %v759_v54 }
 0x1c7   : > { %1161 = vmatmul.msk.f32.vlgmr.msrb.gmra.mxu2 %vm323_vm2, %v1441_v7 }
 0x1c8   : > { %1181 = vmatpush.msk.msra.mxu2 %vm391_vm0, %v934_v55 }
 0x1c9   : > { %v826_v56 = vpop.f32.mrf.mxu3 }
 0x1ca   : > { %962 = vmatpush.msra.mxu2 %v1404_v2  ;;  %v723_v2 = vpop.f32.mrf.mxu1 }
 0x1cb   : > { %v727_v3 = vmax.f32 %v654_v1, %v723_v2 }
 0x1cd   : > { %1156 = vst.msk [vmem:[%s1500_s19 + $0x28] sm:$0xff] %vm452_vm3, %v727_v3 }
 0x1cf   : > { %1162 = vmatmul.msk.f32.gmra.mxu2 %vm323_vm2, %v1454_v11 }
 0x1d1   : > { %v829_v57 = vpop.f32.mrf.mxu3 }
 0x1d2   : > { %1168 = vmatpush.msk.msrb.mxu0 %vm391_vm0, %v829_v57  ;;  %v897_v4 = vpop.f32.mrf.mxu1 }
 0x1d3   : > { %921 = vmatpush.msra.mxu1 %v897_v4 }
 0x1d4   : > { %856 = vmatpush.msrb.mxu0 %v826_v56  ;;  %1177 = vmatmul.msk.f32.vlgmr.msra.gmra.mxu1 %vm323_vm2, %v1441_v7 }
 0x1d5   : > { %1169 = vmatmul.msk.f32.vlgmr.msrb.gmra.mxu0 %vm384_vm1, %v1459_v12 }
 0x1d7   : > { %1182 = vmatmul.msk.f32.vlgmr.msra.gmra.mxu2 %vm384_vm1, %v1179_v58 }
 0x1dc   : > { %1178 = vmatmul.msk.f32.gmra.mxu1 %vm323_vm2, %v1454_v11 }
 0x1dd   : > { %1170 = vmatmul.msk.f32.gmra.mxu0 %vm384_vm1, %v1469_v14 }
 0x1df   : > { %1183 = vmatmul.msk.f32.gmra.mxu2 %vm384_vm1, %v1180_v59 }
 0x24a   : > { %v785_v5 = vpop.f32.mrf.mxu2 }
 0x24b   : > { %v791_v8 = vmax.f32 %v1157_v6, %v785_v5 }
 0x251   : > { %v923_v11 = vpop.f32.mrf.mxu1 }
 0x252   : > { %v788_v9 = vpop.f32.mrf.mxu2  ;;  %v858_v10 = vpop.f32.mrf.mxu0  ;;  %v929_v21 = vmax.f32 %v1173_v20, %v923_v11 }
 0x253   : > { %v864_v13 = vmax.f32 %v791_v8, %v858_v10  ;;  %v792_v16 = vmax.f32 %v1158_v15, %v788_v9 }
 0x255   : > { %1171 = vst.msk [vmem:[%s1500_s19 + $0x30] sm:$0xff] %vm452_vm3, %v864_v13 }
 0x259   : > { %v926_v25 = vpop.f32.mrf.mxu1 }
 0x25a   : > { %v861_v17 = vpop.f32.mrf.mxu0  ;;  %v964_v18 = vpop.f32.mrf.mxu2 }
 0x25b   : > { %v865_v19 = vmax.f32 %v792_v16, %v861_v17 }
 0x25d   : > { %1172 = vst.msk [vmem:[%s1500_s19 + $0x38] sm:$0xff] %vm452_vm3, %v865_v19 }
 0x262   : > { %v967_v7 = vpop.f32.mrf.mxu2 }
 0x263   : > { %1184 = vmatpush.msk.msra.mxu3 %vm391_vm0, %v967_v7 }
 0x265   : > { %994 = vmatpush.msra.mxu3 %v964_v18 }
 0x266   : > { %1185 = vmatmul.msk.f32.vlgmr.msra.gmra.mxu3 %vm384_vm1, %v1459_v12  ;;  %v930_v12 = vmax.f32 %v1174_v24, %v926_v25 }
 0x26e   : > { %1186 = vmatmul.msk.f32.gmra.mxu3 %vm384_vm1, %v1469_v14 }
 0x2e9   : > { %v996_v22 = vpop.f32.mrf.mxu3 }
 0x2ea   : > { %v1002_v23 = vmax.f32 %v929_v21, %v996_v22 }
 0x2ec   : > { %1187 = vst.msk [vmem:[%s1500_s19 + $0x40] sm:$0xff] %vm452_vm3, %v1002_v23 }
 0x2f1   : > { %v999_v14 = vpop.f32.mrf.mxu3 }
 0x2f2   : > { %v1003_v26 = vmax.f32 %v930_v12, %v999_v14 }
 0x2f4   : > { %1188 = vst.msk [vmem:[%s1500_s19 + $0x48] sm:$0xff] %vm452_vm3, %v1003_v26 }
 0x2f5   : > { %1266 = shalt.err (!%p1263_p3)
}
 0x2f6   : > { %s1303_s17 = smov 128   ;;  %s1304_s19 = smov 8  }
 0x2f7   : > { %1198 = dma.vmem_to_hbm [thread:$0]  (%p1383_p5), %s1021_s18, 1280, %s1023_s21, %s1008_s28, %s1303_s17, %s1303_s17, %s1304_s19  }
 0x2f8 PF: > { %p1204_p4 = scmp.ge.s32.totalorder %s1301_s27, 2  ;;  %s1037_s13 = sand.u32 1, %s1289_s24  }
 0x2f9   : > { %s1038_s14 = scalar_lea.sflag [#allocation3], %s1037_s13 }
 0x2fa   : > { %p1201_p7 = pnand %p1204_p4, %p1387_p6 }
 0x2fc   : > { %p1202_p8 = pneg %p1201_p7 }
 0x2fe   : > { %1284 = dma.done.wait (%p1202_p8), %s1038_s14, 1280  }
 0x2ff   : > { %1286 = vsyncadd (%p1202_p8), %s1038_s14, 4294966016  ;;  %p17_p9 = scmp.ge.s32.totalorder %s1370_s30, 6   ;;  %s1634_s24 = smov %s1293_s25 }
 0x300   : > { %s1635_s25 = smov %s1297_s26  ;;  %s1636_s26 = smov %s1381_s10 }
 0x301   : > { %s1637_s27 = smov %s1370_s30  ;;  %19 = sbr.rel (!%p17_p9) target bundleno = 3 (0x3), region = 105 }
 0x306   :  { %1044 = vsyncpa [#allocation3], 1 }
 0x307   :  { %1046 = vsyncpa [#allocation3 + $0x1], 1 }

// kernel: msc_forward.19
= control target key start
LH: loop header
LB: loop body
LE: loop exit
PB: predicated region body
PF: predicated region fallthrough
CT: control target
= control target key end

     0   :  { %7 = vsyncpa [#allocation3], 0  ;;  %s2174_s0 = inlined_call_operand.vmem [shape: f32[4,8,144], index: 0, kind: input, shape index: {}, may-alias: {0,1}]   ;;  %s2175_s1 = inlined_call_operand.vmem [shape: f32[4,8,144], index: 1, kind: input, shape index: {}, may-alias: {0,1}]   ;;  %s2176_s2 = inlined_call_operand.hbm [shape: f32[4,144,144], index: 2, kind: output, shape index: {}]  }
   0x1   :  { %9 = vsyncpa [#allocation3 + $0x1], 0  ;;  %s1677_s9 = smov 0   ;;  %s1679_s10 = smov 0  }
   0x2   :  { %s1681_s11 = smov 0   ;;  %s1683_s12 = smov 0  }
   0x3   :  { %s1685_s13 = smov 0   ;;  %s1687_s14 = smov 0  }
   0x4 LB: > { %s1288_s15 = sadd.s32 4294967295, %s1658_s14   ;;  %s1289_s16 = sadd.s32 4294967294, %s1658_s14   ;;  %s1658_s14 = sphi %s1687_s14, %s15_s14   ;;  %s1654_s13 = sphi %s1685_s13, %s2201_s13   ;;  %s1650_s12 = sphi %s1683_s12, %s2200_s12   ;;  %s1646_s11 = sphi %s1681_s11, %s2199_s11   ;;  %s1642_s10 = sphi %s1679_s10, %s2198_s10   ;;  %s1638_s9 = sphi %s1677_s9, %s2197_s9  }
   0x5   : > { %s27_s17 = sadd.s32 1, %s1654_s13  ;;  %s90_s18 = sadd.s32 1, %s1646_s11 }
   0x6   : > { %p29_p0 = scmp.ge.s32.totalorder %s27_s17, 4  ;;  %p100_p1 = scmp.ne.s32.totalorder %s1646_s11, %s1642_s10 }
   0x7   : > { %p101_p2 = scmp.eq.s32.totalorder %s1288_s15, 3  ;;  %p106_p3 = scmp.ne.s32.totalorder %s1642_s10, %s1638_s9 }
   0x8   : > { %s2203_s17 = smov (%p29_p0, %s27_s17), 0  ;;  %p107_p5 = scmp.eq.s32.totalorder %s1289_s16, 3 }
   0x9   : > { %p1717_p4 = por %p101_p2, %p100_p1  ;;  %s85_s20 = ssub.s32 %s1654_s13, %s2203_s17 }
   0xa   : > { %p1292_p6 = scmp.ge.s32.totalorder %s1658_s14, 1  ;;  %p88_p7 = scmp.eq.s32.totalorder %s85_s20, 0 }
   0xb   : > { %p1724_p8 = por %p107_p5, %p106_p3  ;;  %p146_p9 = scmp.lt.s32.totalorder %s1658_s14, 5 }
   0xc   : > { %s1730_s22 = scalar_select %p88_p7, %s1646_s11, %s90_s18  }
   0xd   : > { %p147_p10 = pnand %p1292_p6, %p146_p9 }
   0xe   : > { %p177_p11 = scmp.lt.s32.totalorder (!%p147_p10), %s1650_s12, 3  ;;  %s174_s3 = sand.u32 (!%p147_p10), 1, %s1642_s10  }
   0xf   : > { %150 = sbr.rel (%p147_p10) target bundleno = 494 (0x1ee), region = 28  ;;  %s1180_s18 = scalar_lea.sflag (!%p147_p10), [#allocation3], %s174_s3 }
  0x10   : > { %s1784_s4 = smul.u32 (!%p147_p10), 288, %s174_s3  ;;  %s1600_s26 = scalar_lea.hbm (!%p147_p10), %s2176_s2, 1152 }
  0x11   : > { %s1377_s6 = smul.u32 (!%p147_p10), 288, %s1650_s12 }
  0x12   : > { %s1794_s5 = scalar_lea.vmem (!%p147_p10), [#allocation2], %s1784_s4 }
  0x13   : > { %s1193_s15 = scalar_lea.hbm (!%p147_p10), %s2176_s2, %s1377_s6 }
  0x14   : > { %s178_s23 = scalar_select %p177_p11, %s1650_s12, 3  ;;  %vm261_vm0 = vcmask 64512   ;;  %vm1143_vm1 = vcmask 130048  }
  0x15   : > { %s1194_s12 = sshll.u32 %s1794_s5, 4  ;;  %s1196_s16 = sshll.u32 %s1193_s15, 4  ;;  %s1195_s12 = int_to_ptr.vmem [resolvable:$true] %s1194_s12  ;;  %s1197_s16 = int_to_ptr.hbm [resolvable:$true] %s1196_s16 }
  0x16   : > { %s1372_s24 = sshll.u32 %s178_s23, 4  ;;  %s1594_s20 = sshra.s32 %s1197_s16, 4  ;;  %s1595_s20 = int_to_ptr.hbm [resolvable:$true] %s1594_s20 }
  0x17   : > { %s181_s27 = scalar_lea.vmem %s2174_s0, %s1372_s24  ;;  %s190_s30 = scalar_lea.vmem %s2175_s1, %s1372_s24 }
  0x18   : > { %v193_v0 = vld [vmem:[%s181_s27] sm:$0xff]  ;;  %v196_v2 = vld [vmem:[%s190_s30 + $0x8] sm:$0xff]  ;;  %s1596_s23 = scalar_lea.hbm %s1595_s20, 288  ;;  %p1601_p1 = scmp.lt.s32.totalorder %s1595_s20, %s2176_s2 }
  0x19   : > { %197 = vxpose.xlu0.b32.start.end [1/1] (short) %v193_v0, 128  ;;  %v195_v1 = vld [vmem:[%s190_s30] sm:$0xff]  ;;  %402 = vmatpush.msra.mxu1 %v196_v2  ;;  %v194_v3 = vld [vmem:[%s181_s27 + $0x8] sm:$0xff]  ;;  %p1597_p12 = scmp.ne.s32.totalorder %s1595_s20, %s1596_s23  ;;  %p1602_p2 = scmp.lt.s32.totalorder %s1600_s26, %s1596_s23 }
  0x1a   : > { %331 = vmatpush.msra.mxu0 %v195_v1  ;;  %1374 = vmatpush.msra.mxu2 %v195_v1 }
  0x1b   : > { %1375 = vmatpush.msra.mxu3 %v196_v2  ;;  %p1598_p13 = pnand %p1597_p12, %p1717_p4  ;;  %p1603_p3 = por %p1602_p2, %p1601_p1 }
  0x1d   : > { %p1599_p0 = pneg %p1598_p13 }
  0x1f   : > { %p1604_p5 = pnand %p1603_p3, %p1599_p0 }
  0x99   : > { %229 = vxpose.xlu0.b32.start.end [1/1] (short) (narrow) %v194_v3, 16 }
  0xbd   : > { %v213_v4 = vpop.trf.xlu0 }
  0xbe   : > { %1297 = vmatmul.msk.f32.vlgmr.msra.gmra.mxu0 %vm261_vm0, %v213_v4  ;;  %1315 = vmatmul.msk.f32.vlgmr.msra.gmra.mxu1 %vm261_vm0, %v213_v4 }
  0xc5   : > { %v214_v5 = vpop.trf.xlu0 }
  0xc6   : > { %1298 = vmatmul.msk.f32.gmra.mxu0 %vm261_vm0, %v214_v5  ;;  %1316 = vmatmul.msk.f32.gmra.mxu1 %vm261_vm0, %v214_v5 }
  0xcd   : > { %v215_v6 = vpop.trf.xlu0 }
  0xce   : > { %1299 = vmatmul.msk.f32.gmra.mxu0 %vm261_vm0, %v215_v6  ;;  %1317 = vmatmul.msk.f32.gmra.mxu1 %vm261_vm0, %v215_v6 }
  0xd5   : > { %v216_v7 = vpop.trf.xlu0 }
  0xd6   : > { %1300 = vmatmul.msk.f32.gmra.mxu0 %vm261_vm0, %v216_v7  ;;  %1318 = vmatmul.msk.f32.gmra.mxu1 %vm261_vm0, %v216_v7 }
  0xdd   : > { %v217_v8 = vpop.trf.xlu0 }
  0xde   : > { %1301 = vmatmul.msk.f32.gmra.mxu0 %vm261_vm0, %v217_v8  ;;  %1319 = vmatmul.msk.f32.gmra.mxu1 %vm261_vm0, %v217_v8 }
  0xe5   : > { %v218_v9 = vpop.trf.xlu0 }
  0xe6   : > { %1302 = vmatmul.msk.f32.gmra.mxu0 %vm261_vm0, %v218_v9  ;;  %1320 = vmatmul.msk.f32.gmra.mxu1 %vm261_vm0, %v218_v9 }
  0xed   : > { %v219_v10 = vpop.trf.xlu0 }
  0xee   : > { %1303 = vmatmul.msk.f32.gmra.mxu0 %vm261_vm0, %v219_v10  ;;  %1321 = vmatmul.msk.f32.gmra.mxu1 %vm261_vm0, %v219_v10 }
  0xf5   : > { %v220_v11 = vpop.trf.xlu0 }
  0xf6   : > { %1304 = vmatmul.msk.f32.gmra.mxu0 %vm261_vm0, %v220_v11  ;;  %1322 = vmatmul.msk.f32.gmra.mxu1 %vm261_vm0, %v220_v11 }
  0xfd   : > { %v221_v12 = vpop.trf.xlu0 }
  0xfe   : > { %1305 = vmatmul.msk.f32.gmra.mxu0 %vm261_vm0, %v221_v12  ;;  %1323 = vmatmul.msk.f32.gmra.mxu1 %vm261_vm0, %v221_v12 }
 0x105   : > { %v222_v13 = vpop.trf.xlu0 }
 0x106   : > { %1306 = vmatmul.msk.f32.vlgmr.msra.gmra.mxu2 %vm261_vm0, %v222_v13  ;;  %1324 = vmatmul.msk.f32.vlgmr.msra.gmra.mxu3 %vm261_vm0, %v222_v13 }
 0x10d   : > { %v223_v14 = vpop.trf.xlu0 }
 0x10e   : > { %1307 = vmatmul.msk.f32.gmra.mxu2 %vm261_vm0, %v223_v14  ;;  %1325 = vmatmul.msk.f32.gmra.mxu3 %vm261_vm0, %v223_v14 }
 0x115   : > { %v224_v15 = vpop.trf.xlu0 }
 0x116   : > { %1308 = vmatmul.msk.f32.gmra.mxu2 %vm261_vm0, %v224_v15  ;;  %1326 = vmatmul.msk.f32.gmra.mxu3 %vm261_vm0, %v224_v15 }
 0x11d   : > { %v225_v16 = vpop.trf.xlu0 }
 0x11e   : > { %1309 = vmatmul.msk.f32.gmra.mxu2 %vm261_vm0, %v225_v16  ;;  %1327 = vmatmul.msk.f32.gmra.mxu3 %vm261_vm0, %v225_v16 }
 0x125   : > { %v226_v17 = vpop.trf.xlu0 }
 0x126   : > { %1310 = vmatmul.msk.f32.gmra.mxu2 %vm261_vm0, %v226_v17  ;;  %1328 = vmatmul.msk.f32.gmra.mxu3 %vm261_vm0, %v226_v17 }
 0x12d   : > { %v227_v18 = vpop.trf.xlu0 }
 0x12e   : > { %1311 = vmatmul.msk.f32.gmra.mxu2 %vm261_vm0, %v227_v18  ;;  %1329 = vmatmul.msk.f32.gmra.mxu3 %vm261_vm0, %v227_v18 }
 0x135   : > { %v228_v19 = vpop.trf.xlu0 }
 0x136   : > { %1312 = vmatmul.msk.f32.gmra.mxu2 %vm261_vm0, %v228_v19  ;;  %1330 = vmatmul.msk.f32.gmra.mxu3 %vm261_vm0, %v228_v19 }
 0x13b   : > { %v333_v20 = vpop.f32.mrf.mxu0  ;;  %v404_v21 = vpop.f32.mrf.mxu1 }
 0x13c   : > { %v1333_v22 = vmul.f32 -1.442695, %v333_v20  ;;  %v1334_v23 = vmul.f32 -1.442695, %v404_v21 }
 0x13d   : > { %v245_v24 = vpop.trf.xlu0 }
 0x13e   : > { %1436 = vpow2.f32 %v1333_v22  ;;  %1313 = vmatmul.msk.f32.gmra.mxu2 %vm261_vm0, %v245_v24  ;;  %1331 = vmatmul.msk.f32.gmra.mxu3 %vm261_vm0, %v245_v24 }
 0x13f   : > { %1438 = vpow2.f32 %v1334_v23 }
 0x143   : > { %v336_v25 = vpop.f32.mrf.mxu0  ;;  %v407_v26 = vpop.f32.mrf.mxu1 }
 0x144   : > { %v1437_v27 = vpop.eup %1436  ;;  %v1335_v28 = vmul.f32 -1.442695, %v336_v25  ;;  %v1336_v31 = vmul.f32 -1.442695, %v407_v26 }
 0x145   : > { %v1439_v29 = vpop.eup %1438  ;;  %v566_v30 = vadd.f32 1.0, %v1437_v27  ;;  %v246_v32 = vpop.trf.xlu0 }
 0x146   : > { %v567_v33 = vadd.f32 1.0, %v1439_v29  ;;  %1440 = vpow2.f32 %v1335_v28  ;;  %1314 = vmatmul.msk.f32.gmra.mxu2 %vm261_vm0, %v246_v32  ;;  %1332 = vmatmul.msk.f32.gmra.mxu3 %vm261_vm0, %v246_v32 }
 0x147   : > { %1442 = vrcp.f32 %v566_v30  ;;  %v611_v46 = vand.u32 2147483647, %v566_v30  ;;  %v613_v48 = vand.u32 2147483648, %v566_v30  ;;  %vm607_vm3 = vweird.f32 %v566_v30 }
 0x148   : > { %1444 = vrcp.f32 %v567_v33  ;;  %v628_v51 = vand.u32 2147483648, %v567_v33  ;;  %v626_v53 = vand.u32 2147483647, %v567_v33  ;;  %vm622_vm6 = vweird.f32 %v567_v33 }
 0x149   : > { %1446 = vpow2.f32 %v1336_v31  ;;  %vm612_vm5 = vcmp.eq.f32.partialorder %v611_v46, 8.507059e+37  ;;  %v614_v60 = vor.u32 1.1754944e-38, %v613_v48 }
 0x14a   : > { %v629_v1 = vor.u32 1.1754944e-38, %v628_v51  ;;  %vm627_vm9 = vcmp.eq.f32.partialorder %v626_v53, 8.507059e+37 }
 0x14b   : > { %v339_v34 = vpop.f32.mrf.mxu0  ;;  %v410_v35 = vpop.f32.mrf.mxu1 }
 0x14c   : > { %v1441_v36 = vpop.eup %1440  ;;  %v1337_v37 = vmul.f32 -1.442695, %v339_v34  ;;  %v1338_v40 = vmul.f32 -1.442695, %v410_v35 }
 0x14d   : > { %v1443_v38 = vpop.eup %1442  ;;  %v1776_v39 = vadd.f32 1.0, %v1441_v36 }
 0x14e   : > { %v1445_v41 = vpop.eup %1444  ;;  %v603_v42 = vmul.f32 %v1443_v38, %v566_v30  ;;  %1448 = vpow2.f32 %v1337_v37  ;;  %vm608_vm2 = vweird.f32 %v1443_v38 }
 0x14f   : > { %v1447_v43 = vpop.eup %1446  ;;  %v618_v44 = vmul.f32 %v1445_v41, %v567_v33  ;;  %1450 = vrcp.f32 %v1776_v39  ;;  %vm623_vm4 = vweird.f32 %v1445_v41  ;;  %vm609_vm7 = vmor %vm607_vm3, %vm608_vm2  ;;  %v643_v9 = vand.u32 2147483648, %v1776_v39 }
 0x150   : > { %v604_v45 = vsub.f32 1.0, %v603_v42  ;;  %v1780_v47 = vadd.f32 1.0, %v1447_v43  ;;  %1452 = vpow2.f32 %v1338_v40  ;;  %vm624_vm8 = vmor %vm622_vm6, %vm623_vm4  ;;  %v641_v13 = vand.u32 2147483647, %v1776_v39 }
 0x151   : > { %v619_v49 = vsub.f32 1.0, %v618_v44  ;;  %vm637_vm11 = vweird.f32 %v1776_v39  ;;  %v644_v19 = vor.u32 1.1754944e-38, %v643_v9 }
 0x152   : > { %v605_v50 = vmul.f32 %v1443_v38, %v604_v45  ;;  %1454 = vrcp.f32 %v1780_v47  ;;  %v656_v20 = vand.u32 2147483647, %v1780_v47  ;;  %v658_v21 = vand.u32 2147483648, %v1780_v47 }
 0x153   : > { %v620_v52 = vmul.f32 %v1445_v41, %v619_v49  ;;  %v342_v54 = vpop.f32.mrf.mxu0  ;;  %v413_v55 = vpop.f32.mrf.mxu1  ;;  %vm642_vm14 = vcmp.eq.f32.partialorder %v641_v13, 8.507059e+37  ;;  %vm652_vm15 = vweird.f32 %v1780_v47 }
 0x154   : > { %v1449_v56 = vpop.eup %1448  ;;  %v606_v57 = vadd.f32 %v1443_v38, %v605_v50  ;;  %v1339_v58 = vmul.f32 -1.442695, %v342_v54  ;;  %v1340_v63 = vmul.f32 -1.442695, %v413_v55  ;;  %v659_v32 = vor.u32 1.1754944e-38, %v658_v21 }
 0x155   : > { %v1451_v59 = vpop.eup %1450  ;;  %v621_v61 = vadd.f32 %v1445_v41, %v620_v52  ;;  %v1788_v62 = vadd.f32 1.0, %v1449_v56  ;;  %vm657_vm2 = vcmp.eq.f32.partialorder %v656_v20, 8.507059e+37 }
 0x156   : > { %v610_v0 = vsel %vm609_vm7, %v1443_v38, %v606_v57  ;;  %v633_v2 = vmul.f32 %v1451_v59, %v1776_v39  ;;  %1456 = vpow2.f32 %v1339_v58  ;;  %v1453_v3 = vpop.eup %1452  ;;  %vm638_vm10 = vweird.f32 %v1451_v59 }
 0x157   : > { %v615_v4 = vsel %vm612_vm5, %v614_v60, %v610_v0  ;;  %v625_v5 = vsel %vm624_vm8, %v1445_v41, %v621_v61  ;;  %1458 = vrcp.f32 %v1788_v62  ;;  %v1801_v11 = vadd.f32 1.0, %v1453_v3  ;;  %vm639_vm12 = vmor %vm637_vm11, %vm638_vm10 }
 0x158   : > { %v1455_v6 = vpop.eup %1454  ;;  %1142 = vst [vmem:[%s1794_s5] sm:$0xff] %v615_v4  ;;  %v630_v7 = vsel %vm627_vm9, %v629_v1, %v625_v5  ;;  %v634_v8 = vsub.f32 1.0, %v633_v2  ;;  %1460 = vpow2.f32 %v1340_v63  ;;  %v671_v31 = vand.u32 2147483647, %v1788_v62 }
 0x159   : > { %1144 = vst.msk [vmem:[%s1794_s5 + $0x8] sm:$0xff] %vm1143_vm1, %v630_v7  ;;  %v648_v10 = vmul.f32 %v1455_v6, %v1780_v47  ;;  %1462 = vrcp.f32 %v1801_v11  ;;  %vm653_vm13 = vweird.f32 %v1455_v6  ;;  %v673_v34 = vand.u32 2147483648, %v1788_v62 }
 0x15a   : > { %v635_v12 = vmul.f32 %v1451_v59, %v634_v8  ;;  %vm654_vm0 = vmor %vm652_vm15, %vm653_vm13  ;;  %vm667_vm4 = vweird.f32 %v1788_v62  ;;  %vm1822_vm5 = vcmp.eq.f32.partialorder %v671_v31, 8.507059e+37  ;;  %v686_v48 = vand.u32 2147483647, %v1801_v11 }
 0x15b   : > { %v649_v14 = vsub.f32 1.0, %v648_v10  ;;  %v345_v15 = vpop.f32.mrf.mxu0  ;;  %v416_v16 = vpop.f32.mrf.mxu1  ;;  %v674_v46 = vor.u32 1.1754944e-38, %v673_v34  ;;  %v688_v50 = vand.u32 2147483648, %v1801_v11  ;;  %vm682_vm8 = vweird.f32 %v1801_v11 }
 0x15c   : > { %v1457_v17 = vpop.eup %1456  ;;  %v636_v18 = vadd.f32 %v1451_v59, %v635_v12  ;;  %v1341_v25 = vmul.f32 -1.442695, %v345_v15  ;;  %v1342_v38 = vmul.f32 -1.442695, %v416_v16  ;;  %vm687_vm10 = vcmp.eq.f32.partialorder %v686_v48, 8.507059e+37 }
 0x15d   : > { %v1459_v22 = vpop.eup %1458  ;;  %v650_v23 = vmul.f32 %v1455_v6, %v649_v14  ;;  %v1808_v24 = vadd.f32 1.0, %v1457_v17  ;;  %v689_v63 = vor.u32 1.1754944e-38, %v688_v50 }
 0x15e   : > { %v640_v26 = vsel %vm639_vm12, %v1451_v59, %v636_v18  ;;  %v663_v27 = vmul.f32 %v1459_v22, %v1788_v62  ;;  %v1461_v28 = vpop.eup %1460  ;;  %vm668_vm3 = vweird.f32 %v1459_v22 }
 0x15f   : > { %v645_v29 = vsel %vm642_vm14, %v644_v19, %v640_v26  ;;  %v651_v30 = vadd.f32 %v1455_v6, %v650_v23  ;;  %1464 = vrcp.f32 %v1808_v24  ;;  %v1816_v35 = vadd.f32 1.0, %v1461_v28  ;;  %v1463_v36 = vpop.eup %1462  ;;  %vm669_vm6 = vmor %vm667_vm4, %vm668_vm3 }
 0x160   : > { %1145 = vst [vmem:[%s1794_s5 + $0x10] sm:$0xff] %v645_v29  ;;  %v664_v33 = vsub.f32 1.0, %v663_v27  ;;  %1466 = vpow2.f32 %v1341_v25  ;;  %v678_v41 = vmul.f32 %v1463_v36, %v1801_v11  ;;  %vm683_vm7 = vweird.f32 %v1463_v36 }
 0x161   : > { %v655_v37 = vsel %vm654_vm0, %v1455_v6, %v651_v30  ;;  %1468 = vrcp.f32 %v1816_v35  ;;  %v701_v58 = vand.u32 2147483647, %v1808_v24  ;;  %vm684_vm9 = vmor %vm682_vm8, %vm683_vm7  ;;  %v703_v0 = vand.u32 2147483648, %v1808_v24 }
 0x162   : > { %v660_v39 = vsel %vm657_vm2, %v659_v32, %v655_v37  ;;  %v665_v40 = vmul.f32 %v1459_v22, %v664_v33  ;;  %v679_v47 = vsub.f32 1.0, %v678_v41  ;;  %1470 = vpow2.f32 %v1342_v38 }
 0x163   : > { %1146 = vst.msk [vmem:[%s1794_s5 + $0x18] sm:$0xff] %vm1143_vm1, %v660_v39  ;;  %v348_v43 = vpop.f32.mrf.mxu0  ;;  %v419_v44 = vpop.f32.mrf.mxu1  ;;  %vm697_vm12 = vweird.f32 %v1808_v24  ;;  %vm1840_vm13 = vcmp.eq.f32.partialorder %v701_v58, 8.507059e+37  ;;  %v716_v11 = vand.u32 2147483647, %v1816_v35  ;;  %v704_v14 = vor.u32 1.1754944e-38, %v703_v0 }
 0x164   : > { %v666_v45 = vadd.f32 %v1459_v22, %v665_v40  ;;  %v1343_v51 = vmul.f32 -1.442695, %v348_v43  ;;  %v1344_v52 = vmul.f32 -1.442695, %v419_v44  ;;  %v680_v54 = vmul.f32 %v1463_v36, %v679_v47 }
 0x165   : > { %v1465_v49 = vpop.eup %1464  ;;  %v718_v15 = vand.u32 2147483648, %v1816_v35  ;;  %vm712_vm0 = vweird.f32 %v1816_v35  ;;  %vm717_vm3 = vcmp.eq.f32.partialorder %v716_v11, 8.507059e+37 }
 0x166   : > { %v670_v53 = vsel %vm669_vm6, %v1459_v22, %v666_v45  ;;  %v693_v55 = vmul.f32 %v1465_v49, %v1808_v24  ;;  %v1467_v56 = vpop.eup %1466  ;;  %1472 = vpow2.f32 %v1343_v51  ;;  %v681_v59 = vadd.f32 %v1463_v36, %v680_v54 }
 0x167   : > { %v675_v57 = vsel %vm1822_vm5, %v674_v46, %v670_v53  ;;  %v1835_v61 = vadd.f32 1.0, %v1467_v56  ;;  %1474 = vpow2.f32 %v1344_v52  ;;  %v1469_v62 = vpop.eup %1468  ;;  %vm698_vm11 = vweird.f32 %v1465_v49 }
 0x168   : > { %1147 = vst [vmem:[%s1794_s5 + $0x20] sm:$0xff] %v675_v57  ;;  %v694_v60 = vsub.f32 1.0, %v693_v55  ;;  %v685_v1 = vsel %vm684_vm9, %v1463_v36, %v681_v59  ;;  %v708_v3 = vmul.f32 %v1469_v62, %v1816_v35  ;;  %v1471_v4 = vpop.eup %1470  ;;  %vm699_vm14 = vmor %vm697_vm12, %vm698_vm11  ;;  %vm713_vm15 = vweird.f32 %v1469_v62 }
 0x169   : > { %v690_v5 = vsel %vm687_vm10, %v689_v63, %v685_v1  ;;  %1476 = vrcp.f32 %v1835_v61  ;;  %v1848_v12 = vadd.f32 1.0, %v1471_v4  ;;  %vm714_vm2 = vmor %vm712_vm0, %vm713_vm15  ;;  %v719_v26 = vor.u32 1.1754944e-38, %v718_v15 }
 0x16a   : > { %v695_v2 = vmul.f32 %v1465_v49, %v694_v60  ;;  %1148 = vst.msk [vmem:[%s1794_s5 + $0x28] sm:$0xff] %vm1143_vm1, %v690_v5  ;;  %v709_v10 = vsub.f32 1.0, %v708_v3  ;;  %v731_v27 = vand.u32 2147483647, %v1835_v61  ;;  %v733_v31 = vand.u32 2147483648, %v1835_v61 }
 0x16b   : > { %v351_v7 = vpop.f32.mrf.mxu0  ;;  %v422_v8 = vpop.f32.mrf.mxu1  ;;  %1478 = vrcp.f32 %v1848_v12  ;;  %v746_v35 = vand.u32 2147483647, %v1848_v12  ;;  %vm727_vm4 = vweird.f32 %v1835_v61  ;;  %v748_v40 = vand.u32 2147483648, %v1848_v12 }
 0x16c   : > { %v696_v9 = vadd.f32 %v1465_v49, %v695_v2  ;;  %v1473_v13 = vpop.eup %1472  ;;  %v1345_v16 = vmul.f32 -1.442695, %v351_v7  ;;  %v1346_v17 = vmul.f32 -1.442695, %v422_v8  ;;  %v710_v20 = vmul.f32 %v1469_v62, %v709_v10 }
 0x16d   : > { %v1475_v18 = vpop.eup %1474  ;;  %v1857_v23 = vadd.f32 1.0, %v1473_v13  ;;  %vm1870_vm5 = vcmp.eq.f32.partialorder %v731_v27, 8.507059e+37  ;;  %v734_v43 = vor.u32 1.1754944e-38, %v733_v31  ;;  %vm742_vm7 = vweird.f32 %v1848_v12 }
 0x16e   : > { %v700_v19 = vsel %vm699_vm14, %v1465_v49, %v696_v9  ;;  %v711_v22 = vadd.f32 %v1469_v62, %v710_v20  ;;  %v1859_v24 = vadd.f32 1.0, %v1475_v18  ;;  %1480 = vpow2.f32 %v1345_v16 }
 0x16f   : > { %v705_v21 = vsel %vm1840_vm13, %v704_v14, %v700_v19  ;;  %v1477_v25 = vpop.eup %1476  ;;  %1482 = vpow2.f32 %v1346_v17  ;;  %vm1879_vm8 = vcmp.eq.f32.partialorder %v746_v35, 8.507059e+37  ;;  %v749_v55 = vor.u32 1.1754944e-38, %v748_v40 }
 0x170   : > { %1149 = vst [vmem:[%s1794_s5 + $0x30] sm:$0xff] %v705_v21  ;;  %v715_v28 = vsel %vm714_vm2, %v1469_v62, %v711_v22  ;;  %v723_v29 = vmul.f32 %v1477_v25, %v1835_v61  ;;  %1484 = vrcp.f32 %v1857_v23  ;;  %vm728_vm6 = vweird.f32 %v1477_v25 }
 0x171   : > { %v720_v30 = vsel %vm717_vm3, %v719_v26, %v715_v28  ;;  %v1479_v33 = vpop.eup %1478  ;;  %1486 = vrcp.f32 %v1859_v24  ;;  %vm729_vm9 = vmor %vm727_vm4, %vm728_vm6  ;;  %vm757_vm11 = vweird.f32 %v1857_v23  ;;  %v761_v61 = vand.u32 2147483647, %v1857_v23 }
 0x172   : > { %1150 = vst.msk [vmem:[%s1794_s5 + $0x38] sm:$0xff] %vm1143_vm1, %v720_v30  ;;  %v724_v34 = vsub.f32 1.0, %v723_v29  ;;  %v738_v37 = vmul.f32 %v1479_v33, %v1848_v12  ;;  %vm743_vm10 = vweird.f32 %v1479_v33  ;;  %v763_v62 = vand.u32 2147483648, %v1857_v23 }
 0x173   : > { %v354_v32 = vpop.f32.mrf.mxu0  ;;  %v425_v46 = vpop.f32.mrf.mxu1  ;;  %vm744_vm12 = vmor %vm742_vm7, %vm743_vm10  ;;  %v776_v63 = vand.u32 2147483647, %v1859_v24  ;;  %v778_v6 = vand.u32 2147483648, %v1859_v24  ;;  %vm762_vm0 = vcmp.eq.f32.partialorder %v761_v61, 8.507059e+37  ;;  %vm772_vm2 = vweird.f32 %v1859_v24 }
 0x174   : > { %v1481_v38 = vpop.eup %1480  ;;  %v725_v39 = vmul.f32 %v1477_v25, %v724_v34  ;;  %v1347_v41 = vmul.f32 -1.442695, %v354_v32  ;;  %v739_v44 = vsub.f32 1.0, %v738_v37  ;;  %v1348_v56 = vmul.f32 -1.442695, %v425_v46 }
 0x175   : > { %v1483_v42 = vpop.eup %1482  ;;  %v1877_v45 = vadd.f32 1.0, %v1481_v38  ;;  %v764_v12 = vor.u32 1.1754944e-38, %v763_v62  ;;  %vm777_vm3 = vcmp.eq.f32.partialorder %v776_v63, 8.507059e+37  ;;  %v779_v18 = vor.u32 1.1754944e-38, %v778_v6 }
 0x176   : > { %v1485_v47 = vpop.eup %1484  ;;  %v726_v48 = vadd.f32 %v1477_v25, %v725_v39  ;;  %v1883_v50 = vadd.f32 1.0, %v1483_v42  ;;  %1488 = vpow2.f32 %v1347_v41  ;;  %v740_v51 = vmul.f32 %v1479_v33, %v739_v44 }
 0x177   : > { %v753_v52 = vmul.f32 %v1485_v47, %v1857_v23  ;;  %1490 = vrcp.f32 %v1877_v45  ;;  %v1487_v53 = vpop.eup %1486  ;;  %vm758_vm13 = vweird.f32 %v1485_v47  ;;  %v791_v20 = vand.u32 2147483647, %v1877_v45 }
 0x178   : > { %v730_v54 = vsel %vm729_vm9, %v1477_v25, %v726_v48  ;;  %v741_v58 = vadd.f32 %v1479_v33, %v740_v51  ;;  %v768_v60 = vmul.f32 %v1487_v53, %v1859_v24  ;;  %1492 = vrcp.f32 %v1883_v50  ;;  %vm759_vm15 = vmor %vm757_vm11, %vm758_vm13 }
 0x179   : > { %v735_v57 = vsel %vm1870_vm5, %v734_v43, %v730_v54  ;;  %v754_v59 = vsub.f32 1.0, %v753_v52  ;;  %vm773_vm14 = vweird.f32 %v1487_v53  ;;  %1494 = vpow2.f32 %v1348_v56 }
 0x17a   : > { %1151 = vst [vmem:[%s1794_s5 + $0x40] sm:$0xff] %v735_v57  ;;  %v745_v1 = vsel %vm744_vm12, %v1479_v33, %v741_v58  ;;  %v769_v3 = vsub.f32 1.0, %v768_v60  ;;  %vm774_vm4 = vmor %vm772_vm2, %vm773_vm14  ;;  %v793_v23 = vand.u32 2147483648, %v1877_v45  ;;  %v806_v28 = vand.u32 2147483647, %v1883_v50 }
 0x17b   : > { %v357_v0 = vpop.f32.mrf.mxu0  ;;  %v755_v2 = vmul.f32 %v1485_v47, %v754_v59  ;;  %v750_v5 = vsel %vm1879_vm8, %v749_v55, %v745_v1  ;;  %v428_v21 = vpop.f32.mrf.mxu1  ;;  %vm787_vm6 = vweird.f32 %v1877_v45  ;;  %v808_v33 = vand.u32 2147483648, %v1883_v50 }
 0x17c   : > { %v1489_v4 = vpop.eup %1488  ;;  %1152 = vst.msk [vmem:[%s1794_s5 + $0x48] sm:$0xff] %vm1143_vm1, %v750_v5  ;;  %v770_v9 = vmul.f32 %v1487_v53, %v769_v3  ;;  %v1349_v11 = vmul.f32 -1.442695, %v357_v0  ;;  %v1350_v31 = vmul.f32 -1.442695, %v428_v21  ;;  %v794_v35 = vor.u32 1.1754944e-38, %v793_v23 }
 0x17d   : > { %v1491_v7 = vpop.eup %1490  ;;  %v756_v8 = vadd.f32 %v1485_v47, %v755_v2  ;;  %v1905_v10 = vadd.f32 1.0, %v1489_v4  ;;  %vm792_vm9 = vcmp.eq.f32.partialorder %v791_v20, 8.507059e+37  ;;  %vm802_vm10 = vweird.f32 %v1883_v50 }
 0x17e   : > { %v783_v13 = vmul.f32 %v1491_v7, %v1877_v45  ;;  %v771_v15 = vadd.f32 %v1487_v53, %v770_v9  ;;  %v1493_v16 = vpop.eup %1492  ;;  %vm788_vm5 = vweird.f32 %v1491_v7  ;;  %vm807_vm11 = vcmp.eq.f32.partialorder %v806_v28, 8.507059e+37 }
 0x17f   : > { %v760_v14 = vsel %vm759_vm15, %v1485_v47, %v756_v8  ;;  %1496 = vrcp.f32 %v1905_v10  ;;  %v798_v24 = vmul.f32 %v1493_v16, %v1883_v50  ;;  %v1495_v25 = vpop.eup %1494  ;;  %vm789_vm7 = vmor %vm787_vm6, %vm788_vm5  ;;  %vm803_vm8 = vweird.f32 %v1493_v16 }
 0x180   : > { %v765_v17 = vsel %vm762_vm0, %v764_v12, %v760_v14  ;;  %v784_v19 = vsub.f32 1.0, %v783_v13  ;;  %v775_v22 = vsel %vm774_vm4, %v1487_v53, %v771_v15  ;;  %1498 = vpow2.f32 %v1349_v11  ;;  %vm804_vm12 = vmor %vm802_vm10, %vm803_vm8 }
 0x181   : > { %1153 = vst [vmem:[%s1794_s5 + $0x50] sm:$0xff] %v765_v17  ;;  %v780_v26 = vsel %vm777_vm3, %v779_v18, %v775_v22  ;;  %v799_v29 = vsub.f32 1.0, %v798_v24  ;;  %v1920_v30 = vadd.f32 1.0, %v1495_v25  ;;  %v809_v44 = vor.u32 1.1754944e-38, %v808_v33 }
 0x182   : > { %v785_v27 = vmul.f32 %v1491_v7, %v784_v19  ;;  %1154 = vst.msk [vmem:[%s1794_s5 + $0x58] sm:$0xff] %vm1143_vm1, %v780_v26  ;;  %v821_v49 = vand.u32 2147483647, %v1905_v10  ;;  %v823_v50 = vand.u32 2147483648, %v1905_v10  ;;  %vm817_vm14 = vweird.f32 %v1905_v10 }
 0x183   : > { %v800_v36 = vmul.f32 %v1493_v16, %v799_v29  ;;  %1500 = vrcp.f32 %v1920_v30  ;;  %v836_v59 = vand.u32 2147483647, %v1920_v30  ;;  %v838_v62 = vand.u32 2147483648, %v1920_v30 }
 0x184   : > { %v786_v32 = vadd.f32 %v1491_v7, %v785_v27  ;;  %1502 = vpow2.f32 %v1350_v31  ;;  %vm822_vm0 = vcmp.eq.f32.partialorder %v821_v49, 8.507059e+37  ;;  %v824_v58 = vor.u32 1.1754944e-38, %v823_v50 }
 0x185   : > { %v1497_v34 = vpop.eup %1496  ;;  %v801_v41 = vadd.f32 %v1493_v16, %v800_v36  ;;  %vm832_vm3 = vweird.f32 %v1920_v30  ;;  %vm837_vm4 = vcmp.eq.f32.partialorder %v836_v59, 8.507059e+37 }
 0x186   : > { %v790_v37 = vsel %vm789_vm7, %v1491_v7, %v786_v32  ;;  %v813_v38 = vmul.f32 %v1497_v34, %v1905_v10  ;;  %v1499_v39 = vpop.eup %1498  ;;  %vm818_vm13 = vweird.f32 %v1497_v34  ;;  %v839_v10 = vor.u32 1.1754944e-38, %v838_v62 }
 0x187   : > { %v795_v40 = vsel %vm792_vm9, %v794_v35, %v790_v37  ;;  %v1928_v46 = vadd.f32 1.0, %v1499_v39  ;;  %v805_v48 = vsel %vm804_vm12, %v1493_v16, %v801_v41  ;;  %vm819_vm15 = vmor %vm817_vm14, %vm818_vm13 }
 0x188   : > { %1155 = vst [vmem:[%s1794_s5 + $0x60] sm:$0xff] %v795_v40  ;;  %v814_v45 = vsub.f32 1.0, %v813_v38  ;;  %v810_v52 = vsel %vm807_vm11, %v809_v44, %v805_v48 }
 0x189   : > { %v360_v42 = vpop.f32.mrf.mxu2  ;;  %v431_v43 = vpop.f32.mrf.mxu3  ;;  %1504 = vrcp.f32 %v1928_v46  ;;  %1156 = vst.msk [vmem:[%s1794_s5 + $0x68] sm:$0xff] %vm1143_vm1, %v810_v52  ;;  %v853_v13 = vand.u32 2147483648, %v1928_v46  ;;  %v851_v16 = vand.u32 2147483647, %v1928_v46  ;;  %vm847_vm7 = vweird.f32 %v1928_v46 }
 0x18a   : > { %v1351_v47 = vmul.f32 -1.442695, %v360_v42  ;;  %v1352_v51 = vmul.f32 -1.442695, %v431_v43  ;;  %v815_v53 = vmul.f32 %v1497_v34, %v814_v45  ;;  %v1501_v54 = vpop.eup %1500 }
 0x18b   : > { %v828_v56 = vmul.f32 %v1501_v54, %v1920_v30  ;;  %v1503_v57 = vpop.eup %1502  ;;  %vm833_vm2 = vweird.f32 %v1501_v54  ;;  %v854_v22 = vor.u32 1.1754944e-38, %v853_v13  ;;  %vm852_vm9 = vcmp.eq.f32.partialorder %v851_v16, 8.507059e+37 }
 0x18c   : > { %1506 = vpow2.f32 %v1351_v47  ;;  %v816_v55 = vadd.f32 %v1497_v34, %v815_v53  ;;  %v1939_v63 = vadd.f32 1.0, %v1503_v57  ;;  %vm834_vm5 = vmor %vm832_vm3, %vm833_vm2 }
 0x18d   : > { %1508 = vpow2.f32 %v1352_v51  ;;  %v829_v61 = vsub.f32 1.0, %v828_v56 }
 0x18e   : > { %v820_v60 = vsel %vm819_vm15, %v1497_v34, %v816_v55  ;;  %1510 = vrcp.f32 %v1939_v63  ;;  %v866_v26 = vand.u32 2147483647, %v1939_v63  ;;  %v868_v27 = vand.u32 2147483648, %v1939_v63 }
 0x18f   : > { %v825_v0 = vsel %vm822_vm0, %v824_v58, %v820_v60  ;;  %v1505_v3 = vpop.eup %1504  ;;  %v830_v4 = vmul.f32 %v1501_v54, %v829_v61  ;;  %vm862_vm10 = vweird.f32 %v1939_v63 }
 0x190   : > { %1157 = vst [vmem:[%s1794_s5 + $0x70] sm:$0xff] %v825_v0  ;;  %v843_v6 = vmul.f32 %v1505_v3, %v1928_v46  ;;  %vm848_vm6 = vweird.f32 %v1505_v3  ;;  %vm1964_vm12 = vcmp.eq.f32.partialorder %v866_v26, 8.507059e+37  ;;  %v869_v40 = vor.u32 1.1754944e-38, %v868_v27 }
 0x191   : > { %v363_v1 = vpop.f32.mrf.mxu2  ;;  %v434_v2 = vpop.f32.mrf.mxu3  ;;  %v831_v9 = vadd.f32 %v1501_v54, %v830_v4  ;;  %vm849_vm8 = vmor %vm847_vm7, %vm848_vm6 }
 0x192   : > { %v1507_v5 = vpop.eup %1506  ;;  %v1353_v7 = vmul.f32 -1.442695, %v363_v1  ;;  %v844_v12 = vsub.f32 1.0, %v843_v6  ;;  %v1354_v17 = vmul.f32 -1.442695, %v434_v2 }
 0x193   : > { %v1509_v8 = vpop.eup %1508  ;;  %v1945_v11 = vadd.f32 1.0, %v1507_v5  ;;  %v835_v15 = vsel %vm834_vm5, %v1501_v54, %v831_v9 }
 0x194   : > { %v1948_v14 = vadd.f32 1.0, %v1509_v8  ;;  %1512 = vpow2.f32 %v1353_v7  ;;  %v840_v18 = vsel %vm837_vm4, %v839_v10, %v835_v15  ;;  %v845_v19 = vmul.f32 %v1505_v3, %v844_v12  ;;  %v1511_v20 = vpop.eup %1510 }
 0x195   : > { %1514 = vrcp.f32 %v1945_v11  ;;  %1158 = vst.msk [vmem:[%s1794_s5 + $0x78] sm:$0xff] %vm1143_vm1, %v840_v18  ;;  %v858_v23 = vmul.f32 %v1511_v20, %v1939_v63  ;;  %vm863_vm11 = vweird.f32 %v1511_v20  ;;  %v881_v44 = vand.u32 2147483647, %v1945_v11 }
 0x196   : > { %1516 = vrcp.f32 %v1948_v14  ;;  %v846_v21 = vadd.f32 %v1505_v3, %v845_v19  ;;  %vm864_vm13 = vmor %vm862_vm10, %vm863_vm11  ;;  %vm877_vm14 = vweird.f32 %v1945_v11  ;;  %v883_v46 = vand.u32 2147483648, %v1945_v11 }
 0x197   : > { %1518 = vpow2.f32 %v1354_v17  ;;  %v859_v31 = vsub.f32 1.0, %v858_v23  ;;  %v896_v48 = vand.u32 2147483647, %v1948_v14  ;;  %v898_v51 = vand.u32 2147483648, %v1948_v14 }
 0x198   : > { %v850_v30 = vsel %vm849_vm8, %v1505_v3, %v846_v21  ;;  %vm882_vm2 = vcmp.eq.f32.partialorder %v881_v44, 8.507059e+37  ;;  %vm892_vm3 = vweird.f32 %v1948_v14  ;;  %v884_v61 = vor.u32 1.1754944e-38, %v883_v46 }
 0x199   : > { %v366_v24 = vpop.f32.mrf.mxu2  ;;  %v437_v25 = vpop.f32.mrf.mxu3  ;;  %v855_v34 = vsel %vm852_vm9, %v854_v22, %v850_v30  ;;  %v860_v37 = vmul.f32 %v1511_v20, %v859_v31  ;;  %v899_v2 = vor.u32 1.1754944e-38, %v898_v51  ;;  %vm897_vm6 = vcmp.eq.f32.partialorder %v896_v48, 8.507059e+37 }
 0x19a   : > { %v1355_v28 = vmul.f32 -1.442695, %v366_v24  ;;  %v1513_v29 = vpop.eup %1512  ;;  %v1356_v32 = vmul.f32 -1.442695, %v437_v25  ;;  %1159 = vst [vmem:[%s1794_s5 + $0x80] sm:$0xff] %v855_v34 }
 0x19b   : > { %v1515_v33 = vpop.eup %1514  ;;  %v1959_v35 = vadd.f32 1.0, %v1513_v29  ;;  %v861_v42 = vadd.f32 %v1511_v20, %v860_v37 }
 0x19c   : > { %1520 = vpow2.f32 %v1355_v28  ;;  %v1517_v36 = vpop.eup %1516  ;;  %v873_v38 = vmul.f32 %v1515_v33, %v1945_v11  ;;  %vm878_vm15 = vweird.f32 %v1515_v33 }
 0x19d   : > { %v888_v41 = vmul.f32 %v1517_v36, %v1948_v14  ;;  %1522 = vrcp.f32 %v1959_v35  ;;  %v1519_v45 = vpop.eup %1518  ;;  %v865_v49 = vsel %vm864_vm13, %v1511_v20, %v861_v42  ;;  %vm893_vm0 = vweird.f32 %v1517_v36  ;;  %vm879_vm4 = vmor %vm877_vm14, %vm878_vm15 }
 0x19e   : > { %v874_v43 = vsub.f32 1.0, %v873_v38  ;;  %1524 = vpow2.f32 %v1356_v32  ;;  %v870_v55 = vsel %vm1964_vm12, %v869_v40, %v865_v49  ;;  %v1977_v57 = vadd.f32 1.0, %v1519_v45  ;;  %vm894_vm5 = vmor %vm892_vm3, %vm893_vm0 }
 0x19f   : > { %v889_v47 = vsub.f32 1.0, %v888_v41  ;;  %1160 = vst.msk [vmem:[%s1794_s5 + $0x88] sm:$0xff] %vm1143_vm1, %v870_v55  ;;  %v911_v9 = vand.u32 2147483647, %v1959_v35  ;;  %v913_v10 = vand.u32 2147483648, %v1959_v35  ;;  %vm907_vm8 = vweird.f32 %v1959_v35 }
 0x1a0   : > { %v875_v50 = vmul.f32 %v1515_v33, %v874_v43  ;;  %1526 = vrcp.f32 %v1977_v57  ;;  %v926_v24 = vand.u32 2147483647, %v1977_v57  ;;  %v928_v28 = vand.u32 2147483648, %v1977_v57 }
 0x1a1   : > { %v369_v52 = vpop.f32.mrf.mxu2  ;;  %v440_v53 = vpop.f32.mrf.mxu3  ;;  %v890_v56 = vmul.f32 %v1517_v36, %v889_v47  ;;  %vm912_vm10 = vcmp.eq.f32.partialorder %v911_v9, 8.507059e+37  ;;  %v914_v19 = vor.u32 1.1754944e-38, %v913_v10  ;;  %vm922_vm12 = vweird.f32 %v1977_v57 }
 0x1a2   : > { %v1521_v54 = vpop.eup %1520  ;;  %v876_v58 = vadd.f32 %v1515_v33, %v875_v50  ;;  %v1357_v63 = vmul.f32 -1.442695, %v369_v52  ;;  %v1358_v4 = vmul.f32 -1.442695, %v440_v53  ;;  %vm927_vm15 = vcmp.eq.f32.partialorder %v926_v24, 8.507059e+37 }
 0x1a3   : > { %v1982_v59 = vadd.f32 1.0, %v1521_v54  ;;  %v1523_v60 = vpop.eup %1522  ;;  %v891_v62 = vadd.f32 %v1517_v36, %v890_v56  ;;  %v929_v42 = vor.u32 1.1754944e-38, %v928_v28 }
 0x1a4   : > { %v1525_v0 = vpop.eup %1524  ;;  %v880_v1 = vsel %vm879_vm4, %v1515_v33, %v876_v58  ;;  %v903_v3 = vmul.f32 %v1523_v60, %v1959_v35  ;;  %vm908_vm7 = vweird.f32 %v1523_v60 }
 0x1a5   : > { %v885_v5 = vsel %vm882_vm2, %v884_v61, %v880_v1  ;;  %v895_v6 = vsel %vm894_vm5, %v1517_v36, %v891_v62  ;;  %1528 = vrcp.f32 %v1982_v59  ;;  %v1996_v11 = vadd.f32 1.0, %v1525_v0  ;;  %vm909_vm9 = vmor %vm907_vm8, %vm908_vm7 }
 0x1a6   : > { %1161 = vst [vmem:[%s1794_s5 + $0x90] sm:$0xff] %v885_v5  ;;  %v900_v7 = vsel %vm897_vm6, %v899_v2, %v895_v6  ;;  %v904_v8 = vsub.f32 1.0, %v903_v3  ;;  %1530 = vpow2.f32 %v1357_v63  ;;  %v1527_v15 = vpop.eup %1526  ;;  %v941_v34 = vand.u32 2147483647, %v1982_v59 }
 0x1a7   : > { %1162 = vst.msk [vmem:[%s1794_s5 + $0x98] sm:$0xff] %vm1143_vm1, %v900_v7  ;;  %1532 = vpow2.f32 %v1358_v4  ;;  %v918_v17 = vmul.f32 %v1527_v15, %v1977_v57  ;;  %vm923_vm11 = vweird.f32 %v1527_v15  ;;  %v943_v35 = vand.u32 2147483648, %v1982_v59 }
 0x1a8   : > { %v905_v12 = vmul.f32 %v1523_v60, %v904_v8  ;;  %1534 = vrcp.f32 %v1996_v11  ;;  %vm924_vm14 = vmor %vm922_vm12, %vm923_vm11  ;;  %vm937_vm0 = vweird.f32 %v1982_v59  ;;  %v956_v49 = vand.u32 2147483647, %v1996_v11 }
 0x1a9   : > { %v372_v13 = vpop.f32.mrf.mxu2  ;;  %v443_v14 = vpop.f32.mrf.mxu3  ;;  %v919_v23 = vsub.f32 1.0, %v918_v17  ;;  %v944_v48 = vor.u32 1.1754944e-38, %v943_v35  ;;  %v958_v50 = vand.u32 2147483648, %v1996_v11  ;;  %vm942_vm3 = vcmp.eq.f32.partialorder %v941_v34, 8.507059e+37 }
 0x1aa   : > { %v906_v16 = vadd.f32 %v1523_v60, %v905_v12  ;;  %v1359_v20 = vmul.f32 -1.442695, %v372_v13  ;;  %v1360_v21 = vmul.f32 -1.442695, %v443_v14  ;;  %vm952_vm5 = vweird.f32 %v1996_v11 }
 0x1ab   : > { %v1529_v18 = vpop.eup %1528  ;;  %v920_v30 = vmul.f32 %v1527_v15, %v919_v23  ;;  %vm957_vm7 = vcmp.eq.f32.partialorder %v956_v49, 8.507059e+37  ;;  %v959_v61 = vor.u32 1.1754944e-38, %v958_v50 }
 0x1ac   : > { %v910_v22 = vsel %vm909_vm9, %v1523_v60, %v906_v16  ;;  %v933_v25 = vmul.f32 %v1529_v18, %v1982_v59  ;;  %v1531_v26 = vpop.eup %1530  ;;  %1536 = vpow2.f32 %v1359_v20  ;;  %vm938_vm13 = vweird.f32 %v1529_v18 }
 0x1ad   : > { %v915_v27 = vsel %vm912_vm10, %v914_v19, %v910_v22  ;;  %v1533_v29 = vpop.eup %1532  ;;  %v2005_v32 = vadd.f32 1.0, %v1531_v26  ;;  %1538 = vpow2.f32 %v1360_v21  ;;  %v921_v37 = vadd.f32 %v1527_v15, %v920_v30  ;;  %vm939_vm2 = vmor %vm937_vm0, %vm938_vm13 }
 0x1ae   : > { %1163 = vst [vmem:[%s1794_s5 + $0xa0] sm:$0xff] %v915_v27  ;;  %v934_v31 = vsub.f32 1.0, %v933_v25  ;;  %v1535_v33 = vpop.eup %1534  ;;  %v2010_v36 = vadd.f32 1.0, %v1533_v29 }
 0x1af   : > { %v948_v39 = vmul.f32 %v1535_v33, %v1996_v11  ;;  %1540 = vrcp.f32 %v2005_v32  ;;  %v925_v43 = vsel %vm924_vm14, %v1527_v15, %v921_v37  ;;  %vm953_vm4 = vweird.f32 %v1535_v33 }
 0x1b0   : > { %v935_v38 = vmul.f32 %v1529_v18, %v934_v31  ;;  %1542 = vrcp.f32 %v2010_v36  ;;  %v930_v47 = vsel %vm927_vm15, %v929_v42, %v925_v43  ;;  %v971_v58 = vand.u32 2147483647, %v2005_v32  ;;  %vm954_vm6 = vmor %vm952_vm5, %vm953_vm4 }
 0x1b1   : > { %v375_v40 = vpop.f32.mrf.mxu2  ;;  %v446_v41 = vpop.f32.mrf.mxu3  ;;  %v949_v45 = vsub.f32 1.0, %v948_v39  ;;  %1164 = vst.msk [vmem:[%s1794_s5 + $0xa8] sm:$0xff] %vm1143_vm1, %v930_v47  ;;  %v973_v59 = vand.u32 2147483648, %v2005_v32  ;;  %v986_v7 = vand.u32 2147483647, %v2010_v36  ;;  %v988_v8 = vand.u32 2147483648, %v2010_v36 }
 0x1b2   : > { %v936_v44 = vadd.f32 %v1529_v18, %v935_v38  ;;  %v1537_v46 = vpop.eup %1536  ;;  %v1361_v62 = vmul.f32 -1.442695, %v375_v40  ;;  %v1362_v2 = vmul.f32 -1.442695, %v446_v41  ;;  %vm967_vm8 = vweird.f32 %v2005_v32 }
 0x1b3   : > { %v1539_v51 = vpop.eup %1538  ;;  %v950_v53 = vmul.f32 %v1535_v33, %v949_v45  ;;  %v2022_v55 = vadd.f32 1.0, %v1537_v46  ;;  %vm2039_vm9 = vcmp.eq.f32.partialorder %v971_v58, 8.507059e+37  ;;  %v974_v11 = vor.u32 1.1754944e-38, %v973_v59 }
 0x1b4   : > { %v940_v52 = vsel %vm939_vm2, %v1529_v18, %v936_v44  ;;  %v2024_v56 = vadd.f32 1.0, %v1539_v51  ;;  %vm982_vm10 = vweird.f32 %v2010_v36  ;;  %vm2044_vm13 = vcmp.eq.f32.partialorder %v986_v7, 8.507059e+37 }
 0x1b5   : > { %v945_v54 = vsel %vm942_vm3, %v944_v48, %v940_v52  ;;  %v951_v57 = vadd.f32 %v1535_v33, %v950_v53  ;;  %v1541_v60 = vpop.eup %1540  ;;  %1544 = vrcp.f32 %v2022_v55  ;;  %v989_v19 = vor.u32 1.1754944e-38, %v988_v8 }
 0x1b6   : > { %1165 = vst [vmem:[%s1794_s5 + $0xb0] sm:$0xff] %v945_v54  ;;  %v1543_v63 = vpop.eup %1542  ;;  %v963_v1 = vmul.f32 %v1541_v60, %v2005_v32  ;;  %1546 = vrcp.f32 %v2024_v56  ;;  %vm968_vm11 = vweird.f32 %v1541_v60  ;;  %v1001_v23 = vand.u32 2147483647, %v2022_v55 }
 0x1b7   : > { %v955_v0 = vsel %vm954_vm6, %v1535_v33, %v951_v57  ;;  %v978_v6 = vmul.f32 %v1543_v63, %v2010_v36  ;;  %1548 = vpow2.f32 %v1361_v62  ;;  %vm983_vm12 = vweird.f32 %v1543_v63  ;;  %vm969_vm14 = vmor %vm967_vm8, %vm968_vm11 }
 0x1b8   : > { %v960_v5 = vsel %vm957_vm7, %v959_v61, %v955_v0  ;;  %v964_v9 = vsub.f32 1.0, %v963_v1  ;;  %1550 = vpow2.f32 %v1362_v2  ;;  %v1003_v25 = vand.u32 2147483648, %v2022_v55  ;;  %vm984_vm15 = vmor %vm982_vm10, %vm983_vm12 }
 0x1b9   : > { %v378_v3 = vpop.f32.mrf.mxu2  ;;  %v449_v4 = vpop.f32.mrf.mxu3  ;;  %1166 = vst.msk [vmem:[%s1794_s5 + $0xb8] sm:$0xff] %vm1143_vm1, %v960_v5  ;;  %v979_v12 = vsub.f32 1.0, %v978_v6  ;;  %v1016_v29 = vand.u32 2147483647, %v2024_v56  ;;  %v1018_v30 = vand.u32 2147483648, %v2024_v56  ;;  %vm997_vm3 = vweird.f32 %v2022_v55 }
 0x1ba   : > { %v1363_v13 = vmul.f32 -1.442695, %v378_v3  ;;  %v965_v14 = vmul.f32 %v1541_v60, %v964_v9  ;;  %v1364_v15 = vmul.f32 -1.442695, %v449_v4  ;;  %v1004_v47 = vor.u32 1.1754944e-38, %v1003_v25 }
 0x1bb   : > { %v1545_v16 = vpop.eup %1544  ;;  %v980_v17 = vmul.f32 %v1543_v63, %v979_v12  ;;  %vm1012_vm5 = vweird.f32 %v2024_v56  ;;  %vm1002_vm6 = vcmp.eq.f32.partialorder %v1001_v23, 8.507059e+37  ;;  %v1019_v50 = vor.u32 1.1754944e-38, %v1018_v30 }
 0x1bc   : > { %v1547_v20 = vpop.eup %1546  ;;  %v966_v21 = vadd.f32 %v1541_v60, %v965_v14  ;;  %v993_v22 = vmul.f32 %v1545_v16, %v2022_v55  ;;  %1552 = vpow2.f32 %v1363_v13  ;;  %vm998_vm0 = vweird.f32 %v1545_v16 }
 0x1bd   : > { %v981_v24 = vadd.f32 %v1543_v63, %v980_v17  ;;  %v1008_v26 = vmul.f32 %v1547_v20, %v2024_v56  ;;  %1554 = vpow2.f32 %v1364_v15  ;;  %v1549_v32 = vpop.eup %1548  ;;  %vm1013_vm2 = vweird.f32 %v1547_v20  ;;  %vm999_vm4 = vmor %vm997_vm3, %vm998_vm0 }
 0x1be   : > { %v970_v27 = vsel %vm969_vm14, %v1541_v60, %v966_v21  ;;  %v994_v28 = vsub.f32 1.0, %v993_v22  ;;  %v1551_v38 = vpop.eup %1550  ;;  %v2063_v40 = vadd.f32 1.0, %v1549_v32  ;;  %vm1014_vm7 = vmor %vm1012_vm5, %vm1013_vm2  ;;  %vm1017_vm8 = vcmp.eq.f32.partialorder %v1016_v29, 8.507059e+37 }
 0x1bf   : > { %v975_v33 = vsel %vm2039_vm9, %v974_v11, %v970_v27  ;;  %v985_v34 = vsel %vm984_vm15, %v1543_v63, %v981_v24  ;;  %v1009_v35 = vsub.f32 1.0, %v1008_v26  ;;  %v2067_v43 = vadd.f32 1.0, %v1551_v38 }
 0x1c0   : > { %1167 = vst [vmem:[%s1794_s5 + $0xc0] sm:$0xff] %v975_v33  ;;  %v990_v36 = vsel %vm2044_vm13, %v989_v19, %v985_v34  ;;  %v995_v39 = vmul.f32 %v1545_v16, %v994_v28  ;;  %v1031_v55 = vand.u32 2147483647, %v2063_v40  ;;  %v1033_v56 = vand.u32 2147483648, %v2063_v40 }
 0x1c1   : > { %v381_v31 = vpop.f32.mrf.mxu2  ;;  %v452_v41 = vpop.f32.mrf.mxu3  ;;  %1168 = vst.msk [vmem:[%s1794_s5 + $0xc8] sm:$0xff] %vm1143_vm1, %v990_v36  ;;  %v1010_v42 = vmul.f32 %v1547_v20, %v1009_v35  ;;  %v1046_v61 = vand.u32 2147483647, %v2067_v43  ;;  %v1048_v62 = vand.u32 2147483648, %v2067_v43  ;;  %vm1027_vm9 = vweird.f32 %v2063_v40 }
 0x1c2   : > { %v1365_v37 = vmul.f32 -1.442695, %v381_v31  ;;  %v1553_v44 = vpop.eup %1552  ;;  %v996_v45 = vadd.f32 %v1545_v16, %v995_v39  ;;  %v1366_v59 = vmul.f32 -1.442695, %v452_v41  ;;  %vm2089_vm10 = vcmp.eq.f32.partialorder %v1031_v55, 8.507059e+37 }
 0x1c3   : > { %v1555_v46 = vpop.eup %1554  ;;  %v1011_v48 = vadd.f32 %v1547_v20, %v1010_v42  ;;  %v2074_v53 = vadd.f32 1.0, %v1553_v44  ;;  %vm1042_vm11 = vweird.f32 %v2067_v43  ;;  %v1034_v6 = vor.u32 1.1754944e-38, %v1033_v56 }
 0x1c4   : > { %1556 = vpow2.f32 %v1365_v37  ;;  %v1000_v49 = vsel %vm999_vm4, %v1545_v16, %v996_v45  ;;  %v2078_v57 = vadd.f32 1.0, %v1555_v46  ;;  %vm2097_vm12 = vcmp.eq.f32.partialorder %v1046_v61, 8.507059e+37 }
 0x1c5   : > { %1558 = vrcp.f32 %v2063_v40  ;;  %v1005_v51 = vsel %vm1002_vm6, %v1004_v47, %v1000_v49  ;;  %v1015_v52 = vsel %vm1014_vm7, %v1547_v20, %v1011_v48  ;;  %v1049_v10 = vor.u32 1.1754944e-38, %v1048_v62 }
 0x1c6   : > { %1560 = vrcp.f32 %v2067_v43  ;;  %1169 = vst [vmem:[%s1794_s5 + $0xd0] sm:$0xff] %v1005_v51  ;;  %v1020_v54 = vsel %vm1017_vm8, %v1019_v50, %v1015_v52  ;;  %v1061_v18 = vand.u32 2147483647, %v2074_v53  ;;  %v1063_v20 = vand.u32 2147483648, %v2074_v53 }
 0x1c7   : > { %1170 = vst.msk [vmem:[%s1794_s5 + $0xd8] sm:$0xff] %vm1143_vm1, %v1020_v54  ;;  %1562 = vrcp.f32 %v2074_v53  ;;  %v1076_v22 = vand.u32 2147483647, %v2078_v57  ;;  %v1078_v25 = vand.u32 2147483648, %v2078_v57  ;;  %vm1057_vm3 = vweird.f32 %v2074_v53 }
 0x1c8   : > { %1564 = vrcp.f32 %v2078_v57  ;;  %vm1072_vm5 = vweird.f32 %v2078_v57  ;;  %vm1062_vm7 = vcmp.eq.f32.partialorder %v1061_v18, 8.507059e+37  ;;  %v1064_v36 = vor.u32 1.1754944e-38, %v1063_v20 }
 0x1c9   : > { %v384_v1 = vpop.f32.mrf.mxu2  ;;  %v455_v4 = vpop.f32.mrf.mxu3  ;;  %1566 = vpow2.f32 %v1366_v59  ;;  %vm1077_vm8 = vcmp.eq.f32.partialorder %v1076_v22, 8.507059e+37  ;;  %v1079_v42 = vor.u32 1.1754944e-38, %v1078_v25 }
 0x1ca   : > { %v1557_v58 = vpop.eup %1556  ;;  %v1367_v11 = vmul.f32 -1.442695, %v384_v1  ;;  %v1368_v14 = vmul.f32 -1.442695, %v455_v4 }
 0x1cb   : > { %v1559_v60 = vpop.eup %1558  ;;  %v2095_v7 = vadd.f32 1.0, %v1557_v58 }
 0x1cc   : > { %v1561_v63 = vpop.eup %1560  ;;  %v1023_v0 = vmul.f32 %v1559_v60, %v2063_v40  ;;  %vm1028_vm13 = vweird.f32 %v1559_v60 }
 0x1cd   : > { %v1038_v3 = vmul.f32 %v1561_v63, %v2067_v43  ;;  %v1563_v12 = vpop.eup %1562  ;;  %1568 = vrcp.f32 %v2095_v7  ;;  %vm1043_vm14 = vweird.f32 %v1561_v63  ;;  %vm1029_vm15 = vmor %vm1027_vm9, %vm1028_vm13  ;;  %v1091_v44 = vand.u32 2147483647, %v2095_v7 }
 0x1ce   : > { %v1024_v5 = vsub.f32 1.0, %v1023_v0  ;;  %v1565_v15 = vpop.eup %1564  ;;  %v1053_v17 = vmul.f32 %v1563_v12, %v2074_v53  ;;  %1570 = vpow2.f32 %v1367_v11  ;;  %vm1044_vm0 = vmor %vm1042_vm11, %vm1043_vm14  ;;  %vm1058_vm2 = vweird.f32 %v1563_v12 }
 0x1cf   : > { %v1039_v8 = vsub.f32 1.0, %v1038_v3  ;;  %v1068_v21 = vmul.f32 %v1565_v15, %v2078_v57  ;;  %v1567_v26 = vpop.eup %1566  ;;  %1572 = vpow2.f32 %v1368_v14  ;;  %vm1073_vm4 = vweird.f32 %v1565_v15  ;;  %vm1059_vm6 = vmor %vm1057_vm3, %vm1058_vm2 }
 0x1d0   : > { %v1025_v13 = vmul.f32 %v1559_v60, %v1024_v5  ;;  %v1054_v24 = vsub.f32 1.0, %v1053_v17  ;;  %v599_v32 = vadd.f32 1.0, %v1567_v26  ;;  %vm1074_vm9 = vmor %vm1072_vm5, %vm1073_vm4  ;;  %v1093_v48 = vand.u32 2147483648, %v2095_v7 }
 0x1d1   : > { %v1040_v16 = vmul.f32 %v1561_v63, %v1039_v8  ;;  %v1069_v28 = vsub.f32 1.0, %v1068_v21  ;;  %vm1087_vm11 = vweird.f32 %v2095_v7  ;;  %vm1092_vm13 = vcmp.eq.f32.partialorder %v1091_v44, 8.507059e+37 }
 0x1d2   : > { %v1026_v19 = vadd.f32 %v1559_v60, %v1025_v13  ;;  %v1055_v31 = vmul.f32 %v1563_v12, %v1054_v24  ;;  %1574 = vrcp.f32 %v599_v32  ;;  %v1094_v55 = vor.u32 1.1754944e-38, %v1093_v48 }
 0x1d3   : > { %v1041_v23 = vadd.f32 %v1561_v63, %v1040_v16  ;;  %v1569_v33 = vpop.eup %1568  ;;  %v1070_v35 = vmul.f32 %v1565_v15, %v1069_v28  ;;  %v1106_v62 = vand.u32 2147483647, %v599_v32 }
 0x1d4   : > { %v1030_v27 = vsel %vm1029_vm15, %v1559_v60, %v1026_v19  ;;  %v1056_v37 = vadd.f32 %v1563_v12, %v1055_v31  ;;  %v1083_v38 = vmul.f32 %v1569_v33, %v2095_v7  ;;  %v1571_v40 = vpop.eup %1570  ;;  %v1108_v60 = vand.u32 2147483648, %v599_v32 }
 0x1d5   : > { %v1035_v29 = vsel %vm2089_vm10, %v1034_v6, %v1030_v27  ;;  %v1045_v30 = vsel %vm1044_vm0, %v1561_v63, %v1041_v23  ;;  %v1071_v39 = vadd.f32 %v1565_v15, %v1070_v35  ;;  %v1573_v45 = vpop.eup %1572  ;;  %vm1088_vm10 = vweird.f32 %v1569_v33 }
 0x1d6   : > { %1171 = vst [vmem:[%s1794_s5 + $0xe0] sm:$0xff] %v1035_v29  ;;  %v1050_v34 = vsel %vm2097_vm12, %v1049_v10, %v1045_v30  ;;  %v1060_v41 = vsel %vm1059_vm6, %v1563_v12, %v1056_v37  ;;  %v1084_v43 = vsub.f32 1.0, %v1083_v38  ;;  %v600_v51 = vadd.f32 1.0, %v1571_v40  ;;  %vm1089_vm12 = vmor %vm1087_vm11, %vm1088_vm10 }
 0x1d7   : > { %1172 = vst.msk [vmem:[%s1794_s5 + $0xe8] sm:$0xff] %vm1143_vm1, %v1050_v34  ;;  %v1065_v46 = vsel %vm1062_vm7, %v1064_v36, %v1060_v41  ;;  %v1075_v47 = vsel %vm1074_vm9, %v1565_v15, %v1071_v39  ;;  %v601_v52 = vadd.f32 1.0, %v1573_v45  ;;  %vm1102_vm15 = vweird.f32 %v599_v32 }
 0x1d8   : > { %1173 = vst [vmem:[%s1794_s5 + $0xf0] sm:$0xff] %v1065_v46  ;;  %v1080_v49 = vsel %vm1077_vm8, %v1079_v42, %v1075_v47  ;;  %v1085_v50 = vmul.f32 %v1569_v33, %v1084_v43  ;;  %v1575_v53 = vpop.eup %1574  ;;  %1576 = vrcp.f32 %v600_v51  ;;  %v1109_v3 = vor.u32 1.1754944e-38, %v1108_v60 }
 0x1d9   : > { %1174 = vst.msk [vmem:[%s1794_s5 + $0xf8] sm:$0xff] %vm1143_vm1, %v1080_v49  ;;  %v1098_v57 = vmul.f32 %v1575_v53, %v599_v32  ;;  %1578 = vrcp.f32 %v601_v52  ;;  %vm1103_vm14 = vweird.f32 %v1575_v53  ;;  %vm1107_vm2 = vcmp.eq.f32.partialorder %v1106_v62, 8.507059e+37 }
 0x1da   : > { %v1086_v54 = vadd.f32 %v1569_v33, %v1085_v50  ;;  %vm1104_vm0 = vmor %vm1102_vm15, %vm1103_vm14  ;;  %v1123_v8 = vand.u32 2147483648, %v600_v51  ;;  %v1121_v11 = vand.u32 2147483647, %v600_v51  ;;  %v1138_v12 = vand.u32 2147483648, %v601_v52 }
 0x1db   : > { %v1099_v59 = vsub.f32 1.0, %v1098_v57  ;;  %v1136_v14 = vand.u32 2147483647, %v601_v52  ;;  %vm1117_vm5 = vweird.f32 %v600_v51  ;;  %vm1132_vm7 = vweird.f32 %v601_v52 }
 0x1dc   : > { %v1090_v58 = vsel %vm1089_vm12, %v1569_v33, %v1086_v54  ;;  %v1124_v16 = vor.u32 1.1754944e-38, %v1123_v8  ;;  %vm1122_vm8 = vcmp.eq.f32.partialorder %v1121_v11, 8.507059e+37  ;;  %v1139_v19 = vor.u32 1.1754944e-38, %v1138_v12 }
 0x1dd   : > { %v1095_v56 = vsel %vm1092_vm13, %v1094_v55, %v1090_v58  ;;  %v1100_v61 = vmul.f32 %v1575_v53, %v1099_v59  ;;  %vm1137_vm10 = vcmp.eq.f32.partialorder %v1136_v14, 8.507059e+37 }
 0x1de   : > { %1175 = vst [vmem:[%s1794_s5 + $0x100] sm:$0xff] %v1095_v56  ;;  %v1577_v63 = vpop.eup %1576 }
 0x1df   : > { %v1579_v0 = vpop.eup %1578  ;;  %v1101_v1 = vadd.f32 %v1575_v53, %v1100_v61  ;;  %v1113_v2 = vmul.f32 %v1577_v63, %v600_v51  ;;  %vm1118_vm3 = vweird.f32 %v1577_v63 }
 0x1e0   : > { %v1128_v4 = vmul.f32 %v1579_v0, %v601_v52  ;;  %vm1133_vm4 = vweird.f32 %v1579_v0  ;;  %vm1119_vm6 = vmor %vm1117_vm5, %vm1118_vm3 }
 0x1e1   : > { %v1105_v5 = vsel %vm1104_vm0, %v1575_v53, %v1101_v1  ;;  %v1114_v6 = vsub.f32 1.0, %v1113_v2  ;;  %vm1134_vm9 = vmor %vm1132_vm7, %vm1133_vm4 }
 0x1e2   : > { %v1110_v7 = vsel %vm1107_vm2, %v1109_v3, %v1105_v5  ;;  %v1129_v9 = vsub.f32 1.0, %v1128_v4 }
 0x1e3   : > { %1176 = vst.msk [vmem:[%s1794_s5 + $0x108] sm:$0xff] %vm1143_vm1, %v1110_v7  ;;  %v1115_v10 = vmul.f32 %v1577_v63, %v1114_v6 }
 0x1e4   : > { %v1130_v13 = vmul.f32 %v1579_v0, %v1129_v9 }
 0x1e5   : > { %v1116_v15 = vadd.f32 %v1577_v63, %v1115_v10 }
 0x1e6   : > { %v1131_v17 = vadd.f32 %v1579_v0, %v1130_v13 }
 0x1e7   : > { %v1120_v18 = vsel %vm1119_vm6, %v1577_v63, %v1116_v15 }
 0x1e8   : > { %v1125_v20 = vsel %vm1122_vm8, %v1124_v16, %v1120_v18  ;;  %v1135_v21 = vsel %vm1134_vm9, %v1579_v0, %v1131_v17 }
 0x1e9   : > { %1177 = vst [vmem:[%s1794_s5 + $0x110] sm:$0xff] %v1125_v20  ;;  %v1140_v22 = vsel %vm1137_vm10, %v1139_v19, %v1135_v21 }
 0x1ea   : > { %1178 = vst.msk [vmem:[%s1794_s5 + $0x118] sm:$0xff] %vm1143_vm1, %v1140_v22 }
 0x1eb   : > { %1607 = shalt.err (!%p1604_p5)
}
 0x1ec   : > { %s1660_s29 = smov 256   ;;  %s1661_s30 = smov 16  }
 0x1ed   : > { %1378 = dma.vmem_to_hbm [thread:$0]  (%p1717_p4), %s1195_s12, 4608, %s1197_s16, %s1180_s18, %s1660_s29, %s1660_s29, %s1661_s30  }
 0x1ee PF: > { %p1384_p6 = scmp.ge.s32.totalorder %s1658_s14, 2  ;;  %s1211_s3 = sand.u32 1, %s1638_s9  }
 0x1ef   : > { %s1212_s4 = scalar_lea.sflag [#allocation3], %s1211_s3 }
 0x1f0   : > { %p1381_p7 = pnand %p1384_p6, %p1724_p8 }
 0x1f2   : > { %p1382_p9 = pneg %p1381_p7 }
 0x1f4   : > { %1633 = dma.done.wait (%p1382_p9), %s1212_s4, 4608  }
 0x1f5   : > { %1635 = vsyncadd (%p1382_p9), %s1212_s4, 4294962688  ;;  %s15_s14 = sadd.s32 1, %s1658_s14   ;;  %s2197_s9 = smov %s1642_s10 }
 0x1f6   : > { %p12_p10 = scmp.ge.s32.totalorder %s15_s14, 6   ;;  %s2198_s10 = smov %s1646_s11 }
 0x1f7   : > { %s2199_s11 = smov %s1730_s22  ;;  %s2200_s12 = smov %s1654_s13 }
 0x1f8   : > { %s2201_s13 = smov %s2203_s17  ;;  %14 = sbr.rel (!%p12_p10) target bundleno = 4 (0x4), region = 66 }
 0x1fd   :  { %1218 = vsyncpa [#allocation3], 1 }
 0x1fe   :  { %1220 = vsyncpa [#allocation3 + $0x1], 1 }

// kernel: msc_forward.24
= control target key start
LH: loop header
LB: loop body
LE: loop exit
PB: predicated region body
PF: predicated region fallthrough
CT: control target
= control target key end

     0   :  { %s1714_s24 = smov 0   ;;  %s1996_s0 = inlined_call_operand.vmem [shape: f32[4,8,16,16], index: 0, kind: input, shape index: {}]   ;;  %s1997_s1 = inlined_call_operand.vmem [shape: f32[4,8,8,8], index: 1, kind: input, shape index: {}]   ;;  %s1998_s2 = inlined_call_operand.vmem [shape: f32[16,8], index: 2, kind: input, shape index: {}]   ;;  %s1999_s3 = inlined_call_operand.vmem [shape: f32[8,16], index: 3, kind: input, shape index: {}]   ;;  %s2000_s4 = inlined_call_operand.vmem [shape: f32[4,8,12,12], index: 4, kind: input, shape index: {}]   ;;  %s2001_s5 = inlined_call_operand.vmem [shape: f32[16,12], index: 5, kind: input, shape index: {}]   ;;  %s2002_s6 = inlined_call_operand.vmem [shape: f32[12,16], index: 6, kind: input, shape index: {}]   ;;  %s2003_s7 = inlined_call_operand.vmem [shape: f32[4,8,16,16], index: 7, kind: output, shape index: {}]  }
   0x1 LB: > { %s1518_s25 = sadd.s32 4294967295, %s1672_s24   ;;  %p1522_p0 = scmp.ge.s32.totalorder %s1672_s24, 1  ;;  %s1672_s24 = sphi %s1714_s24, %s17_s24  }
   0x2   : > { %p257_p1 = scmp.lt.s32.totalorder %s1672_s24, 5 }
   0x4   : > { %p258_p2 = pnand %p1522_p0, %p257_p1 }
   0x5   : > { %p299_p3 = scmp.lt.s32.totalorder (!%p258_p2), %s1518_s25, 3 }
   0x6   : > { %261 = sbr.rel (%p258_p2) target bundleno = 1050 (0x41a), region = 48 }
   0xb   : > { %v383_v0 = vld [vmem:[%s2002_s6 + $0x8] sm:$0xf]  ;;  %vm393_vm0 = vcmask 1043456   ;;  %v1728_v1 = vld [vmem:[%s1999_s3] sm:$0xff]  ;;  %s2005_s25 = smov (!%p299_p3, %s1518_s25), 3  ;;  %vm325_vm1 = vcmask 64512  }
   0xc   : > { %v1733_v2 = vld [vmem:[%s2002_s6] sm:$0xff]  ;;  %1534 = vmatpush.msk.msra.mxu2 %vm393_vm0, %v383_v0  ;;  %344 = vmatpush.msra.mxu1 %v1728_v1  ;;  %s1739_s9 = sshll.u32 %s2005_s25, 7  ;;  %s1655_s10 = sshll.u32 %s2005_s25, 6  ;;  %vm386_vm2 = vcmask 97280   ;;  %v524_v9 = vld [vmem:[%s2002_s6 + $0x8] sm:$0xf] }
   0xd   : > { %485 = vmatpush.msra.mxu0 %v1728_v1  ;;  %s1744_s13 = scalar_lea.vmem %s1997_s1, %s1655_s10  ;;  %s1750_s16 = scalar_lea.vmem %s2000_s4, %s1739_s9  ;;  %v1763_v7 = vld [vmem:[%s1998_s2] sm:$0xff]  ;;  %v1775_v11 = vld [vmem:[%s1998_s2 + $0x8] sm:$0xff]  ;;  %vm456_vm3 = vcmask 130048  }
   0xe   : > { %412 = vmatpush.msra.mxu2 %v1733_v2  ;;  %v324_v3 = vld [vmem:[%s1744_s13] sm:$0xff]  ;;  %v385_v5 = vld [vmem:[%s1750_s16 + $0x8] sm:$0xf]  ;;  %v1546_v14 = vld [vmem:[%s1750_s16 + $0x10] sm:$0xff]  ;;  %s1816_s10 = scalar_lea.vmem %s1996_s0, %s1739_s9  ;;  %s1825_s14 = scalar_lea.vmem %s2003_s7, %s1739_s9 }
   0xf   : > { %v384_v4 = vld [vmem:[%s1750_s16] sm:$0xff]  ;;  %1531 = vmatmul.msk.f32.vlgmr.msra.gmra.mxu1 %vm325_vm1, %v324_v3  ;;  %v1542_v6 = vld [vmem:[%s1744_s13 + $0x8] sm:$0xff]  ;;  %v1547_v16 = vld [vmem:[%s1750_s16 + $0x18] sm:$0xf] }
  0x10   : > { %1535 = vmatmul.msk.f32.vlgmr.msra.gmra.mxu2 %vm386_vm2, %v384_v4  ;;  %1543 = vmatmul.msk.f32.vlgmr.msra.gmra.mxu0 %vm325_vm1, %v1542_v6  ;;  %v1783_v13 = vld [vmem:[%s2001_s5] sm:$0xff]  ;;  %v1793_v15 = vld [vmem:[%s2001_s5 + $0x8] sm:$0xff]  ;;  %v1558_v17 = vld [vmem:[%s1744_s13 + $0x10] sm:$0xff] }
  0x11   : > { %v664_v21 = vld [vmem:[%s2002_s6 + $0x8] sm:$0xf]  ;;  %v1562_v22 = vld [vmem:[%s1750_s16 + $0x20] sm:$0xff]  ;;  %v1574_v38 = vld [vmem:[%s1744_s13 + $0x18] sm:$0xff] }
  0x12   : > { %v1563_v24 = vld [vmem:[%s1750_s16 + $0x28] sm:$0xf]  ;;  %v319_v25 = vld [vmem:[%s1816_s10] sm:$0xff]  ;;  %v1578_v39 = vld [vmem:[%s1750_s16 + $0x30] sm:$0xff] }
  0x13   : > { %v320_v31 = vld [vmem:[%s1816_s10 + $0x8] sm:$0xff]  ;;  %v1579_v40 = vld [vmem:[%s1750_s16 + $0x38] sm:$0xf]  ;;  %v1540_v45 = vld [vmem:[%s1816_s10 + $0x10] sm:$0xff] }
  0x14   : > { %v804_v37 = vld [vmem:[%s2002_s6 + $0x8] sm:$0xf]  ;;  %v1541_v49 = vld [vmem:[%s1816_s10 + $0x18] sm:$0xff]  ;;  %v1590_v52 = vld [vmem:[%s1744_s13 + $0x20] sm:$0xff] }
  0x15   : > { %v944_v58 = vld [vmem:[%s2002_s6 + $0x8] sm:$0xf]  ;;  %v1594_v61 = vld [vmem:[%s1750_s16 + $0x40] sm:$0xff] }
  0x16   : > { %v1595_v63 = vld [vmem:[%s1750_s16 + $0x48] sm:$0xf]  ;;  %v1556_v3 = vld [vmem:[%s1816_s10 + $0x20] sm:$0xff] }
  0x17   : > { %v1606_v0 = vld [vmem:[%s1744_s13 + $0x28] sm:$0xff] }
  0x18   : > { %1536 = vmatmul.msk.f32.gmra.mxu2 %vm386_vm2, %v385_v5 }
  0x8c   : > { %v346_v8 = vpop.f32.mrf.mxu1 }
  0x8d   : > { %370 = vmatpush.msrb.mxu1 %v346_v8  ;;  %v487_v18 = vpop.f32.mrf.mxu0  ;;  %v1557_v8 = vld [vmem:[%s1816_s10 + $0x28] sm:$0xff] }
  0x8e   : > { %1532 = vmatmul.msk.f32.vlgmr.msrb.gmra.mxu1 %vm325_vm1, %v1763_v7  ;;  %511 = vmatpush.msrb.mxu0 %v487_v18  ;;  %v1084_v18 = vld [vmem:[%s2002_s6 + $0x8] sm:$0xf] }
  0x8f   : > { %1548 = vmatpush.msk.msra.mxu1 %vm393_vm0, %v524_v9  ;;  %1544 = vmatmul.msk.f32.vlgmr.msrb.gmra.mxu0 %vm325_vm1, %v1763_v7 }
  0x90   : > { %1564 = vmatpush.msk.msra.mxu0 %vm393_vm0, %v664_v21  ;;  %v1611_v21 = vld [vmem:[%s1750_s16 + $0x58] sm:$0xf] }
  0x91   : > { %552 = vmatpush.msra.mxu1 %v1733_v2 }
  0x92   : > { %692 = vmatpush.msra.mxu0 %v1733_v2 }
  0x93   : > { %v414_v10 = vpop.f32.mrf.mxu2 }
  0x96   : > { %1533 = vmatmul.msk.f32.gmra.mxu1 %vm325_vm1, %v1775_v11 }
  0x97   : > { %1545 = vmatmul.msk.f32.gmra.mxu0 %vm325_vm1, %v1775_v11 }
  0x9b   : > { %v417_v12 = vpop.f32.mrf.mxu2 }
  0x9c   : > { %1537 = vmatpush.msk.msra.mxu3 %vm393_vm0, %v417_v12 }
  0x9e   : > { %444 = vmatpush.msra.mxu3 %v414_v10  ;;  %1549 = vmatmul.msk.f32.vlgmr.msra.gmra.mxu1 %vm386_vm2, %v1546_v14 }
  0x9f   : > { %1538 = vmatmul.msk.f32.vlgmr.msra.gmra.mxu3 %vm386_vm2, %v1783_v13  ;;  %1565 = vmatmul.msk.f32.vlgmr.msra.gmra.mxu0 %vm386_vm2, %v1562_v22 }
  0xa0   : > { %625 = vmatpush.msrb.mxu3 %v1728_v1 }
  0xa6   : > { %1550 = vmatmul.msk.f32.gmra.mxu1 %vm386_vm2, %v1547_v16 }
  0xa7   : > { %1539 = vmatmul.msk.f32.gmra.mxu3 %vm386_vm2, %v1793_v15  ;;  %1566 = vmatmul.msk.f32.gmra.mxu0 %vm386_vm2, %v1563_v24 }
  0xaf   : > { %1559 = vmatmul.msk.f32.vlgmr.msrb.gmra.mxu3 %vm325_vm1, %v1558_v17 }
 0x10b   : > { %v372_v19 = vpop.f32.mrf.mxu1 }
 0x10c   : > { %v378_v26 = vadd.f32 %v372_v19, %v319_v25  ;;  %v513_v41 = vpop.f32.mrf.mxu0  ;;  %v1610_v19 = vld [vmem:[%s1750_s16 + $0x50] sm:$0xff] }
 0x10d   : > { %v519_v46 = vadd.f32 %v1540_v45, %v513_v41 }
 0x113   : > { %v375_v20 = vpop.f32.mrf.mxu1 }
 0x114   : > { %v379_v32 = vadd.f32 %v375_v20, %v320_v31  ;;  %v516_v42 = vpop.f32.mrf.mxu0 }
 0x115   : > { %v520_v51 = vadd.f32 %v1541_v49, %v516_v42 }
 0x11b   : > { %v554_v23 = vpop.f32.mrf.mxu1 }
 0x11c   : > { %v694_v43 = vpop.f32.mrf.mxu0 }
 0x122   : > { %v446_v27 = vpop.f32.mrf.mxu3 }
 0x123   : > { %v452_v28 = vadd.f32 %v446_v27, %v378_v26  ;;  %v557_v29 = vpop.f32.mrf.mxu1 }
 0x124   : > { %1551 = vmatpush.msk.msrb.mxu2 %vm393_vm0, %v557_v29  ;;  %v697_v44 = vpop.f32.mrf.mxu0  ;;  %v1573_v29 = vld [vmem:[%s1816_s10 + $0x38] sm:$0xff] }
 0x125   : > { %v454_v30 = vmul.f32 0.33333334, %v452_v28  ;;  %1567 = vmatpush.msk.msrb.mxu1 %vm393_vm0, %v697_v44  ;;  %v1588_v44 = vld [vmem:[%s1816_s10 + $0x40] sm:$0xff] }
 0x126   : > { %584 = vmatpush.msrb.mxu2 %v554_v23  ;;  %v1572_v23 = vld [vmem:[%s1816_s10 + $0x30] sm:$0xff] }
 0x127   : > { %457 = vst.msk [vmem:[%s1825_s14] sm:$0xff] %vm456_vm3, %v454_v30  ;;  %1552 = vmatmul.msk.f32.vlgmr.msrb.gmra.mxu2 %vm386_vm2, %v1783_v13  ;;  %724 = vmatpush.msrb.mxu1 %v694_v43 }
 0x128   : > { %765 = vmatpush.msra.mxu2 %v1728_v1  ;;  %1568 = vmatmul.msk.f32.vlgmr.msrb.gmra.mxu1 %vm386_vm2, %v1783_v13 }
 0x129   : > { %905 = vmatpush.msra.mxu1 %v1728_v1 }
 0x12a   : > { %v449_v33 = vpop.f32.mrf.mxu3 }
 0x12b   : > { %v453_v34 = vadd.f32 %v449_v33, %v379_v32 }
 0x12d   : > { %v455_v35 = vmul.f32 0.33333334, %v453_v34 }
 0x12f   : > { %458 = vst.msk [vmem:[%s1825_s14 + $0x8] sm:$0xff] %vm456_vm3, %v455_v35  ;;  %1553 = vmatmul.msk.f32.gmra.mxu2 %vm386_vm2, %v1793_v15 }
 0x130   : > { %1569 = vmatmul.msk.f32.gmra.mxu1 %vm386_vm2, %v1793_v15 }
 0x132   : > { %v627_v36 = vpop.f32.mrf.mxu3 }
 0x133   : > { %651 = vmatpush.msra.mxu3 %v627_v36  ;;  %v1224_v36 = vld [vmem:[%s2002_s6 + $0x8] sm:$0xf] }
 0x134   : > { %1560 = vmatmul.msk.f32.vlgmr.msra.gmra.mxu3 %vm325_vm1, %v1763_v7 }
 0x135   : > { %1580 = vmatpush.msk.msrb.mxu3 %vm393_vm0, %v804_v37  ;;  %v1622_v37 = vld [vmem:[%s1744_s13 + $0x30] sm:$0xff] }
 0x137   : > { %832 = vmatpush.msrb.mxu3 %v1733_v2  ;;  %1575 = vmatmul.msk.f32.vlgmr.msra.gmra.mxu2 %vm325_vm1, %v1574_v38  ;;  %v1626_v38 = vld [vmem:[%s1750_s16 + $0x60] sm:$0xff] }
 0x138   : > { %1591 = vmatmul.msk.f32.vlgmr.msra.gmra.mxu1 %vm325_vm1, %v1590_v52 }
 0x13c   : > { %1561 = vmatmul.msk.f32.gmra.mxu3 %vm325_vm1, %v1775_v11 }
 0x144   : > { %1581 = vmatmul.msk.f32.vlgmr.msrb.gmra.mxu3 %vm386_vm2, %v1578_v39  ;;  %v1627_v39 = vld [vmem:[%s1750_s16 + $0x68] sm:$0xf] }
 0x14c   : > { %1582 = vmatmul.msk.f32.gmra.mxu3 %vm386_vm2, %v1579_v40 }
 0x1a5   : > { %v726_v5 = vpop.f32.mrf.mxu1 }
 0x1aa   : > { %v586_v47 = vpop.f32.mrf.mxu2 }
 0x1ab   : > { %v592_v48 = vadd.f32 %v586_v47, %v519_v46 }
 0x1ad   : > { %v594_v50 = vmul.f32 0.33333334, %v592_v48  ;;  %v729_v12 = vpop.f32.mrf.mxu1 }
 0x1af   : > { %1554 = vst.msk [vmem:[%s1825_s14 + $0x10] sm:$0xff] %vm456_vm3, %v594_v50  ;;  %v1638_v50 = vld [vmem:[%s1744_s13 + $0x38] sm:$0xff] }
 0x1b2   : > { %v589_v53 = vpop.f32.mrf.mxu2 }
 0x1b3   : > { %v593_v54 = vadd.f32 %v589_v53, %v520_v51  ;;  %v1589_v51 = vld [vmem:[%s1816_s10 + $0x48] sm:$0xff] }
 0x1b5   : > { %v595_v55 = vmul.f32 0.33333334, %v593_v54  ;;  %v907_v17 = vpop.f32.mrf.mxu1 }
 0x1b6   : > { %931 = vmatpush.msrb.mxu1 %v907_v17 }
 0x1b7   : > { %v653_v56 = vpop.f32.mrf.mxu3  ;;  %1555 = vst.msk [vmem:[%s1825_s14 + $0x18] sm:$0xff] %vm456_vm3, %v595_v55  ;;  %1592 = vmatmul.msk.f32.vlgmr.msrb.gmra.mxu1 %vm325_vm1, %v1763_v7 }
 0x1b8   : > { %v659_v4 = vadd.f32 %v1556_v3, %v653_v56  ;;  %1612 = vmatpush.msk.msra.mxu1 %vm393_vm0, %v1084_v18  ;;  %v1605_v3 = vld [vmem:[%s1816_s10 + $0x58] sm:$0xff] }
 0x1ba   : > { %v767_v57 = vpop.f32.mrf.mxu2  ;;  %v732_v6 = vadd.f32 %v726_v5, %v659_v4  ;;  %1112 = vmatpush.msra.mxu1 %v1733_v2 }
 0x1bb   : > { %791 = vmatpush.msrb.mxu2 %v767_v57 }
 0x1bc   : > { %1576 = vmatmul.msk.f32.vlgmr.msrb.gmra.mxu2 %vm325_vm1, %v1763_v7  ;;  %v734_v9 = vmul.f32 0.33333334, %v732_v6 }
 0x1bd   : > { %1596 = vmatpush.msk.msra.mxu2 %vm393_vm0, %v944_v58  ;;  %v1364_v58 = vld [vmem:[%s2002_s6 + $0x8] sm:$0xf] }
 0x1be   : > { %1570 = vst.msk [vmem:[%s1825_s14 + $0x20] sm:$0xff] %vm456_vm3, %v734_v9 }
 0x1bf   : > { %v656_v59 = vpop.f32.mrf.mxu3  ;;  %972 = vmatpush.msra.mxu2 %v1733_v2  ;;  %1593 = vmatmul.msk.f32.gmra.mxu1 %vm325_vm1, %v1775_v11 }
 0x1c0   : > { %v660_v10 = vadd.f32 %v1557_v8, %v656_v59 }
 0x1c2   : > { %v733_v14 = vadd.f32 %v729_v12, %v660_v10  ;;  %v1620_v12 = vld [vmem:[%s1816_s10 + $0x60] sm:$0xff] }
 0x1c4   : > { %1577 = vmatmul.msk.f32.gmra.mxu2 %vm325_vm1, %v1775_v11  ;;  %v735_v16 = vmul.f32 0.33333334, %v733_v14 }
 0x1c6   : > { %1571 = vst.msk [vmem:[%s1825_s14 + $0x28] sm:$0xff] %vm456_vm3, %v735_v16 }
 0x1c7   : > { %v834_v60 = vpop.f32.mrf.mxu3  ;;  %1613 = vmatmul.msk.f32.vlgmr.msra.gmra.mxu1 %vm386_vm2, %v1610_v19 }
 0x1cc   : > { %1597 = vmatmul.msk.f32.vlgmr.msra.gmra.mxu2 %vm386_vm2, %v1594_v61  ;;  %v1643_v61 = vld [vmem:[%s1750_s16 + $0x78] sm:$0xf] }
 0x1cf   : > { %v837_v62 = vpop.f32.mrf.mxu3  ;;  %1614 = vmatmul.msk.f32.gmra.mxu1 %vm386_vm2, %v1611_v21 }
 0x1d0   : > { %1583 = vmatpush.msk.msrb.mxu0 %vm393_vm0, %v837_v62 }
 0x1d2   : > { %864 = vmatpush.msrb.mxu0 %v834_v60  ;;  %v1642_v60 = vld [vmem:[%s1750_s16 + $0x70] sm:$0xff] }
 0x1d3   : > { %1584 = vmatmul.msk.f32.vlgmr.msrb.gmra.mxu0 %vm386_vm2, %v1783_v13 }
 0x1d4   : > { %1045 = vmatpush.msra.mxu0 %v1728_v1  ;;  %1598 = vmatmul.msk.f32.gmra.mxu2 %vm386_vm2, %v1595_v63 }
 0x1db   : > { %1585 = vmatmul.msk.f32.gmra.mxu0 %vm386_vm2, %v1793_v15 }
 0x1e3   : > { %1607 = vmatmul.msk.f32.vlgmr.msra.gmra.mxu0 %vm325_vm1, %v1606_v0 }
 0x234   : > { %v933_v40 = vpop.f32.mrf.mxu1 }
 0x235   : > { %v939_v45 = vadd.f32 %v1588_v44, %v933_v40 }
 0x23c   : > { %v936_v41 = vpop.f32.mrf.mxu1 }
 0x23d   : > { %v940_v52 = vadd.f32 %v1589_v51, %v936_v41 }
 0x23f   : > { %v793_v20 = vpop.f32.mrf.mxu2 }
 0x240   : > { %v799_v24 = vadd.f32 %v1572_v23, %v793_v20  ;;  %v1621_v20 = vld [vmem:[%s1816_s10 + $0x68] sm:$0xff] }
 0x244   : > { %v1114_v42 = vpop.f32.mrf.mxu1 }
 0x247   : > { %v796_v22 = vpop.f32.mrf.mxu2 }
 0x248   : > { %v800_v30 = vadd.f32 %v1573_v29, %v796_v22 }
 0x24c   : > { %v1117_v43 = vpop.f32.mrf.mxu1 }
 0x24d   : > { %1615 = vmatpush.msk.msrb.mxu2 %vm393_vm0, %v1117_v43 }
 0x24f   : > { %v974_v26 = vpop.f32.mrf.mxu2  ;;  %1144 = vmatpush.msrb.mxu2 %v1114_v42 }
 0x250   : > { %v866_v25 = vpop.f32.mrf.mxu0  ;;  %1616 = vmatmul.msk.f32.vlgmr.msrb.gmra.mxu2 %vm386_vm2, %v1783_v13 }
 0x251   : > { %v872_v27 = vadd.f32 %v866_v25, %v799_v24  ;;  %1325 = vmatpush.msra.mxu2 %v1728_v1 }
 0x253   : > { %v874_v28 = vmul.f32 0.33333334, %v872_v27  ;;  %v1636_v27 = vld [vmem:[%s1816_s10 + $0x70] sm:$0xff] }
 0x255   : > { %1586 = vst.msk [vmem:[%s1825_s14 + $0x30] sm:$0xff] %vm456_vm3, %v874_v28 }
 0x257   : > { %v977_v32 = vpop.f32.mrf.mxu2 }
 0x258   : > { %v869_v31 = vpop.f32.mrf.mxu0  ;;  %1599 = vmatpush.msk.msra.mxu3 %vm393_vm0, %v977_v32  ;;  %1617 = vmatmul.msk.f32.gmra.mxu2 %vm386_vm2, %v1793_v15 }
 0x259   : > { %v873_v33 = vadd.f32 %v869_v31, %v800_v30  ;;  %v1637_v31 = vld [vmem:[%s1816_s10 + $0x78] sm:$0xff] }
 0x25a   : > { %1004 = vmatpush.msra.mxu3 %v974_v26 }
 0x25b   : > { %v875_v34 = vmul.f32 0.33333334, %v873_v33  ;;  %1600 = vmatmul.msk.f32.vlgmr.msra.gmra.mxu3 %vm386_vm2, %v1783_v13 }
 0x25c   : > { %1185 = vmatpush.msrb.mxu3 %v1728_v1 }
 0x25d   : > { %1587 = vst.msk [vmem:[%s1825_s14 + $0x38] sm:$0xff] %vm456_vm3, %v875_v34 }
 0x260   : > { %v1047_v35 = vpop.f32.mrf.mxu0  ;;  %1639 = vmatmul.msk.f32.vlgmr.msra.gmra.mxu2 %vm325_vm1, %v1638_v50 }
 0x261   : > { %1071 = vmatpush.msrb.mxu0 %v1047_v35 }
 0x262   : > { %1608 = vmatmul.msk.f32.vlgmr.msrb.gmra.mxu0 %vm325_vm1, %v1763_v7 }
 0x263   : > { %1628 = vmatpush.msk.msra.mxu0 %vm393_vm0, %v1224_v36  ;;  %1601 = vmatmul.msk.f32.gmra.mxu3 %vm386_vm2, %v1793_v15 }
 0x265   : > { %1252 = vmatpush.msra.mxu0 %v1733_v2 }
 0x26a   : > { %1609 = vmatmul.msk.f32.gmra.mxu0 %vm325_vm1, %v1775_v11 }
 0x26b   : > { %1623 = vmatmul.msk.f32.vlgmr.msrb.gmra.mxu3 %vm325_vm1, %v1622_v37 }
 0x272   : > { %1629 = vmatmul.msk.f32.vlgmr.msra.gmra.mxu0 %vm386_vm2, %v1626_v38 }
 0x27a   : > { %1630 = vmatmul.msk.f32.gmra.mxu0 %vm386_vm2, %v1627_v39 }
 0x2d3   : > { %v1146_v63 = vpop.f32.mrf.mxu2 }
 0x2db   : > { %v1149_v6 = vpop.f32.mrf.mxu2 }
 0x2de   : > { %v1006_v46 = vpop.f32.mrf.mxu3 }
 0x2df   : > { %v1073_v47 = vpop.f32.mrf.mxu0  ;;  %v1012_v48 = vadd.f32 %v1006_v46, %v939_v45 }
 0x2e1   : > { %v1014_v49 = vmul.f32 0.33333334, %v1012_v48 }
 0x2e3   : > { %1602 = vst.msk [vmem:[%s1825_s14 + $0x40] sm:$0xff] %vm456_vm3, %v1014_v49  ;;  %v1327_v10 = vpop.f32.mrf.mxu2 }
 0x2e4   : > { %1351 = vmatpush.msrb.mxu2 %v1327_v10 }
 0x2e5   : > { %1640 = vmatmul.msk.f32.vlgmr.msrb.gmra.mxu2 %vm325_vm1, %v1763_v7 }
 0x2e6   : > { %v1009_v53 = vpop.f32.mrf.mxu3 }
 0x2e7   : > { %v1076_v54 = vpop.f32.mrf.mxu0  ;;  %v1013_v1 = vadd.f32 %v1009_v53, %v940_v52 }
 0x2e8   : > { %v1080_v5 = vadd.f32 %v1605_v3, %v1076_v54 }
 0x2e9   : > { %v1015_v55 = vmul.f32 0.33333334, %v1013_v1 }
 0x2ea   : > { %v1153_v8 = vadd.f32 %v1149_v6, %v1080_v5 }
 0x2eb   : > { %1603 = vst.msk [vmem:[%s1825_s14 + $0x48] sm:$0xff] %vm456_vm3, %v1015_v55 }
 0x2ec   : > { %v1155_v9 = vmul.f32 0.33333334, %v1153_v8 }
 0x2ed   : > { %1641 = vmatmul.msk.f32.gmra.mxu2 %vm325_vm1, %v1775_v11 }
 0x2ee   : > { %v1187_v56 = vpop.f32.mrf.mxu3  ;;  %1619 = vst.msk [vmem:[%s1825_s14 + $0x58] sm:$0xff] %vm456_vm3, %v1155_v9 }
 0x2ef   : > { %v1254_v57 = vpop.f32.mrf.mxu0  ;;  %1211 = vmatpush.msra.mxu3 %v1187_v56 }
 0x2f0   : > { %1624 = vmatmul.msk.f32.vlgmr.msra.gmra.mxu3 %vm325_vm1, %v1763_v7 }
 0x2f1   : > { %1644 = vmatpush.msk.msrb.mxu3 %vm393_vm0, %v1364_v58 }
 0x2f3   : > { %1392 = vmatpush.msrb.mxu3 %v1733_v2  ;;  %v1604_v2 = vld [vmem:[%s1816_s10 + $0x50] sm:$0xff] }
 0x2f4   : > { %v1079_v62 = vadd.f32 %v1604_v2, %v1073_v47 }
 0x2f6   : > { %v1152_v0 = vadd.f32 %v1146_v63, %v1079_v62 }
 0x2f7   : > { %v1257_v59 = vpop.f32.mrf.mxu0 }
 0x2f8   : > { %1631 = vmatpush.msk.msrb.mxu1 %vm393_vm0, %v1257_v59  ;;  %1625 = vmatmul.msk.f32.gmra.mxu3 %vm325_vm1, %v1775_v11  ;;  %v1154_v4 = vmul.f32 0.33333334, %v1152_v0 }
 0x2fa   : > { %1284 = vmatpush.msrb.mxu1 %v1254_v57  ;;  %1618 = vst.msk [vmem:[%s1825_s14 + $0x50] sm:$0xff] %vm456_vm3, %v1154_v4 }
 0x2fb   : > { %1632 = vmatmul.msk.f32.vlgmr.msrb.gmra.mxu1 %vm386_vm2, %v1783_v13 }
 0x300   : > { %1645 = vmatmul.msk.f32.vlgmr.msrb.gmra.mxu3 %vm386_vm2, %v1642_v60 }
 0x303   : > { %1633 = vmatmul.msk.f32.gmra.mxu1 %vm386_vm2, %v1793_v15 }
 0x308   : > { %1646 = vmatmul.msk.f32.gmra.mxu3 %vm386_vm2, %v1643_v61 }
 0x368   : > { %v1353_v26 = vpop.f32.mrf.mxu2 }
 0x369   : > { %v1359_v28 = vadd.f32 %v1636_v27, %v1353_v26 }
 0x370   : > { %v1356_v32 = vpop.f32.mrf.mxu2 }
 0x371   : > { %v1360_v34 = vadd.f32 %v1637_v31, %v1356_v32 }
 0x373   : > { %v1213_v14 = vpop.f32.mrf.mxu3 }
 0x374   : > { %v1219_v16 = vadd.f32 %v1620_v12, %v1213_v14 }
 0x378   : > { %v1286_v17 = vpop.f32.mrf.mxu1 }
 0x379   : > { %v1292_v18 = vadd.f32 %v1286_v17, %v1219_v16 }
 0x37b   : > { %v1294_v19 = vmul.f32 0.33333334, %v1292_v18  ;;  %v1216_v21 = vpop.f32.mrf.mxu3 }
 0x37c   : > { %v1220_v22 = vadd.f32 %v1621_v20, %v1216_v21 }
 0x37d   : > { %1634 = vst.msk [vmem:[%s1825_s14 + $0x60] sm:$0xff] %vm456_vm3, %v1294_v19 }
 0x380   : > { %v1289_v23 = vpop.f32.mrf.mxu1 }
 0x381   : > { %v1293_v24 = vadd.f32 %v1289_v23, %v1220_v22 }
 0x383   : > { %v1295_v7 = vmul.f32 0.33333334, %v1293_v24  ;;  %v1394_v25 = vpop.f32.mrf.mxu3 }
 0x385   : > { %1635 = vst.msk [vmem:[%s1825_s14 + $0x68] sm:$0xff] %vm456_vm3, %v1295_v7 }
 0x38b   : > { %v1397_v11 = vpop.f32.mrf.mxu3 }
 0x38c   : > { %1647 = vmatpush.msk.msrb.mxu0 %vm393_vm0, %v1397_v11 }
 0x38e   : > { %1424 = vmatpush.msrb.mxu0 %v1394_v25 }
 0x38f   : > { %1648 = vmatmul.msk.f32.vlgmr.msrb.gmra.mxu0 %vm386_vm2, %v1783_v13 }
 0x397   : > { %1649 = vmatmul.msk.f32.gmra.mxu0 %vm386_vm2, %v1793_v15 }
 0x40c   : > { %v1426_v29 = vpop.f32.mrf.mxu0 }
 0x40d   : > { %v1432_v30 = vadd.f32 %v1426_v29, %v1359_v28 }
 0x40f   : > { %v1434_v33 = vmul.f32 0.33333334, %v1432_v30 }
 0x411   : > { %1650 = vst.msk [vmem:[%s1825_s14 + $0x70] sm:$0xff] %vm456_vm3, %v1434_v33 }
 0x414   : > { %v1429_v35 = vpop.f32.mrf.mxu0 }
 0x415   : > { %v1433_v36 = vadd.f32 %v1429_v35, %v1360_v34 }
 0x417   : > { %v1435_v37 = vmul.f32 0.33333334, %v1433_v36 }
 0x419   : > { %1651 = vst.msk [vmem:[%s1825_s14 + $0x78] sm:$0xff] %vm456_vm3, %v1435_v37 }
 0x41a PF: > { %s17_s24 = sadd.s32 1, %s1672_s24  }
 0x41b   : > { %p14_p4 = scmp.ge.s32.totalorder %s17_s24, 6  }
 0x41d   :  { %16 = sbr.rel (!%p14_p4) target bundleno = 1 (0x1), region = 112 }

// kernel: msc_forward.25
= control target key start
LH: loop header
LB: loop body
LE: loop exit
PB: predicated region body
PF: predicated region fallthrough
CT: control target
= control target key end

     0   :  { %7 = vsyncpa [#allocation3], 0  ;;  %s3577_s0 = inlined_call_operand.vmem [shape: f32[4,8,256], index: 0, kind: input, shape index: {}, may-alias: {0,1}]   ;;  %s3578_s1 = inlined_call_operand.vmem [shape: f32[4,8,256], index: 1, kind: input, shape index: {}, may-alias: {0,1}]   ;;  %s3579_s2 = inlined_call_operand.hbm [shape: f32[4,256,256], index: 2, kind: output, shape index: {}]  }
   0x1   :  { %9 = vsyncpa [#allocation3 + $0x1], 0  ;;  %s2532_s9 = smov 0   ;;  %s2534_s10 = smov 0  }
   0x2   :  { %s2536_s11 = smov 0   ;;  %s2538_s12 = smov 0  }
   0x3   :  { %s2540_s13 = smov 0   ;;  %s2542_s14 = smov 0  }
   0x4 LB: > { %s1973_s15 = sadd.s32 4294967295, %s2513_s14   ;;  %s1974_s16 = sadd.s32 4294967294, %s2513_s14   ;;  %s2513_s14 = sphi %s2542_s14, %s15_s14   ;;  %s2509_s13 = sphi %s2540_s13, %s3664_s13   ;;  %s2505_s12 = sphi %s2538_s12, %s3663_s12   ;;  %s2501_s11 = sphi %s2536_s11, %s3662_s11   ;;  %s2497_s10 = sphi %s2534_s10, %s3661_s10   ;;  %s2493_s9 = sphi %s2532_s9, %s3660_s9  }
   0x5   : > { %s27_s17 = sadd.s32 1, %s2509_s13  ;;  %s90_s18 = sadd.s32 1, %s2501_s11 }
   0x6   : > { %p29_p0 = scmp.ge.s32.totalorder %s27_s17, 4  ;;  %p100_p1 = scmp.ne.s32.totalorder %s2501_s11, %s2497_s10 }
   0x7   : > { %p101_p2 = scmp.eq.s32.totalorder %s1973_s15, 3  ;;  %p106_p3 = scmp.ne.s32.totalorder %s2497_s10, %s2493_s9 }
   0x8   : > { %s3666_s17 = smov (%p29_p0, %s27_s17), 0  ;;  %p107_p5 = scmp.eq.s32.totalorder %s1974_s16, 3 }
   0x9   : > { %p2572_p4 = por %p101_p2, %p100_p1  ;;  %s85_s20 = ssub.s32 %s2509_s13, %s3666_s17 }
   0xa   : > { %p1977_p6 = scmp.ge.s32.totalorder %s2513_s14, 1  ;;  %p88_p7 = scmp.eq.s32.totalorder %s85_s20, 0 }
   0xb   : > { %p2579_p8 = por %p107_p5, %p106_p3  ;;  %p146_p9 = scmp.lt.s32.totalorder %s2513_s14, 5 }
   0xc   : > { %s2585_s22 = scalar_select %p88_p7, %s2501_s11, %s90_s18  }
   0xd   : > { %p147_p10 = pnand %p1977_p6, %p146_p9 }
   0xe   : > { %p177_p11 = scmp.lt.s32.totalorder (!%p147_p10), %s2505_s12, 3  ;;  %s174_s3 = sand.u32 (!%p147_p10), 1, %s2497_s10  }
   0xf   : > { %150 = sbr.rel (%p147_p10) target bundleno = 606 (0x25e), region = 28  ;;  %s2643_s4 = sshll.u32 (!%p147_p10), %s174_s3, 9 }
  0x10   : > { %s2653_s5 = scalar_lea.vmem (!%p147_p10), [#allocation2], %s2643_s4  ;;  %s2118_s6 = sshll.u32 (!%p147_p10), %s2505_s12, 9 }
  0x11   : > { %s1879_s15 = sshll.u32 (!%p147_p10), %s2653_s5, 4  ;;  %s1865_s18 = scalar_lea.sflag (!%p147_p10), [#allocation3], %s174_s3  ;;  %s1880_s15 = int_to_ptr.vmem [resolvable:$true] %s1879_s15 }
  0x12   : > { %s2455_s26 = scalar_lea.hbm (!%p147_p10), %s3579_s2, 2048 }
  0x14   : > { %s178_s23 = scalar_select %p177_p11, %s2505_s12, 3  ;;  %vm261_vm0 = vcmask 64512  }
  0x15   : > { %s1878_s12 = scalar_lea.hbm %s3579_s2, %s2118_s6 }
  0x16   : > { %s2116_s24 = sshll.u32 %s178_s23, 4  ;;  %s1881_s16 = sshll.u32 %s1878_s12, 4  ;;  %s1882_s16 = int_to_ptr.hbm [resolvable:$true] %s1881_s16 }
  0x17   : > { %s181_s27 = scalar_lea.vmem %s3577_s0, %s2116_s24  ;;  %s190_s30 = scalar_lea.vmem %s3578_s1, %s2116_s24 }
  0x18   : > { %v194_v0 = vld [vmem:[%s181_s27 + $0x8] sm:$0xff]  ;;  %v195_v1 = vld [vmem:[%s190_s30] sm:$0xff]  ;;  %s2449_s20 = sshra.s32 %s1882_s16, 4  ;;  %s2450_s20 = int_to_ptr.hbm [resolvable:$true] %s2449_s20 }
  0x19   : > { %229 = vxpose.xlu0.b32.start.end [1/1] (short) %v194_v0, 128  ;;  %v196_v2 = vld [vmem:[%s190_s30 + $0x8] sm:$0xff]  ;;  %2119 = vmatpush.msra.mxu2 %v195_v1  ;;  %v193_v3 = vld [vmem:[%s181_s27] sm:$0xff]  ;;  %s2451_s23 = scalar_lea.hbm %s2450_s20, 512  ;;  %p2456_p1 = scmp.lt.s32.totalorder %s2450_s20, %s3579_s2 }
  0x1a   : > { %2120 = vmatpush.msra.mxu3 %v196_v2  ;;  %373 = vmatpush.msra.mxu0 %v195_v1  ;;  %p2452_p12 = scmp.ne.s32.totalorder %s2450_s20, %s2451_s23  ;;  %p2457_p2 = scmp.lt.s32.totalorder %s2455_s26, %s2451_s23 }
  0x1b   : > { %486 = vmatpush.msra.mxu1 %v196_v2 }
  0x1c   : > { %p2453_p13 = pnand %p2452_p12, %p2572_p4  ;;  %p2458_p3 = por %p2457_p2, %p2456_p1 }
  0x1e   : > { %p2454_p0 = pneg %p2453_p13 }
  0x20   : > { %p2459_p5 = pnand %p2458_p3, %p2454_p0 }
  0x99   : > { %197 = vxpose.xlu0.b32.start.end [1/1] (short) %v193_v3, 128 }
  0xbd   : > { %v245_v4 = vpop.trf.xlu0 }
  0xbe   : > { %1999 = vmatmul.msk.f32.vlgmr.msra.gmra.mxu2 %vm261_vm0, %v245_v4  ;;  %2031 = vmatmul.msk.f32.vlgmr.msra.gmra.mxu3 %vm261_vm0, %v245_v4 }
  0xc5   : > { %v246_v5 = vpop.trf.xlu0 }
  0xc6   : > { %2000 = vmatmul.msk.f32.gmra.mxu2 %vm261_vm0, %v246_v5  ;;  %2032 = vmatmul.msk.f32.gmra.mxu3 %vm261_vm0, %v246_v5 }
  0xcd   : > { %v247_v6 = vpop.trf.xlu0 }
  0xce   : > { %2001 = vmatmul.msk.f32.gmra.mxu2 %vm261_vm0, %v247_v6  ;;  %2033 = vmatmul.msk.f32.gmra.mxu3 %vm261_vm0, %v247_v6 }
  0xd5   : > { %v248_v7 = vpop.trf.xlu0 }
  0xd6   : > { %2002 = vmatmul.msk.f32.gmra.mxu2 %vm261_vm0, %v248_v7  ;;  %2034 = vmatmul.msk.f32.gmra.mxu3 %vm261_vm0, %v248_v7 }
  0xdd   : > { %v249_v8 = vpop.trf.xlu0 }
  0xde   : > { %2003 = vmatmul.msk.f32.gmra.mxu2 %vm261_vm0, %v249_v8  ;;  %2035 = vmatmul.msk.f32.gmra.mxu3 %vm261_vm0, %v249_v8 }
  0xe5   : > { %v250_v9 = vpop.trf.xlu0 }
  0xe6   : > { %2004 = vmatmul.msk.f32.gmra.mxu2 %vm261_vm0, %v250_v9  ;;  %2036 = vmatmul.msk.f32.gmra.mxu3 %vm261_vm0, %v250_v9 }
  0xed   : > { %v251_v10 = vpop.trf.xlu0 }
  0xee   : > { %2005 = vmatmul.msk.f32.gmra.mxu2 %vm261_vm0, %v251_v10  ;;  %2037 = vmatmul.msk.f32.gmra.mxu3 %vm261_vm0, %v251_v10 }
  0xf5   : > { %v252_v11 = vpop.trf.xlu0 }
  0xf6   : > { %2006 = vmatmul.msk.f32.gmra.mxu2 %vm261_vm0, %v252_v11  ;;  %2038 = vmatmul.msk.f32.gmra.mxu3 %vm261_vm0, %v252_v11 }
  0xfd   : > { %v253_v12 = vpop.trf.xlu0 }
  0xfe   : > { %2007 = vmatmul.msk.f32.gmra.mxu2 %vm261_vm0, %v253_v12  ;;  %2039 = vmatmul.msk.f32.gmra.mxu3 %vm261_vm0, %v253_v12 }
 0x105   : > { %v254_v13 = vpop.trf.xlu0 }
 0x106   : > { %2008 = vmatmul.msk.f32.gmra.mxu2 %vm261_vm0, %v254_v13  ;;  %2040 = vmatmul.msk.f32.gmra.mxu3 %vm261_vm0, %v254_v13 }
 0x10d   : > { %v255_v14 = vpop.trf.xlu0 }
 0x10e   : > { %2009 = vmatmul.msk.f32.gmra.mxu2 %vm261_vm0, %v255_v14  ;;  %2041 = vmatmul.msk.f32.gmra.mxu3 %vm261_vm0, %v255_v14 }
 0x115   : > { %v256_v15 = vpop.trf.xlu0 }
 0x116   : > { %2010 = vmatmul.msk.f32.gmra.mxu2 %vm261_vm0, %v256_v15  ;;  %2042 = vmatmul.msk.f32.gmra.mxu3 %vm261_vm0, %v256_v15 }
 0x11d   : > { %v257_v16 = vpop.trf.xlu0 }
 0x11e   : > { %2011 = vmatmul.msk.f32.gmra.mxu2 %vm261_vm0, %v257_v16  ;;  %2043 = vmatmul.msk.f32.gmra.mxu3 %vm261_vm0, %v257_v16 }
 0x125   : > { %v258_v17 = vpop.trf.xlu0 }
 0x126   : > { %2012 = vmatmul.msk.f32.gmra.mxu2 %vm261_vm0, %v258_v17  ;;  %2044 = vmatmul.msk.f32.gmra.mxu3 %vm261_vm0, %v258_v17 }
 0x12d   : > { %v259_v18 = vpop.trf.xlu0 }
 0x12e   : > { %2013 = vmatmul.msk.f32.gmra.mxu2 %vm261_vm0, %v259_v18  ;;  %2045 = vmatmul.msk.f32.gmra.mxu3 %vm261_vm0, %v259_v18 }
 0x135   : > { %v260_v19 = vpop.trf.xlu0 }
 0x136   : > { %2014 = vmatmul.msk.f32.gmra.mxu2 %vm261_vm0, %v260_v19  ;;  %2046 = vmatmul.msk.f32.gmra.mxu3 %vm261_vm0, %v260_v19 }
 0x13d   : > { %v213_v20 = vpop.trf.xlu0 }
 0x13e   : > { %1983 = vmatmul.msk.f32.vlgmr.msra.gmra.mxu0 %vm261_vm0, %v213_v20  ;;  %2015 = vmatmul.msk.f32.vlgmr.msra.gmra.mxu1 %vm261_vm0, %v213_v20 }
 0x141   : > { %v423_v21 = vpop.f32.mrf.mxu2  ;;  %v536_v22 = vpop.f32.mrf.mxu3 }
 0x142   : > { %v2079_v23 = vmul.f32 -1.442695, %v423_v21  ;;  %v2080_v24 = vmul.f32 -1.442695, %v536_v22 }
 0x144   : > { %2179 = vpow2.f32 %v2079_v23 }
 0x145   : > { %2181 = vpow2.f32 %v2080_v24  ;;  %v214_v25 = vpop.trf.xlu0 }
 0x146   : > { %1984 = vmatmul.msk.f32.gmra.mxu0 %vm261_vm0, %v214_v25  ;;  %2016 = vmatmul.msk.f32.gmra.mxu1 %vm261_vm0, %v214_v25 }
 0x149   : > { %v426_v26 = vpop.f32.mrf.mxu2  ;;  %v539_v27 = vpop.f32.mrf.mxu3 }
 0x14a   : > { %v2180_v28 = vpop.eup %2179  ;;  %v2081_v29 = vmul.f32 -1.442695, %v426_v26  ;;  %v2082_v32 = vmul.f32 -1.442695, %v539_v27 }
 0x14b   : > { %v2182_v30 = vpop.eup %2181  ;;  %v808_v31 = vadd.f32 1.0, %v2180_v28 }
 0x14c   : > { %v809_v33 = vadd.f32 1.0, %v2182_v30  ;;  %2183 = vpow2.f32 %v2081_v29 }
 0x14d   : > { %2185 = vrcp.f32 %v808_v31  ;;  %v215_v34 = vpop.trf.xlu0  ;;  %v1329_v48 = vand.u32 2147483647, %v808_v31  ;;  %v1331_v50 = vand.u32 2147483648, %v808_v31  ;;  %vm1325_vm2 = vweird.f32 %v808_v31 }
 0x14e   : > { %2187 = vrcp.f32 %v809_v33  ;;  %1985 = vmatmul.msk.f32.gmra.mxu0 %vm261_vm0, %v215_v34  ;;  %2017 = vmatmul.msk.f32.gmra.mxu1 %vm261_vm0, %v215_v34  ;;  %v1346_v53 = vand.u32 2147483648, %v809_v33  ;;  %v1344_v55 = vand.u32 2147483647, %v809_v33  ;;  %vm1340_vm5 = vweird.f32 %v809_v33 }
 0x14f   : > { %2189 = vpow2.f32 %v2082_v32  ;;  %vm1330_vm4 = vcmp.eq.f32.partialorder %v1329_v48, 8.507059e+37  ;;  %v1332_v62 = vor.u32 1.1754944e-38, %v1331_v50 }
 0x150   : > { %v1347_v3 = vor.u32 1.1754944e-38, %v1346_v53  ;;  %vm1345_vm8 = vcmp.eq.f32.partialorder %v1344_v55, 8.507059e+37 }
 0x151   : > { %v429_v35 = vpop.f32.mrf.mxu2  ;;  %v542_v36 = vpop.f32.mrf.mxu3 }
 0x152   : > { %v2184_v37 = vpop.eup %2183  ;;  %v2083_v38 = vmul.f32 -1.442695, %v429_v35  ;;  %v2084_v41 = vmul.f32 -1.442695, %v542_v36 }
 0x153   : > { %v2186_v39 = vpop.eup %2185  ;;  %v2633_v40 = vadd.f32 1.0, %v2184_v37 }
 0x154   : > { %v2188_v42 = vpop.eup %2187  ;;  %v1321_v43 = vmul.f32 %v2186_v39, %v808_v31  ;;  %2191 = vpow2.f32 %v2083_v38  ;;  %vm1326_vm1 = vweird.f32 %v2186_v39 }
 0x155   : > { %v2190_v44 = vpop.eup %2189  ;;  %v1336_v45 = vmul.f32 %v2188_v42, %v809_v33  ;;  %2193 = vrcp.f32 %v2633_v40  ;;  %v216_v46 = vpop.trf.xlu0  ;;  %vm1341_vm3 = vweird.f32 %v2188_v42  ;;  %vm1327_vm6 = vmor %vm1325_vm2, %vm1326_vm1  ;;  %v1361_v12 = vand.u32 2147483648, %v2633_v40 }
 0x156   : > { %v1322_v47 = vsub.f32 1.0, %v1321_v43  ;;  %v2637_v49 = vadd.f32 1.0, %v2190_v44  ;;  %1986 = vmatmul.msk.f32.gmra.mxu0 %vm261_vm0, %v216_v46  ;;  %2018 = vmatmul.msk.f32.gmra.mxu1 %vm261_vm0, %v216_v46  ;;  %2195 = vpow2.f32 %v2084_v41  ;;  %vm1342_vm7 = vmor %vm1340_vm5, %vm1341_vm3  ;;  %v1359_v16 = vand.u32 2147483647, %v2633_v40 }
 0x157   : > { %v1337_v51 = vsub.f32 1.0, %v1336_v45  ;;  %vm1355_vm10 = vweird.f32 %v2633_v40  ;;  %v1362_v22 = vor.u32 1.1754944e-38, %v1361_v12 }
 0x158   : > { %v1323_v52 = vmul.f32 %v2186_v39, %v1322_v47  ;;  %2197 = vrcp.f32 %v2637_v49  ;;  %v1374_v23 = vand.u32 2147483647, %v2637_v49  ;;  %v1376_v24 = vand.u32 2147483648, %v2637_v49 }
 0x159   : > { %v1338_v54 = vmul.f32 %v2188_v42, %v1337_v51  ;;  %v432_v56 = vpop.f32.mrf.mxu2  ;;  %v545_v57 = vpop.f32.mrf.mxu3  ;;  %vm1360_vm13 = vcmp.eq.f32.partialorder %v1359_v16, 8.507059e+37  ;;  %vm1370_vm14 = vweird.f32 %v2637_v49 }
 0x15a   : > { %v2192_v58 = vpop.eup %2191  ;;  %v1324_v59 = vadd.f32 %v2186_v39, %v1323_v52  ;;  %v2085_v60 = vmul.f32 -1.442695, %v432_v56  ;;  %v2086_v1 = vmul.f32 -1.442695, %v545_v57  ;;  %v1377_v36 = vor.u32 1.1754944e-38, %v1376_v24 }
 0x15b   : > { %v2194_v61 = vpop.eup %2193  ;;  %v1339_v63 = vadd.f32 %v2188_v42, %v1338_v54  ;;  %v2647_v0 = vadd.f32 1.0, %v2192_v58  ;;  %vm1375_vm1 = vcmp.eq.f32.partialorder %v1374_v23, 8.507059e+37 }
 0x15c   : > { %v1328_v2 = vsel %vm1327_vm6, %v2186_v39, %v1324_v59  ;;  %v1351_v4 = vmul.f32 %v2194_v61, %v2633_v40  ;;  %2199 = vpow2.f32 %v2085_v60  ;;  %v2196_v5 = vpop.eup %2195  ;;  %vm1356_vm9 = vweird.f32 %v2194_v61 }
 0x15d   : > { %v1333_v6 = vsel %vm1330_vm4, %v1332_v62, %v1328_v2  ;;  %v1343_v7 = vsel %vm1342_vm7, %v2188_v42, %v1339_v63  ;;  %2201 = vrcp.f32 %v2647_v0  ;;  %v217_v8 = vpop.trf.xlu0  ;;  %v2661_v14 = vadd.f32 1.0, %v2196_v5  ;;  %vm1357_vm11 = vmor %vm1355_vm10, %vm1356_vm9 }
 0x15e   : > { %v2198_v9 = vpop.eup %2197  ;;  %1832 = vst [vmem:[%s2653_s5 + $0x100] sm:$0xff] %v1333_v6  ;;  %v1348_v10 = vsel %vm1345_vm8, %v1347_v3, %v1343_v7  ;;  %v1352_v11 = vsub.f32 1.0, %v1351_v4  ;;  %1987 = vmatmul.msk.f32.gmra.mxu0 %vm261_vm0, %v217_v8  ;;  %2019 = vmatmul.msk.f32.gmra.mxu1 %vm261_vm0, %v217_v8  ;;  %2203 = vpow2.f32 %v2086_v1  ;;  %v1389_v34 = vand.u32 2147483647, %v2647_v0 }
 0x15f   : > { %1833 = vst [vmem:[%s2653_s5 + $0x108] sm:$0xff] %v1348_v10  ;;  %v1366_v13 = vmul.f32 %v2198_v9, %v2637_v49  ;;  %2205 = vrcp.f32 %v2661_v14  ;;  %vm1371_vm12 = vweird.f32 %v2198_v9  ;;  %v1391_v38 = vand.u32 2147483648, %v2647_v0 }
 0x160   : > { %v1353_v15 = vmul.f32 %v2194_v61, %v1352_v11  ;;  %vm1372_vm15 = vmor %vm1370_vm14, %vm1371_vm12  ;;  %vm1385_vm3 = vweird.f32 %v2647_v0  ;;  %vm2683_vm4 = vcmp.eq.f32.partialorder %v1389_v34, 8.507059e+37  ;;  %v1404_v52 = vand.u32 2147483647, %v2661_v14 }
 0x161   : > { %v1367_v17 = vsub.f32 1.0, %v1366_v13  ;;  %v435_v18 = vpop.f32.mrf.mxu2  ;;  %v548_v19 = vpop.f32.mrf.mxu3  ;;  %v1392_v50 = vor.u32 1.1754944e-38, %v1391_v38  ;;  %v1406_v54 = vand.u32 2147483648, %v2661_v14  ;;  %vm1400_vm7 = vweird.f32 %v2661_v14 }
 0x162   : > { %v2200_v20 = vpop.eup %2199  ;;  %v1354_v21 = vadd.f32 %v2194_v61, %v1353_v15  ;;  %v2087_v28 = vmul.f32 -1.442695, %v435_v18  ;;  %v2088_v42 = vmul.f32 -1.442695, %v548_v19  ;;  %vm1405_vm9 = vcmp.eq.f32.partialorder %v1404_v52, 8.507059e+37 }
 0x163   : > { %v2202_v25 = vpop.eup %2201  ;;  %v1368_v26 = vmul.f32 %v2198_v9, %v1367_v17  ;;  %v2668_v27 = vadd.f32 1.0, %v2200_v20  ;;  %v1407_v4 = vor.u32 1.1754944e-38, %v1406_v54 }
 0x164   : > { %v1358_v29 = vsel %vm1357_vm11, %v2194_v61, %v1354_v21  ;;  %v1381_v30 = vmul.f32 %v2202_v25, %v2647_v0  ;;  %v2204_v31 = vpop.eup %2203  ;;  %vm1386_vm2 = vweird.f32 %v2202_v25 }
 0x165   : > { %v1363_v32 = vsel %vm1360_vm13, %v1362_v22, %v1358_v29  ;;  %v1369_v33 = vadd.f32 %v2198_v9, %v1368_v26  ;;  %2207 = vrcp.f32 %v2668_v27  ;;  %v218_v35 = vpop.trf.xlu0  ;;  %v2676_v39 = vadd.f32 1.0, %v2204_v31  ;;  %v2206_v40 = vpop.eup %2205  ;;  %vm1387_vm5 = vmor %vm1385_vm3, %vm1386_vm2 }
 0x166   : > { %1834 = vst [vmem:[%s2653_s5 + $0x110] sm:$0xff] %v1363_v32  ;;  %v1382_v37 = vsub.f32 1.0, %v1381_v30  ;;  %1988 = vmatmul.msk.f32.gmra.mxu0 %vm261_vm0, %v218_v35  ;;  %2020 = vmatmul.msk.f32.gmra.mxu1 %vm261_vm0, %v218_v35  ;;  %2209 = vpow2.f32 %v2087_v28  ;;  %v1396_v45 = vmul.f32 %v2206_v40, %v2661_v14  ;;  %vm1401_vm6 = vweird.f32 %v2206_v40 }
 0x167   : > { %v1373_v41 = vsel %vm1372_vm15, %v2198_v9, %v1369_v33  ;;  %2211 = vrcp.f32 %v2676_v39  ;;  %v1419_v62 = vand.u32 2147483647, %v2668_v27  ;;  %vm1402_vm8 = vmor %vm1400_vm7, %vm1401_vm6  ;;  %v1421_v5 = vand.u32 2147483648, %v2668_v27 }
 0x168   : > { %v1378_v43 = vsel %vm1375_vm1, %v1377_v36, %v1373_v41  ;;  %v1383_v44 = vmul.f32 %v2202_v25, %v1382_v37  ;;  %v1397_v51 = vsub.f32 1.0, %v1396_v45  ;;  %2213 = vpow2.f32 %v2088_v42 }
 0x169   : > { %1835 = vst [vmem:[%s2653_s5 + $0x118] sm:$0xff] %v1378_v43  ;;  %v438_v47 = vpop.f32.mrf.mxu2  ;;  %v551_v48 = vpop.f32.mrf.mxu3  ;;  %vm1415_vm11 = vweird.f32 %v2668_v27  ;;  %vm2704_vm12 = vcmp.eq.f32.partialorder %v1419_v62, 8.507059e+37  ;;  %v1434_v16 = vand.u32 2147483647, %v2676_v39  ;;  %v1422_v19 = vor.u32 1.1754944e-38, %v1421_v5 }
 0x16a   : > { %v1384_v49 = vadd.f32 %v2202_v25, %v1383_v44  ;;  %v2089_v55 = vmul.f32 -1.442695, %v438_v47  ;;  %v2090_v56 = vmul.f32 -1.442695, %v551_v48  ;;  %v1398_v58 = vmul.f32 %v2206_v40, %v1397_v51 }
 0x16b   : > { %v2208_v53 = vpop.eup %2207  ;;  %v1436_v20 = vand.u32 2147483648, %v2676_v39  ;;  %vm1430_vm15 = vweird.f32 %v2676_v39  ;;  %vm1435_vm2 = vcmp.eq.f32.partialorder %v1434_v16, 8.507059e+37 }
 0x16c   : > { %v1388_v57 = vsel %vm1387_vm5, %v2202_v25, %v1384_v49  ;;  %v1411_v59 = vmul.f32 %v2208_v53, %v2668_v27  ;;  %v2210_v60 = vpop.eup %2209  ;;  %2215 = vpow2.f32 %v2089_v55  ;;  %v1399_v0 = vadd.f32 %v2206_v40, %v1398_v58 }
 0x16d   : > { %v1393_v61 = vsel %vm2683_vm4, %v1392_v50, %v1388_v57  ;;  %v219_v63 = vpop.trf.xlu0  ;;  %v2696_v2 = vadd.f32 1.0, %v2210_v60  ;;  %2217 = vpow2.f32 %v2090_v56  ;;  %v2212_v3 = vpop.eup %2211  ;;  %vm1416_vm10 = vweird.f32 %v2208_v53 }
 0x16e   : > { %1836 = vst [vmem:[%s2653_s5 + $0x120] sm:$0xff] %v1393_v61  ;;  %v1412_v1 = vsub.f32 1.0, %v1411_v59  ;;  %1989 = vmatmul.msk.f32.gmra.mxu0 %vm261_vm0, %v219_v63  ;;  %2021 = vmatmul.msk.f32.gmra.mxu1 %vm261_vm0, %v219_v63  ;;  %v1403_v6 = vsel %vm1402_vm8, %v2206_v40, %v1399_v0  ;;  %v1426_v8 = vmul.f32 %v2212_v3, %v2676_v39  ;;  %v2214_v9 = vpop.eup %2213  ;;  %vm1417_vm13 = vmor %vm1415_vm11, %vm1416_vm10  ;;  %vm1431_vm14 = vweird.f32 %v2212_v3 }
 0x16f   : > { %v1408_v10 = vsel %vm1405_vm9, %v1407_v4, %v1403_v6  ;;  %2219 = vrcp.f32 %v2696_v2  ;;  %v2711_v17 = vadd.f32 1.0, %v2214_v9  ;;  %vm1432_vm1 = vmor %vm1430_vm15, %vm1431_vm14  ;;  %v1437_v32 = vor.u32 1.1754944e-38, %v1436_v20 }
 0x170   : > { %v1413_v7 = vmul.f32 %v2208_v53, %v1412_v1  ;;  %1837 = vst [vmem:[%s2653_s5 + $0x128] sm:$0xff] %v1408_v10  ;;  %v1427_v15 = vsub.f32 1.0, %v1426_v8  ;;  %v1449_v33 = vand.u32 2147483647, %v2696_v2  ;;  %v1451_v37 = vand.u32 2147483648, %v2696_v2 }
 0x171   : > { %v441_v12 = vpop.f32.mrf.mxu2  ;;  %v554_v13 = vpop.f32.mrf.mxu3  ;;  %2221 = vrcp.f32 %v2711_v17  ;;  %v1464_v42 = vand.u32 2147483647, %v2711_v17  ;;  %vm1445_vm3 = vweird.f32 %v2696_v2  ;;  %v1466_v47 = vand.u32 2147483648, %v2711_v17 }
 0x172   : > { %v1414_v14 = vadd.f32 %v2208_v53, %v1413_v7  ;;  %v2216_v18 = vpop.eup %2215  ;;  %v2091_v21 = vmul.f32 -1.442695, %v441_v12  ;;  %v2092_v22 = vmul.f32 -1.442695, %v554_v13  ;;  %v1428_v25 = vmul.f32 %v2212_v3, %v1427_v15 }
 0x173   : > { %v2218_v23 = vpop.eup %2217  ;;  %v2720_v29 = vadd.f32 1.0, %v2216_v18  ;;  %vm2734_vm4 = vcmp.eq.f32.partialorder %v1449_v33, 8.507059e+37  ;;  %v1452_v50 = vor.u32 1.1754944e-38, %v1451_v37  ;;  %vm1460_vm6 = vweird.f32 %v2711_v17 }
 0x174   : > { %v1418_v24 = vsel %vm1417_vm13, %v2208_v53, %v1414_v14  ;;  %v1429_v28 = vadd.f32 %v2212_v3, %v1428_v25  ;;  %v2722_v30 = vadd.f32 1.0, %v2218_v23  ;;  %2223 = vpow2.f32 %v2091_v21 }
 0x175   : > { %v1423_v26 = vsel %vm2704_vm12, %v1422_v19, %v1418_v24  ;;  %v220_v27 = vpop.trf.xlu0  ;;  %v2220_v31 = vpop.eup %2219  ;;  %2225 = vpow2.f32 %v2092_v22  ;;  %vm2743_vm7 = vcmp.eq.f32.partialorder %v1464_v42, 8.507059e+37  ;;  %v1467_v62 = vor.u32 1.1754944e-38, %v1466_v47 }
 0x176   : > { %1838 = vst [vmem:[%s2653_s5 + $0x130] sm:$0xff] %v1423_v26  ;;  %1990 = vmatmul.msk.f32.gmra.mxu0 %vm261_vm0, %v220_v27  ;;  %2022 = vmatmul.msk.f32.gmra.mxu1 %vm261_vm0, %v220_v27  ;;  %v1433_v34 = vsel %vm1432_vm1, %v2212_v3, %v1429_v28  ;;  %v1441_v35 = vmul.f32 %v2220_v31, %v2696_v2  ;;  %2227 = vrcp.f32 %v2720_v29  ;;  %vm1446_vm5 = vweird.f32 %v2220_v31 }
 0x177   : > { %v1438_v36 = vsel %vm1435_vm2, %v1437_v32, %v1433_v34  ;;  %v2222_v40 = vpop.eup %2221  ;;  %2229 = vrcp.f32 %v2722_v30  ;;  %vm1447_vm8 = vmor %vm1445_vm3, %vm1446_vm5  ;;  %vm1475_vm10 = vweird.f32 %v2720_v29  ;;  %v1479_v6 = vand.u32 2147483647, %v2720_v29 }
 0x178   : > { %1839 = vst [vmem:[%s2653_s5 + $0x138] sm:$0xff] %v1438_v36  ;;  %v1442_v41 = vsub.f32 1.0, %v1441_v35  ;;  %v1456_v44 = vmul.f32 %v2222_v40, %v2711_v17  ;;  %vm1461_vm9 = vweird.f32 %v2222_v40  ;;  %v1481_v7 = vand.u32 2147483648, %v2720_v29 }
 0x179   : > { %v444_v38 = vpop.f32.mrf.mxu2  ;;  %v557_v39 = vpop.f32.mrf.mxu3  ;;  %vm1462_vm11 = vmor %vm1460_vm6, %vm1461_vm9  ;;  %v1494_v8 = vand.u32 2147483647, %v2722_v30  ;;  %v1496_v14 = vand.u32 2147483648, %v2722_v30  ;;  %vm1480_vm15 = vcmp.eq.f32.partialorder %v1479_v6, 8.507059e+37  ;;  %vm1490_vm1 = vweird.f32 %v2722_v30 }
 0x17a   : > { %v2224_v45 = vpop.eup %2223  ;;  %v1443_v46 = vmul.f32 %v2220_v31, %v1442_v41  ;;  %v2093_v48 = vmul.f32 -1.442695, %v444_v38  ;;  %v1457_v51 = vsub.f32 1.0, %v1456_v44  ;;  %v2094_v63 = vmul.f32 -1.442695, %v557_v39 }
 0x17b   : > { %v2226_v49 = vpop.eup %2225  ;;  %v2741_v52 = vadd.f32 1.0, %v2224_v45  ;;  %v1482_v21 = vor.u32 1.1754944e-38, %v1481_v7  ;;  %vm2780_vm2 = vcmp.eq.f32.partialorder %v1494_v8, 8.507059e+37  ;;  %v1497_v28 = vor.u32 1.1754944e-38, %v1496_v14 }
 0x17c   : > { %v2228_v54 = vpop.eup %2227  ;;  %v1444_v55 = vadd.f32 %v2220_v31, %v1443_v46  ;;  %v2747_v57 = vadd.f32 1.0, %v2226_v49  ;;  %2231 = vpow2.f32 %v2093_v48  ;;  %v1458_v58 = vmul.f32 %v2222_v40, %v1457_v51 }
 0x17d   : > { %v221_v53 = vpop.trf.xlu0  ;;  %v1471_v59 = vmul.f32 %v2228_v54, %v2720_v29  ;;  %2233 = vrcp.f32 %v2741_v52  ;;  %v2230_v60 = vpop.eup %2229  ;;  %vm1476_vm12 = vweird.f32 %v2228_v54  ;;  %v1509_v32 = vand.u32 2147483647, %v2741_v52 }
 0x17e   : > { %1991 = vmatmul.msk.f32.gmra.mxu0 %vm261_vm0, %v221_v53  ;;  %2023 = vmatmul.msk.f32.gmra.mxu1 %vm261_vm0, %v221_v53  ;;  %v1448_v61 = vsel %vm1447_vm8, %v2220_v31, %v1444_v55  ;;  %v1459_v1 = vadd.f32 %v2222_v40, %v1458_v58  ;;  %v1486_v2 = vmul.f32 %v2230_v60, %v2722_v30  ;;  %2235 = vrcp.f32 %v2747_v57  ;;  %vm1477_vm14 = vmor %vm1475_vm10, %vm1476_vm12 }
 0x17f   : > { %v1453_v0 = vsel %vm2734_vm4, %v1452_v50, %v1448_v61  ;;  %v1472_v3 = vsub.f32 1.0, %v1471_v59  ;;  %vm1491_vm13 = vweird.f32 %v2230_v60  ;;  %2237 = vpow2.f32 %v2094_v63 }
 0x180   : > { %1840 = vst [vmem:[%s2653_s5 + $0x140] sm:$0xff] %v1453_v0  ;;  %v1463_v9 = vsel %vm1462_vm11, %v2222_v40, %v1459_v1  ;;  %v1487_v11 = vsub.f32 1.0, %v1486_v2  ;;  %vm1492_vm3 = vmor %vm1490_vm1, %vm1491_vm13  ;;  %v1511_v30 = vand.u32 2147483648, %v2741_v52  ;;  %v1524_v39 = vand.u32 2147483647, %v2747_v57 }
 0x181   : > { %v447_v4 = vpop.f32.mrf.mxu2  ;;  %v560_v5 = vpop.f32.mrf.mxu3  ;;  %v1473_v10 = vmul.f32 %v2228_v54, %v1472_v3  ;;  %v1468_v13 = vsel %vm2743_vm7, %v1467_v62, %v1463_v9  ;;  %vm1505_vm5 = vweird.f32 %v2741_v52  ;;  %v1526_v45 = vand.u32 2147483648, %v2747_v57 }
 0x182   : > { %v2232_v12 = vpop.eup %2231  ;;  %1841 = vst [vmem:[%s2653_s5 + $0x148] sm:$0xff] %v1468_v13  ;;  %v1488_v17 = vmul.f32 %v2230_v60, %v1487_v11  ;;  %v2095_v19 = vmul.f32 -1.442695, %v447_v4  ;;  %v2096_v42 = vmul.f32 -1.442695, %v560_v5  ;;  %v1512_v44 = vor.u32 1.1754944e-38, %v1511_v30 }
 0x183   : > { %v2234_v15 = vpop.eup %2233  ;;  %v1474_v16 = vadd.f32 %v2228_v54, %v1473_v10  ;;  %v2772_v18 = vadd.f32 1.0, %v2232_v12  ;;  %vm1510_vm8 = vcmp.eq.f32.partialorder %v1509_v32, 8.507059e+37  ;;  %vm1520_vm9 = vweird.f32 %v2747_v57 }
 0x184   : > { %v1501_v22 = vmul.f32 %v2234_v15, %v2741_v52  ;;  %v1489_v24 = vadd.f32 %v2230_v60, %v1488_v17  ;;  %v2236_v26 = vpop.eup %2235  ;;  %vm1506_vm4 = vweird.f32 %v2234_v15  ;;  %vm1525_vm10 = vcmp.eq.f32.partialorder %v1524_v39, 8.507059e+37 }
 0x185   : > { %v222_v20 = vpop.trf.xlu0  ;;  %v1478_v23 = vsel %vm1477_vm14, %v2228_v54, %v1474_v16  ;;  %2239 = vrcp.f32 %v2772_v18  ;;  %v1516_v33 = vmul.f32 %v2236_v26, %v2747_v57  ;;  %v2238_v36 = vpop.eup %2237  ;;  %vm1507_vm6 = vmor %vm1505_vm5, %vm1506_vm4  ;;  %vm1521_vm7 = vweird.f32 %v2236_v26 }
 0x186   : > { %1992 = vmatmul.msk.f32.gmra.mxu0 %vm261_vm0, %v222_v20  ;;  %2024 = vmatmul.msk.f32.gmra.mxu1 %vm261_vm0, %v222_v20  ;;  %v1483_v27 = vsel %vm1480_vm15, %v1482_v21, %v1478_v23  ;;  %v1502_v29 = vsub.f32 1.0, %v1501_v22  ;;  %v1493_v31 = vsel %vm1492_vm3, %v2230_v60, %v1489_v24  ;;  %2241 = vpow2.f32 %v2095_v19  ;;  %vm1522_vm11 = vmor %vm1520_vm9, %vm1521_vm7 }
 0x187   : > { %1842 = vst [vmem:[%s2653_s5 + $0x150] sm:$0xff] %v1483_v27  ;;  %v1498_v37 = vsel %vm2780_vm2, %v1497_v28, %v1493_v31  ;;  %v1517_v40 = vsub.f32 1.0, %v1516_v33  ;;  %v2795_v41 = vadd.f32 1.0, %v2238_v36  ;;  %v1527_v56 = vor.u32 1.1754944e-38, %v1526_v45 }
 0x188   : > { %v1503_v38 = vmul.f32 %v2234_v15, %v1502_v29  ;;  %1843 = vst [vmem:[%s2653_s5 + $0x158] sm:$0xff] %v1498_v37  ;;  %v1539_v60 = vand.u32 2147483647, %v2772_v18  ;;  %v1541_v61 = vand.u32 2147483648, %v2772_v18  ;;  %vm1535_vm13 = vweird.f32 %v2772_v18 }
 0x189   : > { %v450_v34 = vpop.f32.mrf.mxu2  ;;  %v563_v35 = vpop.f32.mrf.mxu3  ;;  %v1518_v48 = vmul.f32 %v2236_v26, %v1517_v40  ;;  %2243 = vrcp.f32 %v2795_v41  ;;  %v1554_v9 = vand.u32 2147483647, %v2795_v41  ;;  %v1556_v14 = vand.u32 2147483648, %v2795_v41 }
 0x18a   : > { %v1504_v43 = vadd.f32 %v2234_v15, %v1503_v38  ;;  %v2097_v46 = vmul.f32 -1.442695, %v450_v34  ;;  %v2098_v49 = vmul.f32 -1.442695, %v563_v35  ;;  %2245 = vpow2.f32 %v2096_v42 }
 0x18b   : > { %v2240_v47 = vpop.eup %2239  ;;  %v1519_v55 = vadd.f32 %v2236_v26, %v1518_v48  ;;  %vm1540_vm15 = vcmp.eq.f32.partialorder %v1539_v60, 8.507059e+37  ;;  %v1542_v8 = vor.u32 1.1754944e-38, %v1541_v61  ;;  %vm1550_vm2 = vweird.f32 %v2795_v41 }
 0x18c   : > { %v1508_v51 = vsel %vm1507_vm6, %v2234_v15, %v1504_v43  ;;  %v1531_v52 = vmul.f32 %v2240_v47, %v2772_v18  ;;  %v2242_v53 = vpop.eup %2241  ;;  %2247 = vpow2.f32 %v2097_v46  ;;  %vm1536_vm12 = vweird.f32 %v2240_v47 }
 0x18d   : > { %v223_v50 = vpop.trf.xlu0  ;;  %v1513_v54 = vsel %vm1510_vm8, %v1512_v44, %v1508_v51  ;;  %v2805_v59 = vadd.f32 1.0, %v2242_v53  ;;  %v1523_v57 = vsel %vm1522_vm11, %v2236_v26, %v1519_v55  ;;  %2249 = vpow2.f32 %v2098_v49  ;;  %vm1537_vm14 = vmor %vm1535_vm13, %vm1536_vm12 }
 0x18e   : > { %1993 = vmatmul.msk.f32.gmra.mxu0 %vm261_vm0, %v223_v50  ;;  %2025 = vmatmul.msk.f32.gmra.mxu1 %vm261_vm0, %v223_v50  ;;  %1844 = vst [vmem:[%s2653_s5 + $0x160] sm:$0xff] %v1513_v54  ;;  %v1532_v58 = vsub.f32 1.0, %v1531_v52  ;;  %v1528_v0 = vsel %vm1525_vm10, %v1527_v56, %v1523_v57  ;;  %vm2824_vm3 = vcmp.eq.f32.partialorder %v1554_v9, 8.507059e+37  ;;  %v1557_v26 = vor.u32 1.1754944e-38, %v1556_v14 }
 0x18f   : > { %2251 = vrcp.f32 %v2805_v59  ;;  %v2244_v3 = vpop.eup %2243  ;;  %1845 = vst [vmem:[%s2653_s5 + $0x168] sm:$0xff] %v1528_v0  ;;  %v1569_v27 = vand.u32 2147483647, %v2805_v59  ;;  %v1571_v28 = vand.u32 2147483648, %v2805_v59  ;;  %vm1565_vm6 = vweird.f32 %v2805_v59 }
 0x190   : > { %v1533_v1 = vmul.f32 %v2240_v47, %v1532_v58  ;;  %v1546_v5 = vmul.f32 %v2244_v3, %v2795_v41  ;;  %v2246_v7 = vpop.eup %2245  ;;  %vm1551_vm1 = vweird.f32 %v2244_v3 }
 0x191   : > { %v453_v62 = vpop.f32.mrf.mxu2  ;;  %v566_v63 = vpop.f32.mrf.mxu3  ;;  %v2815_v15 = vadd.f32 1.0, %v2246_v7  ;;  %vm1552_vm4 = vmor %vm1550_vm2, %vm1551_vm1  ;;  %vm2845_vm7 = vcmp.eq.f32.partialorder %v1569_v27, 8.507059e+37 }
 0x192   : > { %v2099_v2 = vmul.f32 -1.442695, %v453_v62  ;;  %v1534_v4 = vadd.f32 %v2240_v47, %v1533_v1  ;;  %v2100_v6 = vmul.f32 -1.442695, %v566_v63  ;;  %v2248_v11 = vpop.eup %2247  ;;  %v1547_v13 = vsub.f32 1.0, %v1546_v5 }
 0x193   : > { %v2250_v16 = vpop.eup %2249  ;;  %v2819_v18 = vadd.f32 1.0, %v2248_v11  ;;  %v1584_v31 = vand.u32 2147483647, %v2815_v15  ;;  %v1586_v34 = vand.u32 2147483648, %v2815_v15  ;;  %vm1580_vm8 = vweird.f32 %v2815_v15 }
 0x194   : > { %2253 = vpow2.f32 %v2099_v2  ;;  %v1538_v12 = vsel %vm1537_vm14, %v2240_v47, %v1534_v4  ;;  %v1548_v20 = vmul.f32 %v2244_v3, %v1547_v13  ;;  %v2833_v32 = vadd.f32 1.0, %v2250_v16 }
 0x195   : > { %v224_v10 = vpop.trf.xlu0  ;;  %v1543_v17 = vsel %vm1540_vm15, %v1542_v8, %v1538_v12  ;;  %2255 = vpow2.f32 %v2100_v6  ;;  %v2252_v19 = vpop.eup %2251  ;;  %v1599_v35 = vand.u32 2147483647, %v2819_v18  ;;  %v1601_v40 = vand.u32 2147483648, %v2819_v18 }
 0x196   : > { %1994 = vmatmul.msk.f32.gmra.mxu0 %vm261_vm0, %v224_v10  ;;  %2026 = vmatmul.msk.f32.gmra.mxu1 %vm261_vm0, %v224_v10  ;;  %1846 = vst [vmem:[%s2653_s5 + $0x170] sm:$0xff] %v1543_v17  ;;  %2257 = vrcp.f32 %v2815_v15  ;;  %v1561_v22 = vmul.f32 %v2252_v19, %v2805_v59  ;;  %v1549_v25 = vadd.f32 %v2244_v3, %v1548_v20  ;;  %vm1566_vm5 = vweird.f32 %v2252_v19 }
 0x197   : > { %2259 = vrcp.f32 %v2819_v18  ;;  %v1572_v47 = vor.u32 1.1754944e-38, %v1571_v28  ;;  %vm1567_vm9 = vmor %vm1565_vm6, %vm1566_vm5  ;;  %vm2855_vm10 = vcmp.eq.f32.partialorder %v1584_v31, 8.507059e+37  ;;  %v1587_v50 = vor.u32 1.1754944e-38, %v1586_v34 }
 0x198   : > { %v1562_v30 = vsub.f32 1.0, %v1561_v22  ;;  %v1553_v33 = vsel %vm1552_vm4, %v2244_v3, %v1549_v25  ;;  %2261 = vrcp.f32 %v2833_v32  ;;  %vm1595_vm11 = vweird.f32 %v2819_v18 }
 0x199   : > { %v456_v23 = vpop.f32.mrf.mxu2  ;;  %v569_v24 = vpop.f32.mrf.mxu3  ;;  %v1558_v38 = vsel %vm2824_vm3, %v1557_v26, %v1553_v33  ;;  %vm2861_vm12 = vcmp.eq.f32.partialorder %v1599_v35, 8.507059e+37  ;;  %v1602_v55 = vor.u32 1.1754944e-38, %v1601_v40  ;;  %vm1610_vm13 = vweird.f32 %v2833_v32 }
 0x19a   : > { %v2254_v29 = vpop.eup %2253  ;;  %v1563_v39 = vmul.f32 %v2252_v19, %v1562_v30  ;;  %1847 = vst [vmem:[%s2653_s5 + $0x178] sm:$0xff] %v1558_v38  ;;  %v2101_v44 = vmul.f32 -1.442695, %v456_v23  ;;  %v1614_v63 = vand.u32 2147483647, %v2833_v32  ;;  %v1616_v5 = vand.u32 2147483648, %v2833_v32 }
 0x19b   : > { %v2837_v36 = vadd.f32 1.0, %v2254_v29  ;;  %v2256_v37 = vpop.eup %2255  ;;  %v2102_v0 = vmul.f32 -1.442695, %v569_v24 }
 0x19c   : > { %v2258_v42 = vpop.eup %2257  ;;  %v1564_v46 = vadd.f32 %v2252_v19, %v1563_v39  ;;  %v2868_v60 = vadd.f32 1.0, %v2256_v37  ;;  %v1617_v25 = vor.u32 1.1754944e-38, %v1616_v5 }
 0x19d   : > { %v225_v41 = vpop.trf.xlu0  ;;  %2263 = vrcp.f32 %v2837_v36  ;;  %v2260_v45 = vpop.eup %2259  ;;  %v1576_v48 = vmul.f32 %v2258_v42, %v2815_v15  ;;  %vm1581_vm14 = vweird.f32 %v2258_v42  ;;  %vm1625_vm1 = vweird.f32 %v2837_v36 }
 0x19e   : > { %1995 = vmatmul.msk.f32.gmra.mxu0 %vm261_vm0, %v225_v41  ;;  %2027 = vmatmul.msk.f32.gmra.mxu1 %vm261_vm0, %v225_v41  ;;  %v1591_v51 = vmul.f32 %v2260_v45, %v2819_v18  ;;  %v1568_v52 = vsel %vm1567_vm9, %v2252_v19, %v1564_v46  ;;  %2265 = vpow2.f32 %v2101_v44  ;;  %v2262_v61 = vpop.eup %2261  ;;  %vm1596_vm15 = vweird.f32 %v2260_v45  ;;  %vm1582_vm2 = vmor %vm1580_vm8, %vm1581_vm14 }
 0x19f   : > { %v1577_v53 = vsub.f32 1.0, %v1576_v48  ;;  %v1573_v59 = vsel %vm2845_vm7, %v1572_v47, %v1568_v52  ;;  %v1606_v2 = vmul.f32 %v2262_v61, %v2833_v32  ;;  %2267 = vrcp.f32 %v2868_v60  ;;  %vm1597_vm3 = vmor %vm1595_vm11, %vm1596_vm15 }
 0x1a0   : > { %v1592_v57 = vsub.f32 1.0, %v1591_v51  ;;  %1848 = vst [vmem:[%s2653_s5 + $0x180] sm:$0xff] %v1573_v59  ;;  %v1629_v10 = vand.u32 2147483647, %v2837_v36  ;;  %v1631_v11 = vand.u32 2147483648, %v2837_v36  ;;  %2269 = vpow2.f32 %v2102_v0 }
 0x1a1   : > { %v459_v56 = vpop.f32.mrf.mxu2  ;;  %v572_v58 = vpop.f32.mrf.mxu3  ;;  %v1578_v62 = vmul.f32 %v2258_v42, %v1577_v53  ;;  %v1607_v9 = vsub.f32 1.0, %v1606_v2  ;;  %vm1611_vm4 = vweird.f32 %v2262_v61  ;;  %vm1615_vm7 = vcmp.eq.f32.partialorder %v1614_v63, 8.507059e+37 }
 0x1a2   : > { %v1593_v3 = vmul.f32 %v2260_v45, %v1592_v57  ;;  %v2103_v14 = vmul.f32 -1.442695, %v459_v56  ;;  %v2104_v26 = vmul.f32 -1.442695, %v572_v58  ;;  %vm1612_vm6 = vmor %vm1610_vm13, %vm1611_vm4  ;;  %vm1630_vm9 = vcmp.eq.f32.partialorder %v1629_v10, 8.507059e+37 }
 0x1a3   : > { %v2264_v1 = vpop.eup %2263  ;;  %v1579_v4 = vadd.f32 %v2258_v42, %v1578_v62  ;;  %v1608_v19 = vmul.f32 %v2262_v61, %v1607_v9  ;;  %v1632_v33 = vor.u32 1.1754944e-38, %v1631_v11  ;;  %v1644_v40 = vand.u32 2147483647, %v2868_v60 }
 0x1a4   : > { %v1621_v6 = vmul.f32 %v2264_v1, %v2837_v36  ;;  %v1594_v8 = vadd.f32 %v2260_v45, %v1593_v3  ;;  %v2266_v15 = vpop.eup %2265  ;;  %vm1626_vm5 = vweird.f32 %v2264_v1  ;;  %2271 = vpow2.f32 %v2103_v14 }
 0x1a5   : > { %v226_v7 = vpop.trf.xlu0  ;;  %v1583_v12 = vsel %vm1582_vm2, %v2258_v42, %v1579_v4  ;;  %v2891_v22 = vadd.f32 1.0, %v2266_v15  ;;  %v2268_v23 = vpop.eup %2267  ;;  %v1609_v24 = vadd.f32 %v2262_v61, %v1608_v19  ;;  %vm1627_vm8 = vmor %vm1625_vm1, %vm1626_vm5  ;;  %v1646_v41 = vand.u32 2147483648, %v2868_v60 }
 0x1a6   : > { %1996 = vmatmul.msk.f32.gmra.mxu0 %vm261_vm0, %v226_v7  ;;  %2028 = vmatmul.msk.f32.gmra.mxu1 %vm261_vm0, %v226_v7  ;;  %v1622_v13 = vsub.f32 1.0, %v1621_v6  ;;  %v1588_v16 = vsel %vm2855_vm10, %v1587_v50, %v1583_v12  ;;  %v1598_v17 = vsel %vm1597_vm3, %v2260_v45, %v1594_v8  ;;  %v1636_v29 = vmul.f32 %v2268_v23, %v2868_v60  ;;  %v2270_v34 = vpop.eup %2269 }
 0x1a7   : > { %1849 = vst [vmem:[%s2653_s5 + $0x188] sm:$0xff] %v1588_v16  ;;  %v1603_v20 = vsel %vm2861_vm12, %v1602_v55, %v1598_v17  ;;  %2273 = vrcp.f32 %v2891_v22  ;;  %v1613_v31 = vsel %vm1612_vm6, %v2262_v61, %v1609_v24  ;;  %v2904_v42 = vadd.f32 1.0, %v2270_v34 }
 0x1a8   : > { %v1623_v21 = vmul.f32 %v2264_v1, %v1622_v13  ;;  %1850 = vst [vmem:[%s2653_s5 + $0x190] sm:$0xff] %v1603_v20  ;;  %v1618_v35 = vsel %vm1615_vm7, %v1617_v25, %v1613_v31  ;;  %v1637_v37 = vsub.f32 1.0, %v1636_v29  ;;  %2275 = vpow2.f32 %v2104_v26 }
 0x1a9   : > { %v462_v18 = vpop.f32.mrf.mxu2  ;;  %v575_v27 = vpop.f32.mrf.mxu3  ;;  %1851 = vst [vmem:[%s2653_s5 + $0x198] sm:$0xff] %v1618_v35  ;;  %vm1641_vm10 = vweird.f32 %v2268_v23  ;;  %vm1640_vm11 = vweird.f32 %v2868_v60  ;;  %v1659_v45 = vand.u32 2147483647, %v2891_v22  ;;  %v1661_v48 = vand.u32 2147483648, %v2891_v22 }
 0x1aa   : > { %v1624_v28 = vadd.f32 %v2264_v1, %v1623_v21  ;;  %v2105_v30 = vmul.f32 -1.442695, %v462_v18  ;;  %v1638_v36 = vmul.f32 %v2268_v23, %v1637_v37  ;;  %v2106_v43 = vmul.f32 -1.442695, %v575_v27  ;;  %v2272_v44 = vpop.eup %2271  ;;  %vm1642_vm12 = vmor %vm1640_vm11, %vm1641_vm10 }
 0x1ab   : > { %v2913_v49 = vadd.f32 1.0, %v2272_v44  ;;  %v1647_v50 = vor.u32 1.1754944e-38, %v1646_v41  ;;  %vm1645_vm13 = vcmp.eq.f32.partialorder %v1644_v40, 8.507059e+37  ;;  %v1674_v55 = vand.u32 2147483647, %v2904_v42 }
 0x1ac   : > { %v1628_v32 = vsel %vm1627_vm8, %v2264_v1, %v1624_v28  ;;  %2277 = vpow2.f32 %v2105_v30  ;;  %v1639_v47 = vadd.f32 %v2268_v23, %v1638_v36  ;;  %vm1655_vm14 = vweird.f32 %v2891_v22 }
 0x1ad   : > { %v227_v38 = vpop.trf.xlu0  ;;  %v1633_v39 = vsel %vm1630_vm9, %v1632_v33, %v1628_v32  ;;  %2279 = vrcp.f32 %v2904_v42  ;;  %v2274_v46 = vpop.eup %2273  ;;  %vm2922_vm15 = vcmp.eq.f32.partialorder %v1659_v45, 8.507059e+37  ;;  %v1662_v62 = vor.u32 1.1754944e-38, %v1661_v48 }
 0x1ae   : > { %1997 = vmatmul.msk.f32.gmra.mxu0 %vm261_vm0, %v227_v38  ;;  %2029 = vmatmul.msk.f32.gmra.mxu1 %vm261_vm0, %v227_v38  ;;  %1852 = vst [vmem:[%s2653_s5 + $0x1a0] sm:$0xff] %v1633_v39  ;;  %2281 = vpow2.f32 %v2106_v43  ;;  %v1651_v51 = vmul.f32 %v2274_v46, %v2891_v22  ;;  %v2276_v53 = vpop.eup %2275  ;;  %v1643_v54 = vsel %vm1642_vm12, %v2268_v23, %v1639_v47  ;;  %v1676_v63 = vand.u32 2147483648, %v2904_v42 }
 0x1af   : > { %2283 = vrcp.f32 %v2913_v49  ;;  %v1648_v56 = vsel %vm1645_vm13, %v1647_v50, %v1643_v54  ;;  %v2919_v59 = vadd.f32 1.0, %v2276_v53  ;;  %vm1656_vm1 = vweird.f32 %v2274_v46 }
 0x1b0   : > { %v1652_v58 = vsub.f32 1.0, %v1651_v51  ;;  %1853 = vst [vmem:[%s2653_s5 + $0x1a8] sm:$0xff] %v1648_v56  ;;  %vm1670_vm2 = vweird.f32 %v2904_v42  ;;  %vm2932_vm3 = vcmp.eq.f32.partialorder %v1674_v55, 8.507059e+37  ;;  %v1689_v7 = vand.u32 2147483647, %v2913_v49 }
 0x1b1   : > { %v465_v52 = vpop.f32.mrf.mxu2  ;;  %v578_v57 = vpop.f32.mrf.mxu3  ;;  %2285 = vrcp.f32 %v2919_v59  ;;  %v1677_v14 = vor.u32 1.1754944e-38, %v1676_v63  ;;  %v1691_v15 = vand.u32 2147483648, %v2913_v49  ;;  %v1704_v16 = vand.u32 2147483647, %v2919_v59 }
 0x1b2   : > { %v2278_v60 = vpop.eup %2277  ;;  %v2107_v0 = vmul.f32 -1.442695, %v465_v52  ;;  %v1653_v2 = vmul.f32 %v2274_v46, %v1652_v58  ;;  %v2108_v8 = vmul.f32 -1.442695, %v578_v57  ;;  %v1706_v20 = vand.u32 2147483648, %v2919_v59 }
 0x1b3   : > { %v2280_v3 = vpop.eup %2279  ;;  %v2937_v10 = vadd.f32 1.0, %v2278_v60  ;;  %vm1685_vm5 = vweird.f32 %v2913_v49  ;;  %vm2957_vm6 = vcmp.eq.f32.partialorder %v1689_v7, 8.507059e+37  ;;  %v1692_v28 = vor.u32 1.1754944e-38, %v1691_v15 }
 0x1b4   : > { %v2282_v4 = vpop.eup %2281  ;;  %v1666_v5 = vmul.f32 %v2280_v3, %v2904_v42  ;;  %v1654_v9 = vadd.f32 %v2274_v46, %v1653_v2  ;;  %2287 = vpow2.f32 %v2107_v0  ;;  %vm1671_vm4 = vweird.f32 %v2280_v3 }
 0x1b5   : > { %v228_v1 = vpop.trf.xlu0  ;;  %v2939_v11 = vadd.f32 1.0, %v2282_v4  ;;  %v2284_v12 = vpop.eup %2283  ;;  %2289 = vrcp.f32 %v2937_v10  ;;  %vm1700_vm7 = vweird.f32 %v2919_v59  ;;  %vm1672_vm8 = vmor %vm1670_vm2, %vm1671_vm4  ;;  %vm2967_vm10 = vcmp.eq.f32.partialorder %v1704_v16, 8.507059e+37 }
 0x1b6   : > { %1998 = vmatmul.msk.f32.gmra.mxu0 %vm261_vm0, %v228_v1  ;;  %2030 = vmatmul.msk.f32.gmra.mxu1 %vm261_vm0, %v228_v1  ;;  %vm1657_vm0 = vmor %vm1655_vm14, %vm1656_vm1  ;;  %v1667_v13 = vsub.f32 1.0, %v1666_v5  ;;  %v1681_v19 = vmul.f32 %v2284_v12, %v2913_v49  ;;  %2291 = vpow2.f32 %v2108_v8  ;;  %vm1686_vm9 = vweird.f32 %v2284_v12 }
 0x1b7   : > { %v1658_v17 = vsel %vm1657_vm0, %v2274_v46, %v1654_v9  ;;  %v2286_v24 = vpop.eup %2285  ;;  %2293 = vrcp.f32 %v2939_v11  ;;  %v1707_v34 = vor.u32 1.1754944e-38, %v1706_v20  ;;  %vm1715_vm11 = vweird.f32 %v2937_v10  ;;  %vm1687_vm13 = vmor %vm1685_vm5, %vm1686_vm9 }
 0x1b8   : > { %v1663_v21 = vsel %vm2922_vm15, %v1662_v62, %v1658_v17  ;;  %v1668_v18 = vmul.f32 %v2280_v3, %v1667_v13  ;;  %v1682_v25 = vsub.f32 1.0, %v1681_v19  ;;  %v1696_v29 = vmul.f32 %v2286_v24, %v2919_v59 }
 0x1b9   : > { %1854 = vst [vmem:[%s2653_s5 + $0x1b0] sm:$0xff] %v1663_v21  ;;  %v468_v35 = vpop.f32.mrf.mxu2  ;;  %vm1701_vm12 = vweird.f32 %v2286_v24  ;;  %v1719_v42 = vand.u32 2147483647, %v2937_v10  ;;  %v1721_v48 = vand.u32 2147483648, %v2937_v10  ;;  %vm1730_vm14 = vweird.f32 %v2939_v11  ;;  %v581_v60 = vpop.f32.mrf.mxu3 }
 0x1ba   : > { %v1669_v27 = vadd.f32 %v2280_v3, %v1668_v18  ;;  %v2288_v30 = vpop.eup %2287  ;;  %v1683_v31 = vmul.f32 %v2284_v12, %v1682_v25  ;;  %v1697_v37 = vsub.f32 1.0, %v1696_v29  ;;  %v2109_v45 = vmul.f32 -1.442695, %v468_v35  ;;  %vm1702_vm15 = vmor %vm1700_vm7, %vm1701_vm12 }
 0x1bb   : > { %v2951_v22 = vpop.f32.mrf.mxu0  ;;  %v2953_v23 = vpop.f32.mrf.mxu1  ;;  %v2972_v38 = vadd.f32 1.0, %v2288_v30  ;;  %v1734_v50 = vand.u32 2147483647, %v2939_v11  ;;  %vm2993_vm2 = vcmp.eq.f32.partialorder %v1719_v42, 8.507059e+37  ;;  %v1736_v58 = vand.u32 2147483648, %v2939_v11 }
 0x1bc   : > { %v1673_v32 = vsel %vm1672_vm8, %v2280_v3, %v1669_v27  ;;  %v2290_v39 = vpop.eup %2289  ;;  %v1684_v41 = vadd.f32 %v2284_v12, %v1683_v31  ;;  %v1698_v43 = vmul.f32 %v2286_v24, %v1697_v37  ;;  %v1722_v59 = vor.u32 1.1754944e-38, %v1721_v48 }
 0x1bd   : > { %v1678_v40 = vsel %vm2932_vm3, %v1677_v14, %v1673_v32  ;;  %v2292_v36 = vpop.eup %2291  ;;  %v1711_v44 = vmul.f32 %v2290_v39, %v2937_v10  ;;  %2295 = vrcp.f32 %v2972_v38  ;;  %vm1716_vm1 = vweird.f32 %v2290_v39 }
 0x1be   : > { %1855 = vst [vmem:[%s2653_s5 + $0x1b8] sm:$0xff] %v1678_v40  ;;  %v2294_v46 = vpop.eup %2293  ;;  %v1688_v47 = vsel %vm1687_vm13, %v2284_v12, %v1684_v41  ;;  %v1699_v49 = vadd.f32 %v2286_v24, %v1698_v43  ;;  %v2998_v57 = vadd.f32 1.0, %v2292_v36  ;;  %2297 = vpow2.f32 %v2109_v45  ;;  %vm1717_vm4 = vmor %vm1715_vm11, %vm1716_vm1 }
 0x1bf   : > { %v1693_v51 = vsel %vm2957_vm6, %v1692_v28, %v1688_v47  ;;  %v1712_v52 = vsub.f32 1.0, %v1711_v44  ;;  %v1726_v53 = vmul.f32 %v2294_v46, %v2939_v11  ;;  %vm3002_vm3 = vcmp.eq.f32.partialorder %v1734_v50, 8.507059e+37 }
 0x1c0   : > { %1856 = vst [vmem:[%s2653_s5 + $0x1c0] sm:$0xff] %v1693_v51  ;;  %v1703_v61 = vsel %vm1702_vm15, %v2286_v24, %v1699_v49  ;;  %2299 = vrcp.f32 %v2998_v57  ;;  %vm1731_vm0 = vweird.f32 %v2294_v46  ;;  %v2110_v5 = vmul.f32 -1.442695, %v581_v60 }
 0x1c1   : > { %v1713_v62 = vmul.f32 %v2290_v39, %v1712_v52  ;;  %v1727_v63 = vsub.f32 1.0, %v1726_v53  ;;  %v1708_v0 = vsel %vm2967_vm10, %v1707_v34, %v1703_v61  ;;  %v1737_v6 = vor.u32 1.1754944e-38, %v1736_v58  ;;  %vm1732_vm5 = vmor %vm1730_vm14, %vm1731_vm0 }
 0x1c2   : > { %1857 = vst [vmem:[%s2653_s5 + $0x1c8] sm:$0xff] %v1708_v0  ;;  %v1749_v8 = vand.u32 2147483647, %v2972_v38  ;;  %v2047_v9 = vmul.f32 -1.442695, %v2951_v22  ;;  %v1751_v14 = vand.u32 2147483648, %v2972_v38  ;;  %2301 = vpow2.f32 %v2110_v5 }
 0x1c3   : > { %v378_v54 = vpop.f32.mrf.mxu0  ;;  %v491_v55 = vpop.f32.mrf.mxu1  ;;  %v1714_v2 = vadd.f32 %v2290_v39, %v1713_v62  ;;  %v1728_v4 = vmul.f32 %v2294_v46, %v1727_v63  ;;  %v2048_v16 = vmul.f32 -1.442695, %v2953_v23  ;;  %vm1745_vm7 = vweird.f32 %v2972_v38 }
 0x1c4   : > { %v2296_v3 = vpop.eup %2295  ;;  %2303 = vpow2.f32 %v2047_v9  ;;  %v2049_v20 = vmul.f32 -1.442695, %v378_v54  ;;  %v2050_v21 = vmul.f32 -1.442695, %v491_v55  ;;  %vm1750_vm8 = vcmp.eq.f32.partialorder %v1749_v8, 8.507059e+37 }
 0x1c5   : > { %v1741_v7 = vmul.f32 %v2296_v3, %v2972_v38  ;;  %v1718_v12 = vsel %vm1717_vm4, %v2290_v39, %v1714_v2  ;;  %v1729_v13 = vadd.f32 %v2294_v46, %v1728_v4  ;;  %v2298_v17 = vpop.eup %2297  ;;  %vm1746_vm6 = vweird.f32 %v2296_v3 }
 0x1c6   : > { %v1723_v15 = vsel %vm2993_vm2, %v1722_v59, %v1718_v12  ;;  %v2300_v24 = vpop.eup %2299  ;;  %v3023_v11 = vadd.f32 1.0, %v2298_v17  ;;  %2305 = vpow2.f32 %v2048_v16  ;;  %vm1747_vm9 = vmor %vm1745_vm7, %vm1746_vm6  ;;  %v1752_v30 = vor.u32 1.1754944e-38, %v1751_v14 }
 0x1c7   : > { %v1742_v10 = vsub.f32 1.0, %v1741_v7  ;;  %1858 = vst [vmem:[%s2653_s5 + $0x1d0] sm:$0xff] %v1723_v15  ;;  %v1733_v19 = vsel %vm1732_vm5, %v2294_v46, %v1729_v13  ;;  %v1756_v27 = vmul.f32 %v2300_v24, %v2998_v57  ;;  %2307 = vpow2.f32 %v2049_v20 }
 0x1c8   : > { %v1738_v25 = vsel %vm3002_vm3, %v1737_v6, %v1733_v19  ;;  %2309 = vrcp.f32 %v3023_v11  ;;  %v2302_v29 = vpop.eup %2301  ;;  %v1764_v33 = vand.u32 2147483647, %v2998_v57  ;;  %vm1761_vm10 = vweird.f32 %v2300_v24 }
 0x1c9   : > { %v1743_v26 = vmul.f32 %v2296_v3, %v1742_v10  ;;  %1859 = vst [vmem:[%s2653_s5 + $0x1d8] sm:$0xff] %v1738_v25  ;;  %v1757_v31 = vsub.f32 1.0, %v1756_v27  ;;  %2311 = vpow2.f32 %v2050_v21  ;;  %v1766_v32 = vand.u32 2147483648, %v2998_v57 }
 0x1ca   : > { %v2304_v34 = vpop.eup %2303  ;;  %v3032_v37 = vadd.f32 1.0, %v2302_v29  ;;  %vm1760_vm11 = vweird.f32 %v2998_v57  ;;  %vm3039_vm12 = vcmp.eq.f32.partialorder %v1764_v33, 8.507059e+37  ;;  %v1779_v44 = vand.u32 2147483647, %v3023_v11 }
 0x1cb   : > { %v381_v18 = vpop.f32.mrf.mxu0  ;;  %v494_v22 = vpop.f32.mrf.mxu1  ;;  %v1744_v28 = vadd.f32 %v2296_v3, %v1743_v26  ;;  %v1758_v39 = vmul.f32 %v2300_v24, %v1757_v31  ;;  %v3034_v40 = vadd.f32 1.0, %v2304_v34  ;;  %vm1762_vm13 = vmor %vm1760_vm11, %vm1761_vm10  ;;  %v1767_v48 = vor.u32 1.1754944e-38, %v1766_v32 }
 0x1cc   : > { %v2051_v23 = vmul.f32 -1.442695, %v381_v18  ;;  %v2306_v41 = vpop.eup %2305  ;;  %vm1775_vm14 = vweird.f32 %v3023_v11  ;;  %v1781_v50 = vand.u32 2147483648, %v3023_v11  ;;  %v1794_v54 = vand.u32 2147483647, %v3032_v37 }
 0x1cd   : > { %v1748_v35 = vsel %vm1747_vm9, %v2296_v3, %v1744_v28  ;;  %v2308_v42 = vpop.eup %2307  ;;  %v1759_v36 = vadd.f32 %v2300_v24, %v1758_v39  ;;  %v3050_v51 = vadd.f32 1.0, %v2306_v41  ;;  %v1796_v55 = vand.u32 2147483648, %v3032_v37 }
 0x1ce   : > { %v1753_v38 = vsel %vm1750_vm8, %v1752_v30, %v1748_v35  ;;  %2313 = vpow2.f32 %v2051_v23  ;;  %v2310_v47 = vpop.eup %2309  ;;  %v849_v58 = vand.u32 2147483647, %v3034_v40  ;;  %v851_v57 = vand.u32 2147483648, %v3034_v40 }
 0x1cf   : > { %1860 = vst [vmem:[%s2653_s5 + $0x1e0] sm:$0xff] %v1753_v38  ;;  %2315 = vrcp.f32 %v3032_v37  ;;  %v2312_v49 = vpop.eup %2311  ;;  %v1763_v52 = vsel %vm1762_vm13, %v2300_v24, %v1759_v36  ;;  %v1771_v53 = vmul.f32 %v2310_v47, %v3023_v11  ;;  %vm3061_vm15 = vcmp.eq.f32.partialorder %v1779_v44, 8.507059e+37 }
 0x1d0   : > { %2317 = vrcp.f32 %v3034_v40  ;;  %v1768_v56 = vsel %vm3039_vm12, %v1767_v48, %v1763_v52  ;;  %v3065_v63 = vadd.f32 1.0, %v2308_v42  ;;  %v2052_v0 = vmul.f32 -1.442695, %v494_v22 }
 0x1d1   : > { %2319 = vrcp.f32 %v3050_v51  ;;  %1861 = vst [vmem:[%s2653_s5 + $0x1e8] sm:$0xff] %v1768_v56  ;;  %v1772_v61 = vsub.f32 1.0, %v1771_v53  ;;  %v1782_v1 = vor.u32 1.1754944e-38, %v1781_v50  ;;  %vm1790_vm1 = vweird.f32 %v3032_v37 }
 0x1d2   : > { %vm845_vm2 = vweird.f32 %v3034_v40  ;;  %v3069_v3 = vadd.f32 1.0, %v2312_v49  ;;  %vm1776_vm3 = vweird.f32 %v2310_v47  ;;  %vm3072_vm0 = vcmp.eq.f32.partialorder %v1794_v54, 8.507059e+37 }
 0x1d3   : > { %v384_v45 = vpop.f32.mrf.mxu0  ;;  %v3045_v46 = vpop.f32.mrf.mxu1  ;;  %v1773_v4 = vmul.f32 %v2310_v47, %v1772_v61  ;;  %v1797_v7 = vor.u32 1.1754944e-38, %v1796_v55  ;;  %vm3077_vm4 = vcmp.eq.f32.partialorder %v849_v58, 8.507059e+37  ;;  %v852_v12 = vor.u32 1.1754944e-38, %v851_v57  ;;  %vm1777_vm5 = vmor %vm1775_vm14, %vm1776_vm3 }
 0x1d4   : > { %v2314_v60 = vpop.eup %2313  ;;  %v864_v13 = vand.u32 2147483647, %v3050_v51  ;;  %2321 = vrcp.f32 %v3065_v63  ;;  %v866_v10 = vand.u32 2147483648, %v3050_v51  ;;  %vm860_vm6 = vweird.f32 %v3050_v51 }
 0x1d5   : > { %v2316_v59 = vpop.eup %2315  ;;  %v1774_v14 = vadd.f32 %v2310_v47, %v1773_v4  ;;  %2323 = vpow2.f32 %v2052_v0  ;;  %v3093_v21 = vadd.f32 1.0, %v2314_v60  ;;  %v2053_v27 = vmul.f32 -1.442695, %v384_v45 }
 0x1d6   : > { %v2318_v2 = vpop.eup %2317  ;;  %v1786_v5 = vmul.f32 %v2316_v59, %v3032_v37  ;;  %2325 = vrcp.f32 %v3069_v3  ;;  %vm1791_vm7 = vweird.f32 %v2316_v59  ;;  %vm3099_vm9 = vcmp.eq.f32.partialorder %v864_v13, 8.507059e+37 }
 0x1d7   : > { %v841_v8 = vmul.f32 %v2318_v2, %v3034_v40  ;;  %v2320_v19 = vpop.eup %2319  ;;  %v1778_v18 = vsel %vm1777_vm5, %v2310_v47, %v1774_v14  ;;  %vm846_vm8 = vweird.f32 %v2318_v2  ;;  %v867_v29 = vor.u32 1.1754944e-38, %v866_v10  ;;  %vm1792_vm10 = vmor %vm1790_vm1, %vm1791_vm7 }
 0x1d8   : > { %v1787_v15 = vsub.f32 1.0, %v1786_v5  ;;  %v856_v24 = vmul.f32 %v2320_v19, %v3050_v51  ;;  %v1783_v25 = vsel %vm3061_vm15, %v1782_v1, %v1778_v18  ;;  %vm875_vm11 = vweird.f32 %v3065_v63  ;;  %vm847_vm12 = vmor %vm845_vm2, %vm846_vm8 }
 0x1d9   : > { %v842_v20 = vsub.f32 1.0, %v841_v8  ;;  %1862 = vst [vmem:[%s2653_s5 + $0x1f0] sm:$0xff] %v1783_v25  ;;  %v879_v33 = vand.u32 2147483647, %v3065_v63  ;;  %2327 = vrcp.f32 %v3093_v21  ;;  %vm861_vm13 = vweird.f32 %v2320_v19 }
 0x1da   : > { %v1788_v22 = vmul.f32 %v2316_v59, %v1787_v15  ;;  %v857_v23 = vsub.f32 1.0, %v856_v24  ;;  %v2322_v30 = vpop.eup %2321  ;;  %v881_v42 = vand.u32 2147483648, %v3065_v63  ;;  %vm890_vm14 = vweird.f32 %v3069_v3  ;;  %vm862_vm15 = vmor %vm860_vm6, %vm861_vm13 }
 0x1db   : > { %v3084_v16 = vpop.f32.mrf.mxu0  ;;  %v3086_v17 = vpop.f32.mrf.mxu1  ;;  %v843_v26 = vmul.f32 %v2318_v2, %v842_v20  ;;  %v871_v37 = vmul.f32 %v2322_v30, %v3065_v63  ;;  %vm876_vm1 = vweird.f32 %v2322_v30  ;;  %v894_v48 = vand.u32 2147483647, %v3069_v3 }
 0x1dc   : > { %v1789_v11 = vadd.f32 %v2316_v59, %v1788_v22  ;;  %v2324_v34 = vpop.eup %2323  ;;  %v858_v32 = vmul.f32 %v2320_v19, %v857_v23  ;;  %v896_v50 = vand.u32 2147483648, %v3069_v3  ;;  %2329 = vpow2.f32 %v2053_v27 }
 0x1dd   : > { %v844_v31 = vadd.f32 %v2318_v2, %v843_v26  ;;  %v2326_v38 = vpop.eup %2325  ;;  %v872_v43 = vsub.f32 1.0, %v871_v37  ;;  %v3126_v49 = vadd.f32 1.0, %v2324_v34  ;;  %vm3130_vm2 = vcmp.eq.f32.partialorder %v879_v33, 8.507059e+37 }
 0x1de   : > { %v1793_v35 = vsel %vm1792_vm10, %v2316_v59, %v1789_v11  ;;  %v859_v40 = vadd.f32 %v2320_v19, %v858_v32  ;;  %v886_v44 = vmul.f32 %v2326_v38, %v3069_v3  ;;  %v882_v51 = vor.u32 1.1754944e-38, %v881_v42 }
 0x1df   : > { %v1798_v39 = vsel %vm3072_vm0, %v1797_v7, %v1793_v35  ;;  %v848_v41 = vsel %vm847_vm12, %v2318_v2, %v844_v31  ;;  %v873_v53 = vmul.f32 %v2322_v30, %v872_v43  ;;  %v2328_v55 = vpop.eup %2327  ;;  %2331 = vrcp.f32 %v3126_v49  ;;  %vm877_vm0 = vmor %vm875_vm11, %vm876_vm1 }
 0x1e0   : > { %1863 = vst [vmem:[%s2653_s5 + $0x1f8] sm:$0xff] %v1798_v39  ;;  %v853_v36 = vsel %vm3077_vm4, %v852_v12, %v848_v41  ;;  %v863_v52 = vsel %vm862_vm15, %v2320_v19, %v859_v40  ;;  %v887_v54 = vsub.f32 1.0, %v886_v44  ;;  %vm891_vm3 = vweird.f32 %v2326_v38 }
 0x1e1   : > { %1800 = vst [vmem:[%s2653_s5] sm:$0xff] %v853_v36  ;;  %v868_v56 = vsel %vm3099_vm9, %v867_v29, %v863_v52  ;;  %v874_v57 = vadd.f32 %v2322_v30, %v873_v53  ;;  %v901_v61 = vmul.f32 %v2328_v55, %v3093_v21  ;;  %vm3140_vm4 = vcmp.eq.f32.partialorder %v894_v48, 8.507059e+37  ;;  %vm892_vm5 = vmor %vm890_vm14, %vm891_vm3 }
 0x1e2   : > { %1801 = vst [vmem:[%s2653_s5 + $0x8] sm:$0xff] %v868_v56  ;;  %v888_v60 = vmul.f32 %v2326_v38, %v887_v54  ;;  %v897_v0 = vor.u32 1.1754944e-38, %v896_v50  ;;  %v909_v59 = vand.u32 2147483647, %v3093_v21  ;;  %v2054_v1 = vmul.f32 -1.442695, %v3045_v46  ;;  %v2330_v8 = vpop.eup %2329 }
 0x1e3   : > { %v390_v45 = vpop.f32.mrf.mxu0  ;;  %v503_v47 = vpop.f32.mrf.mxu1  ;;  %v878_v2 = vsel %vm877_vm0, %v2322_v30, %v874_v57  ;;  %v902_v5 = vsub.f32 1.0, %v901_v61  ;;  %v2055_v6 = vmul.f32 -1.442695, %v3084_v16  ;;  %vm906_vm6 = vweird.f32 %v2328_v55 }
 0x1e4   : > { %v889_v4 = vadd.f32 %v2326_v38, %v888_v60  ;;  %v883_v7 = vsel %vm3130_vm2, %v882_v51, %v878_v2  ;;  %v911_v63 = vand.u32 2147483648, %v3093_v21  ;;  %2333 = vpow2.f32 %v2054_v1 }
 0x1e5   : > { %1802 = vst [vmem:[%s2653_s5 + $0x10] sm:$0xff] %v883_v7  ;;  %v903_v46 = vmul.f32 %v2328_v55, %v902_v5  ;;  %2335 = vpow2.f32 %v2055_v6  ;;  %v2056_v12 = vmul.f32 -1.442695, %v3086_v17  ;;  %v2332_v15 = vpop.eup %2331  ;;  %v3156_v3 = vadd.f32 1.0, %v2330_v8 }
 0x1e6   : > { %v893_v9 = vsel %vm892_vm5, %v2326_v38, %v889_v4  ;;  %v2057_v16 = vmul.f32 -1.442695, %v390_v45  ;;  %v2058_v19 = vmul.f32 -1.442695, %v503_v47  ;;  %vm905_vm7 = vweird.f32 %v3093_v21 }
 0x1e7   : > { %v898_v10 = vsel %vm3140_vm4, %v897_v0, %v893_v9  ;;  %v904_v20 = vadd.f32 %v2328_v55, %v903_v46  ;;  %v916_v18 = vmul.f32 %v2332_v15, %v3126_v49  ;;  %2337 = vpow2.f32 %v2056_v12  ;;  %vm907_vm8 = vmor %vm905_vm7, %vm906_vm6 }
 0x1e8   : > { %1803 = vst [vmem:[%s2653_s5 + $0x18] sm:$0xff] %v898_v10  ;;  %vm910_vm9 = vcmp.eq.f32.partialorder %v909_v59, 8.507059e+37  ;;  %v912_v17 = vor.u32 1.1754944e-38, %v911_v63  ;;  %2339 = vrcp.f32 %v3156_v3  ;;  %v926_v11 = vand.u32 2147483648, %v3126_v49 }
 0x1e9   : > { %v908_v22 = vsel %vm907_vm8, %v2328_v55, %v904_v20  ;;  %v917_v24 = vsub.f32 1.0, %v916_v18  ;;  %2341 = vpow2.f32 %v2057_v16  ;;  %vm921_vm10 = vweird.f32 %v2332_v15 }
 0x1ea   : > { %v2334_v26 = vpop.eup %2333  ;;  %v913_v27 = vsel %vm910_vm9, %v912_v17, %v908_v22  ;;  %2343 = vpow2.f32 %v2058_v19  ;;  %v924_v28 = vand.u32 2147483647, %v3126_v49  ;;  %v939_v30 = vand.u32 2147483647, %v3156_v3 }
 0x1eb   : > { %v393_v13 = vpop.f32.mrf.mxu0  ;;  %v506_v14 = vpop.f32.mrf.mxu1  ;;  %1804 = vst [vmem:[%s2653_s5 + $0x20] sm:$0xff] %v913_v27  ;;  %v918_v23 = vmul.f32 %v2332_v15, %v917_v24  ;;  %v3166_v29 = vadd.f32 1.0, %v2334_v26  ;;  %vm920_vm11 = vweird.f32 %v3126_v49  ;;  %v927_v38 = vor.u32 1.1754944e-38, %v926_v11 }
 0x1ec   : > { %v2059_v25 = vmul.f32 -1.442695, %v393_v13  ;;  %v2336_v21 = vpop.eup %2335  ;;  %vm922_vm12 = vmor %vm920_vm11, %vm921_vm10  ;;  %v941_v39 = vand.u32 2147483648, %v3156_v3  ;;  %vm925_vm13 = vcmp.eq.f32.partialorder %v924_v28, 8.507059e+37  ;;  %vm935_vm14 = vweird.f32 %v3156_v3 }
 0x1ed   : > { %v3169_v31 = vadd.f32 1.0, %v2336_v21  ;;  %v2338_v33 = vpop.eup %2337  ;;  %v919_v34 = vadd.f32 %v2332_v15, %v918_v23  ;;  %vm3179_vm15 = vcmp.eq.f32.partialorder %v939_v30, 8.507059e+37  ;;  %v954_v45 = vand.u32 2147483647, %v3166_v29 }
 0x1ee   : > { %2345 = vpow2.f32 %v2059_v25  ;;  %v2340_v37 = vpop.eup %2339  ;;  %v956_v47 = vand.u32 2147483648, %v3166_v29  ;;  %v3187_v49 = vadd.f32 1.0, %v2338_v33  ;;  %v942_v54 = vor.u32 1.1754944e-38, %v941_v39 }
 0x1ef   : > { %2347 = vrcp.f32 %v3166_v29  ;;  %v2342_v41 = vpop.eup %2341  ;;  %v923_v42 = vsel %vm922_vm12, %v2332_v15, %v919_v34  ;;  %v931_v36 = vmul.f32 %v2340_v37, %v3156_v3  ;;  %v969_v50 = vand.u32 2147483647, %v3169_v31 }
 0x1f0   : > { %2349 = vrcp.f32 %v3169_v31  ;;  %v2344_v40 = vpop.eup %2343  ;;  %v928_v43 = vsel %vm925_vm13, %v927_v38, %v923_v42  ;;  %v3189_v52 = vadd.f32 1.0, %v2342_v41  ;;  %vm936_vm1 = vweird.f32 %v2340_v37 }
 0x1f1   : > { %1805 = vst [vmem:[%s2653_s5 + $0x28] sm:$0xff] %v928_v43  ;;  %v932_v48 = vsub.f32 1.0, %v931_v36  ;;  %vm950_vm2 = vweird.f32 %v3166_v29  ;;  %v2060_v55 = vmul.f32 -1.442695, %v506_v14  ;;  %vm965_vm3 = vweird.f32 %v3169_v31  ;;  %vm937_vm5 = vmor %vm935_vm14, %vm936_vm1 }
 0x1f2   : > { %v971_v51 = vand.u32 2147483648, %v3169_v31  ;;  %2351 = vrcp.f32 %v3187_v49  ;;  %v3195_v57 = vadd.f32 1.0, %v2344_v40  ;;  %vm3198_vm0 = vcmp.eq.f32.partialorder %v954_v45, 8.507059e+37 }
 0x1f3   : > { %v396_v35 = vpop.f32.mrf.mxu0  ;;  %v3173_v32 = vpop.f32.mrf.mxu1  ;;  %v933_v58 = vmul.f32 %v2340_v37, %v932_v48  ;;  %v957_v0 = vor.u32 1.1754944e-38, %v956_v47  ;;  %2353 = vrcp.f32 %v3189_v52  ;;  %vm3204_vm4 = vcmp.eq.f32.partialorder %v969_v50, 8.507059e+37 }
 0x1f4   : > { %v2346_v53 = vpop.eup %2345  ;;  %v984_v63 = vand.u32 2147483647, %v3187_v49  ;;  %v986_v8 = vand.u32 2147483648, %v3187_v49  ;;  %2355 = vpow2.f32 %v2060_v55  ;;  %v972_v12 = vor.u32 1.1754944e-38, %v971_v51 }
 0x1f5   : > { %v2348_v56 = vpop.eup %2347  ;;  %v934_v59 = vadd.f32 %v2340_v37, %v933_v58  ;;  %v3208_v4 = vadd.f32 1.0, %v2346_v53  ;;  %2357 = vrcp.f32 %v3195_v57  ;;  %v999_v15 = vand.u32 2147483647, %v3189_v52 }
 0x1f6   : > { %v2350_v60 = vpop.eup %2349  ;;  %v946_v61 = vmul.f32 %v2348_v56, %v3166_v29  ;;  %vm951_vm6 = vweird.f32 %v2348_v56  ;;  %vm980_vm8 = vweird.f32 %v3187_v49  ;;  %v2061_v16 = vmul.f32 -1.442695, %v396_v35 }
 0x1f7   : > { %v961_v1 = vmul.f32 %v2350_v60, %v3169_v31  ;;  %v938_v9 = vsel %vm937_vm5, %v2340_v37, %v934_v59  ;;  %vm966_vm7 = vweird.f32 %v2350_v60  ;;  %vm3226_vm9 = vcmp.eq.f32.partialorder %v984_v63, 8.507059e+37  ;;  %vm952_vm10 = vmor %vm950_vm2, %vm951_vm6 }
 0x1f8   : > { %v947_v7 = vsub.f32 1.0, %v946_v61  ;;  %v943_v13 = vsel %vm3179_vm15, %v942_v54, %v938_v9  ;;  %v2352_v10 = vpop.eup %2351  ;;  %v987_v22 = vor.u32 1.1754944e-38, %v986_v8  ;;  %2359 = vrcp.f32 %v3208_v4  ;;  %vm967_vm12 = vmor %vm965_vm3, %vm966_vm7 }
 0x1f9   : > { %v962_v46 = vsub.f32 1.0, %v961_v1  ;;  %1806 = vst [vmem:[%s2653_s5 + $0x30] sm:$0xff] %v943_v13  ;;  %v2354_v19 = vpop.eup %2353  ;;  %v976_v18 = vmul.f32 %v2352_v10, %v3187_v49  ;;  %vm995_vm11 = vweird.f32 %v3189_v52  ;;  %v1001_v26 = vand.u32 2147483648, %v3189_v52 }
 0x1fa   : > { %v948_v14 = vmul.f32 %v2348_v56, %v947_v7  ;;  %v991_v25 = vmul.f32 %v2354_v19, %v3189_v52  ;;  %v2356_v27 = vpop.eup %2355  ;;  %vm3239_vm13 = vcmp.eq.f32.partialorder %v999_v15, 8.507059e+37  ;;  %vm1010_vm14 = vweird.f32 %v3195_v57 }
 0x1fb   : > { %v3210_v5 = vpop.f32.mrf.mxu0  ;;  %v3212_v6 = vpop.f32.mrf.mxu1  ;;  %v963_v3 = vmul.f32 %v2350_v60, %v962_v46  ;;  %v977_v21 = vsub.f32 1.0, %v976_v18  ;;  %v1016_v34 = vand.u32 2147483648, %v3195_v57  ;;  %vm981_vm15 = vweird.f32 %v2352_v10 }
 0x1fc   : > { %v949_v20 = vadd.f32 %v2348_v56, %v948_v14  ;;  %v2358_v28 = vpop.eup %2357  ;;  %v992_v33 = vsub.f32 1.0, %v991_v25  ;;  %vm996_vm1 = vweird.f32 %v2354_v19  ;;  %v1002_v42 = vor.u32 1.1754944e-38, %v1001_v26  ;;  %vm982_vm2 = vmor %vm980_vm8, %vm981_vm15 }
 0x1fd   : > { %v964_v24 = vadd.f32 %v2350_v60, %v963_v3  ;;  %v978_v38 = vmul.f32 %v2352_v10, %v977_v21  ;;  %v1006_v39 = vmul.f32 %v2358_v28, %v3195_v57  ;;  %v3252_v36 = vadd.f32 1.0, %v2356_v27  ;;  %vm997_vm3 = vmor %vm995_vm11, %vm996_vm1 }
 0x1fe   : > { %v953_v11 = vsel %vm952_vm10, %v2348_v56, %v949_v20  ;;  %v993_v41 = vmul.f32 %v2354_v19, %v992_v33  ;;  %v2360_v40 = vpop.eup %2359  ;;  %2361 = vpow2.f32 %v2061_v16  ;;  %v2062_v45 = vmul.f32 -1.442695, %v3173_v32 }
 0x1ff   : > { %v958_v29 = vsel %vm3198_vm0, %v957_v0, %v953_v11  ;;  %v968_v30 = vsel %vm967_vm12, %v2350_v60, %v964_v24  ;;  %v979_v43 = vadd.f32 %v2352_v10, %v978_v38  ;;  %v1007_v44 = vsub.f32 1.0, %v1006_v39 }
 0x200   : > { %1807 = vst [vmem:[%s2653_s5 + $0x38] sm:$0xff] %v958_v29  ;;  %v973_v31 = vsel %vm3204_vm4, %v972_v12, %v968_v30  ;;  %v994_v47 = vadd.f32 %v2354_v19, %v993_v41  ;;  %v1014_v48 = vand.u32 2147483647, %v3195_v57  ;;  %v1017_v50 = vor.u32 1.1754944e-38, %v1016_v34 }
 0x201   : > { %1808 = vst [vmem:[%s2653_s5 + $0x40] sm:$0xff] %v973_v31  ;;  %v1021_v53 = vmul.f32 %v2360_v40, %v3208_v4  ;;  %v983_v54 = vsel %vm982_vm2, %v2352_v10, %v979_v43  ;;  %v1008_v55 = vmul.f32 %v2358_v28, %v1007_v44  ;;  %vm1011_vm0 = vweird.f32 %v2358_v28 }
 0x202   : > { %2363 = vrcp.f32 %v3252_v36  ;;  %v988_v32 = vsel %vm3226_vm9, %v987_v22, %v983_v54  ;;  %v998_v49 = vsel %vm997_vm3, %v2354_v19, %v994_v47  ;;  %v1029_v58 = vand.u32 2147483647, %v3208_v4  ;;  %vm1012_vm4 = vmor %vm1010_vm14, %vm1011_vm0 }
 0x203   : > { %v402_v35 = vpop.f32.mrf.mxu0  ;;  %v515_v37 = vpop.f32.mrf.mxu1  ;;  %v1022_v56 = vsub.f32 1.0, %v1021_v53  ;;  %1809 = vst [vmem:[%s2653_s5 + $0x48] sm:$0xff] %v988_v32  ;;  %v1003_v51 = vsel %vm3239_vm13, %v1002_v42, %v998_v49  ;;  %v1009_v60 = vadd.f32 %v2358_v28, %v1008_v55  ;;  %v1031_v61 = vand.u32 2147483648, %v3208_v4 }
 0x204   : > { %2365 = vpow2.f32 %v2062_v45  ;;  %1810 = vst [vmem:[%s2653_s5 + $0x50] sm:$0xff] %v1003_v51  ;;  %vm1026_vm5 = vweird.f32 %v2360_v40  ;;  %v2063_v62 = vmul.f32 -1.442695, %v3210_v5  ;;  %v2064_v0 = vmul.f32 -1.442695, %v3212_v6  ;;  %v2362_v2 = vpop.eup %2361 }
 0x205   : > { %v1023_v52 = vmul.f32 %v2360_v40, %v1022_v56  ;;  %v1013_v7 = vsel %vm1012_vm4, %v2358_v28, %v1009_v60  ;;  %vm1015_vm6 = vcmp.eq.f32.partialorder %v1014_v48, 8.507059e+37  ;;  %vm1025_vm7 = vweird.f32 %v3208_v4 }
 0x206   : > { %v2065_v63 = vmul.f32 -1.442695, %v402_v35  ;;  %v1018_v8 = vsel %vm1015_vm6, %v1017_v50, %v1013_v7  ;;  %v3275_v46 = vadd.f32 1.0, %v2362_v2  ;;  %2367 = vpow2.f32 %v2063_v62  ;;  %vm1027_vm8 = vmor %vm1025_vm7, %vm1026_vm5 }
 0x207   : > { %v1024_v9 = vadd.f32 %v2360_v40, %v1023_v52  ;;  %1811 = vst [vmem:[%s2653_s5 + $0x58] sm:$0xff] %v1018_v8  ;;  %v1032_v5 = vor.u32 1.1754944e-38, %v1031_v61  ;;  %2369 = vpow2.f32 %v2064_v0  ;;  %v2066_v6 = vmul.f32 -1.442695, %v515_v37 }
 0x208   : > { %v2364_v57 = vpop.eup %2363  ;;  %vm1030_vm9 = vcmp.eq.f32.partialorder %v1029_v58, 8.507059e+37  ;;  %2371 = vrcp.f32 %v3275_v46  ;;  %v1044_v15 = vand.u32 2147483647, %v3252_v36  ;;  %v1046_v16 = vand.u32 2147483648, %v3252_v36 }
 0x209   : > { %v1028_v12 = vsel %vm1027_vm8, %v2360_v40, %v1024_v9  ;;  %v1036_v13 = vmul.f32 %v2364_v57, %v3252_v36  ;;  %2373 = vpow2.f32 %v2065_v63  ;;  %vm1041_vm10 = vweird.f32 %v2364_v57 }
 0x20a   : > { %v2366_v4 = vpop.eup %2365  ;;  %v1033_v14 = vsel %vm1030_vm9, %v1032_v5, %v1028_v12  ;;  %2375 = vpow2.f32 %v2066_v6  ;;  %v1059_v17 = vand.u32 2147483647, %v3275_v46  ;;  %v1061_v22 = vand.u32 2147483648, %v3275_v46 }
 0x20b   : > { %v405_v59 = vpop.f32.mrf.mxu0  ;;  %v518_v1 = vpop.f32.mrf.mxu1  ;;  %1812 = vst [vmem:[%s2653_s5 + $0x60] sm:$0xff] %v1033_v14  ;;  %v1037_v3 = vsub.f32 1.0, %v1036_v13  ;;  %v3284_v19 = vadd.f32 1.0, %v2366_v4  ;;  %vm1040_vm11 = vweird.f32 %v3252_v36  ;;  %vm3292_vm12 = vcmp.eq.f32.partialorder %v1044_v15, 8.507059e+37 }
 0x20c   : > { %v2067_v10 = vmul.f32 -1.442695, %v405_v59  ;;  %v2368_v20 = vpop.eup %2367  ;;  %v1047_v28 = vor.u32 1.1754944e-38, %v1046_v16  ;;  %v2068_v30 = vmul.f32 -1.442695, %v518_v1  ;;  %vm1042_vm13 = vmor %vm1040_vm11, %vm1041_vm10  ;;  %vm1055_vm14 = vweird.f32 %v3275_v46 }
 0x20d   : > { %v1038_v18 = vmul.f32 %v2364_v57, %v1037_v3  ;;  %2377 = vrcp.f32 %v3284_v19  ;;  %v2370_v26 = vpop.eup %2369  ;;  %v3296_v11 = vadd.f32 1.0, %v2368_v20  ;;  %v1074_v34 = vand.u32 2147483647, %v3284_v19 }
 0x20e   : > { %2379 = vpow2.f32 %v2067_v10  ;;  %v2372_v21 = vpop.eup %2371  ;;  %v3298_v29 = vadd.f32 1.0, %v2370_v26  ;;  %vm3305_vm15 = vcmp.eq.f32.partialorder %v1059_v17, 8.507059e+37  ;;  %v1062_v38 = vor.u32 1.1754944e-38, %v1061_v22 }
 0x20f   : > { %v1039_v23 = vadd.f32 %v2364_v57, %v1038_v18  ;;  %v1051_v33 = vmul.f32 %v2372_v21, %v3275_v46  ;;  %2381 = vrcp.f32 %v3296_v11  ;;  %v2374_v35 = vpop.eup %2373  ;;  %v1076_v39 = vand.u32 2147483648, %v3284_v19 }
 0x210   : > { %v2376_v41 = vpop.eup %2375  ;;  %vm1070_vm1 = vweird.f32 %v3284_v19  ;;  %2383 = vrcp.f32 %v3298_v29  ;;  %v1089_v43 = vand.u32 2147483647, %v3296_v11  ;;  %v1091_v44 = vand.u32 2147483648, %v3296_v11 }
 0x211   : > { %v1043_v37 = vsel %vm1042_vm13, %v2364_v57, %v1039_v23  ;;  %v1052_v36 = vsub.f32 1.0, %v1051_v33  ;;  %2385 = vpow2.f32 %v2068_v30  ;;  %vm1056_vm2 = vweird.f32 %v2372_v21 }
 0x212   : > { %v1048_v42 = vsel %vm3292_vm12, %v1047_v28, %v1043_v37  ;;  %vm3320_vm3 = vcmp.eq.f32.partialorder %v1074_v34, 8.507059e+37  ;;  %v3324_v54 = vadd.f32 1.0, %v2374_v35  ;;  %v1077_v55 = vor.u32 1.1754944e-38, %v1076_v39  ;;  %vm1057_vm4 = vmor %vm1055_vm14, %vm1056_vm2 }
 0x213   : > { %v408_v24 = vpop.f32.mrf.mxu0  ;;  %v3289_v25 = vpop.f32.mrf.mxu1  ;;  %1813 = vst [vmem:[%s2653_s5 + $0x68] sm:$0xff] %v1048_v42  ;;  %v1053_v48 = vmul.f32 %v2372_v21, %v1052_v36  ;;  %vm1085_vm0 = vweird.f32 %v3296_v11  ;;  %v1104_v32 = vand.u32 2147483647, %v3298_v29  ;;  %v3328_v49 = vadd.f32 1.0, %v2376_v41 }
 0x214   : > { %v2378_v40 = vpop.eup %2377  ;;  %v3317_v45 = vmul.f32 -1.442695, %v408_v24  ;;  %v1106_v52 = vand.u32 2147483648, %v3298_v29  ;;  %2387 = vrcp.f32 %v3324_v54  ;;  %vm3340_vm5 = vcmp.eq.f32.partialorder %v1089_v43, 8.507059e+37 }
 0x215   : > { %v2380_v47 = vpop.eup %2379  ;;  %v1066_v50 = vmul.f32 %v2378_v40, %v3284_v19  ;;  %v1054_v60 = vadd.f32 %v2372_v21, %v1053_v48  ;;  %v1092_v59 = vor.u32 1.1754944e-38, %v1091_v44  ;;  %vm1100_vm6 = vweird.f32 %v3298_v29 }
 0x216   : > { %v2382_v51 = vpop.eup %2381  ;;  %v3345_v1 = vadd.f32 1.0, %v2380_v47  ;;  %vm1071_vm7 = vweird.f32 %v2378_v40  ;;  %2389 = vrcp.f32 %v3328_v49  ;;  %vm3351_vm8 = vcmp.eq.f32.partialorder %v1104_v32, 8.507059e+37 }
 0x217   : > { %v1067_v61 = vsub.f32 1.0, %v1066_v50  ;;  %v1081_v62 = vmul.f32 %v2382_v51, %v3296_v11  ;;  %v2384_v2 = vpop.eup %2383  ;;  %v1058_v7 = vsel %vm1057_vm4, %v2372_v21, %v1054_v60  ;;  %v1107_v12 = vor.u32 1.1754944e-38, %v1106_v52  ;;  %vm1072_vm9 = vmor %vm1070_vm1, %vm1071_vm7 }
 0x218   : > { %v2386_v8 = vpop.eup %2385  ;;  %v1063_v9 = vsel %vm3305_vm15, %v1062_v38, %v1058_v7  ;;  %v1096_v57 = vmul.f32 %v2384_v2, %v3298_v29  ;;  %v1119_v13 = vand.u32 2147483647, %v3324_v54  ;;  %v1121_v4 = vand.u32 2147483648, %v3324_v54 }
 0x219   : > { %v1068_v63 = vmul.f32 %v2378_v40, %v1067_v61  ;;  %v1082_v46 = vsub.f32 1.0, %v1081_v62  ;;  %1814 = vst [vmem:[%s2653_s5 + $0x70] sm:$0xff] %v1063_v9  ;;  %vm1086_vm10 = vweird.f32 %v2382_v51  ;;  %2391 = vrcp.f32 %v3345_v1 }
 0x21a   : > { %v1097_v15 = vsub.f32 1.0, %v1096_v57  ;;  %v2388_v10 = vpop.eup %2387  ;;  %vm1101_vm11 = vweird.f32 %v2384_v2  ;;  %vm1115_vm12 = vweird.f32 %v3324_v54  ;;  %v1134_v16 = vand.u32 2147483647, %v3328_v49  ;;  %vm1087_vm13 = vmor %vm1085_vm0, %vm1086_vm10 }
 0x21b   : > { %v3330_v56 = vpop.f32.mrf.mxu0  ;;  %v3332_v58 = vpop.f32.mrf.mxu1  ;;  %v1069_v6 = vadd.f32 %v2378_v40, %v1068_v63  ;;  %v1083_v14 = vmul.f32 %v2382_v51, %v1082_v46  ;;  %v1111_v19 = vmul.f32 %v2388_v10, %v3324_v54  ;;  %vm3370_vm14 = vcmp.eq.f32.partialorder %v1119_v13, 8.507059e+37  ;;  %vm1102_vm1 = vmor %vm1100_vm6, %vm1101_vm11 }
 0x21c   : > { %v1098_v17 = vmul.f32 %v2384_v2, %v1097_v15  ;;  %v2390_v26 = vpop.eup %2389  ;;  %v1122_v21 = vor.u32 1.1754944e-38, %v1121_v4  ;;  %vm1130_vm15 = vweird.f32 %v3328_v49  ;;  %v1136_v23 = vand.u32 2147483648, %v3328_v49 }
 0x21d   : > { %v1073_v3 = vsel %vm1072_vm9, %v2378_v40, %v1069_v6  ;;  %v1084_v18 = vadd.f32 %v2382_v51, %v1083_v14  ;;  %v1112_v33 = vsub.f32 1.0, %v1111_v19  ;;  %v1126_v34 = vmul.f32 %v2390_v26, %v3328_v49 }
 0x21e   : > { %v1078_v20 = vsel %vm3320_vm3, %v1077_v55, %v1073_v3  ;;  %v1099_v30 = vadd.f32 %v2384_v2, %v1098_v17  ;;  %vm1116_vm2 = vweird.f32 %v2388_v10  ;;  %vm3382_vm3 = vcmp.eq.f32.partialorder %v1134_v16, 8.507059e+37 }
 0x21f   : > { %1815 = vst [vmem:[%s2653_s5 + $0x78] sm:$0xff] %v1078_v20  ;;  %v1088_v28 = vsel %vm1087_vm13, %v2382_v51, %v1084_v18  ;;  %v3386_v37 = vadd.f32 1.0, %v2386_v8  ;;  %v2392_v31 = vpop.eup %2391  ;;  %v1113_v39 = vmul.f32 %v2388_v10, %v1112_v33  ;;  %v1127_v41 = vsub.f32 1.0, %v1126_v34 }
 0x220   : > { %v1093_v11 = vsel %vm3340_vm5, %v1092_v59, %v1088_v28  ;;  %v1103_v38 = vsel %vm1102_vm1, %v2384_v2, %v1099_v30  ;;  %2393 = vpow2.f32 %v3317_v45  ;;  %v1141_v29 = vmul.f32 %v2392_v31, %v3345_v1  ;;  %vm1117_vm5 = vmor %vm1115_vm12, %vm1116_vm2 }
 0x221   : > { %1816 = vst [vmem:[%s2653_s5 + $0x80] sm:$0xff] %v1093_v11  ;;  %v1108_v42 = vsel %vm3351_vm8, %v1107_v12, %v1103_v38  ;;  %vm1145_vm0 = vweird.f32 %v3345_v1  ;;  %2395 = vrcp.f32 %v3386_v37  ;;  %v1114_v36 = vadd.f32 %v2388_v10, %v1113_v39 }
 0x222   : > { %1817 = vst [vmem:[%s2653_s5 + $0x88] sm:$0xff] %v1108_v42  ;;  %v1128_v40 = vmul.f32 %v2390_v26, %v1127_v41  ;;  %vm1131_vm4 = vweird.f32 %v2390_v26  ;;  %v1149_v43 = vand.u32 2147483647, %v3345_v1  ;;  %v1137_v44 = vor.u32 1.1754944e-38, %v1136_v23 }
 0x223   : > { %v414_v22 = vpop.f32.mrf.mxu0  ;;  %v527_v24 = vpop.f32.mrf.mxu1  ;;  %v1142_v45 = vsub.f32 1.0, %v1141_v29  ;;  %v2070_v47 = vmul.f32 -1.442695, %v3289_v25  ;;  %v2071_v48 = vmul.f32 -1.442695, %v3330_v56  ;;  %v1118_v50 = vsel %vm1117_vm5, %v2388_v10, %v1114_v36  ;;  %vm1132_vm6 = vmor %vm1130_vm15, %vm1131_vm4 }
 0x224   : > { %v1129_v53 = vadd.f32 %v2390_v26, %v1128_v40  ;;  %v1151_v55 = vand.u32 2147483648, %v3345_v1  ;;  %v2072_v32 = vmul.f32 -1.442695, %v3332_v58  ;;  %v1123_v51 = vsel %vm3370_vm14, %v1122_v21, %v1118_v50 }
 0x225   : > { %v1143_v54 = vmul.f32 %v2392_v31, %v1142_v45  ;;  %vm1146_vm7 = vweird.f32 %v2392_v31  ;;  %2397 = vpow2.f32 %v2070_v47  ;;  %1818 = vst [vmem:[%s2653_s5 + $0x90] sm:$0xff] %v1123_v51  ;;  %v2073_v56 = vmul.f32 -1.442695, %v414_v22 }
 0x226   : > { %v2394_v60 = vpop.eup %2393  ;;  %v1133_v25 = vsel %vm1132_vm6, %v2390_v26, %v1129_v53  ;;  %2399 = vpow2.f32 %v2071_v48  ;;  %v2074_v61 = vmul.f32 -1.442695, %v527_v24  ;;  %vm1147_vm8 = vmor %vm1145_vm0, %vm1146_vm7  ;;  %v1152_v2 = vor.u32 1.1754944e-38, %v1151_v55 }
 0x227   : > { %v2396_v0 = vpop.eup %2395  ;;  %v1138_v58 = vsel %vm3382_vm3, %v1137_v44, %v1133_v25  ;;  %v1144_v59 = vadd.f32 %v2392_v31, %v1143_v54  ;;  %v3411_v49 = vadd.f32 1.0, %v2394_v60  ;;  %2401 = vpow2.f32 %v2072_v32 }
 0x228   : > { %1819 = vst [vmem:[%s2653_s5 + $0x98] sm:$0xff] %v1138_v58  ;;  %v1156_v7 = vmul.f32 %v2396_v0, %v3386_v37  ;;  %2403 = vpow2.f32 %v2073_v56  ;;  %vm1150_vm9 = vcmp.eq.f32.partialorder %v1149_v43, 8.507059e+37  ;;  %v1164_v5 = vand.u32 2147483647, %v3386_v37 }
 0x229   : > { %v1148_v63 = vsel %vm1147_vm8, %v2392_v31, %v1144_v59  ;;  %2405 = vrcp.f32 %v3411_v49  ;;  %v1166_v6 = vand.u32 2147483648, %v3386_v37  ;;  %vm1161_vm10 = vweird.f32 %v2396_v0 }
 0x22a   : > { %v1153_v9 = vsel %vm1150_vm9, %v1152_v2, %v1148_v63  ;;  %v1157_v46 = vsub.f32 1.0, %v1156_v7  ;;  %2407 = vpow2.f32 %v2074_v61  ;;  %v1179_v13 = vand.u32 2147483647, %v3411_v49 }
 0x22b   : > { %v417_v52 = vpop.f32.mrf.mxu0  ;;  %v530_v62 = vpop.f32.mrf.mxu1  ;;  %1820 = vst [vmem:[%s2653_s5 + $0xa0] sm:$0xff] %v1153_v9  ;;  %v1181_v15 = vand.u32 2147483648, %v3411_v49  ;;  %vm1160_vm11 = vweird.f32 %v3386_v37  ;;  %vm1165_vm13 = vcmp.eq.f32.partialorder %v1164_v5, 8.507059e+37  ;;  %v1167_v17 = vor.u32 1.1754944e-38, %v1166_v6 }
 0x22c   : > { %v2075_v8 = vmul.f32 -1.442695, %v417_v52  ;;  %v2398_v57 = vpop.eup %2397  ;;  %v1158_v12 = vmul.f32 %v2396_v0, %v1157_v46  ;;  %v2076_v3 = vmul.f32 -1.442695, %v530_v62  ;;  %vm1162_vm12 = vmor %vm1160_vm11, %vm1161_vm10  ;;  %vm1175_vm14 = vweird.f32 %v3411_v49 }
 0x22d   : > { %v2400_v1 = vpop.eup %2399  ;;  %v3423_v4 = vadd.f32 1.0, %v2398_v57  ;;  %vm3433_vm15 = vcmp.eq.f32.partialorder %v1179_v13, 8.507059e+37  ;;  %v1182_v28 = vor.u32 1.1754944e-38, %v1181_v15 }
 0x22e   : > { %v2402_v14 = vpop.eup %2401  ;;  %v3426_v10 = vadd.f32 1.0, %v2400_v1  ;;  %2409 = vpow2.f32 %v2075_v8  ;;  %v1159_v20 = vadd.f32 %v2396_v0, %v1158_v12 }
 0x22f   : > { %v2404_v16 = vpop.eup %2403  ;;  %2411 = vrcp.f32 %v3423_v4  ;;  %v1194_v30 = vand.u32 2147483647, %v3423_v4  ;;  %v1196_v34 = vand.u32 2147483648, %v3423_v4  ;;  %v3440_v11 = vadd.f32 1.0, %v2402_v14 }
 0x230   : > { %v2406_v18 = vpop.eup %2405  ;;  %2413 = vrcp.f32 %v3426_v10  ;;  %v1163_v19 = vsel %vm1162_vm12, %v2396_v0, %v1159_v20  ;;  %v3442_v35 = vadd.f32 1.0, %v2404_v16  ;;  %vm1190_vm1 = vweird.f32 %v3423_v4 }
 0x231   : > { %v1171_v22 = vmul.f32 %v2406_v18, %v3411_v49  ;;  %v2408_v21 = vpop.eup %2407  ;;  %v1168_v23 = vsel %vm1165_vm13, %v1167_v17, %v1163_v19  ;;  %2415 = vpow2.f32 %v2076_v3  ;;  %v1209_v31 = vand.u32 2147483647, %v3426_v10 }
 0x232   : > { %1821 = vst [vmem:[%s2653_s5 + $0xa8] sm:$0xff] %v1168_v23  ;;  %vm1176_vm2 = vweird.f32 %v2406_v18  ;;  %2417 = vrcp.f32 %v3440_v11  ;;  %v3449_v29 = vadd.f32 1.0, %v2408_v21  ;;  %vm3452_vm3 = vcmp.eq.f32.partialorder %v1194_v30, 8.507059e+37 }
 0x233   : > { %v420_v26 = vpop.f32.mrf.mxu0  ;;  %v533_v27 = vpop.f32.mrf.mxu1  ;;  %v1172_v33 = vsub.f32 1.0, %v1171_v22  ;;  %vm1205_vm0 = vweird.f32 %v3426_v10  ;;  %2419 = vrcp.f32 %v3442_v35  ;;  %v1197_v45 = vor.u32 1.1754944e-38, %v1196_v34  ;;  %vm1177_vm4 = vmor %vm1175_vm14, %vm1176_vm2 }
 0x234   : > { %v2410_v37 = vpop.eup %2409  ;;  %v2077_v38 = vmul.f32 -1.442695, %v420_v26  ;;  %v3446_v39 = vmul.f32 -1.442695, %v533_v27  ;;  %v1211_v48 = vand.u32 2147483648, %v3426_v10  ;;  %vm3462_vm5 = vcmp.eq.f32.partialorder %v1209_v31, 8.507059e+37 }
 0x235   : > { %v2412_v41 = vpop.eup %2411  ;;  %v1173_v42 = vmul.f32 %v2406_v18, %v1172_v33  ;;  %v3466_v32 = vadd.f32 1.0, %v2410_v37  ;;  %v1224_v60 = vand.u32 2147483647, %v3440_v11  ;;  %v1226_v61 = vand.u32 2147483648, %v3440_v11 }
 0x236   : > { %v2414_v36 = vpop.eup %2413  ;;  %v1186_v40 = vmul.f32 %v2412_v41, %v3423_v4  ;;  %2421 = vpow2.f32 %v2077_v38  ;;  %vm1191_vm6 = vweird.f32 %v2412_v41  ;;  %v1212_v0 = vor.u32 1.1754944e-38, %v1211_v48 }
 0x237   : > { %v1174_v44 = vadd.f32 %v2406_v18, %v1173_v42  ;;  %v1201_v47 = vmul.f32 %v2414_v36, %v3426_v10  ;;  %v2416_v50 = vpop.eup %2415  ;;  %2423 = vrcp.f32 %v3449_v29  ;;  %vm1206_vm7 = vweird.f32 %v2414_v36  ;;  %vm1192_vm9 = vmor %vm1190_vm1, %vm1191_vm6 }
 0x238   : > { %v1187_v53 = vsub.f32 1.0, %v1186_v40  ;;  %v2418_v52 = vpop.eup %2417  ;;  %v1239_v58 = vand.u32 2147483647, %v3442_v35  ;;  %vm1220_vm8 = vweird.f32 %v3440_v11  ;;  %2425 = vrcp.f32 %v3466_v32  ;;  %vm1207_vm11 = vmor %vm1205_vm0, %vm1206_vm7 }
 0x239   : > { %v1178_v51 = vsel %vm1177_vm4, %v2406_v18, %v1174_v44  ;;  %v1202_v54 = vsub.f32 1.0, %v1201_v47  ;;  %v2420_v59 = vpop.eup %2419  ;;  %v1216_v2 = vmul.f32 %v2418_v52, %v3440_v11  ;;  %vm3480_vm10 = vcmp.eq.f32.partialorder %v1224_v60, 8.507059e+37 }
 0x23a   : > { %v1183_v25 = vsel %vm3433_vm15, %v1182_v28, %v1178_v51  ;;  %v1188_v56 = vmul.f32 %v2412_v41, %v1187_v53  ;;  %v1231_v8 = vmul.f32 %v2420_v59, %v3442_v35  ;;  %v1241_v9 = vand.u32 2147483648, %v3442_v35 }
 0x23b   : > { %1822 = vst [vmem:[%s2653_s5 + $0xb0] sm:$0xff] %v1183_v25  ;;  %v1203_v62 = vmul.f32 %v2414_v36, %v1202_v54  ;;  %v1217_v5 = vsub.f32 1.0, %v1216_v2  ;;  %v1227_v6 = vor.u32 1.1754944e-38, %v1226_v61  ;;  %vm1235_vm12 = vweird.f32 %v3442_v35 }
 0x23c   : > { %v1189_v49 = vadd.f32 %v2412_v41, %v1188_v56  ;;  %v2422_v46 = vpop.eup %2421  ;;  %v1232_v4 = vsub.f32 1.0, %v1231_v8  ;;  %vm3492_vm13 = vcmp.eq.f32.partialorder %v1239_v58, 8.507059e+37  ;;  %vm1221_vm14 = vweird.f32 %v2418_v52 }
 0x23d   : > { %v1204_v7 = vadd.f32 %v2414_v36, %v1203_v62  ;;  %v2424_v1 = vpop.eup %2423  ;;  %v1218_v10 = vmul.f32 %v2418_v52, %v1217_v5  ;;  %vm1236_vm15 = vweird.f32 %v2420_v59  ;;  %v1242_v20 = vor.u32 1.1754944e-38, %v1241_v9  ;;  %vm1222_vm1 = vmor %vm1220_vm8, %vm1221_vm14 }
 0x23e   : > { %v1193_v57 = vsel %vm1192_vm9, %v2412_v41, %v1189_v49  ;;  %v1246_v3 = vmul.f32 %v2424_v1, %v3449_v29  ;;  %v1233_v16 = vmul.f32 %v2420_v59, %v1232_v4  ;;  %v3501_v18 = vadd.f32 1.0, %v2416_v50  ;;  %v2426_v17 = vpop.eup %2425  ;;  %vm1237_vm2 = vmor %vm1235_vm12, %vm1236_vm15 }
 0x23f   : > { %v1198_v12 = vsel %vm3452_vm3, %v1197_v45, %v1193_v57  ;;  %v1208_v13 = vsel %vm1207_vm11, %v2414_v36, %v1204_v7  ;;  %v1219_v19 = vadd.f32 %v2418_v52, %v1218_v10  ;;  %v3503_v24 = vadd.f32 1.0, %v2422_v46 }
 0x240   : > { %1823 = vst [vmem:[%s2653_s5 + $0xb8] sm:$0xff] %v1198_v12  ;;  %v1213_v15 = vsel %vm3462_vm5, %v1212_v0, %v1208_v13  ;;  %v1247_v22 = vsub.f32 1.0, %v1246_v3  ;;  %2427 = vpow2.f32 %v3446_v39  ;;  %v1234_v26 = vadd.f32 %v2420_v59, %v1233_v16 }
 0x241   : > { %1824 = vst [vmem:[%s2653_s5 + $0xc0] sm:$0xff] %v1213_v15  ;;  %v1254_v27 = vand.u32 2147483647, %v3449_v29  ;;  %v1256_v21 = vand.u32 2147483648, %v3449_v29  ;;  %v1261_v23 = vmul.f32 %v2426_v17, %v3466_v32  ;;  %v1223_v28 = vsel %vm1222_vm1, %v2418_v52, %v1219_v19 }
 0x242   : > { %v1248_v30 = vmul.f32 %v2424_v1, %v1247_v22  ;;  %vm1251_vm3 = vweird.f32 %v2424_v1  ;;  %2429 = vrcp.f32 %v3501_v18  ;;  %v1228_v33 = vsel %vm3480_vm10, %v1227_v6, %v1223_v28 }
 0x243   : > { %v1238_v34 = vsel %vm1237_vm2, %v2420_v59, %v1234_v26  ;;  %vm1250_vm0 = vweird.f32 %v3449_v29  ;;  %v1262_v11 = vsub.f32 1.0, %v1261_v23  ;;  %1825 = vst [vmem:[%s2653_s5 + $0xc8] sm:$0xff] %v1228_v33  ;;  %v1271_v38 = vand.u32 2147483648, %v3466_v32 }
 0x244   : > { %v1243_v37 = vsel %vm3492_vm13, %v1242_v20, %v1238_v34  ;;  %v1249_v31 = vadd.f32 %v2424_v1, %v1248_v30  ;;  %2431 = vrcp.f32 %v3503_v24  ;;  %vm1252_vm4 = vmor %vm1250_vm0, %vm1251_vm3  ;;  %v1257_v35 = vor.u32 1.1754944e-38, %v1256_v21 }
 0x245   : > { %1826 = vst [vmem:[%s2653_s5 + $0xd0] sm:$0xff] %v1243_v37  ;;  %v1263_v39 = vmul.f32 %v2426_v17, %v1262_v11  ;;  %vm1266_vm5 = vweird.f32 %v2426_v17  ;;  %v1269_v41 = vand.u32 2147483647, %v3466_v32  ;;  %vm1255_vm6 = vcmp.eq.f32.partialorder %v1254_v27, 8.507059e+37 }
 0x246   : > { %v2428_v42 = vpop.eup %2427  ;;  %v1253_v29 = vsel %vm1252_vm4, %v2424_v1, %v1249_v31  ;;  %vm1265_vm7 = vweird.f32 %v3466_v32  ;;  %v1272_v45 = vor.u32 1.1754944e-38, %v1271_v38  ;;  %v1286_v54 = vand.u32 2147483648, %v3501_v18 }
 0x247   : > { %v1258_v36 = vsel %vm1255_vm6, %v1257_v35, %v1253_v29  ;;  %v1264_v40 = vadd.f32 %v2426_v17, %v1263_v39  ;;  %v807_v43 = vadd.f32 1.0, %v2428_v42  ;;  %vm1267_vm8 = vmor %vm1265_vm7, %vm1266_vm5  ;;  %vm1270_vm9 = vcmp.eq.f32.partialorder %v1269_v41, 8.507059e+37 }
 0x248   : > { %v2430_v44 = vpop.eup %2429  ;;  %1827 = vst [vmem:[%s2653_s5 + $0xd8] sm:$0xff] %v1258_v36  ;;  %v1284_v60 = vand.u32 2147483647, %v3501_v18  ;;  %vm1280_vm11 = vweird.f32 %v3501_v18  ;;  %v1301_v56 = vand.u32 2147483648, %v3503_v24  ;;  %v1299_v0 = vand.u32 2147483647, %v3503_v24 }
 0x249   : > { %v1268_v47 = vsel %vm1267_vm8, %v2426_v17, %v1264_v40  ;;  %v1276_v48 = vmul.f32 %v2430_v44, %v3501_v18  ;;  %2433 = vrcp.f32 %v807_v43  ;;  %vm1281_vm10 = vweird.f32 %v2430_v44 }
 0x24a   : > { %v2432_v50 = vpop.eup %2431  ;;  %v1273_v53 = vsel %vm1270_vm9, %v1272_v45, %v1268_v47  ;;  %vm1282_vm13 = vmor %vm1280_vm11, %vm1281_vm10  ;;  %v1287_v58 = vor.u32 1.1754944e-38, %v1286_v54  ;;  %vm1285_vm14 = vcmp.eq.f32.partialorder %v1284_v60, 8.507059e+37  ;;  %vm1295_vm15 = vweird.f32 %v3503_v24 }
 0x24b   : > { %1828 = vst [vmem:[%s2653_s5 + $0xe0] sm:$0xff] %v1273_v53  ;;  %v1277_v55 = vsub.f32 1.0, %v1276_v48  ;;  %v1291_v51 = vmul.f32 %v2432_v50, %v3503_v24  ;;  %vm1296_vm12 = vweird.f32 %v2432_v50  ;;  %v1302_v63 = vor.u32 1.1754944e-38, %v1301_v56 }
 0x24c   : > { %vm1297_vm1 = vmor %vm1295_vm15, %vm1296_vm12  ;;  %vm1300_vm2 = vcmp.eq.f32.partialorder %v1299_v0, 8.507059e+37  ;;  %v1316_v46 = vand.u32 2147483648, %v807_v43  ;;  %v1314_v6 = vand.u32 2147483647, %v807_v43  ;;  %vm1310_vm0 = vweird.f32 %v807_v43 }
 0x24d   : > { %v1278_v32 = vmul.f32 %v2430_v44, %v1277_v55  ;;  %v1292_v25 = vsub.f32 1.0, %v1291_v51 }
 0x24e   : > { %v1317_v12 = vor.u32 1.1754944e-38, %v1316_v46  ;;  %vm1315_vm5 = vcmp.eq.f32.partialorder %v1314_v6, 8.507059e+37 }
 0x24f   : > { %v2434_v61 = vpop.eup %2433  ;;  %v1279_v52 = vadd.f32 %v2430_v44, %v1278_v32  ;;  %v1293_v62 = vmul.f32 %v2432_v50, %v1292_v25 }
 0x250   : > { %v1306_v59 = vmul.f32 %v2434_v61, %v807_v43  ;;  %vm1311_vm3 = vweird.f32 %v2434_v61 }
 0x251   : > { %v1283_v49 = vsel %vm1282_vm13, %v2430_v44, %v1279_v52  ;;  %v1294_v2 = vadd.f32 %v2432_v50, %v1293_v62  ;;  %vm1312_vm4 = vmor %vm1310_vm0, %vm1311_vm3 }
 0x252   : > { %v1288_v7 = vsel %vm1285_vm14, %v1287_v58, %v1283_v49  ;;  %v1307_v8 = vsub.f32 1.0, %v1306_v59 }
 0x253   : > { %1829 = vst [vmem:[%s2653_s5 + $0xe8] sm:$0xff] %v1288_v7  ;;  %v1298_v9 = vsel %vm1297_vm1, %v2432_v50, %v1294_v2 }
 0x254   : > { %v1303_v57 = vsel %vm1300_vm2, %v1302_v63, %v1298_v9  ;;  %v1308_v5 = vmul.f32 %v2434_v61, %v1307_v8 }
 0x255   : > { %1830 = vst [vmem:[%s2653_s5 + $0xf0] sm:$0xff] %v1303_v57 }
 0x256   : > { %v1309_v1 = vadd.f32 %v2434_v61, %v1308_v5 }
 0x258   : > { %v1313_v13 = vsel %vm1312_vm4, %v2434_v61, %v1309_v1 }
 0x259   : > { %v1318_v4 = vsel %vm1315_vm5, %v1317_v12, %v1313_v13 }
 0x25a   : > { %1831 = vst [vmem:[%s2653_s5 + $0xf8] sm:$0xff] %v1318_v4 }
 0x25b   : > { %2462 = shalt.err (!%p2459_p5)
}
 0x25c   : > { %s2515_s29 = smov 256   ;;  %s2516_s30 = smov 16  }
 0x25d   : > { %2121 = dma.vmem_to_hbm [thread:$0]  (%p2572_p4), %s1880_s15, 8192, %s1882_s16, %s1865_s18, %s2515_s29, %s2515_s29, %s2516_s30  }
 0x25e PF: > { %p2127_p6 = scmp.ge.s32.totalorder %s2513_s14, 2  ;;  %s1896_s3 = sand.u32 1, %s2493_s9  }
 0x25f   : > { %s1897_s4 = scalar_lea.sflag [#allocation3], %s1896_s3 }
 0x260   : > { %p2124_p7 = pnand %p2127_p6, %p2579_p8 }
 0x262   : > { %p2125_p9 = pneg %p2124_p7 }
 0x264   : > { %2488 = dma.done.wait (%p2125_p9), %s1897_s4, 8192  }
 0x265   : > { %2490 = vsyncadd (%p2125_p9), %s1897_s4, 4294959104  ;;  %s15_s14 = sadd.s32 1, %s2513_s14   ;;  %s3660_s9 = smov %s2497_s10 }
 0x266   : > { %p12_p10 = scmp.ge.s32.totalorder %s15_s14, 6   ;;  %s3661_s10 = smov %s2501_s11 }
 0x267   : > { %s3662_s11 = smov %s2585_s22  ;;  %s3663_s12 = smov %s2509_s13 }
 0x268   : > { %s3664_s13 = smov %s3666_s17  ;;  %14 = sbr.rel (!%p12_p10) target bundleno = 4 (0x4), region = 66 }
 0x26d   :  { %1903 = vsyncpa [#allocation3], 1 }
 0x26e   :  { %1905 = vsyncpa [#allocation3 + $0x1], 1 }

</bundles_post_ra>
